<compile_context>
chip_gen: v7x
topology: tpu7x:2x2x1
jax: 0.10.0
libtpu: 0.0.40
codegen_flags: <defaults>
</compile_context>

<pallas_src>
import functools

import jax
import jax.numpy as jnp
from jax.experimental import pallas as pl
from jax.experimental.pallas import tpu as pltpu

BN_EPS = 1e-5
LANES = 128
SUBLANES = 8
TARGET_PIXELS = 512                 # ~TH*Wo output pixels per grid step
VMEM_LIMIT = 32 * 1024 * 1024       # safe on v5e/v6e/v7x; blocks here are far smaller


# ----------------------------------------------------------------------------- helpers
def _pad_to(n, m):
    return -(-n // m) * m


def _row_tiles(Ho, Wo_pad):
    """Pick an output-row tile TH so TH*Wo_pad ~ TARGET_PIXELS."""
    th = max(1, min(Ho, -(-TARGET_PIXELS // Wo_pad)))
    nt = -(-Ho // th)
    return th, nt, th * nt


def _fold_and_phase(x, KH, KW, sh, sw, Ho_pad, Wo, Wo_pad):
    """JAX-side glue.  Returns `sh` row-phase arrays of shape (B, n_rows, W_in, C').

    For stride-2 ops the KW column taps (with the W stride) are folded into the channel
    axis and rows are split by parity, so the kernel only needs contiguous row loads.
    For stride-1 ops the input is passed through untouched (plus alignment zero-pad).
    """
    if sw > 1:
        x = jnp.concatenate(
            [x[:, :, kw: kw + sw * (Wo - 1) + 1: sw, :] for kw in range(KW)], axis=-1)
        kw_eff = 1
        w_need = Wo_pad
    else:
        kw_eff = KW
        w_need = Wo_pad + KW - 1
    n_rows = Ho_pad + (KH - 1) // sh
    pad_h = max(sh * n_rows - x.shape[1], 0)
    pad_w = max(w_need - x.shape[2], 0)
    if pad_h or pad_w:
        x = jnp.pad(x, ((0, 0), (0, pad_h), (0, pad_w), (0, 0)))
    phases = [x[:, p::sh][:, :n_rows] for p in range(sh)]
    return phases, kw_eff


# ----------------------------------------------------------------------------- kernels
def _make_conv_kernel(KH, KW_eff, sh, TH, Wk):
    """Fused conv + folded-BN affine + ReLU for one (batch, row-tile) grid step."""
    n_taps = KH * KW_eff

    def kernel(*refs):
        xs = refs[:sh]                                  # sh row-phase inputs
        w_ref, scale_ref, bias_ref, o_ref = refs[sh:sh + 4]
        r0 = pl.program_id(1) * TH
        taps = []
        for kh in range(KH):
            rows = xs[kh % sh][0, pl.ds(r0 + kh // sh, TH), :, :]   # (TH, W_in, C')
            for kw in range(KW_eff):
                taps.append(rows[:, kw:kw + Wk, :])
        patch = taps[0] if n_taps == 1 else jnp.concatenate(taps, axis=-1)
        patch = patch.reshape(TH * Wk, patch.shape[-1])             # (M, KH*KW*Cin)
        acc = jnp.dot(patch, w_ref[...], preferred_element_type=jnp.float32)
        y = acc * scale_ref[...] + bias_ref[...]                    # f32 epilogue
        y = jnp.maximum(y, 0.0)
        o_ref[0] = y.reshape(TH, Wk, y.shape[-1]).astype(o_ref.dtype)

    return kernel


def _make_pool_kernel(KH, KW, sh, sw, TH, Wk, C):
    """3x3/s2 max pool: in-kernel tap extraction + max reduction (no im2col)."""

    def kernel(*refs):
        xs = refs[:sh]
        o_ref = refs[sh]
        r0 = pl.program_id(1) * TH
        out = None
        for kh in range(KH):
            rows = xs[kh % sh][0, pl.ds(r0 + kh // sh, TH), :, :]
            for kw in range(KW):
                if sw > 1:                      # W taps folded into channels in JAX
                    v = rows[:, :, kw * C:(kw + 1) * C]
                else:
                    v = rows[:, kw:kw + Wk, :]
                out = v if out is None else jnp.maximum(out, v)
        o_ref[0] = out.astype(o_ref.dtype)

    return kernel


# ----------------------------------------------------------------------------- wrappers
def conv_bn_relu_apply(x, segs, params, *, stride=(1, 1), padding="valid"):
    """x: (B,H,W,Cp) NHWC bf16 with `segs` describing real channels -> (y, segs_out)."""
    w, scale, bias = params["w"], params["scale"], params["bias"]
    KH, KW, _, Cout = w.shape
    sh, sw = stride
    B, H, W, Cp_in = x.shape

    if padding == "same":                       # only stride-1, odd kernels here
        ph, pw = (KH - 1) // 2, (KW - 1) // 2
        x = jnp.pad(x, ((0, 0), (ph, ph), (pw, pw), (0, 0)))
        H, W = H + 2 * ph, W + 2 * pw
    Ho = (H - KH) // sh + 1
    Wo = (W - KW) // sw + 1
    Wo_pad = _pad_to(Wo, SUBLANES)
    TH, nt, Ho_pad = _row_tiles(Ho, Wo_pad)
    Cout_p = _pad_to(Cout, LANES)

    # Scatter the real input channels into the padded/segmented layout, pad Cout to a
    # lane-dense multiple of 128, fold all taps into the contraction, cast to bf16.
    wp = jnp.zeros((KH, KW, Cp_in, Cout_p), jnp.float32)
    cur = 0
    for off, ln in segs:
        wp = wp.at[:, :, off:off + ln, :Cout].set(w[:, :, cur:cur + ln, :])
        cur += ln
    w2 = wp.reshape(KH * KW * Cp_in, Cout_p).astype(jnp.bfloat16)
    scale2 = jnp.zeros((1, Cout_p), jnp.float32).at[:, :Cout].set(scale[None, :])
    bias2 = jnp.zeros((1, Cout_p), jnp.float32).at[:, :Cout].set(bias[None, :])

    phases, kw_eff = _fold_and_phase(x, KH, KW, sh, sw, Ho_pad, Wo, Wo_pad)
    n_rows, W_in, Cx = phases[0].shape[1:]

    kernel = _make_conv_kernel(KH, kw_eff, sh, TH, Wo_pad)
    in_specs = ([pl.BlockSpec((1, n_rows, W_in, Cx), lambda b, r: (b, 0, 0, 0))] * sh
                + [pl.BlockSpec((KH * KW * Cp_in, Cout_p), lambda b, r: (0, 0)),
                   pl.BlockSpec((1, Cout_p), lambda b, r: (0, 0)),
                   pl.BlockSpec((1, Cout_p), lambda b, r: (0, 0))])
    out = pl.pallas_call(
        kernel,
        out_shape=jax.ShapeDtypeStruct((B, Ho_pad, Wo_pad, Cout_p), jnp.bfloat16),
        grid=(B, nt),
        in_specs=in_specs,
        out_specs=pl.BlockSpec((1, TH, Wo_pad, Cout_p), lambda b, r: (b, r, 0, 0)),
        compiler_params=pltpu.CompilerParams(
            dimension_semantics=("parallel", "parallel"),
            vmem_limit_bytes=VMEM_LIMIT),
    )(*phases, w2, scale2, bias2)
    return out[:, :Ho, :Wo, :], ((0, Cout),)


def maxpool_apply(x, segs, *, ksize=(3, 3), stride=(2, 2)):
    """nn.MaxPool2d(kernel=3, stride=2, no padding), NHWC / padded-channel layout."""
    KH, KW = ksize
    sh, sw = stride
    B, H, W, C = x.shape
    Ho = (H - KH) // sh + 1
    Wo = (W - KW) // sw + 1
    Wo_pad = _pad_to(Wo, SUBLANES)
    TH, nt, Ho_pad = _row_tiles(Ho, Wo_pad)

    phases, _ = _fold_and_phase(x, KH, KW, sh, sw, Ho_pad, Wo, Wo_pad)
    n_rows, W_in, Cx = phases[0].shape[1:]

    kernel = _make_pool_kernel(KH, KW, sh, sw, TH, Wo_pad, C)
    out = pl.pallas_call(
        kernel,
        out_shape=jax.ShapeDtypeStruct((B, Ho_pad, Wo_pad, C), x.dtype),
        grid=(B, nt),
        in_specs=[pl.BlockSpec((1, n_rows, W_in, Cx), lambda b, r: (b, 0, 0, 0))] * sh,
        out_specs=pl.BlockSpec((1, TH, Wo_pad, C), lambda b, r: (b, r, 0, 0)),
        compiler_params=pltpu.CompilerParams(
            dimension_semantics=("parallel", "parallel"),
            vmem_limit_bytes=VMEM_LIMIT),
    )(*phases)
    return out[:, :Ho, :Wo, :], segs


def concat_channels(parts):
    """Concatenate padded-channel NHWC tensors, tracking real-channel segments."""
    arrs, segs, off = [], [], 0
    for a, s in parts:
        arrs.append(a)
        segs.extend((off + o, l) for o, l in s)
        off += a.shape[-1]
    return jnp.concatenate(arrs, axis=-1), tuple(segs)


def gather_real_channels(x, segs):
    return jnp.concatenate([x[..., o:o + l] for o, l in segs], axis=-1)


# ----------------------------------------------------------------------------- params
def init_cbr(key, cin, cout, kh, kw):
    """Synthetic Conv2d+BatchNorm2d(+ReLU) params; BN (eval mode) folded into scale/bias."""
    k1, k2, k3, k4, k5, k6 = jax.random.split(key, 6)
    fan_in = kh * kw * cin
    w = jax.random.normal(k1, (kh, kw, cin, cout), jnp.float32) / jnp.sqrt(float(fan_in))
    b = 0.01 * jax.random.normal(k2, (cout,), jnp.float32)
    gamma = 1.0 + 0.1 * jax.random.normal(k3, (cout,), jnp.float32)
    beta = 0.1 * jax.random.normal(k4, (cout,), jnp.float32)
    mean = 0.1 * jax.random.normal(k5, (cout,), jnp.float32)
    var = jnp.abs(1.0 + 0.1 * jax.random.normal(k6, (cout,), jnp.float32))
    scale = gamma / jnp.sqrt(var + BN_EPS)
    bias = (b - mean) * scale + beta
    return {"w": w, "scale": scale, "bias": bias}


def init_params(key):
    keys = jax.random.split(key, 11)
    return {
        "c1a": init_cbr(keys[0], 3, 32, 3, 3),     # conv1[0]: 3x3 s2 valid
        "c1b": init_cbr(keys[1], 32, 32, 3, 3),    # conv1[1]: 3x3 valid
        "c1c": init_cbr(keys[2], 32, 64, 3, 3),    # conv1[2]: 3x3 same
        "d1": init_cbr(keys[3], 64, 96, 3, 3),     # down1 conv: 3x3 s2 valid
        "c21a": init_cbr(keys[4], 160, 64, 1, 1),  # conv2_1: 1x1 same
        "c21b": init_cbr(keys[5], 64, 96, 3, 3),   # conv2_1: 3x3 valid
        "c22a": init_cbr(keys[6], 160, 64, 1, 1),  # conv2_2: 1x1 same
        "c22b": init_cbr(keys[7], 64, 64, 7, 1),   # conv2_2: 7x1 same
        "c22c": init_cbr(keys[8], 64, 64, 1, 7),   # conv2_2: 1x7 same
        "c22d": init_cbr(keys[9], 64, 96, 3, 3),   # conv2_2: 3x3 valid
        "d2": init_cbr(keys[10], 192, 192, 3, 3),  # down2 conv: 3x3 s2 valid
    }


# ----------------------------------------------------------------------------- forward
def stem_v2_forward(x_nchw, params):
    # NCHW (PyTorch) -> NHWC, bf16 activations for the MXU (f32 accum inside kernels).
    x = jnp.transpose(x_nchw, (0, 2, 3, 1)).astype(jnp.bfloat16)
    segs = ((0, x.shape[-1]),)

    # conv1
    x, segs = conv_bn_relu_apply(x, segs, params["c1a"], stride=(2, 2), padding="valid")
    x, segs = conv_bn_relu_apply(x, segs, params["c1b"], stride=(1, 1), padding="valid")
    x, segs = conv_bn_relu_apply(x, segs, params["c1c"], stride=(1, 1), padding="same")

    # down1: [maxpool, conv] concatenated on channels (64 + 96 = 160 real channels)
    a, sa = maxpool_apply(x, segs)
    b, sb = conv_bn_relu_apply(x, segs, params["d1"], stride=(2, 2), padding="valid")
    x, segs = concat_channels([(a, sa), (b, sb)])

    # conv2_1 / conv2_2 branches (96 + 96 = 192 real channels)
    y1, s1 = conv_bn_relu_apply(x, segs, params["c21a"], padding="same")
    y1, s1 = conv_bn_relu_apply(y1, s1, params["c21b"], padding="valid")

    y2, s2 = conv_bn_relu_apply(x, segs, params["c22a"], padding="same")
    y2, s2 = conv_bn_relu_apply(y2, s2, params["c22b"], padding="same")   # 7x1
    y2, s2 = conv_bn_relu_apply(y2, s2, params["c22c"], padding="same")   # 1x7
    y2, s2 = conv_bn_relu_apply(y2, s2, params["c22d"], padding="valid")
    x, segs = concat_channels([(y1, s1), (y2, s2)])

    # down2: [maxpool, conv] concatenated on channels (192 + 192 = 384 real channels)
    a, sa = maxpool_apply(x, segs)
    b, sb = conv_bn_relu_apply(x, segs, params["d2"], stride=(2, 2), padding="valid")
    x, segs = concat_channels([(a, sa), (b, sb)])

    # TODO(synk): branch concats / boundary transposes are XLA copies; they could be
    # fused by writing into disjoint channel ranges of one output via out_specs offsets.
    x = gather_real_channels(x, segs)
    return jnp.transpose(x, (0, 3, 1, 2)).astype(jnp.float32)


# TODO(synk): BatchNorm2d uses eval-mode (running-stat) semantics folded into the conv;
# training-mode batch-statistics normalization is not reproduced.

if __name__ == "__main__":
    key = jax.random.PRNGKey(0)
    pkey, xkey = jax.random.split(key)
    params = init_params(pkey)

    # Smallest comfortable spatial size that survives all stride-2 stages: 35x35.
    x = jax.random.normal(xkey, (2, 3, 35, 35), jnp.float32)   # NCHW like the nn.Module

    fwd = jax.jit(functools.partial(stem_v2_forward, params=params))
    out = fwd(x)
    out = jax.block_until_ready(out)

    assert out.shape == (2, 384, 2, 2), out.shape
    assert jnp.all(jnp.isfinite(out))
    print("KERNEL_OK")
</pallas_src>

<mosaic_0001>
module attributes {stable_mosaic.version = 11 : i64} {
  func.func @kernel(%arg0: i32, %arg1: i32, %arg2: memref<1x18x24x9xbf16, #tpu.memory_space<vmem>>, %arg3: memref<1x18x24x9xbf16, #tpu.memory_space<vmem>>, %arg4: memref<27x128xbf16, #tpu.memory_space<vmem>>, %arg5: memref<1x128xf32, #tpu.memory_space<vmem>>, %arg6: memref<1x128xf32, #tpu.memory_space<vmem>>, %arg7: memref<1x17x24x128xbf16, #tpu.memory_space<vmem>>) attributes {dimension_semantics = [#tpu.dimension_semantics<parallel>, #tpu.dimension_semantics<parallel>], iteration_bounds = array<i64: 2, 1>, scalar_prefetch = 0 : i64, scratch_operands = 0 : i64, tpu.core_type = #tpu.core_type<tc>, window_params = [{transform_indices = @transform_0, window_bounds = array<i64: 1, 18, 24, 9>}, {transform_indices = @transform_1, window_bounds = array<i64: 1, 18, 24, 9>}, {pipeline_mode = #tpu.pipeline_mode<synchronous>, transform_indices = @transform_2, window_bounds = array<i64: 27, 128>}, {pipeline_mode = #tpu.pipeline_mode<synchronous>, transform_indices = @transform_3, window_bounds = array<i64: 1, 128>}, {pipeline_mode = #tpu.pipeline_mode<synchronous>, transform_indices = @transform_4, window_bounds = array<i64: 1, 128>}, {transform_indices = @transform_5, window_bounds = array<i64: 1, 17, 24, 128>}]} {
    %c17_i32 = arith.constant 17 : i32
    %0 = arith.muli %arg1, %c17_i32 : i32
    %c0_i32 = arith.constant 0 : i32
    %1 = arith.addi %0, %c0_i32 : i32
    %c0 = arith.constant 0 : index
    %2 = arith.index_cast %1 : i32 to index
    %c0_0 = arith.constant 0 : index
    %c0_1 = arith.constant 0 : index
    %3 = vector.load %arg2[%c0, %2, %c0_0, %c0_1] : memref<1x18x24x9xbf16, #tpu.memory_space<vmem>>, vector<1x17x24x9xbf16>
    %4 = vector.shape_cast %3 : vector<1x17x24x9xbf16> to vector<17x24x9xbf16>
    %c0_i32_2 = arith.constant 0 : i32
    %5 = arith.addi %0, %c0_i32_2 : i32
    %c0_3 = arith.constant 0 : index
    %6 = arith.index_cast %5 : i32 to index
    %c0_4 = arith.constant 0 : index
    %c0_5 = arith.constant 0 : index
    %7 = vector.load %arg3[%c0_3, %6, %c0_4, %c0_5] : memref<1x18x24x9xbf16, #tpu.memory_space<vmem>>, vector<1x17x24x9xbf16>
    %8 = vector.shape_cast %7 : vector<1x17x24x9xbf16> to vector<17x24x9xbf16>
    %c1_i32 = arith.constant 1 : i32
    %9 = arith.addi %0, %c1_i32 : i32
    %c0_6 = arith.constant 0 : index
    %10 = arith.index_cast %9 : i32 to index
    %c0_7 = arith.constant 0 : index
    %c0_8 = arith.constant 0 : index
    %11 = vector.load %arg2[%c0_6, %10, %c0_7, %c0_8] : memref<1x18x24x9xbf16, #tpu.memory_space<vmem>>, vector<1x17x24x9xbf16>
    %12 = vector.shape_cast %11 : vector<1x17x24x9xbf16> to vector<17x24x9xbf16>
    %13 = tpu.concatenate %4, %8, %12 in 2 : vector<17x24x9xbf16>, vector<17x24x9xbf16>, vector<17x24x9xbf16> -> vector<17x24x27xbf16>
    %14 = vector.shape_cast %13 : vector<17x24x27xbf16> to vector<408x27xbf16>
    %c0_9 = arith.constant 0 : index
    %c0_10 = arith.constant 0 : index
    %15 = vector.load %arg4[%c0_9, %c0_10] : memref<27x128xbf16, #tpu.memory_space<vmem>>, vector<27x128xbf16>
    %cst = arith.constant dense<0.000000e+00> : vector<408x128xf32>
    %16 = tpu.matmul %14, %15, %cst {dimension_numbers = #tpu.dot_dimension_numbers<[1], [0], [0], [1], [0, 0, 1, 1], [], []>} : vector<408x27xbf16>, vector<27x128xbf16>, vector<408x128xf32> -> vector<408x128xf32>
    %c0_11 = arith.constant 0 : index
    %c0_12 = arith.constant 0 : index
    %17 = vector.load %arg5[%c0_11, %c0_12] : memref<1x128xf32, #tpu.memory_space<vmem>>, vector<1x128xf32>
    %18 = vector.broadcast %17 : vector<1x128xf32> to vector<408x128xf32>
    %19 = arith.mulf %16, %18 : vector<408x128xf32>
    %c0_13 = arith.constant 0 : index
    %c0_14 = arith.constant 0 : index
    %20 = vector.load %arg6[%c0_13, %c0_14] : memref<1x128xf32, #tpu.memory_space<vmem>>, vector<1x128xf32>
    %21 = vector.broadcast %20 : vector<1x128xf32> to vector<408x128xf32>
    %22 = arith.addf %19, %21 : vector<408x128xf32>
    %cst_15 = arith.constant 0.000000e+00 : f32
    %23 = vector.broadcast %cst_15 : f32 to vector<408x128xf32>
    %24 = arith.maximumf %22, %23 : vector<408x128xf32>
    %25 = vector.shape_cast %24 : vector<408x128xf32> to vector<17x24x128xf32>
    %26 = arith.truncf %25 : vector<17x24x128xf32> to vector<17x24x128xbf16>
    %c0_16 = arith.constant 0 : index
    %c0_17 = arith.constant 0 : index
    %c0_18 = arith.constant 0 : index
    %c0_19 = arith.constant 0 : index
    %27 = vector.load %arg7[%c0_16, %c0_17, %c0_18, %c0_19] : memref<1x17x24x128xbf16, #tpu.memory_space<vmem>>, vector<1x17x24x128xbf16>
    %28 = vector.shape_cast %27 : vector<1x17x24x128xbf16> to vector<17x24x128xbf16>
    %29 = vector.shape_cast %26 : vector<17x24x128xbf16> to vector<1x17x24x128xbf16>
    tpu.vector_store %arg7[%c0_16, %c0_17, %c0_18, %c0_19], %29 {strides = array<i32>} : memref<1x17x24x128xbf16, #tpu.memory_space<vmem>>, vector<1x17x24x128xbf16>,
    return
  }
  func.func @transform_0(%arg0: i32, %arg1: i32) -> (i32, i32, i32, i32) {
    %c0_i32 = arith.constant 0 : i32
    %c0_i32_0 = arith.constant 0 : i32
    %c0_i32_1 = arith.constant 0 : i32
    %c0_i32_2 = arith.constant 0 : i32
    return %arg0, %c0_i32, %c0_i32_0, %c0_i32_1 : i32, i32, i32, i32
  }
  func.func @transform_1(%arg0: i32, %arg1: i32) -> (i32, i32, i32, i32) {
    %c0_i32 = arith.constant 0 : i32
    %c0_i32_0 = arith.constant 0 : i32
    %c0_i32_1 = arith.constant 0 : i32
    %c0_i32_2 = arith.constant 0 : i32
    return %arg0, %c0_i32, %c0_i32_0, %c0_i32_1 : i32, i32, i32, i32
  }
  func.func @transform_2(%arg0: i32, %arg1: i32) -> (i32, i32) {
    %c0_i32 = arith.constant 0 : i32
    %c0_i32_0 = arith.constant 0 : i32
    %c0_i32_1 = arith.constant 0 : i32
    return %c0_i32, %c0_i32_0 : i32, i32
  }
  func.func @transform_3(%arg0: i32, %arg1: i32) -> (i32, i32) {
    %c0_i32 = arith.constant 0 : i32
    %c0_i32_0 = arith.constant 0 : i32
    %c0_i32_1 = arith.constant 0 : i32
    return %c0_i32, %c0_i32_0 : i32, i32
  }
  func.func @transform_4(%arg0: i32, %arg1: i32) -> (i32, i32) {
    %c0_i32 = arith.constant 0 : i32
    %c0_i32_0 = arith.constant 0 : i32
    %c0_i32_1 = arith.constant 0 : i32
    return %c0_i32, %c0_i32_0 : i32, i32
  }
  func.func @transform_5(%arg0: i32, %arg1: i32) -> (i32, i32, i32, i32) {
    %c0_i32 = arith.constant 0 : i32
    %c0_i32_0 = arith.constant 0 : i32
    %c0_i32_1 = arith.constant 0 : i32
    return %arg0, %arg1, %c0_i32, %c0_i32_0 : i32, i32, i32, i32
  }
}

module attributes {stable_mosaic.version = 11 : i64} {
  func.func @kernel(%arg0: i32, %arg1: i32, %arg2: memref<1x17x18x128xbf16, #tpu.memory_space<vmem>>, %arg3: memref<1152x128xbf16, #tpu.memory_space<vmem>>, %arg4: memref<1x128xf32, #tpu.memory_space<vmem>>, %arg5: memref<1x128xf32, #tpu.memory_space<vmem>>, %arg6: memref<1x15x16x128xbf16, #tpu.memory_space<vmem>>) attributes {dimension_semantics = [#tpu.dimension_semantics<parallel>, #tpu.dimension_semantics<parallel>], iteration_bounds = array<i64: 2, 1>, scalar_prefetch = 0 : i64, scratch_operands = 0 : i64, tpu.core_type = #tpu.core_type<tc>, window_params = [{transform_indices = @transform_0, window_bounds = array<i64: 1, 17, 18, 128>}, {pipeline_mode = #tpu.pipeline_mode<synchronous>, transform_indices = @transform_1, window_bounds = array<i64: 1152, 128>}, {pipeline_mode = #tpu.pipeline_mode<synchronous>, transform_indices = @transform_2, window_bounds = array<i64: 1, 128>}, {pipeline_mode = #tpu.pipeline_mode<synchronous>, transform_indices = @transform_3, window_bounds = array<i64: 1, 128>}, {transform_indices = @transform_4, window_bounds = array<i64: 1, 15, 16, 128>}]} {
    %c15_i32 = arith.constant 15 : i32
    %0 = arith.muli %arg1, %c15_i32 : i32
    %c0_i32 = arith.constant 0 : i32
    %1 = arith.addi %0, %c0_i32 : i32
    %c0 = arith.constant 0 : index
    %2 = arith.index_cast %1 : i32 to index
    %c0_0 = arith.constant 0 : index
    %c0_1 = arith.constant 0 : index
    %3 = vector.load %arg2[%c0, %2, %c0_0, %c0_1] : memref<1x17x18x128xbf16, #tpu.memory_space<vmem>>, vector<1x15x18x128xbf16>
    %4 = vector.shape_cast %3 : vector<1x15x18x128xbf16> to vector<15x18x128xbf16>
    %5 = vector.extract_strided_slice %4 {offsets = [0, 0, 0], sizes = [15, 16, 128], strides = [1, 1, 1]} : vector<15x18x128xbf16> to vector<15x16x128xbf16>
    %6 = vector.extract_strided_slice %4 {offsets = [0, 1, 0], sizes = [15, 16, 128], strides = [1, 1, 1]} : vector<15x18x128xbf16> to vector<15x16x128xbf16>
    %7 = vector.extract_strided_slice %4 {offsets = [0, 2, 0], sizes = [15, 16, 128], strides = [1, 1, 1]} : vector<15x18x128xbf16> to vector<15x16x128xbf16>
    %c1_i32 = arith.constant 1 : i32
    %8 = arith.addi %0, %c1_i32 : i32
    %c0_2 = arith.constant 0 : index
    %9 = arith.index_cast %8 : i32 to index
    %c0_3 = arith.constant 0 : index
    %c0_4 = arith.constant 0 : index
    %10 = vector.load %arg2[%c0_2, %9, %c0_3, %c0_4] : memref<1x17x18x128xbf16, #tpu.memory_space<vmem>>, vector<1x15x18x128xbf16>
    %11 = vector.shape_cast %10 : vector<1x15x18x128xbf16> to vector<15x18x128xbf16>
    %12 = vector.extract_strided_slice %11 {offsets = [0, 0, 0], sizes = [15, 16, 128], strides = [1, 1, 1]} : vector<15x18x128xbf16> to vector<15x16x128xbf16>
    %13 = vector.extract_strided_slice %11 {offsets = [0, 1, 0], sizes = [15, 16, 128], strides = [1, 1, 1]} : vector<15x18x128xbf16> to vector<15x16x128xbf16>
    %14 = vector.extract_strided_slice %11 {offsets = [0, 2, 0], sizes = [15, 16, 128], strides = [1, 1, 1]} : vector<15x18x128xbf16> to vector<15x16x128xbf16>
    %c2_i32 = arith.constant 2 : i32
    %15 = arith.addi %0, %c2_i32 : i32
    %c0_5 = arith.constant 0 : index
    %16 = arith.index_cast %15 : i32 to index
    %c0_6 = arith.constant 0 : index
    %c0_7 = arith.constant 0 : index
    %17 = vector.load %arg2[%c0_5, %16, %c0_6, %c0_7] : memref<1x17x18x128xbf16, #tpu.memory_space<vmem>>, vector<1x15x18x128xbf16>
    %18 = vector.shape_cast %17 : vector<1x15x18x128xbf16> to vector<15x18x128xbf16>
    %19 = vector.extract_strided_slice %18 {offsets = [0, 0, 0], sizes = [15, 16, 128], strides = [1, 1, 1]} : vector<15x18x128xbf16> to vector<15x16x128xbf16>
    %20 = vector.extract_strided_slice %18 {offsets = [0, 1, 0], sizes = [15, 16, 128], strides = [1, 1, 1]} : vector<15x18x128xbf16> to vector<15x16x128xbf16>
    %21 = vector.extract_strided_slice %18 {offsets = [0, 2, 0], sizes = [15, 16, 128], strides = [1, 1, 1]} : vector<15x18x128xbf16> to vector<15x16x128xbf16>
    %22 = tpu.concatenate %5, %6, %7, %12, %13, %14, %19, %20, %21 in 2 : vector<15x16x128xbf16>, vector<15x16x128xbf16>, vector<15x16x128xbf16>, vector<15x16x128xbf16>, vector<15x16x128xbf16>, vector<15x16x128xbf16>, vector<15x16x128xbf16>, vector<15x16x128xbf16>, vector<15x16x128xbf16> -> vector<15x16x1152xbf16>
    %23 = vector.shape_cast %22 : vector<15x16x1152xbf16> to vector<240x1152xbf16>
    %c0_8 = arith.constant 0 : index
    %c0_9 = arith.constant 0 : index
    %24 = vector.load %arg3[%c0_8, %c0_9] : memref<1152x128xbf16, #tpu.memory_space<vmem>>, vector<1152x128xbf16>
    %cst = arith.constant dense<0.000000e+00> : vector<240x128xf32>
    %25 = tpu.matmul %23, %24, %cst {dimension_numbers = #tpu.dot_dimension_numbers<[1], [0], [0], [1], [0, 0, 1, 1], [], []>} : vector<240x1152xbf16>, vector<1152x128xbf16>, vector<240x128xf32> -> vector<240x128xf32>
    %c0_10 = arith.constant 0 : index
    %c0_11 = arith.constant 0 : index
    %26 = vector.load %arg4[%c0_10, %c0_11] : memref<1x128xf32, #tpu.memory_space<vmem>>, vector<1x128xf32>
    %27 = vector.broadcast %26 : vector<1x128xf32> to vector<240x128xf32>
    %28 = arith.mulf %25, %27 : vector<240x128xf32>
    %c0_12 = arith.constant 0 : index
    %c0_13 = arith.constant 0 : index
    %29 = vector.load %arg5[%c0_12, %c0_13] : memref<1x128xf32, #tpu.memory_space<vmem>>, vector<1x128xf32>
    %30 = vector.broadcast %29 : vector<1x128xf32> to vector<240x128xf32>
    %31 = arith.addf %28, %30 : vector<240x128xf32>
    %cst_14 = arith.constant 0.000000e+00 : f32
    %32 = vector.broadcast %cst_14 : f32 to vector<240x128xf32>
    %33 = arith.maximumf %31, %32 : vector<240x128xf32>
    %34 = vector.shape_cast %33 : vector<240x128xf32> to vector<15x16x128xf32>
    %35 = arith.truncf %34 : vector<15x16x128xf32> to vector<15x16x128xbf16>
    %c0_15 = arith.constant 0 : index
    %c0_16 = arith.constant 0 : index
    %c0_17 = arith.constant 0 : index
    %c0_18 = arith.constant 0 : index
    %36 = vector.load %arg6[%c0_15, %c0_16, %c0_17, %c0_18] : memref<1x15x16x128xbf16, #tpu.memory_space<vmem>>, vector<1x15x16x128xbf16>
    %37 = vector.shape_cast %36 : vector<1x15x16x128xbf16> to vector<15x16x128xbf16>
    %38 = vector.shape_cast %35 : vector<15x16x128xbf16> to vector<1x15x16x128xbf16>
    tpu.vector_store %arg6[%c0_15, %c0_16, %c0_17, %c0_18], %38 {strides = array<i32>} : memref<1x15x16x128xbf16, #tpu.memory_space<vmem>>, vector<1x15x16x128xbf16>,
    return
  }
  func.func @transform_0(%arg0: i32, %arg1: i32) -> (i32, i32, i32, i32) {
    %c0_i32 = arith.constant 0 : i32
    %c0_i32_0 = arith.constant 0 : i32
    %c0_i32_1 = arith.constant 0 : i32
    %c0_i32_2 = arith.constant 0 : i32
    return %arg0, %c0_i32, %c0_i32_0, %c0_i32_1 : i32, i32, i32, i32
  }
  func.func @transform_1(%arg0: i32, %arg1: i32) -> (i32, i32) {
    %c0_i32 = arith.constant 0 : i32
    %c0_i32_0 = arith.constant 0 : i32
    %c0_i32_1 = arith.constant 0 : i32
    return %c0_i32, %c0_i32_0 : i32, i32
  }
  func.func @transform_2(%arg0: i32, %arg1: i32) -> (i32, i32) {
    %c0_i32 = arith.constant 0 : i32
    %c0_i32_0 = arith.constant 0 : i32
    %c0_i32_1 = arith.constant 0 : i32
    return %c0_i32, %c0_i32_0 : i32, i32
  }
  func.func @transform_3(%arg0: i32, %arg1: i32) -> (i32, i32) {
    %c0_i32 = arith.constant 0 : i32
    %c0_i32_0 = arith.constant 0 : i32
    %c0_i32_1 = arith.constant 0 : i32
    return %c0_i32, %c0_i32_0 : i32, i32
  }
  func.func @transform_4(%arg0: i32, %arg1: i32) -> (i32, i32, i32, i32) {
    %c0_i32 = arith.constant 0 : i32
    %c0_i32_0 = arith.constant 0 : i32
    %c0_i32_1 = arith.constant 0 : i32
    return %arg0, %arg1, %c0_i32, %c0_i32_0 : i32, i32, i32, i32
  }
}

module attributes {stable_mosaic.version = 11 : i64} {
  func.func @kernel(%arg0: i32, %arg1: i32, %arg2: memref<1x8x8x384xbf16, #tpu.memory_space<vmem>>, %arg3: memref<1x8x8x384xbf16, #tpu.memory_space<vmem>>, %arg4: memref<1152x128xbf16, #tpu.memory_space<vmem>>, %arg5: memref<1x128xf32, #tpu.memory_space<vmem>>, %arg6: memref<1x128xf32, #tpu.memory_space<vmem>>, %arg7: memref<1x7x8x128xbf16, #tpu.memory_space<vmem>>) attributes {dimension_semantics = [#tpu.dimension_semantics<parallel>, #tpu.dimension_semantics<parallel>], iteration_bounds = array<i64: 2, 1>, scalar_prefetch = 0 : i64, scratch_operands = 0 : i64, tpu.core_type = #tpu.core_type<tc>, window_params = [{transform_indices = @transform_0, window_bounds = array<i64: 1, 8, 8, 384>}, {transform_indices = @transform_1, window_bounds = array<i64: 1, 8, 8, 384>}, {pipeline_mode = #tpu.pipeline_mode<synchronous>, transform_indices = @transform_2, window_bounds = array<i64: 1152, 128>}, {pipeline_mode = #tpu.pipeline_mode<synchronous>, transform_indices = @transform_3, window_bounds = array<i64: 1, 128>}, {pipeline_mode = #tpu.pipeline_mode<synchronous>, transform_indices = @transform_4, window_bounds = array<i64: 1, 128>}, {transform_indices = @transform_5, window_bounds = array<i64: 1, 7, 8, 128>}]} {
    %c7_i32 = arith.constant 7 : i32
    %0 = arith.muli %arg1, %c7_i32 : i32
    %c0_i32 = arith.constant 0 : i32
    %1 = arith.addi %0, %c0_i32 : i32
    %c0 = arith.constant 0 : index
    %2 = arith.index_cast %1 : i32 to index
    %c0_0 = arith.constant 0 : index
    %c0_1 = arith.constant 0 : index
    %3 = vector.load %arg2[%c0, %2, %c0_0, %c0_1] : memref<1x8x8x384xbf16, #tpu.memory_space<vmem>>, vector<1x7x8x384xbf16>
    %4 = vector.shape_cast %3 : vector<1x7x8x384xbf16> to vector<7x8x384xbf16>
    %c0_i32_2 = arith.constant 0 : i32
    %5 = arith.addi %0, %c0_i32_2 : i32
    %c0_3 = arith.constant 0 : index
    %6 = arith.index_cast %5 : i32 to index
    %c0_4 = arith.constant 0 : index
    %c0_5 = arith.constant 0 : index
    %7 = vector.load %arg3[%c0_3, %6, %c0_4, %c0_5] : memref<1x8x8x384xbf16, #tpu.memory_space<vmem>>, vector<1x7x8x384xbf16>
    %8 = vector.shape_cast %7 : vector<1x7x8x384xbf16> to vector<7x8x384xbf16>
    %c1_i32 = arith.constant 1 : i32
    %9 = arith.addi %0, %c1_i32 : i32
    %c0_6 = arith.constant 0 : index
    %10 = arith.index_cast %9 : i32 to index
    %c0_7 = arith.constant 0 : index
    %c0_8 = arith.constant 0 : index
    %11 = vector.load %arg2[%c0_6, %10, %c0_7, %c0_8] : memref<1x8x8x384xbf16, #tpu.memory_space<vmem>>, vector<1x7x8x384xbf16>
    %12 = vector.shape_cast %11 : vector<1x7x8x384xbf16> to vector<7x8x384xbf16>
    %13 = tpu.concatenate %4, %8, %12 in 2 : vector<7x8x384xbf16>, vector<7x8x384xbf16>, vector<7x8x384xbf16> -> vector<7x8x1152xbf16>
    %14 = vector.shape_cast %13 : vector<7x8x1152xbf16> to vector<56x1152xbf16>
    %c0_9 = arith.constant 0 : index
    %c0_10 = arith.constant 0 : index
    %15 = vector.load %arg4[%c0_9, %c0_10] : memref<1152x128xbf16, #tpu.memory_space<vmem>>, vector<1152x128xbf16>
    %cst = arith.constant dense<0.000000e+00> : vector<56x128xf32>
    %16 = tpu.matmul %14, %15, %cst {dimension_numbers = #tpu.dot_dimension_numbers<[1], [0], [0], [1], [0, 0, 1, 1], [], []>} : vector<56x1152xbf16>, vector<1152x128xbf16>, vector<56x128xf32> -> vector<56x128xf32>
    %c0_11 = arith.constant 0 : index
    %c0_12 = arith.constant 0 : index
    %17 = vector.load %arg5[%c0_11, %c0_12] : memref<1x128xf32, #tpu.memory_space<vmem>>, vector<1x128xf32>
    %18 = vector.broadcast %17 : vector<1x128xf32> to vector<56x128xf32>
    %19 = arith.mulf %16, %18 : vector<56x128xf32>
    %c0_13 = arith.constant 0 : index
    %c0_14 = arith.constant 0 : index
    %20 = vector.load %arg6[%c0_13, %c0_14] : memref<1x128xf32, #tpu.memory_space<vmem>>, vector<1x128xf32>
    %21 = vector.broadcast %20 : vector<1x128xf32> to vector<56x128xf32>
    %22 = arith.addf %19, %21 : vector<56x128xf32>
    %cst_15 = arith.constant 0.000000e+00 : f32
    %23 = vector.broadcast %cst_15 : f32 to vector<56x128xf32>
    %24 = arith.maximumf %22, %23 : vector<56x128xf32>
    %25 = vector.shape_cast %24 : vector<56x128xf32> to vector<7x8x128xf32>
    %26 = arith.truncf %25 : vector<7x8x128xf32> to vector<7x8x128xbf16>
    %c0_16 = arith.constant 0 : index
    %c0_17 = arith.constant 0 : index
    %c0_18 = arith.constant 0 : index
    %c0_19 = arith.constant 0 : index
    %27 = vector.load %arg7[%c0_16, %c0_17, %c0_18, %c0_19] : memref<1x7x8x128xbf16, #tpu.memory_space<vmem>>, vector<1x7x8x128xbf16>
    %28 = vector.shape_cast %27 : vector<1x7x8x128xbf16> to vector<7x8x128xbf16>
    %29 = vector.shape_cast %26 : vector<7x8x128xbf16> to vector<1x7x8x128xbf16>
    tpu.vector_store %arg7[%c0_16, %c0_17, %c0_18, %c0_19], %29 {strides = array<i32>} : memref<1x7x8x128xbf16, #tpu.memory_space<vmem>>, vector<1x7x8x128xbf16>,
    return
  }
  func.func @transform_0(%arg0: i32, %arg1: i32) -> (i32, i32, i32, i32) {
    %c0_i32 = arith.constant 0 : i32
    %c0_i32_0 = arith.constant 0 : i32
    %c0_i32_1 = arith.constant 0 : i32
    %c0_i32_2 = arith.constant 0 : i32
    return %arg0, %c0_i32, %c0_i32_0, %c0_i32_1 : i32, i32, i32, i32
  }
  func.func @transform_1(%arg0: i32, %arg1: i32) -> (i32, i32, i32, i32) {
    %c0_i32 = arith.constant 0 : i32
    %c0_i32_0 = arith.constant 0 : i32
    %c0_i32_1 = arith.constant 0 : i32
    %c0_i32_2 = arith.constant 0 : i32
    return %arg0, %c0_i32, %c0_i32_0, %c0_i32_1 : i32, i32, i32, i32
  }
  func.func @transform_2(%arg0: i32, %arg1: i32) -> (i32, i32) {
    %c0_i32 = arith.constant 0 : i32
    %c0_i32_0 = arith.constant 0 : i32
    %c0_i32_1 = arith.constant 0 : i32
    return %c0_i32, %c0_i32_0 : i32, i32
  }
  func.func @transform_3(%arg0: i32, %arg1: i32) -> (i32, i32) {
    %c0_i32 = arith.constant 0 : i32
    %c0_i32_0 = arith.constant 0 : i32
    %c0_i32_1 = arith.constant 0 : i32
    return %c0_i32, %c0_i32_0 : i32, i32
  }
  func.func @transform_4(%arg0: i32, %arg1: i32) -> (i32, i32) {
    %c0_i32 = arith.constant 0 : i32
    %c0_i32_0 = arith.constant 0 : i32
    %c0_i32_1 = arith.constant 0 : i32
    return %c0_i32, %c0_i32_0 : i32, i32
  }
  func.func @transform_5(%arg0: i32, %arg1: i32) -> (i32, i32, i32, i32) {
    %c0_i32 = arith.constant 0 : i32
    %c0_i32_0 = arith.constant 0 : i32
    %c0_i32_1 = arith.constant 0 : i32
    return %arg0, %arg1, %c0_i32, %c0_i32_0 : i32, i32, i32, i32
  }
}

module attributes {stable_mosaic.version = 11 : i64} {
  func.func @kernel(%arg0: i32, %arg1: i32, %arg2: memref<1x8x8x384xbf16, #tpu.memory_space<vmem>>, %arg3: memref<1x8x8x384xbf16, #tpu.memory_space<vmem>>, %arg4: memref<1x7x8x128xbf16, #tpu.memory_space<vmem>>) attributes {dimension_semantics = [#tpu.dimension_semantics<parallel>, #tpu.dimension_semantics<parallel>], iteration_bounds = array<i64: 2, 1>, scalar_prefetch = 0 : i64, scratch_operands = 0 : i64, tpu.core_type = #tpu.core_type<tc>, window_params = [{transform_indices = @transform_0, window_bounds = array<i64: 1, 8, 8, 384>}, {transform_indices = @transform_1, window_bounds = array<i64: 1, 8, 8, 384>}, {transform_indices = @transform_2, window_bounds = array<i64: 1, 7, 8, 128>}]} {
    %c7_i32 = arith.constant 7 : i32
    %0 = arith.muli %arg1, %c7_i32 : i32
    %c0_i32 = arith.constant 0 : i32
    %1 = arith.addi %0, %c0_i32 : i32
    %c0 = arith.constant 0 : index
    %2 = arith.index_cast %1 : i32 to index
    %c0_0 = arith.constant 0 : index
    %c0_1 = arith.constant 0 : index
    %3 = vector.load %arg2[%c0, %2, %c0_0, %c0_1] : memref<1x8x8x384xbf16, #tpu.memory_space<vmem>>, vector<1x7x8x384xbf16>
    %4 = vector.shape_cast %3 : vector<1x7x8x384xbf16> to vector<7x8x384xbf16>
    %5 = vector.extract_strided_slice %4 {offsets = [0, 0, 0], sizes = [7, 8, 128], strides = [1, 1, 1]} : vector<7x8x384xbf16> to vector<7x8x128xbf16>
    %6 = vector.extract_strided_slice %4 {offsets = [0, 0, 128], sizes = [7, 8, 128], strides = [1, 1, 1]} : vector<7x8x384xbf16> to vector<7x8x128xbf16>
    %7 = arith.maximumf %5, %6 : vector<7x8x128xbf16>
    %8 = vector.extract_strided_slice %4 {offsets = [0, 0, 256], sizes = [7, 8, 128], strides = [1, 1, 1]} : vector<7x8x384xbf16> to vector<7x8x128xbf16>
    %9 = arith.maximumf %7, %8 : vector<7x8x128xbf16>
    %c0_i32_2 = arith.constant 0 : i32
    %10 = arith.addi %0, %c0_i32_2 : i32
    %c0_3 = arith.constant 0 : index
    %11 = arith.index_cast %10 : i32 to index
    %c0_4 = arith.constant 0 : index
    %c0_5 = arith.constant 0 : index
    %12 = vector.load %arg3[%c0_3, %11, %c0_4, %c0_5] : memref<1x8x8x384xbf16, #tpu.memory_space<vmem>>, vector<1x7x8x384xbf16>
    %13 = vector.shape_cast %12 : vector<1x7x8x384xbf16> to vector<7x8x384xbf16>
    %14 = vector.extract_strided_slice %13 {offsets = [0, 0, 0], sizes = [7, 8, 128], strides = [1, 1, 1]} : vector<7x8x384xbf16> to vector<7x8x128xbf16>
    %15 = arith.maximumf %9, %14 : vector<7x8x128xbf16>
    %16 = vector.extract_strided_slice %13 {offsets = [0, 0, 128], sizes = [7, 8, 128], strides = [1, 1, 1]} : vector<7x8x384xbf16> to vector<7x8x128xbf16>
    %17 = arith.maximumf %15, %16 : vector<7x8x128xbf16>
    %18 = vector.extract_strided_slice %13 {offsets = [0, 0, 256], sizes = [7, 8, 128], strides = [1, 1, 1]} : vector<7x8x384xbf16> to vector<7x8x128xbf16>
    %19 = arith.maximumf %17, %18 : vector<7x8x128xbf16>
    %c1_i32 = arith.constant 1 : i32
    %20 = arith.addi %0, %c1_i32 : i32
    %c0_6 = arith.constant 0 : index
    %21 = arith.index_cast %20 : i32 to index
    %c0_7 = arith.constant 0 : index
    %c0_8 = arith.constant 0 : index
    %22 = vector.load %arg2[%c0_6, %21, %c0_7, %c0_8] : memref<1x8x8x384xbf16, #tpu.memory_space<vmem>>, vector<1x7x8x384xbf16>
    %23 = vector.shape_cast %22 : vector<1x7x8x384xbf16> to vector<7x8x384xbf16>
    %24 = vector.extract_strided_slice %23 {offsets = [0, 0, 0], sizes = [7, 8, 128], strides = [1, 1, 1]} : vector<7x8x384xbf16> to vector<7x8x128xbf16>
    %25 = arith.maximumf %19, %24 : vector<7x8x128xbf16>
    %26 = vector.extract_strided_slice %23 {offsets = [0, 0, 128], sizes = [7, 8, 128], strides = [1, 1, 1]} : vector<7x8x384xbf16> to vector<7x8x128xbf16>
    %27 = arith.maximumf %25, %26 : vector<7x8x128xbf16>
    %28 = vector.extract_strided_slice %23 {offsets = [0, 0, 256], sizes = [7, 8, 128], strides = [1, 1, 1]} : vector<7x8x384xbf16> to vector<7x8x128xbf16>
    %29 = arith.maximumf %27, %28 : vector<7x8x128xbf16>
    %c0_9 = arith.constant 0 : index
    %c0_10 = arith.constant 0 : index
    %c0_11 = arith.constant 0 : index
    %c0_12 = arith.constant 0 : index
    %30 = vector.load %arg4[%c0_9, %c0_10, %c0_11, %c0_12] : memref<1x7x8x128xbf16, #tpu.memory_space<vmem>>, vector<1x7x8x128xbf16>
    %31 = vector.shape_cast %30 : vector<1x7x8x128xbf16> to vector<7x8x128xbf16>
    %32 = vector.shape_cast %29 : vector<7x8x128xbf16> to vector<1x7x8x128xbf16>
    tpu.vector_store %arg4[%c0_9, %c0_10, %c0_11, %c0_12], %32 {strides = array<i32>} : memref<1x7x8x128xbf16, #tpu.memory_space<vmem>>, vector<1x7x8x128xbf16>,
    return
  }
  func.func @transform_0(%arg0: i32, %arg1: i32) -> (i32, i32, i32, i32) {
    %c0_i32 = arith.constant 0 : i32
    %c0_i32_0 = arith.constant 0 : i32
    %c0_i32_1 = arith.constant 0 : i32
    %c0_i32_2 = arith.constant 0 : i32
    return %arg0, %c0_i32, %c0_i32_0, %c0_i32_1 : i32, i32, i32, i32
  }
  func.func @transform_1(%arg0: i32, %arg1: i32) -> (i32, i32, i32, i32) {
    %c0_i32 = arith.constant 0 : i32
    %c0_i32_0 = arith.constant 0 : i32
    %c0_i32_1 = arith.constant 0 : i32
    %c0_i32_2 = arith.constant 0 : i32
    return %arg0, %c0_i32, %c0_i32_0, %c0_i32_1 : i32, i32, i32, i32
  }
  func.func @transform_2(%arg0: i32, %arg1: i32) -> (i32, i32, i32, i32) {
    %c0_i32 = arith.constant 0 : i32
    %c0_i32_0 = arith.constant 0 : i32
    %c0_i32_1 = arith.constant 0 : i32
    return %arg0, %arg1, %c0_i32, %c0_i32_0 : i32, i32, i32, i32
  }
}

module attributes {stable_mosaic.version = 11 : i64} {
  func.func @kernel(%arg0: i32, %arg1: i32, %arg2: memref<1x7x8x256xbf16, #tpu.memory_space<vmem>>, %arg3: memref<256x128xbf16, #tpu.memory_space<vmem>>, %arg4: memref<1x128xf32, #tpu.memory_space<vmem>>, %arg5: memref<1x128xf32, #tpu.memory_space<vmem>>, %arg6: memref<1x7x8x128xbf16, #tpu.memory_space<vmem>>) attributes {dimension_semantics = [#tpu.dimension_semantics<parallel>, #tpu.dimension_semantics<parallel>], iteration_bounds = array<i64: 2, 1>, scalar_prefetch = 0 : i64, scratch_operands = 0 : i64, tpu.core_type = #tpu.core_type<tc>, window_params = [{transform_indices = @transform_0, window_bounds = array<i64: 1, 7, 8, 256>}, {pipeline_mode = #tpu.pipeline_mode<synchronous>, transform_indices = @transform_1, window_bounds = array<i64: 256, 128>}, {pipeline_mode = #tpu.pipeline_mode<synchronous>, transform_indices = @transform_2, window_bounds = array<i64: 1, 128>}, {pipeline_mode = #tpu.pipeline_mode<synchronous>, transform_indices = @transform_3, window_bounds = array<i64: 1, 128>}, {transform_indices = @transform_4, window_bounds = array<i64: 1, 7, 8, 128>}]} {
    %c7_i32 = arith.constant 7 : i32
    %0 = arith.muli %arg1, %c7_i32 : i32
    %c0_i32 = arith.constant 0 : i32
    %1 = arith.addi %0, %c0_i32 : i32
    %c0 = arith.constant 0 : index
    %2 = arith.index_cast %1 : i32 to index
    %c0_0 = arith.constant 0 : index
    %c0_1 = arith.constant 0 : index
    %3 = vector.load %arg2[%c0, %2, %c0_0, %c0_1] : memref<1x7x8x256xbf16, #tpu.memory_space<vmem>>, vector<1x7x8x256xbf16>
    %4 = vector.shape_cast %3 : vector<1x7x8x256xbf16> to vector<7x8x256xbf16>
    %5 = vector.shape_cast %4 : vector<7x8x256xbf16> to vector<56x256xbf16>
    %c0_2 = arith.constant 0 : index
    %c0_3 = arith.constant 0 : index
    %6 = vector.load %arg3[%c0_2, %c0_3] : memref<256x128xbf16, #tpu.memory_space<vmem>>, vector<256x128xbf16>
    %cst = arith.constant dense<0.000000e+00> : vector<56x128xf32>
    %7 = tpu.matmul %5, %6, %cst {dimension_numbers = #tpu.dot_dimension_numbers<[1], [0], [0], [1], [0, 0, 1, 1], [], []>} : vector<56x256xbf16>, vector<256x128xbf16>, vector<56x128xf32> -> vector<56x128xf32>
    %c0_4 = arith.constant 0 : index
    %c0_5 = arith.constant 0 : index
    %8 = vector.load %arg4[%c0_4, %c0_5] : memref<1x128xf32, #tpu.memory_space<vmem>>, vector<1x128xf32>
    %9 = vector.broadcast %8 : vector<1x128xf32> to vector<56x128xf32>
    %10 = arith.mulf %7, %9 : vector<56x128xf32>
    %c0_6 = arith.constant 0 : index
    %c0_7 = arith.constant 0 : index
    %11 = vector.load %arg5[%c0_6, %c0_7] : memref<1x128xf32, #tpu.memory_space<vmem>>, vector<1x128xf32>
    %12 = vector.broadcast %11 : vector<1x128xf32> to vector<56x128xf32>
    %13 = arith.addf %10, %12 : vector<56x128xf32>
    %cst_8 = arith.constant 0.000000e+00 : f32
    %14 = vector.broadcast %cst_8 : f32 to vector<56x128xf32>
    %15 = arith.maximumf %13, %14 : vector<56x128xf32>
    %16 = vector.shape_cast %15 : vector<56x128xf32> to vector<7x8x128xf32>
    %17 = arith.truncf %16 : vector<7x8x128xf32> to vector<7x8x128xbf16>
    %c0_9 = arith.constant 0 : index
    %c0_10 = arith.constant 0 : index
    %c0_11 = arith.constant 0 : index
    %c0_12 = arith.constant 0 : index
    %18 = vector.load %arg6[%c0_9, %c0_10, %c0_11, %c0_12] : memref<1x7x8x128xbf16, #tpu.memory_space<vmem>>, vector<1x7x8x128xbf16>
    %19 = vector.shape_cast %18 : vector<1x7x8x128xbf16> to vector<7x8x128xbf16>
    %20 = vector.shape_cast %17 : vector<7x8x128xbf16> to vector<1x7x8x128xbf16>
    tpu.vector_store %arg6[%c0_9, %c0_10, %c0_11, %c0_12], %20 {strides = array<i32>} : memref<1x7x8x128xbf16, #tpu.memory_space<vmem>>, vector<1x7x8x128xbf16>,
    return
  }
  func.func @transform_0(%arg0: i32, %arg1: i32) -> (i32, i32, i32, i32) {
    %c0_i32 = arith.constant 0 : i32
    %c0_i32_0 = arith.constant 0 : i32
    %c0_i32_1 = arith.constant 0 : i32
    %c0_i32_2 = arith.constant 0 : i32
    return %arg0, %c0_i32, %c0_i32_0, %c0_i32_1 : i32, i32, i32, i32
  }
  func.func @transform_1(%arg0: i32, %arg1: i32) -> (i32, i32) {
    %c0_i32 = arith.constant 0 : i32
    %c0_i32_0 = arith.constant 0 : i32
    %c0_i32_1 = arith.constant 0 : i32
    return %c0_i32, %c0_i32_0 : i32, i32
  }
  func.func @transform_2(%arg0: i32, %arg1: i32) -> (i32, i32) {
    %c0_i32 = arith.constant 0 : i32
    %c0_i32_0 = arith.constant 0 : i32
    %c0_i32_1 = arith.constant 0 : i32
    return %c0_i32, %c0_i32_0 : i32, i32
  }
  func.func @transform_3(%arg0: i32, %arg1: i32) -> (i32, i32) {
    %c0_i32 = arith.constant 0 : i32
    %c0_i32_0 = arith.constant 0 : i32
    %c0_i32_1 = arith.constant 0 : i32
    return %c0_i32, %c0_i32_0 : i32, i32
  }
  func.func @transform_4(%arg0: i32, %arg1: i32) -> (i32, i32, i32, i32) {
    %c0_i32 = arith.constant 0 : i32
    %c0_i32_0 = arith.constant 0 : i32
    %c0_i32_1 = arith.constant 0 : i32
    return %arg0, %arg1, %c0_i32, %c0_i32_0 : i32, i32, i32, i32
  }
}

module attributes {stable_mosaic.version = 11 : i64} {
  func.func @kernel(%arg0: i32, %arg1: i32, %arg2: memref<1x13x8x128xbf16, #tpu.memory_space<vmem>>, %arg3: memref<896x128xbf16, #tpu.memory_space<vmem>>, %arg4: memref<1x128xf32, #tpu.memory_space<vmem>>, %arg5: memref<1x128xf32, #tpu.memory_space<vmem>>, %arg6: memref<1x7x8x128xbf16, #tpu.memory_space<vmem>>) attributes {dimension_semantics = [#tpu.dimension_semantics<parallel>, #tpu.dimension_semantics<parallel>], iteration_bounds = array<i64: 2, 1>, scalar_prefetch = 0 : i64, scratch_operands = 0 : i64, tpu.core_type = #tpu.core_type<tc>, window_params = [{transform_indices = @transform_0, window_bounds = array<i64: 1, 13, 8, 128>}, {pipeline_mode = #tpu.pipeline_mode<synchronous>, transform_indices = @transform_1, window_bounds = array<i64: 896, 128>}, {pipeline_mode = #tpu.pipeline_mode<synchronous>, transform_indices = @transform_2, window_bounds = array<i64: 1, 128>}, {pipeline_mode = #tpu.pipeline_mode<synchronous>, transform_indices = @transform_3, window_bounds = array<i64: 1, 128>}, {transform_indices = @transform_4, window_bounds = array<i64: 1, 7, 8, 128>}]} {
    %c7_i32 = arith.constant 7 : i32
    %0 = arith.muli %arg1, %c7_i32 : i32
    %c0_i32 = arith.constant 0 : i32
    %1 = arith.addi %0, %c0_i32 : i32
    %c0 = arith.constant 0 : index
    %2 = arith.index_cast %1 : i32 to index
    %c0_0 = arith.constant 0 : index
    %c0_1 = arith.constant 0 : index
    %3 = vector.load %arg2[%c0, %2, %c0_0, %c0_1] : memref<1x13x8x128xbf16, #tpu.memory_space<vmem>>, vector<1x7x8x128xbf16>
    %4 = vector.shape_cast %3 : vector<1x7x8x128xbf16> to vector<7x8x128xbf16>
    %c1_i32 = arith.constant 1 : i32
    %5 = arith.addi %0, %c1_i32 : i32
    %c0_2 = arith.constant 0 : index
    %6 = arith.index_cast %5 : i32 to index
    %c0_3 = arith.constant 0 : index
    %c0_4 = arith.constant 0 : index
    %7 = vector.load %arg2[%c0_2, %6, %c0_3, %c0_4] : memref<1x13x8x128xbf16, #tpu.memory_space<vmem>>, vector<1x7x8x128xbf16>
    %8 = vector.shape_cast %7 : vector<1x7x8x128xbf16> to vector<7x8x128xbf16>
    %c2_i32 = arith.constant 2 : i32
    %9 = arith.addi %0, %c2_i32 : i32
    %c0_5 = arith.constant 0 : index
    %10 = arith.index_cast %9 : i32 to index
    %c0_6 = arith.constant 0 : index
    %c0_7 = arith.constant 0 : index
    %11 = vector.load %arg2[%c0_5, %10, %c0_6, %c0_7] : memref<1x13x8x128xbf16, #tpu.memory_space<vmem>>, vector<1x7x8x128xbf16>
    %12 = vector.shape_cast %11 : vector<1x7x8x128xbf16> to vector<7x8x128xbf16>
    %c3_i32 = arith.constant 3 : i32
    %13 = arith.addi %0, %c3_i32 : i32
    %c0_8 = arith.constant 0 : index
    %14 = arith.index_cast %13 : i32 to index
    %c0_9 = arith.constant 0 : index
    %c0_10 = arith.constant 0 : index
    %15 = vector.load %arg2[%c0_8, %14, %c0_9, %c0_10] : memref<1x13x8x128xbf16, #tpu.memory_space<vmem>>, vector<1x7x8x128xbf16>
    %16 = vector.shape_cast %15 : vector<1x7x8x128xbf16> to vector<7x8x128xbf16>
    %c4_i32 = arith.constant 4 : i32
    %17 = arith.addi %0, %c4_i32 : i32
    %c0_11 = arith.constant 0 : index
    %18 = arith.index_cast %17 : i32 to index
    %c0_12 = arith.constant 0 : index
    %c0_13 = arith.constant 0 : index
    %19 = vector.load %arg2[%c0_11, %18, %c0_12, %c0_13] : memref<1x13x8x128xbf16, #tpu.memory_space<vmem>>, vector<1x7x8x128xbf16>
    %20 = vector.shape_cast %19 : vector<1x7x8x128xbf16> to vector<7x8x128xbf16>
    %c5_i32 = arith.constant 5 : i32
    %21 = arith.addi %0, %c5_i32 : i32
    %c0_14 = arith.constant 0 : index
    %22 = arith.index_cast %21 : i32 to index
    %c0_15 = arith.constant 0 : index
    %c0_16 = arith.constant 0 : index
    %23 = vector.load %arg2[%c0_14, %22, %c0_15, %c0_16] : memref<1x13x8x128xbf16, #tpu.memory_space<vmem>>, vector<1x7x8x128xbf16>
    %24 = vector.shape_cast %23 : vector<1x7x8x128xbf16> to vector<7x8x128xbf16>
    %c6_i32 = arith.constant 6 : i32
    %25 = arith.addi %0, %c6_i32 : i32
    %c0_17 = arith.constant 0 : index
    %26 = arith.index_cast %25 : i32 to index
    %c0_18 = arith.constant 0 : index
    %c0_19 = arith.constant 0 : index
    %27 = vector.load %arg2[%c0_17, %26, %c0_18, %c0_19] : memref<1x13x8x128xbf16, #tpu.memory_space<vmem>>, vector<1x7x8x128xbf16>
    %28 = vector.shape_cast %27 : vector<1x7x8x128xbf16> to vector<7x8x128xbf16>
    %29 = tpu.concatenate %4, %8, %12, %16, %20, %24, %28 in 2 : vector<7x8x128xbf16>, vector<7x8x128xbf16>, vector<7x8x128xbf16>, vector<7x8x128xbf16>, vector<7x8x128xbf16>, vector<7x8x128xbf16>, vector<7x8x128xbf16> -> vector<7x8x896xbf16>
    %30 = vector.shape_cast %29 : vector<7x8x896xbf16> to vector<56x896xbf16>
    %c0_20 = arith.constant 0 : index
    %c0_21 = arith.constant 0 : index
    %31 = vector.load %arg3[%c0_20, %c0_21] : memref<896x128xbf16, #tpu.memory_space<vmem>>, vector<896x128xbf16>
    %cst = arith.constant dense<0.000000e+00> : vector<56x128xf32>
    %32 = tpu.matmul %30, %31, %cst {dimension_numbers = #tpu.dot_dimension_numbers<[1], [0], [0], [1], [0, 0, 1, 1], [], []>} : vector<56x896xbf16>, vector<896x128xbf16>, vector<56x128xf32> -> vector<56x128xf32>
    %c0_22 = arith.constant 0 : index
    %c0_23 = arith.constant 0 : index
    %33 = vector.load %arg4[%c0_22, %c0_23] : memref<1x128xf32, #tpu.memory_space<vmem>>, vector<1x128xf32>
    %34 = vector.broadcast %33 : vector<1x128xf32> to vector<56x128xf32>
    %35 = arith.mulf %32, %34 : vector<56x128xf32>
    %c0_24 = arith.constant 0 : index
    %c0_25 = arith.constant 0 : index
    %36 = vector.load %arg5[%c0_24, %c0_25] : memref<1x128xf32, #tpu.memory_space<vmem>>, vector<1x128xf32>
    %37 = vector.broadcast %36 : vector<1x128xf32> to vector<56x128xf32>
    %38 = arith.addf %35, %37 : vector<56x128xf32>
    %cst_26 = arith.constant 0.000000e+00 : f32
    %39 = vector.broadcast %cst_26 : f32 to vector<56x128xf32>
    %40 = arith.maximumf %38, %39 : vector<56x128xf32>
    %41 = vector.shape_cast %40 : vector<56x128xf32> to vector<7x8x128xf32>
    %42 = arith.truncf %41 : vector<7x8x128xf32> to vector<7x8x128xbf16>
    %c0_27 = arith.constant 0 : index
    %c0_28 = arith.constant 0 : index
    %c0_29 = arith.constant 0 : index
    %c0_30 = arith.constant 0 : index
    %43 = vector.load %arg6[%c0_27, %c0_28, %c0_29, %c0_30] : memref<1x7x8x128xbf16, #tpu.memory_space<vmem>>, vector<1x7x8x128xbf16>
    %44 = vector.shape_cast %43 : vector<1x7x8x128xbf16> to vector<7x8x128xbf16>
    %45 = vector.shape_cast %42 : vector<7x8x128xbf16> to vector<1x7x8x128xbf16>
    tpu.vector_store %arg6[%c0_27, %c0_28, %c0_29, %c0_30], %45 {strides = array<i32>} : memref<1x7x8x128xbf16, #tpu.memory_space<vmem>>, vector<1x7x8x128xbf16>,
    return
  }
  func.func @transform_0(%arg0: i32, %arg1: i32) -> (i32, i32, i32, i32) {
    %c0_i32 = arith.constant 0 : i32
    %c0_i32_0 = arith.constant 0 : i32
    %c0_i32_1 = arith.constant 0 : i32
    %c0_i32_2 = arith.constant 0 : i32
    return %arg0, %c0_i32, %c0_i32_0, %c0_i32_1 : i32, i32, i32, i32
  }
  func.func @transform_1(%arg0: i32, %arg1: i32) -> (i32, i32) {
    %c0_i32 = arith.constant 0 : i32
    %c0_i32_0 = arith.constant 0 : i32
    %c0_i32_1 = arith.constant 0 : i32
    return %c0_i32, %c0_i32_0 : i32, i32
  }
  func.func @transform_2(%arg0: i32, %arg1: i32) -> (i32, i32) {
    %c0_i32 = arith.constant 0 : i32
    %c0_i32_0 = arith.constant 0 : i32
    %c0_i32_1 = arith.constant 0 : i32
    return %c0_i32, %c0_i32_0 : i32, i32
  }
  func.func @transform_3(%arg0: i32, %arg1: i32) -> (i32, i32) {
    %c0_i32 = arith.constant 0 : i32
    %c0_i32_0 = arith.constant 0 : i32
    %c0_i32_1 = arith.constant 0 : i32
    return %c0_i32, %c0_i32_0 : i32, i32
  }
  func.func @transform_4(%arg0: i32, %arg1: i32) -> (i32, i32, i32, i32) {
    %c0_i32 = arith.constant 0 : i32
    %c0_i32_0 = arith.constant 0 : i32
    %c0_i32_1 = arith.constant 0 : i32
    return %arg0, %arg1, %c0_i32, %c0_i32_0 : i32, i32, i32, i32
  }
}

module attributes {stable_mosaic.version = 11 : i64} {
  func.func @kernel(%arg0: i32, %arg1: i32, %arg2: memref<1x7x14x128xbf16, #tpu.memory_space<vmem>>, %arg3: memref<896x128xbf16, #tpu.memory_space<vmem>>, %arg4: memref<1x128xf32, #tpu.memory_space<vmem>>, %arg5: memref<1x128xf32, #tpu.memory_space<vmem>>, %arg6: memref<1x7x8x128xbf16, #tpu.memory_space<vmem>>) attributes {dimension_semantics = [#tpu.dimension_semantics<parallel>, #tpu.dimension_semantics<parallel>], iteration_bounds = array<i64: 2, 1>, scalar_prefetch = 0 : i64, scratch_operands = 0 : i64, tpu.core_type = #tpu.core_type<tc>, window_params = [{transform_indices = @transform_0, window_bounds = array<i64: 1, 7, 14, 128>}, {pipeline_mode = #tpu.pipeline_mode<synchronous>, transform_indices = @transform_1, window_bounds = array<i64: 896, 128>}, {pipeline_mode = #tpu.pipeline_mode<synchronous>, transform_indices = @transform_2, window_bounds = array<i64: 1, 128>}, {pipeline_mode = #tpu.pipeline_mode<synchronous>, transform_indices = @transform_3, window_bounds = array<i64: 1, 128>}, {transform_indices = @transform_4, window_bounds = array<i64: 1, 7, 8, 128>}]} {
    %c7_i32 = arith.constant 7 : i32
    %0 = arith.muli %arg1, %c7_i32 : i32
    %c0_i32 = arith.constant 0 : i32
    %1 = arith.addi %0, %c0_i32 : i32
    %c0 = arith.constant 0 : index
    %2 = arith.index_cast %1 : i32 to index
    %c0_0 = arith.constant 0 : index
    %c0_1 = arith.constant 0 : index
    %3 = vector.load %arg2[%c0, %2, %c0_0, %c0_1] : memref<1x7x14x128xbf16, #tpu.memory_space<vmem>>, vector<1x7x14x128xbf16>
    %4 = vector.shape_cast %3 : vector<1x7x14x128xbf16> to vector<7x14x128xbf16>
    %5 = vector.extract_strided_slice %4 {offsets = [0, 0, 0], sizes = [7, 8, 128], strides = [1, 1, 1]} : vector<7x14x128xbf16> to vector<7x8x128xbf16>
    %6 = vector.extract_strided_slice %4 {offsets = [0, 1, 0], sizes = [7, 8, 128], strides = [1, 1, 1]} : vector<7x14x128xbf16> to vector<7x8x128xbf16>
    %7 = vector.extract_strided_slice %4 {offsets = [0, 2, 0], sizes = [7, 8, 128], strides = [1, 1, 1]} : vector<7x14x128xbf16> to vector<7x8x128xbf16>
    %8 = vector.extract_strided_slice %4 {offsets = [0, 3, 0], sizes = [7, 8, 128], strides = [1, 1, 1]} : vector<7x14x128xbf16> to vector<7x8x128xbf16>
    %9 = vector.extract_strided_slice %4 {offsets = [0, 4, 0], sizes = [7, 8, 128], strides = [1, 1, 1]} : vector<7x14x128xbf16> to vector<7x8x128xbf16>
    %10 = vector.extract_strided_slice %4 {offsets = [0, 5, 0], sizes = [7, 8, 128], strides = [1, 1, 1]} : vector<7x14x128xbf16> to vector<7x8x128xbf16>
    %11 = vector.extract_strided_slice %4 {offsets = [0, 6, 0], sizes = [7, 8, 128], strides = [1, 1, 1]} : vector<7x14x128xbf16> to vector<7x8x128xbf16>
    %12 = tpu.concatenate %5, %6, %7, %8, %9, %10, %11 in 2 : vector<7x8x128xbf16>, vector<7x8x128xbf16>, vector<7x8x128xbf16>, vector<7x8x128xbf16>, vector<7x8x128xbf16>, vector<7x8x128xbf16>, vector<7x8x128xbf16> -> vector<7x8x896xbf16>
    %13 = vector.shape_cast %12 : vector<7x8x896xbf16> to vector<56x896xbf16>
    %c0_2 = arith.constant 0 : index
    %c0_3 = arith.constant 0 : index
    %14 = vector.load %arg3[%c0_2, %c0_3] : memref<896x128xbf16, #tpu.memory_space<vmem>>, vector<896x128xbf16>
    %cst = arith.constant dense<0.000000e+00> : vector<56x128xf32>
    %15 = tpu.matmul %13, %14, %cst {dimension_numbers = #tpu.dot_dimension_numbers<[1], [0], [0], [1], [0, 0, 1, 1], [], []>} : vector<56x896xbf16>, vector<896x128xbf16>, vector<56x128xf32> -> vector<56x128xf32>
    %c0_4 = arith.constant 0 : index
    %c0_5 = arith.constant 0 : index
    %16 = vector.load %arg4[%c0_4, %c0_5] : memref<1x128xf32, #tpu.memory_space<vmem>>, vector<1x128xf32>
    %17 = vector.broadcast %16 : vector<1x128xf32> to vector<56x128xf32>
    %18 = arith.mulf %15, %17 : vector<56x128xf32>
    %c0_6 = arith.constant 0 : index
    %c0_7 = arith.constant 0 : index
    %19 = vector.load %arg5[%c0_6, %c0_7] : memref<1x128xf32, #tpu.memory_space<vmem>>, vector<1x128xf32>
    %20 = vector.broadcast %19 : vector<1x128xf32> to vector<56x128xf32>
    %21 = arith.addf %18, %20 : vector<56x128xf32>
    %cst_8 = arith.constant 0.000000e+00 : f32
    %22 = vector.broadcast %cst_8 : f32 to vector<56x128xf32>
    %23 = arith.maximumf %21, %22 : vector<56x128xf32>
    %24 = vector.shape_cast %23 : vector<56x128xf32> to vector<7x8x128xf32>
    %25 = arith.truncf %24 : vector<7x8x128xf32> to vector<7x8x128xbf16>
    %c0_9 = arith.constant 0 : index
    %c0_10 = arith.constant 0 : index
    %c0_11 = arith.constant 0 : index
    %c0_12 = arith.constant 0 : index
    %26 = vector.load %arg6[%c0_9, %c0_10, %c0_11, %c0_12] : memref<1x7x8x128xbf16, #tpu.memory_space<vmem>>, vector<1x7x8x128xbf16>
    %27 = vector.shape_cast %26 : vector<1x7x8x128xbf16> to vector<7x8x128xbf16>
    %28 = vector.shape_cast %25 : vector<7x8x128xbf16> to vector<1x7x8x128xbf16>
    tpu.vector_store %arg6[%c0_9, %c0_10, %c0_11, %c0_12], %28 {strides = array<i32>} : memref<1x7x8x128xbf16, #tpu.memory_space<vmem>>, vector<1x7x8x128xbf16>,
    return
  }
  func.func @transform_0(%arg0: i32, %arg1: i32) -> (i32, i32, i32, i32) {
    %c0_i32 = arith.constant 0 : i32
    %c0_i32_0 = arith.constant 0 : i32
    %c0_i32_1 = arith.constant 0 : i32
    %c0_i32_2 = arith.constant 0 : i32
    return %arg0, %c0_i32, %c0_i32_0, %c0_i32_1 : i32, i32, i32, i32
  }
  func.func @transform_1(%arg0: i32, %arg1: i32) -> (i32, i32) {
    %c0_i32 = arith.constant 0 : i32
    %c0_i32_0 = arith.constant 0 : i32
    %c0_i32_1 = arith.constant 0 : i32
    return %c0_i32, %c0_i32_0 : i32, i32
  }
  func.func @transform_2(%arg0: i32, %arg1: i32) -> (i32, i32) {
    %c0_i32 = arith.constant 0 : i32
    %c0_i32_0 = arith.constant 0 : i32
    %c0_i32_1 = arith.constant 0 : i32
    return %c0_i32, %c0_i32_0 : i32, i32
  }
  func.func @transform_3(%arg0: i32, %arg1: i32) -> (i32, i32) {
    %c0_i32 = arith.constant 0 : i32
    %c0_i32_0 = arith.constant 0 : i32
    %c0_i32_1 = arith.constant 0 : i32
    return %c0_i32, %c0_i32_0 : i32, i32
  }
  func.func @transform_4(%arg0: i32, %arg1: i32) -> (i32, i32, i32, i32) {
    %c0_i32 = arith.constant 0 : i32
    %c0_i32_0 = arith.constant 0 : i32
    %c0_i32_1 = arith.constant 0 : i32
    return %arg0, %arg1, %c0_i32, %c0_i32_0 : i32, i32, i32, i32
  }
}

module attributes {stable_mosaic.version = 11 : i64} {
  func.func @kernel(%arg0: i32, %arg1: i32, %arg2: memref<1x7x10x128xbf16, #tpu.memory_space<vmem>>, %arg3: memref<1152x128xbf16, #tpu.memory_space<vmem>>, %arg4: memref<1x128xf32, #tpu.memory_space<vmem>>, %arg5: memref<1x128xf32, #tpu.memory_space<vmem>>, %arg6: memref<1x5x8x128xbf16, #tpu.memory_space<vmem>>) attributes {dimension_semantics = [#tpu.dimension_semantics<parallel>, #tpu.dimension_semantics<parallel>], iteration_bounds = array<i64: 2, 1>, scalar_prefetch = 0 : i64, scratch_operands = 0 : i64, tpu.core_type = #tpu.core_type<tc>, window_params = [{transform_indices = @transform_0, window_bounds = array<i64: 1, 7, 10, 128>}, {pipeline_mode = #tpu.pipeline_mode<synchronous>, transform_indices = @transform_1, window_bounds = array<i64: 1152, 128>}, {pipeline_mode = #tpu.pipeline_mode<synchronous>, transform_indices = @transform_2, window_bounds = array<i64: 1, 128>}, {pipeline_mode = #tpu.pipeline_mode<synchronous>, transform_indices = @transform_3, window_bounds = array<i64: 1, 128>}, {transform_indices = @transform_4, window_bounds = array<i64: 1, 5, 8, 128>}]} {
    %c5_i32 = arith.constant 5 : i32
    %0 = arith.muli %arg1, %c5_i32 : i32
    %c0_i32 = arith.constant 0 : i32
    %1 = arith.addi %0, %c0_i32 : i32
    %c0 = arith.constant 0 : index
    %2 = arith.index_cast %1 : i32 to index
    %c0_0 = arith.constant 0 : index
    %c0_1 = arith.constant 0 : index
    %3 = vector.load %arg2[%c0, %2, %c0_0, %c0_1] : memref<1x7x10x128xbf16, #tpu.memory_space<vmem>>, vector<1x5x10x128xbf16>
    %4 = vector.shape_cast %3 : vector<1x5x10x128xbf16> to vector<5x10x128xbf16>
    %5 = vector.extract_strided_slice %4 {offsets = [0, 0, 0], sizes = [5, 8, 128], strides = [1, 1, 1]} : vector<5x10x128xbf16> to vector<5x8x128xbf16>
    %6 = vector.extract_strided_slice %4 {offsets = [0, 1, 0], sizes = [5, 8, 128], strides = [1, 1, 1]} : vector<5x10x128xbf16> to vector<5x8x128xbf16>
    %7 = vector.extract_strided_slice %4 {offsets = [0, 2, 0], sizes = [5, 8, 128], strides = [1, 1, 1]} : vector<5x10x128xbf16> to vector<5x8x128xbf16>
    %c1_i32 = arith.constant 1 : i32
    %8 = arith.addi %0, %c1_i32 : i32
    %c0_2 = arith.constant 0 : index
    %9 = arith.index_cast %8 : i32 to index
    %c0_3 = arith.constant 0 : index
    %c0_4 = arith.constant 0 : index
    %10 = vector.load %arg2[%c0_2, %9, %c0_3, %c0_4] : memref<1x7x10x128xbf16, #tpu.memory_space<vmem>>, vector<1x5x10x128xbf16>
    %11 = vector.shape_cast %10 : vector<1x5x10x128xbf16> to vector<5x10x128xbf16>
    %12 = vector.extract_strided_slice %11 {offsets = [0, 0, 0], sizes = [5, 8, 128], strides = [1, 1, 1]} : vector<5x10x128xbf16> to vector<5x8x128xbf16>
    %13 = vector.extract_strided_slice %11 {offsets = [0, 1, 0], sizes = [5, 8, 128], strides = [1, 1, 1]} : vector<5x10x128xbf16> to vector<5x8x128xbf16>
    %14 = vector.extract_strided_slice %11 {offsets = [0, 2, 0], sizes = [5, 8, 128], strides = [1, 1, 1]} : vector<5x10x128xbf16> to vector<5x8x128xbf16>
    %c2_i32 = arith.constant 2 : i32
    %15 = arith.addi %0, %c2_i32 : i32
    %c0_5 = arith.constant 0 : index
    %16 = arith.index_cast %15 : i32 to index
    %c0_6 = arith.constant 0 : index
    %c0_7 = arith.constant 0 : index
    %17 = vector.load %arg2[%c0_5, %16, %c0_6, %c0_7] : memref<1x7x10x128xbf16, #tpu.memory_space<vmem>>, vector<1x5x10x128xbf16>
    %18 = vector.shape_cast %17 : vector<1x5x10x128xbf16> to vector<5x10x128xbf16>
    %19 = vector.extract_strided_slice %18 {offsets = [0, 0, 0], sizes = [5, 8, 128], strides = [1, 1, 1]} : vector<5x10x128xbf16> to vector<5x8x128xbf16>
    %20 = vector.extract_strided_slice %18 {offsets = [0, 1, 0], sizes = [5, 8, 128], strides = [1, 1, 1]} : vector<5x10x128xbf16> to vector<5x8x128xbf16>
    %21 = vector.extract_strided_slice %18 {offsets = [0, 2, 0], sizes = [5, 8, 128], strides = [1, 1, 1]} : vector<5x10x128xbf16> to vector<5x8x128xbf16>
    %22 = tpu.concatenate %5, %6, %7, %12, %13, %14, %19, %20, %21 in 2 : vector<5x8x128xbf16>, vector<5x8x128xbf16>, vector<5x8x128xbf16>, vector<5x8x128xbf16>, vector<5x8x128xbf16>, vector<5x8x128xbf16>, vector<5x8x128xbf16>, vector<5x8x128xbf16>, vector<5x8x128xbf16> -> vector<5x8x1152xbf16>
    %23 = vector.shape_cast %22 : vector<5x8x1152xbf16> to vector<40x1152xbf16>
    %c0_8 = arith.constant 0 : index
    %c0_9 = arith.constant 0 : index
    %24 = vector.load %arg3[%c0_8, %c0_9] : memref<1152x128xbf16, #tpu.memory_space<vmem>>, vector<1152x128xbf16>
    %cst = arith.constant dense<0.000000e+00> : vector<40x128xf32>
    %25 = tpu.matmul %23, %24, %cst {dimension_numbers = #tpu.dot_dimension_numbers<[1], [0], [0], [1], [0, 0, 1, 1], [], []>} : vector<40x1152xbf16>, vector<1152x128xbf16>, vector<40x128xf32> -> vector<40x128xf32>
    %c0_10 = arith.constant 0 : index
    %c0_11 = arith.constant 0 : index
    %26 = vector.load %arg4[%c0_10, %c0_11] : memref<1x128xf32, #tpu.memory_space<vmem>>, vector<1x128xf32>
    %27 = vector.broadcast %26 : vector<1x128xf32> to vector<40x128xf32>
    %28 = arith.mulf %25, %27 : vector<40x128xf32>
    %c0_12 = arith.constant 0 : index
    %c0_13 = arith.constant 0 : index
    %29 = vector.load %arg5[%c0_12, %c0_13] : memref<1x128xf32, #tpu.memory_space<vmem>>, vector<1x128xf32>
    %30 = vector.broadcast %29 : vector<1x128xf32> to vector<40x128xf32>
    %31 = arith.addf %28, %30 : vector<40x128xf32>
    %cst_14 = arith.constant 0.000000e+00 : f32
    %32 = vector.broadcast %cst_14 : f32 to vector<40x128xf32>
    %33 = arith.maximumf %31, %32 : vector<40x128xf32>
    %34 = vector.shape_cast %33 : vector<40x128xf32> to vector<5x8x128xf32>
    %35 = arith.truncf %34 : vector<5x8x128xf32> to vector<5x8x128xbf16>
    %c0_15 = arith.constant 0 : index
    %c0_16 = arith.constant 0 : index
    %c0_17 = arith.constant 0 : index
    %c0_18 = arith.constant 0 : index
    %36 = vector.load %arg6[%c0_15, %c0_16, %c0_17, %c0_18] : memref<1x5x8x128xbf16, #tpu.memory_space<vmem>>, vector<1x5x8x128xbf16>
    %37 = vector.shape_cast %36 : vector<1x5x8x128xbf16> to vector<5x8x128xbf16>
    %38 = vector.shape_cast %35 : vector<5x8x128xbf16> to vector<1x5x8x128xbf16>
    tpu.vector_store %arg6[%c0_15, %c0_16, %c0_17, %c0_18], %38 {strides = array<i32>} : memref<1x5x8x128xbf16, #tpu.memory_space<vmem>>, vector<1x5x8x128xbf16>,
    return
  }
  func.func @transform_0(%arg0: i32, %arg1: i32) -> (i32, i32, i32, i32) {
    %c0_i32 = arith.constant 0 : i32
    %c0_i32_0 = arith.constant 0 : i32
    %c0_i32_1 = arith.constant 0 : i32
    %c0_i32_2 = arith.constant 0 : i32
    return %arg0, %c0_i32, %c0_i32_0, %c0_i32_1 : i32, i32, i32, i32
  }
  func.func @transform_1(%arg0: i32, %arg1: i32) -> (i32, i32) {
    %c0_i32 = arith.constant 0 : i32
    %c0_i32_0 = arith.constant 0 : i32
    %c0_i32_1 = arith.constant 0 : i32
    return %c0_i32, %c0_i32_0 : i32, i32
  }
  func.func @transform_2(%arg0: i32, %arg1: i32) -> (i32, i32) {
    %c0_i32 = arith.constant 0 : i32
    %c0_i32_0 = arith.constant 0 : i32
    %c0_i32_1 = arith.constant 0 : i32
    return %c0_i32, %c0_i32_0 : i32, i32
  }
  func.func @transform_3(%arg0: i32, %arg1: i32) -> (i32, i32) {
    %c0_i32 = arith.constant 0 : i32
    %c0_i32_0 = arith.constant 0 : i32
    %c0_i32_1 = arith.constant 0 : i32
    return %c0_i32, %c0_i32_0 : i32, i32
  }
  func.func @transform_4(%arg0: i32, %arg1: i32) -> (i32, i32, i32, i32) {
    %c0_i32 = arith.constant 0 : i32
    %c0_i32_0 = arith.constant 0 : i32
    %c0_i32_1 = arith.constant 0 : i32
    return %arg0, %arg1, %c0_i32, %c0_i32_0 : i32, i32, i32, i32
  }
}

module attributes {stable_mosaic.version = 11 : i64} {
  func.func @kernel(%arg0: i32, %arg1: i32, %arg2: memref<1x3x8x768xbf16, #tpu.memory_space<vmem>>, %arg3: memref<1x3x8x768xbf16, #tpu.memory_space<vmem>>, %arg4: memref<2304x256xbf16, #tpu.memory_space<vmem>>, %arg5: memref<1x256xf32, #tpu.memory_space<vmem>>, %arg6: memref<1x256xf32, #tpu.memory_space<vmem>>, %arg7: memref<1x2x8x256xbf16, #tpu.memory_space<vmem>>) attributes {dimension_semantics = [#tpu.dimension_semantics<parallel>, #tpu.dimension_semantics<parallel>], iteration_bounds = array<i64: 2, 1>, scalar_prefetch = 0 : i64, scratch_operands = 0 : i64, tpu.core_type = #tpu.core_type<tc>, window_params = [{transform_indices = @transform_0, window_bounds = array<i64: 1, 3, 8, 768>}, {transform_indices = @transform_1, window_bounds = array<i64: 1, 3, 8, 768>}, {pipeline_mode = #tpu.pipeline_mode<synchronous>, transform_indices = @transform_2, window_bounds = array<i64: 2304, 256>}, {pipeline_mode = #tpu.pipeline_mode<synchronous>, transform_indices = @transform_3, window_bounds = array<i64: 1, 256>}, {pipeline_mode = #tpu.pipeline_mode<synchronous>, transform_indices = @transform_4, window_bounds = array<i64: 1, 256>}, {transform_indices = @transform_5, window_bounds = array<i64: 1, 2, 8, 256>}]} {
    %c2_i32 = arith.constant 2 : i32
    %0 = arith.muli %arg1, %c2_i32 : i32
    %c0_i32 = arith.constant 0 : i32
    %1 = arith.addi %0, %c0_i32 : i32
    %c0 = arith.constant 0 : index
    %2 = arith.index_cast %1 : i32 to index
    %c0_0 = arith.constant 0 : index
    %c0_1 = arith.constant 0 : index
    %3 = vector.load %arg2[%c0, %2, %c0_0, %c0_1] : memref<1x3x8x768xbf16, #tpu.memory_space<vmem>>, vector<1x2x8x768xbf16>
    %4 = vector.shape_cast %3 : vector<1x2x8x768xbf16> to vector<2x8x768xbf16>
    %c0_i32_2 = arith.constant 0 : i32
    %5 = arith.addi %0, %c0_i32_2 : i32
    %c0_3 = arith.constant 0 : index
    %6 = arith.index_cast %5 : i32 to index
    %c0_4 = arith.constant 0 : index
    %c0_5 = arith.constant 0 : index
    %7 = vector.load %arg3[%c0_3, %6, %c0_4, %c0_5] : memref<1x3x8x768xbf16, #tpu.memory_space<vmem>>, vector<1x2x8x768xbf16>
    %8 = vector.shape_cast %7 : vector<1x2x8x768xbf16> to vector<2x8x768xbf16>
    %c1_i32 = arith.constant 1 : i32
    %9 = arith.addi %0, %c1_i32 : i32
    %c0_6 = arith.constant 0 : index
    %10 = arith.index_cast %9 : i32 to index
    %c0_7 = arith.constant 0 : index
    %c0_8 = arith.constant 0 : index
    %11 = vector.load %arg2[%c0_6, %10, %c0_7, %c0_8] : memref<1x3x8x768xbf16, #tpu.memory_space<vmem>>, vector<1x2x8x768xbf16>
    %12 = vector.shape_cast %11 : vector<1x2x8x768xbf16> to vector<2x8x768xbf16>
    %13 = tpu.concatenate %4, %8, %12 in 2 : vector<2x8x768xbf16>, vector<2x8x768xbf16>, vector<2x8x768xbf16> -> vector<2x8x2304xbf16>
    %14 = vector.shape_cast %13 : vector<2x8x2304xbf16> to vector<16x2304xbf16>
    %c0_9 = arith.constant 0 : index
    %c0_10 = arith.constant 0 : index
    %15 = vector.load %arg4[%c0_9, %c0_10] : memref<2304x256xbf16, #tpu.memory_space<vmem>>, vector<2304x256xbf16>
    %cst = arith.constant dense<0.000000e+00> : vector<16x256xf32>
    %16 = tpu.matmul %14, %15, %cst {dimension_numbers = #tpu.dot_dimension_numbers<[1], [0], [0], [1], [0, 0, 1, 1], [], []>} : vector<16x2304xbf16>, vector<2304x256xbf16>, vector<16x256xf32> -> vector<16x256xf32>
    %c0_11 = arith.constant 0 : index
    %c0_12 = arith.constant 0 : index
    %17 = vector.load %arg5[%c0_11, %c0_12] : memref<1x256xf32, #tpu.memory_space<vmem>>, vector<1x256xf32>
    %18 = vector.broadcast %17 : vector<1x256xf32> to vector<16x256xf32>
    %19 = arith.mulf %16, %18 : vector<16x256xf32>
    %c0_13 = arith.constant 0 : index
    %c0_14 = arith.constant 0 : index
    %20 = vector.load %arg6[%c0_13, %c0_14] : memref<1x256xf32, #tpu.memory_space<vmem>>, vector<1x256xf32>
    %21 = vector.broadcast %20 : vector<1x256xf32> to vector<16x256xf32>
    %22 = arith.addf %19, %21 : vector<16x256xf32>
    %cst_15 = arith.constant 0.000000e+00 : f32
    %23 = vector.broadcast %cst_15 : f32 to vector<16x256xf32>
    %24 = arith.maximumf %22, %23 : vector<16x256xf32>
    %25 = vector.shape_cast %24 : vector<16x256xf32> to vector<2x8x256xf32>
    %26 = arith.truncf %25 : vector<2x8x256xf32> to vector<2x8x256xbf16>
    %c0_16 = arith.constant 0 : index
    %c0_17 = arith.constant 0 : index
    %c0_18 = arith.constant 0 : index
    %c0_19 = arith.constant 0 : index
    %27 = vector.load %arg7[%c0_16, %c0_17, %c0_18, %c0_19] : memref<1x2x8x256xbf16, #tpu.memory_space<vmem>>, vector<1x2x8x256xbf16>
    %28 = vector.shape_cast %27 : vector<1x2x8x256xbf16> to vector<2x8x256xbf16>
    %29 = vector.shape_cast %26 : vector<2x8x256xbf16> to vector<1x2x8x256xbf16>
    tpu.vector_store %arg7[%c0_16, %c0_17, %c0_18, %c0_19], %29 {strides = array<i32>} : memref<1x2x8x256xbf16, #tpu.memory_space<vmem>>, vector<1x2x8x256xbf16>,
    return
  }
  func.func @transform_0(%arg0: i32, %arg1: i32) -> (i32, i32, i32, i32) {
    %c0_i32 = arith.constant 0 : i32
    %c0_i32_0 = arith.constant 0 : i32
    %c0_i32_1 = arith.constant 0 : i32
    %c0_i32_2 = arith.constant 0 : i32
    return %arg0, %c0_i32, %c0_i32_0, %c0_i32_1 : i32, i32, i32, i32
  }
  func.func @transform_1(%arg0: i32, %arg1: i32) -> (i32, i32, i32, i32) {
    %c0_i32 = arith.constant 0 : i32
    %c0_i32_0 = arith.constant 0 : i32
    %c0_i32_1 = arith.constant 0 : i32
    %c0_i32_2 = arith.constant 0 : i32
    return %arg0, %c0_i32, %c0_i32_0, %c0_i32_1 : i32, i32, i32, i32
  }
  func.func @transform_2(%arg0: i32, %arg1: i32) -> (i32, i32) {
    %c0_i32 = arith.constant 0 : i32
    %c0_i32_0 = arith.constant 0 : i32
    %c0_i32_1 = arith.constant 0 : i32
    return %c0_i32, %c0_i32_0 : i32, i32
  }
  func.func @transform_3(%arg0: i32, %arg1: i32) -> (i32, i32) {
    %c0_i32 = arith.constant 0 : i32
    %c0_i32_0 = arith.constant 0 : i32
    %c0_i32_1 = arith.constant 0 : i32
    return %c0_i32, %c0_i32_0 : i32, i32
  }
  func.func @transform_4(%arg0: i32, %arg1: i32) -> (i32, i32) {
    %c0_i32 = arith.constant 0 : i32
    %c0_i32_0 = arith.constant 0 : i32
    %c0_i32_1 = arith.constant 0 : i32
    return %c0_i32, %c0_i32_0 : i32, i32
  }
  func.func @transform_5(%arg0: i32, %arg1: i32) -> (i32, i32, i32, i32) {
    %c0_i32 = arith.constant 0 : i32
    %c0_i32_0 = arith.constant 0 : i32
    %c0_i32_1 = arith.constant 0 : i32
    return %arg0, %arg1, %c0_i32, %c0_i32_0 : i32, i32, i32, i32
  }
}

module attributes {stable_mosaic.version = 11 : i64} {
  func.func @kernel(%arg0: i32, %arg1: i32, %arg2: memref<1x3x8x768xbf16, #tpu.memory_space<vmem>>, %arg3: memref<1x3x8x768xbf16, #tpu.memory_space<vmem>>, %arg4: memref<1x2x8x256xbf16, #tpu.memory_space<vmem>>) attributes {dimension_semantics = [#tpu.dimension_semantics<parallel>, #tpu.dimension_semantics<parallel>], iteration_bounds = array<i64: 2, 1>, scalar_prefetch = 0 : i64, scratch_operands = 0 : i64, tpu.core_type = #tpu.core_type<tc>, window_params = [{transform_indices = @transform_0, window_bounds = array<i64: 1, 3, 8, 768>}, {transform_indices = @transform_1, window_bounds = array<i64: 1, 3, 8, 768>}, {transform_indices = @transform_2, window_bounds = array<i64: 1, 2, 8, 256>}]} {
    %c2_i32 = arith.constant 2 : i32
    %0 = arith.muli %arg1, %c2_i32 : i32
    %c0_i32 = arith.constant 0 : i32
    %1 = arith.addi %0, %c0_i32 : i32
    %c0 = arith.constant 0 : index
    %2 = arith.index_cast %1 : i32 to index
    %c0_0 = arith.constant 0 : index
    %c0_1 = arith.constant 0 : index
    %3 = vector.load %arg2[%c0, %2, %c0_0, %c0_1] : memref<1x3x8x768xbf16, #tpu.memory_space<vmem>>, vector<1x2x8x768xbf16>
    %4 = vector.shape_cast %3 : vector<1x2x8x768xbf16> to vector<2x8x768xbf16>
    %5 = vector.extract_strided_slice %4 {offsets = [0, 0, 0], sizes = [2, 8, 256], strides = [1, 1, 1]} : vector<2x8x768xbf16> to vector<2x8x256xbf16>
    %6 = vector.extract_strided_slice %4 {offsets = [0, 0, 256], sizes = [2, 8, 256], strides = [1, 1, 1]} : vector<2x8x768xbf16> to vector<2x8x256xbf16>
    %7 = arith.maximumf %5, %6 : vector<2x8x256xbf16>
    %8 = vector.extract_strided_slice %4 {offsets = [0, 0, 512], sizes = [2, 8, 256], strides = [1, 1, 1]} : vector<2x8x768xbf16> to vector<2x8x256xbf16>
    %9 = arith.maximumf %7, %8 : vector<2x8x256xbf16>
    %c0_i32_2 = arith.constant 0 : i32
    %10 = arith.addi %0, %c0_i32_2 : i32
    %c0_3 = arith.constant 0 : index
    %11 = arith.index_cast %10 : i32 to index
    %c0_4 = arith.constant 0 : index
    %c0_5 = arith.constant 0 : index
    %12 = vector.load %arg3[%c0_3, %11, %c0_4, %c0_5] : memref<1x3x8x768xbf16, #tpu.memory_space<vmem>>, vector<1x2x8x768xbf16>
    %13 = vector.shape_cast %12 : vector<1x2x8x768xbf16> to vector<2x8x768xbf16>
    %14 = vector.extract_strided_slice %13 {offsets = [0, 0, 0], sizes = [2, 8, 256], strides = [1, 1, 1]} : vector<2x8x768xbf16> to vector<2x8x256xbf16>
    %15 = arith.maximumf %9, %14 : vector<2x8x256xbf16>
    %16 = vector.extract_strided_slice %13 {offsets = [0, 0, 256], sizes = [2, 8, 256], strides = [1, 1, 1]} : vector<2x8x768xbf16> to vector<2x8x256xbf16>
    %17 = arith.maximumf %15, %16 : vector<2x8x256xbf16>
    %18 = vector.extract_strided_slice %13 {offsets = [0, 0, 512], sizes = [2, 8, 256], strides = [1, 1, 1]} : vector<2x8x768xbf16> to vector<2x8x256xbf16>
    %19 = arith.maximumf %17, %18 : vector<2x8x256xbf16>
    %c1_i32 = arith.constant 1 : i32
    %20 = arith.addi %0, %c1_i32 : i32
    %c0_6 = arith.constant 0 : index
    %21 = arith.index_cast %20 : i32 to index
    %c0_7 = arith.constant 0 : index
    %c0_8 = arith.constant 0 : index
    %22 = vector.load %arg2[%c0_6, %21, %c0_7, %c0_8] : memref<1x3x8x768xbf16, #tpu.memory_space<vmem>>, vector<1x2x8x768xbf16>
    %23 = vector.shape_cast %22 : vector<1x2x8x768xbf16> to vector<2x8x768xbf16>
    %24 = vector.extract_strided_slice %23 {offsets = [0, 0, 0], sizes = [2, 8, 256], strides = [1, 1, 1]} : vector<2x8x768xbf16> to vector<2x8x256xbf16>
    %25 = arith.maximumf %19, %24 : vector<2x8x256xbf16>
    %26 = vector.extract_strided_slice %23 {offsets = [0, 0, 256], sizes = [2, 8, 256], strides = [1, 1, 1]} : vector<2x8x768xbf16> to vector<2x8x256xbf16>
    %27 = arith.maximumf %25, %26 : vector<2x8x256xbf16>
    %28 = vector.extract_strided_slice %23 {offsets = [0, 0, 512], sizes = [2, 8, 256], strides = [1, 1, 1]} : vector<2x8x768xbf16> to vector<2x8x256xbf16>
    %29 = arith.maximumf %27, %28 : vector<2x8x256xbf16>
    %c0_9 = arith.constant 0 : index
    %c0_10 = arith.constant 0 : index
    %c0_11 = arith.constant 0 : index
    %c0_12 = arith.constant 0 : index
    %30 = vector.load %arg4[%c0_9, %c0_10, %c0_11, %c0_12] : memref<1x2x8x256xbf16, #tpu.memory_space<vmem>>, vector<1x2x8x256xbf16>
    %31 = vector.shape_cast %30 : vector<1x2x8x256xbf16> to vector<2x8x256xbf16>
    %32 = vector.shape_cast %29 : vector<2x8x256xbf16> to vector<1x2x8x256xbf16>
    tpu.vector_store %arg4[%c0_9, %c0_10, %c0_11, %c0_12], %32 {strides = array<i32>} : memref<1x2x8x256xbf16, #tpu.memory_space<vmem>>, vector<1x2x8x256xbf16>,
    return
  }
  func.func @transform_0(%arg0: i32, %arg1: i32) -> (i32, i32, i32, i32) {
    %c0_i32 = arith.constant 0 : i32
    %c0_i32_0 = arith.constant 0 : i32
    %c0_i32_1 = arith.constant 0 : i32
    %c0_i32_2 = arith.constant 0 : i32
    return %arg0, %c0_i32, %c0_i32_0, %c0_i32_1 : i32, i32, i32, i32
  }
  func.func @transform_1(%arg0: i32, %arg1: i32) -> (i32, i32, i32, i32) {
    %c0_i32 = arith.constant 0 : i32
    %c0_i32_0 = arith.constant 0 : i32
    %c0_i32_1 = arith.constant 0 : i32
    %c0_i32_2 = arith.constant 0 : i32
    return %arg0, %c0_i32, %c0_i32_0, %c0_i32_1 : i32, i32, i32, i32
  }
  func.func @transform_2(%arg0: i32, %arg1: i32) -> (i32, i32, i32, i32) {
    %c0_i32 = arith.constant 0 : i32
    %c0_i32_0 = arith.constant 0 : i32
    %c0_i32_1 = arith.constant 0 : i32
    return %arg0, %arg1, %c0_i32, %c0_i32_0 : i32, i32, i32, i32
  }
}

</mosaic_0001>

<bundles_post_ra>
// kernel: stem_v2_forward.13
= control target key start
LH: loop header
LB: loop body
LE: loop exit
PB: predicated region body
PF: predicated region fallthrough
CT: control target
= control target key end

     0   :  { %s2879_s18 = smov 0   ;;  %s2881_s19 = smov 0   ;;  %s3337_s0 = inlined_call_operand.vmem [shape: bf16[2,18,24,9], index: 0, kind: input, shape index: {}]   ;;  %s3338_s1 = inlined_call_operand.vmem [shape: bf16[2,18,24,9], index: 1, kind: input, shape index: {}]   ;;  %s3339_s2 = inlined_call_operand.vmem [shape: bf16[27,128], index: 2, kind: input, shape index: {}]   ;;  %s3340_s3 = inlined_call_operand.vmem [shape: f32[1,128], index: 3, kind: input, shape index: {}]   ;;  %s3341_s4 = inlined_call_operand.vmem [shape: f32[1,128], index: 4, kind: input, shape index: {}]   ;;  %s3342_s5 = inlined_call_operand.vmem [shape: bf16[2,17,24,128], index: 5, kind: output, shape index: {}]  }
   0x1   :  { %s2883_s20 = smov 0  }
   0x2 LB: > { %s27_s21 = sadd.s32 1, %s2840_s19  ;;  %p2152_p0 = scmp.ge.s32.totalorder %s2844_s20, 1  ;;  %s2844_s20 = sphi %s2883_s20, %s15_s20   ;;  %s2840_s19 = sphi %s2881_s19, %s3344_s19   ;;  %s2836_s18 = sphi %s2879_s18, %s3343_s18  }
   0x3   : > { %p29_p1 = scmp.ge.s32.totalorder %s27_s21, 2  ;;  %p211_p2 = scmp.lt.s32.totalorder %s2844_s20, 3 }
   0x5   : > { %s3346_s21 = smov (%p29_p1, %s27_s21), 0  ;;  %p212_p3 = pnand %p2152_p0, %p211_p2 }
   0x6   : > { %p249_p4 = scmp.lt.s32.totalorder (!%p212_p3), %s2836_s18, 1  ;;  %v2780_v0 = vld [vmem:[%s3339_s2] sm:$0xff] (!%p212_p3)   ;;  %v2784_v1 = vld [vmem:[%s3339_s2 + $0x8] sm:$0x3f] (!%p212_p3)   ;;  %vm1355_vm0 = vcmask (!%p212_p3), 1044480   ;;  %vm1356_vm1 = vcmask (!%p212_p3), 1045504  }
   0x7   : > { %215 = sbr.rel (%p212_p3) target bundleno = 492 (0x1ec), region = 40  ;;  %2629 = vmatprep.subr.bf16.mxu0 (!%p212_p3), %v2780_v0  ;;  %2685 = vmatprep.subr.bf16.mxu1 (!%p212_p3), %v2780_v0  ;;  %v2846_v2 = vmov (!%p212_p3), 65535   ;;  %s2847_s8 = smov (!%p212_p3), 9   ;;  %vm978_vm2 = vcmask (!%p212_p3), 72704   ;;  %vm1081_vm3 = vcmask (!%p212_p3), 146432   ;;  %vm1276_vm4 = vcmask (!%p212_p3), 220160  }
   0x8   : > { %2630 = vmatpush3.bf16.msra.mxu0 (!%p212_p3), %v2780_v0  ;;  %2687 = vmatpush3.bf16.msra.mxu1 (!%p212_p3), %v2780_v0  ;;  %v1357_v3 = vsel (!%p212_p3), %vm1355_vm0, 4294967295, %v2846_v2  ;;  %s2848_s9 = smov (!%p212_p3), 18  }
   0x9   : > { %v1358_v4 = vsel (!%p212_p3), %vm1356_vm1, %v1357_v3, 0 }
   0xa   : > { %v1360_v5 = vand.u32 (!%p212_p3), %v2784_v1, %v1358_v4 }
   0xc   : > { %2631 = vmatprep.subr.bf16.mxu0 (!%p212_p3), %v1360_v5  ;;  %2686 = vmatprep.subr.bf16.mxu1 (!%p212_p3), %v1360_v5 }
   0xd   : > { %2632 = vmatpush3.bf16.msra.mxu0 (!%p212_p3), %v1360_v5  ;;  %2688 = vmatpush3.bf16.msra.mxu1 (!%p212_p3), %v1360_v5 }
   0xe   : > { %s3348_s18 = smov (!%p249_p4, %s2836_s18), 1 }
   0xf   : > { %s2689_s26 = smul.u32 216, %s3348_s18 }
  0x10   : > { %s2690_s14 = smul.u32 204, %s3348_s18 }
  0x11   : > { %s2909_s29 = scalar_lea.vmem %s3338_s1, %s2689_s26  ;;  %s2915_s7 = scalar_lea.vmem %s3337_s0, %s2689_s26 }
  0x12   : > { %v2718_v6 = vld [vmem:[%s2909_s29 + $0x8] ss:$0 sps:$4 sm:$0xff]   ;;  %v2719_v7 = vld [vmem:[%s2909_s29] sm:$0xff]   ;;  %v2720_v8 = vld [vmem:[%s2909_s29 + $0xc] sm:$0xff]   ;;  %s3206_s17 = scalar_lea.vmem %s3342_s5, %s2690_s14 }
  0x13   : > { %708 = vrot.lane.b32.xlu0 %v2718_v6, %s2847_s8  ;;  %706 = vrot.lane.b32.xlu1 %v2719_v7, %s2847_s8  ;;  %v2721_v9 = vld [vmem:[%s2915_s7 + $0x14] ss:$0 sps:$4 sm:$0xff]   ;;  %v2722_v10 = vld [vmem:[%s2915_s7 + $0x18] sm:$0xff]  }
  0x14   : > { %v2723_v11 = vld [vmem:[%s2915_s7 + $0xc] sm:$0xff]   ;;  %v2724_v12 = vld [vmem:[%s2909_s29 + $0x14] ss:$0 sps:$4 sm:$0xff]   ;;  %v2727_v15 = vld [vmem:[%s2915_s7 + $0x20] ss:$0 sps:$4 sm:$0xff]  }
  0x15   : > { %v2725_v13 = vld [vmem:[%s2909_s29 + $0x6c] sm:$0xff]   ;;  %v2726_v14 = vld [vmem:[%s2909_s29 + $0x74] ss:$0 sps:$4 sm:$0xff]   ;;  %v2728_v16 = vld [vmem:[%s2915_s7 + $0x78] sm:$0xff]  }
  0x16   : > { %v2729_v17 = vld [vmem:[%s2915_s7 + $0x80] ss:$0 sps:$4 sm:$0xff]   ;;  %v2730_v18 = vld [vmem:[%s2909_s29 + $0x18] sm:$0xff]   ;;  %v2732_v20 = vld [vmem:[%s2915_s7 + $0x24] sm:$0xff]  }
  0x17   : > { %710 = vrot.lane.b32.xlu0 %v2720_v8, %s2847_s8  ;;  %912 = vrot.lane.b32.xlu1 %v2721_v9, %s2848_s9  ;;  %v2731_v19 = vld [vmem:[%s2909_s29 + $0x78] sm:$0xff]   ;;  %v2733_v21 = vld [vmem:[%s2915_s7 + $0x84] sm:$0xff]  }
  0x18   : > { %v2734_v22 = vld [vmem:[%s2909_s29 + $0x24] sm:$0xff]   ;;  %v2735_v23 = vld [vmem:[%s2909_s29 + $0x2c] ss:$0 sps:$4 sm:$0xff]   ;;  %v2738_v26 = vld [vmem:[%s2909_s29 + $0x20] ss:$0 sps:$4 sm:$0xff]  }
  0x19   : > { %v2736_v24 = vld [vmem:[%s2909_s29 + $0x84] sm:$0xff]   ;;  %v2737_v25 = vld [vmem:[%s2909_s29 + $0x8c] ss:$0 sps:$4 sm:$0xff]   ;;  %v2739_v27 = vld [vmem:[%s2909_s29 + $0x80] ss:$0 sps:$4 sm:$0xff]  }
  0x1a   : > { %v2740_v28 = vld [vmem:[%s2915_s7 + $0x30] sm:$0xff]   ;;  %v2741_v29 = vld [vmem:[%s2915_s7 + $0x38] ss:$0 sps:$4 sm:$0xff]   ;;  %v2744_v32 = vld [vmem:[%s2915_s7 + $0x2c] ss:$0 sps:$4 sm:$0xff]  }
  0x1b   : > { %914 = vrot.lane.b32.xlu0 %v2722_v10, %s2848_s9  ;;  %910 = vrot.lane.b32.xlu1 %v2723_v11, %s2848_s9  ;;  %v2742_v30 = vld [vmem:[%s2915_s7 + $0x90] sm:$0xff]   ;;  %v2743_v31 = vld [vmem:[%s2915_s7 + $0x98] ss:$0 sps:$4 sm:$0xff]  }
  0x1c   : > { %v2745_v33 = vld [vmem:[%s2915_s7 + $0x8c] ss:$0 sps:$4 sm:$0xff]   ;;  %v2746_v34 = vld [vmem:[%s2909_s29 + $0x38] ss:$0 sps:$4 sm:$0xff]   ;;  %v2747_v35 = vld [vmem:[%s2909_s29 + $0x3c] sm:$0xff]  }
  0x1d   : > { %v2748_v36 = vld [vmem:[%s2909_s29 + $0x98] ss:$0 sps:$4 sm:$0xff]   ;;  %v2749_v37 = vld [vmem:[%s2909_s29 + $0x9c] sm:$0xff]   ;;  %v2750_v38 = vld [vmem:[%s2909_s29 + $0x30] sm:$0xff]  }
  0x1e   : > { %v2751_v39 = vld [vmem:[%s2909_s29 + $0x90] sm:$0xff]   ;;  %v2752_v40 = vld [vmem:[%s2915_s7 + $0x44] ss:$0 sps:$4 sm:$0xff]   ;;  %v2753_v41 = vld [vmem:[%s2915_s7 + $0x48] sm:$0xff]  }
  0x1f   : > { %712 = vrot.lane.b32.xlu0 %v2724_v12, %s2847_s8  ;;  %742 = vrot.lane.b32.xlu1 %v2725_v13, %s2847_s8  ;;  %v2754_v42 = vld [vmem:[%s2915_s7 + $0xa4] ss:$0 sps:$4 sm:$0xff]   ;;  %v2755_v43 = vld [vmem:[%s2915_s7 + $0xa8] sm:$0xff]  }
  0x20   : > { %v2756_v44 = vld [vmem:[%s2915_s7 + $0x3c] sm:$0xff]   ;;  %v2758_v46 = vld [vmem:[%s2909_s29 + $0x44] ss:$0 sps:$4 sm:$0xff]   ;;  %v2760_v48 = vld [vmem:[%s2915_s7 + $0x50] ss:$0 sps:$4 sm:$0xff]  }
  0x21   : > { %v2757_v45 = vld [vmem:[%s2915_s7 + $0x9c] sm:$0xff]   ;;  %v2759_v47 = vld [vmem:[%s2909_s29 + $0xa4] ss:$0 sps:$4 sm:$0xff]   ;;  %v2761_v49 = vld [vmem:[%s2915_s7 + $0xb0] ss:$0 sps:$4 sm:$0xff]  }
  0x22   : > { %v2762_v50 = vld [vmem:[%s2909_s29 + $0x48] sm:$0xff]   ;;  %v2764_v52 = vld [vmem:[%s2915_s7 + $0x54] sm:$0xff]   ;;  %v2767_v55 = vld [vmem:[%s2909_s29 + $0x5c] ss:$0 sps:$4 sm:$0xff]  }
  0x23   : > { %744 = vrot.lane.b32.xlu0 %v2726_v14, %s2847_s8  ;;  %916 = vrot.lane.b32.xlu1 %v2727_v15, %s2848_s9  ;;  %v2763_v51 = vld [vmem:[%s2909_s29 + $0xa8] sm:$0xff]   ;;  %v2765_v53 = vld [vmem:[%s2915_s7 + $0xb4] sm:$0xff]  }
  0x24   : > { %v2766_v54 = vld [vmem:[%s2909_s29 + $0x54] sm:$0xff]   ;;  %v2769_v57 = vld [vmem:[%s2909_s29 + $0xbc] ss:$0 sps:$4 sm:$0xff]   ;;  %v2770_v58 = vld [vmem:[%s2909_s29 + $0x50] ss:$0 sps:$4 sm:$0xff]  }
  0x25   : > { %v2768_v56 = vld [vmem:[%s2909_s29 + $0xb4] sm:$0xff]   ;;  %v2771_v59 = vld [vmem:[%s2909_s29 + $0xb0] ss:$0 sps:$4 sm:$0xff]   ;;  %v2772_v60 = vld [vmem:[%s2915_s7 + $0x60] sm:$0xff]  }
  0x26   : > { %v2773_v61 = vld [vmem:[%s2915_s7 + $0x68] ss:$0 sps:$4 sm:$0xff]   ;;  %v2774_v62 = vld [vmem:[%s2915_s7 + $0xc0] sm:$0xff]   ;;  %v2778_v0 = vld [vmem:[%s2915_s7 + $0x5c] ss:$0 sps:$4 sm:$0xff]  }
  0x27   : > { %946 = vrot.lane.b32.xlu0 %v2728_v16, %s2848_s9  ;;  %948 = vrot.lane.b32.xlu1 %v2729_v17, %s2848_s9  ;;  %v2775_v63 = vld [vmem:[%s2915_s7 + $0xc8] ss:$0 sps:$4 sm:$0xff]   ;;  %v2779_v1 = vld [vmem:[%s2915_s7 + $0xbc] ss:$0 sps:$4 sm:$0xff]  }
  0x28   : > { %v2782_v4 = vld [vmem:[%s2909_s29 + $0x68] ss:$0 sps:$4 sm:$0xff]   ;;  %v2781_v8 = vld [vmem:[%s2915_s7 + $0xc] sm:$0xff]   ;;  %v2777_v9 = vld [vmem:[%s2915_s7] sm:$0xff]  }
  0x29   : > { %v2783_v5 = vld [vmem:[%s2909_s29 + $0xc8] ss:$0 sps:$4 sm:$0xff]   ;;  %v2785_v11 = vld [vmem:[%s2909_s29 + $0x60] sm:$0xff]  }
  0x2a   : > { %v2776_v6 = vld [vmem:[%s2915_s7 + $0x8] ss:$0 sps:$4 sm:$0xff]   ;;  %v2786_v12 = vld [vmem:[%s2909_s29 + $0xc0] sm:$0xff]  }
  0x2b   : > { %714 = vrot.lane.b32.xlu0 %v2730_v18, %s2847_s8  ;;  %746 = vrot.lane.b32.xlu1 %v2731_v19, %s2847_s8 }
  0x2f   : > { %918 = vrot.lane.b32.xlu0 %v2732_v20, %s2848_s9  ;;  %950 = vrot.lane.b32.xlu1 %v2733_v21, %s2848_s9 }
  0x33   : > { %718 = vrot.lane.b32.xlu0 %v2734_v22, %s2847_s8  ;;  %720 = vrot.lane.b32.xlu1 %v2735_v23, %s2847_s8  ;;  %v2789_v22 = vld [vmem:[%s2915_s7 + $0x74] ss:$0 sps:$4 sm:$0xff]  }
  0x34   : > { %v2790_v23 = vld [vmem:[%s2915_s7 + $0xd4] ss:$0 sps:$4 sm:$0xff]  }
  0x37   : > { %750 = vrot.lane.b32.xlu0 %v2736_v24, %s2847_s8  ;;  %752 = vrot.lane.b32.xlu1 %v2737_v25, %s2847_s8  ;;  %v2787_v25 = vld [vmem:[%s2915_s7 + $0x14] ss:$0 sps:$4 sm:$0xff]  }
  0x3b   : > { %716 = vrot.lane.b32.xlu0 %v2738_v26, %s2847_s8  ;;  %748 = vrot.lane.b32.xlu1 %v2739_v27, %s2847_s8  ;;  %v2792_v27 = vld [vmem:[%s2915_s7 + $0x6c] sm:$0xff]  }
  0x3f   : > { %922 = vrot.lane.b32.xlu0 %v2740_v28, %s2848_s9  ;;  %924 = vrot.lane.b32.xlu1 %v2741_v29, %s2848_s9  ;;  %v2793_v28 = vld [vmem:[%s2915_s7 + $0xcc] sm:$0xff]  }
  0x40   : > { %v2788_v29 = vld [vmem:[%s2915_s7 + $0x6c] sm:$0xff]  }
  0x43   : > { %954 = vrot.lane.b32.xlu0 %v2742_v30, %s2848_s9  ;;  %956 = vrot.lane.b32.xlu1 %v2743_v31, %s2848_s9 }
  0x47   : > { %920 = vrot.lane.b32.xlu0 %v2744_v32, %s2848_s9  ;;  %952 = vrot.lane.b32.xlu1 %v2745_v33, %s2848_s9  ;;  %v2791_v32 = vld [vmem:[%s2915_s7 + $0x74] ss:$0 sps:$4 sm:$0xff]  }
  0x4b   : > { %724 = vrot.lane.b32.xlu0 %v2746_v34, %s2847_s8  ;;  %726 = vrot.lane.b32.xlu1 %v2747_v35, %s2847_s8 }
  0x4f   : > { %756 = vrot.lane.b32.xlu0 %v2748_v36, %s2847_s8  ;;  %758 = vrot.lane.b32.xlu1 %v2749_v37, %s2847_s8 }
  0x53   : > { %722 = vrot.lane.b32.xlu0 %v2750_v38, %s2847_s8  ;;  %754 = vrot.lane.b32.xlu1 %v2751_v39, %s2847_s8 }
  0x57   : > { %928 = vrot.lane.b32.xlu0 %v2752_v40, %s2848_s9  ;;  %930 = vrot.lane.b32.xlu1 %v2753_v41, %s2848_s9 }
  0x5b   : > { %960 = vrot.lane.b32.xlu0 %v2754_v42, %s2848_s9  ;;  %962 = vrot.lane.b32.xlu1 %v2755_v43, %s2848_s9 }
  0x5f   : > { %926 = vrot.lane.b32.xlu0 %v2756_v44, %s2848_s9  ;;  %958 = vrot.lane.b32.xlu1 %v2757_v45, %s2848_s9 }
  0x63   : > { %728 = vrot.lane.b32.xlu0 %v2758_v46, %s2847_s8  ;;  %760 = vrot.lane.b32.xlu1 %v2759_v47, %s2847_s8  ;;  %v2794_v47 = vld [vmem:[%s2915_s7 + $0x18] sm:$0xff]  }
  0x67   : > { %932 = vrot.lane.b32.xlu0 %v2760_v48, %s2848_s9  ;;  %964 = vrot.lane.b32.xlu1 %v2761_v49, %s2848_s9  ;;  %v2795_v49 = vld [vmem:[%s2915_s7 + $0x78] sm:$0xff]  }
  0x6b   : > { %730 = vrot.lane.b32.xlu0 %v2762_v50, %s2847_s8  ;;  %762 = vrot.lane.b32.xlu1 %v2763_v51, %s2847_s8 }
  0x6f   : > { %934 = vrot.lane.b32.xlu0 %v2764_v52, %s2848_s9  ;;  %966 = vrot.lane.b32.xlu1 %v2765_v53, %s2848_s9 }
  0x73   : > { %734 = vrot.lane.b32.xlu0 %v2766_v54, %s2847_s8  ;;  %736 = vrot.lane.b32.xlu1 %v2767_v55, %s2847_s8 }
  0x77   : > { %766 = vrot.lane.b32.xlu0 %v2768_v56, %s2847_s8  ;;  %768 = vrot.lane.b32.xlu1 %v2769_v57, %s2847_s8 }
  0x7b   : > { %732 = vrot.lane.b32.xlu0 %v2770_v58, %s2847_s8  ;;  %764 = vrot.lane.b32.xlu1 %v2771_v59, %s2847_s8 }
  0x7f   : > { %938 = vrot.lane.b32.xlu0 %v2772_v60, %s2848_s9  ;;  %940 = vrot.lane.b32.xlu1 %v2773_v61, %s2848_s9 }
  0x83   : > { %970 = vrot.lane.b32.xlu0 %v2774_v62, %s2848_s9  ;;  %972 = vrot.lane.b32.xlu1 %v2775_v63, %s2848_s9  ;;  %v2796_v63 = vld [vmem:[%s2915_s7 + $0x24] sm:$0xff]  }
  0x85   : > { %v709_v2 = vpop.permute.xlu0 %708  ;;  %v707_v3 = vpop.permute.xlu1 %706 }
  0x86   : > { %v984_v13 = vsel %vm978_vm2, %v2776_v6, %v709_v2  ;;  %v981_v16 = vsel %vm978_vm2, %v2777_v9, %v707_v3  ;;  %v2799_v3 = vld [vmem:[%s2915_s7 + $0x8c] ss:$0 sps:$4 sm:$0xff]  }
  0x87   : > { %936 = vrot.lane.b32.xlu0 %v2778_v0, %s2848_s9  ;;  %968 = vrot.lane.b32.xlu1 %v2779_v1, %s2848_s9  ;;  %v2797_v0 = vld [vmem:[%s2915_s7 + $0x2c] ss:$0 sps:$4 sm:$0xff]   ;;  %v2798_v1 = vld [vmem:[%s2915_s7 + $0x84] sm:$0xff]  }
  0x89   : > { %v711_v7 = vpop.permute.xlu0 %710  ;;  %v913_v10 = vpop.permute.xlu1 %912 }
  0x8a   : > { %v987_v14 = vsel %vm978_vm2, %v2781_v8, %v711_v7  ;;  %v1085_v17 = vsel %vm1081_vm3, %v984_v13, %v913_v10  ;;  %v2800_v8 = vld [vmem:[%s2915_s7 + $0x20] ss:$0 sps:$4 sm:$0xff]  }
  0x8b   : > { %740 = vrot.lane.b32.xlu0 %v2782_v4, %s2847_s8  ;;  %772 = vrot.lane.b32.xlu1 %v2783_v5, %s2847_s8  ;;  %v2801_v13 = vld [vmem:[%s2915_s7 + $0x80] ss:$0 sps:$4 sm:$0xff]  }
  0x8d   : > { %v915_v15 = vpop.permute.xlu0 %914  ;;  %v911_v19 = vpop.permute.xlu1 %910 }
  0x8e   : > { %v1087_v18 = vsel %vm1081_vm3, %v987_v14, %v915_v15  ;;  %v1083_v21 = vsel %vm1081_vm3, %v981_v16, %v911_v19 }
  0x8f   : > { %v2309_v20 = vcombine.low %v1085_v17, %v1087_v18  ;;  %738 = vrot.lane.b32.xlu0 %v2785_v11, %s2847_s8  ;;  %770 = vrot.lane.b32.xlu1 %v2786_v12, %s2847_s8  ;;  %v1188_v35 = vunpack.c.h.b16 %v1087_v18 }
  0x90   : > { %2633 = vmatprep.mubr.msk.bf16.mxu0 %vm1276_vm4, %v1083_v21 }
  0x91   : > { %v713_v24 = vpop.permute.xlu0 %712  ;;  %2634 = vmatmul.mubr.msk.bf16.vlgmr.msra.gmra.mrb[0].mxu0 %vm1276_vm4, %v2309_v20  ;;  %v743_v26 = vpop.permute.xlu1 %742 }
  0x92   : > { %v990_v31 = vsel %vm978_vm2, %v2787_v25, %v713_v24  ;;  %v1035_v37 = vsel %vm978_vm2, %v2788_v29, %v743_v26 }
  0x93   : > { %944 = vrot.lane.b32.xlu0 %v2789_v22, %s2848_s9  ;;  %976 = vrot.lane.b32.xlu1 %v2790_v23, %s2848_s9 }
  0x95   : > { %v745_v30 = vpop.permute.xlu0 %744  ;;  %v917_v33 = vpop.permute.xlu1 %916 }
  0x96   : > { %v1089_v34 = vsel %vm1081_vm3, %v990_v31, %v917_v33  ;;  %v1038_v39 = vsel %vm978_vm2, %v2791_v32, %v745_v30 }
  0x97   : > { %942 = vrot.lane.b32.xlu0 %v2792_v27, %s2848_s9  ;;  %v1189_v36 = vunpack.c.l.b16 %v1089_v34  ;;  %974 = vrot.lane.b32.xlu1 %v2793_v28, %s2848_s9 }
  0x99   : > { %v947_v38 = vpop.permute.xlu0 %946  ;;  %v1241_v40 = vpack.c.b16 %v1189_v36, %v1188_v35  ;;  %v949_v42 = vpop.permute.xlu1 %948 }
  0x9a   : > { %v3071_v41 = vsel %vm1081_vm3, %v1035_v37, %v947_v38  ;;  %v1121_v44 = vsel %vm1081_vm3, %v1038_v39, %v949_v42  ;;  %v2802_v38 = vld [vmem:[%s2915_s7 + $0x38] ss:$0 sps:$4 sm:$0xff]   ;;  %v2803_v39 = vld [vmem:[%s2915_s7 + $0x3c] sm:$0xff]  }
  0x9b   : > { %v1212_v43 = vunpack.c.h.b16 %v3071_v41  ;;  %v1213_v45 = vunpack.c.l.b16 %v1121_v44  ;;  %2637 = vmatprep.mubr.msk.bf16.mxu0 %vm1276_vm4, %v1241_v40  ;;  %v2804_v42 = vld [vmem:[%s2915_s7 + $0x98] ss:$0 sps:$4 sm:$0xff]   ;;  %v2806_v44 = vld [vmem:[%s2915_s7 + $0x30] sm:$0xff]  }
  0x9d   : > { %v715_v46 = vpop.permute.xlu0 %714  ;;  %v747_v48 = vpop.permute.xlu1 %746  ;;  %v1253_v50 = vpack.c.b16 %v1213_v45, %v1212_v43  ;;  %v2805_v43 = vld [vmem:[%s2915_s7 + $0x9c] sm:$0xff]  }
  0x9e   : > { %v993_v51 = vsel %vm978_vm2, %v2794_v47, %v715_v46  ;;  %v1041_v53 = vsel %vm978_vm2, %v2795_v49, %v747_v48  ;;  %v2807_v48 = vld [vmem:[%s2915_s7 + $0x90] sm:$0xff]  }
  0x9f   : > { %2661 = vmatprep.mubr.msk.bf16.mxu1 %vm1276_vm4, %v1253_v50 }
  0xa1   : > { %v919_v52 = vpop.permute.xlu0 %918  ;;  %v951_v55 = vpop.permute.xlu1 %950 }
  0xa2   : > { %v1091_v54 = vsel %vm1081_vm3, %v993_v51, %v919_v52  ;;  %v1123_v56 = vsel %vm1081_vm3, %v1041_v53, %v951_v55 }
  0xa3   : > { %2638 = vmatmul.mubr.msk.bf16.gmra.mrb[4].mxu0 %vm1276_vm4, %v1091_v54  ;;  %2662 = vmatmul.mubr.msk.bf16.vlgmr.msra.gmra.mrb[0].mxu1 %vm1276_vm4, %v1123_v56 }
  0xa5   : > { %v719_v57 = vpop.permute.xlu0 %718  ;;  %v721_v58 = vpop.permute.xlu1 %720 }
  0xa6   : > { %v999_v5 = vsel %vm978_vm2, %v2796_v63, %v719_v57  ;;  %v1002_v6 = vsel %vm978_vm2, %v2797_v0, %v721_v58 }
  0xa9   : > { %v751_v59 = vpop.permute.xlu0 %750  ;;  %v753_v60 = vpop.permute.xlu1 %752 }
  0xaa   : > { %v1047_v7 = vsel %vm978_vm2, %v2798_v1, %v751_v59  ;;  %v1050_v12 = vsel %vm978_vm2, %v2799_v3, %v753_v60  ;;  %v2808_v1 = vld [vmem:[%s2915_s7 + $0x44] ss:$0 sps:$4 sm:$0xff]  }
  0xab   : > { %v2809_v3 = vld [vmem:[%s2915_s7 + $0xa4] ss:$0 sps:$4 sm:$0xff]  }
  0xad   : > { %v717_v61 = vpop.permute.xlu0 %716  ;;  %v749_v62 = vpop.permute.xlu1 %748 }
  0xae   : > { %v996_v19 = vsel %vm978_vm2, %v2800_v8, %v717_v61  ;;  %v1044_v23 = vsel %vm978_vm2, %v2801_v13, %v749_v62 }
  0xb1   : > { %v923_v2 = vpop.permute.xlu0 %922  ;;  %v925_v4 = vpop.permute.xlu1 %924 }
  0xb2   : > { %v1095_v9 = vsel %vm1081_vm3, %v999_v5, %v923_v2  ;;  %v1097_v10 = vsel %vm1081_vm3, %v1002_v6, %v925_v4 }
  0xb3   : > { %v1194_v17 = vunpack.c.h.b16 %v1095_v9  ;;  %v1195_v18 = vunpack.c.l.b16 %v1097_v10 }
  0xb5   : > { %v955_v11 = vpop.permute.xlu0 %954  ;;  %v957_v15 = vpop.permute.xlu1 %956  ;;  %v1244_v28 = vpack.c.b16 %v1195_v18, %v1194_v17 }
  0xb6   : > { %v1127_v14 = vsel %vm1081_vm3, %v1047_v7, %v955_v11  ;;  %v1129_v16 = vsel %vm1081_vm3, %v1050_v12, %v957_v15 }
  0xb7   : > { %v1218_v20 = vunpack.c.h.b16 %v1127_v14  ;;  %v1219_v21 = vunpack.c.l.b16 %v1129_v16  ;;  %v2810_v16 = vld [vmem:[%s2915_s7 + $0x48] sm:$0xff]  }
  0xb9   : > { %v921_v22 = vpop.permute.xlu0 %920  ;;  %v953_v25 = vpop.permute.xlu1 %952  ;;  %v1256_v30 = vpack.c.b16 %v1219_v21, %v1218_v20 }
  0xba   : > { %v1093_v24 = vsel %vm1081_vm3, %v996_v19, %v921_v22  ;;  %v1125_v27 = vsel %vm1081_vm3, %v1044_v23, %v953_v25  ;;  %v2811_v19 = vld [vmem:[%s2915_s7 + $0xa8] sm:$0xff]  }
  0xbb   : > { %v2310_v26 = vcombine.low %v1093_v24, %v1095_v9  ;;  %v2314_v29 = vcombine.low %v1125_v27, %v1127_v14 }
  0xbd   : > { %v725_v31 = vpop.permute.xlu0 %724  ;;  %2641 = vmatprep.mubr.msk.bf16.mxu0 %vm1276_vm4, %v2310_v26  ;;  %v727_v32 = vpop.permute.xlu1 %726  ;;  %2665 = vmatprep.mubr.msk.bf16.mxu1 %vm1276_vm4, %v2314_v29 }
  0xbe   : > { %2642 = vmatmul.mubr.msk.bf16.gmra.mrb[8].mxu0 %vm1276_vm4, %v1244_v28  ;;  %2666 = vmatmul.mubr.msk.bf16.gmra.mrb[4].mxu1 %vm1276_vm4, %v1256_v30  ;;  %v1008_v46 = vsel %vm978_vm2, %v2802_v38, %v725_v31  ;;  %v1011_v47 = vsel %vm978_vm2, %v2803_v39, %v727_v32  ;;  %v2812_v32 = vld [vmem:[%s2915_s7 + $0x54] sm:$0xff]  }
  0xc1   : > { %v757_v33 = vpop.permute.xlu0 %756  ;;  %v759_v34 = vpop.permute.xlu1 %758 }
  0xc2   : > { %v1056_v50 = vsel %vm978_vm2, %v2804_v42, %v757_v33  ;;  %v1059_v51 = vsel %vm978_vm2, %v2805_v43, %v759_v34  ;;  %v2813_v33 = vld [vmem:[%s2915_s7 + $0x5c] ss:$0 sps:$4 sm:$0xff]   ;;  %v2814_v34 = vld [vmem:[%s2915_s7 + $0xb4] sm:$0xff]   ;;  %v2816_v42 = vld [vmem:[%s2915_s7 + $0x50] ss:$0 sps:$4 sm:$0xff]  }
  0xc5   : > { %v723_v35 = vpop.permute.xlu0 %722  ;;  %v755_v36 = vpop.permute.xlu1 %754 }
  0xc6   : > { %v1005_v56 = vsel %vm978_vm2, %v2806_v44, %v723_v35  ;;  %v1053_v58 = vsel %vm978_vm2, %v2807_v48, %v755_v36  ;;  %v2815_v36 = vld [vmem:[%s2915_s7 + $0xbc] ss:$0 sps:$4 sm:$0xff]  }
  0xc9   : > { %v929_v37 = vpop.permute.xlu0 %928  ;;  %v931_v40 = vpop.permute.xlu1 %930 }
  0xca   : > { %v1101_v52 = vsel %vm1081_vm3, %v1008_v46, %v929_v37  ;;  %v1103_v53 = vsel %vm1081_vm3, %v1011_v47, %v931_v40  ;;  %v2817_v47 = vld [vmem:[%s2915_s7 + $0xb0] ss:$0 sps:$4 sm:$0xff]  }
  0xcb   : > { %v2311_v59 = vcombine.low %v1101_v52, %v1103_v53  ;;  %v1200_v9 = vunpack.c.h.b16 %v1103_v53 }
  0xcd   : > { %v961_v45 = vpop.permute.xlu0 %960  ;;  %v963_v49 = vpop.permute.xlu1 %962 }
  0xce   : > { %v1133_v54 = vsel %vm1081_vm3, %v1056_v50, %v961_v45  ;;  %v1135_v55 = vsel %vm1081_vm3, %v1059_v51, %v963_v49 }
  0xcf   : > { %v2315_v62 = vcombine.low %v1133_v54, %v1135_v55  ;;  %v1224_v12 = vunpack.c.h.b16 %v1135_v55 }
  0xd1   : > { %v927_v57 = vpop.permute.xlu0 %926  ;;  %v959_v61 = vpop.permute.xlu1 %958 }
  0xd2   : > { %v1099_v60 = vsel %vm1081_vm3, %v1005_v56, %v927_v57  ;;  %v1131_v63 = vsel %vm1081_vm3, %v1053_v58, %v959_v61 }
  0xd3   : > { %2645 = vmatprep.mubr.msk.bf16.mxu0 %vm1276_vm4, %v1099_v60  ;;  %2669 = vmatprep.mubr.msk.bf16.mxu1 %vm1276_vm4, %v1131_v63 }
  0xd4   : > { %2646 = vmatmul.mubr.msk.bf16.gmra.mrb[12].mxu0 %vm1276_vm4, %v2311_v59  ;;  %2670 = vmatmul.mubr.msk.bf16.gmra.mrb[8].mxu1 %vm1276_vm4, %v2315_v62 }
  0xd5   : > { %v729_v0 = vpop.permute.xlu0 %728  ;;  %v761_v2 = vpop.permute.xlu1 %760 }
  0xd6   : > { %v1014_v4 = vsel %vm978_vm2, %v2808_v1, %v729_v0  ;;  %v1062_v6 = vsel %vm978_vm2, %v2809_v3, %v761_v2 }
  0xd9   : > { %v933_v5 = vpop.permute.xlu0 %932  ;;  %v965_v8 = vpop.permute.xlu1 %964 }
  0xda   : > { %v1105_v7 = vsel %vm1081_vm3, %v1014_v4, %v933_v5  ;;  %v1137_v11 = vsel %vm1081_vm3, %v1062_v6, %v965_v8  ;;  %v2818_v4 = vld [vmem:[%s2915_s7 + $0x68] ss:$0 sps:$4 sm:$0xff]  }
  0xdb   : > { %v1201_v10 = vunpack.c.l.b16 %v1105_v7  ;;  %v1225_v13 = vunpack.c.l.b16 %v1137_v11  ;;  %v2819_v6 = vld [vmem:[%s2915_s7 + $0xc8] ss:$0 sps:$4 sm:$0xff]   ;;  %v2820_v7 = vld [vmem:[%s2915_s7 + $0x60] sm:$0xff]  }
  0xdd   : > { %v1247_v14 = vpack.c.b16 %v1201_v10, %v1200_v9  ;;  %v731_v15 = vpop.permute.xlu0 %730  ;;  %v1259_v17 = vpack.c.b16 %v1225_v13, %v1224_v12  ;;  %v763_v18 = vpop.permute.xlu1 %762  ;;  %v2821_v10 = vld [vmem:[%s2915_s7 + $0xc0] sm:$0xff]  }
  0xde   : > { %v1017_v20 = vsel %vm978_vm2, %v2810_v16, %v731_v15  ;;  %v1065_v22 = vsel %vm978_vm2, %v2811_v19, %v763_v18 }
  0xdf   : > { %2649 = vmatprep.mubr.msk.bf16.mxu0 %vm1276_vm4, %v1247_v14  ;;  %2673 = vmatprep.mubr.msk.bf16.mxu1 %vm1276_vm4, %v1259_v17 }
  0xe1   : > { %v935_v21 = vpop.permute.xlu0 %934  ;;  %v967_v24 = vpop.permute.xlu1 %966 }
  0xe2   : > { %v1107_v23 = vsel %vm1081_vm3, %v1017_v20, %v935_v21  ;;  %v1139_v25 = vsel %vm1081_vm3, %v1065_v22, %v967_v24  ;;  %v3192_v24 = vld [vmem:[%s3341_s4] ss:$0 sm:$0xff] }
  0xe3   : > { %2650 = vmatmul.mubr.msk.bf16.gmra.mrb[16].mxu0 %vm1276_vm4, %v1107_v23  ;;  %2674 = vmatmul.mubr.msk.bf16.gmra.mrb[12].mxu1 %vm1276_vm4, %v1139_v25  ;;  %v3187_v23 = vld [vmem:[%s3340_s3] ss:$0 sm:$0xff] }
  0xe5   : > { %v735_v26 = vpop.permute.xlu0 %734  ;;  %v737_v27 = vpop.permute.xlu1 %736 }
  0xe6   : > { %v1023_v38 = vsel %vm978_vm2, %v2812_v32, %v735_v26  ;;  %v1026_v39 = vsel %vm978_vm2, %v2813_v33, %v737_v27 }
  0xe9   : > { %v767_v28 = vpop.permute.xlu0 %766  ;;  %v769_v29 = vpop.permute.xlu1 %768 }
  0xea   : > { %v1071_v40 = vsel %vm978_vm2, %v2814_v34, %v767_v28  ;;  %v1074_v46 = vsel %vm978_vm2, %v2815_v36, %v769_v29 }
  0xed   : > { %v733_v30 = vpop.permute.xlu0 %732  ;;  %v765_v31 = vpop.permute.xlu1 %764 }
  0xee   : > { %v1020_v53 = vsel %vm978_vm2, %v2816_v42, %v733_v30  ;;  %v1068_v57 = vsel %vm978_vm2, %v2817_v47, %v765_v31 }
  0xf1   : > { %v939_v35 = vpop.permute.xlu0 %938  ;;  %v941_v37 = vpop.permute.xlu1 %940 }
  0xf2   : > { %v1111_v43 = vsel %vm1081_vm3, %v1023_v38, %v939_v35  ;;  %v1113_v44 = vsel %vm1081_vm3, %v1026_v39, %v941_v37 }
  0xf3   : > { %v1206_v51 = vunpack.c.h.b16 %v1111_v43  ;;  %v1207_v52 = vunpack.c.l.b16 %v1113_v44 }
  0xf5   : > { %v971_v45 = vpop.permute.xlu0 %970  ;;  %v973_v49 = vpop.permute.xlu1 %972  ;;  %v1250_v62 = vpack.c.b16 %v1207_v52, %v1206_v51 }
  0xf6   : > { %v1143_v48 = vsel %vm1081_vm3, %v1071_v40, %v971_v45  ;;  %v1145_v50 = vsel %vm1081_vm3, %v1074_v46, %v973_v49 }
  0xf7   : > { %v1230_v54 = vunpack.c.h.b16 %v1143_v48  ;;  %v1231_v55 = vunpack.c.l.b16 %v1145_v50 }
  0xf9   : > { %v937_v56 = vpop.permute.xlu0 %936  ;;  %v969_v59 = vpop.permute.xlu1 %968  ;;  %v1262_v0 = vpack.c.b16 %v1231_v55, %v1230_v54 }
  0xfa   : > { %v1109_v58 = vsel %vm1081_vm3, %v1020_v53, %v937_v56  ;;  %v1141_v61 = vsel %vm1081_vm3, %v1068_v57, %v969_v59 }
  0xfb   : > { %v2312_v60 = vcombine.low %v1109_v58, %v1111_v43  ;;  %v2316_v63 = vcombine.low %v1141_v61, %v1143_v48 }
  0xfd   : > { %v741_v1 = vpop.permute.xlu0 %740  ;;  %2653 = vmatprep.mubr.msk.bf16.mxu0 %vm1276_vm4, %v2312_v60  ;;  %v773_v2 = vpop.permute.xlu1 %772  ;;  %2677 = vmatprep.mubr.msk.bf16.mxu1 %vm1276_vm4, %v2316_v63 }
  0xfe   : > { %2654 = vmatmul.mubr.msk.bf16.gmra.mrb[20].mxu0 %vm1276_vm4, %v1250_v62  ;;  %2678 = vmatmul.mubr.msk.bf16.gmra.mrb[16].mxu1 %vm1276_vm4, %v1262_v0  ;;  %v1032_v9 = vsel %vm978_vm2, %v2818_v4, %v741_v1  ;;  %v1080_v12 = vsel %vm978_vm2, %v2819_v6, %v773_v2 }
 0x101   : > { %v739_v3 = vpop.permute.xlu0 %738  ;;  %v771_v5 = vpop.permute.xlu1 %770 }
 0x102   : > { %v1029_v15 = vsel %vm978_vm2, %v2820_v7, %v739_v3  ;;  %v1077_v17 = vsel %vm978_vm2, %v2821_v10, %v771_v5 }
 0x105   : > { %v945_v8 = vpop.permute.xlu0 %944  ;;  %v977_v11 = vpop.permute.xlu1 %976 }
 0x106   : > { %v1117_v13 = vsel %vm1081_vm3, %v1032_v9, %v945_v8  ;;  %v1149_v14 = vsel %vm1081_vm3, %v1080_v12, %v977_v11 }
 0x107   : > { %v2313_v18 = vcombine.low %v1117_v13, %v3071_v41  ;;  %v2317_v21 = vcombine.low %v1149_v14, %v1149_v14 }
 0x109   : > { %v943_v16 = vpop.permute.xlu0 %942  ;;  %v975_v20 = vpop.permute.xlu1 %974 }
 0x10a   : > { %v1115_v19 = vsel %vm1081_vm3, %v1029_v15, %v943_v16  ;;  %v1147_v22 = vsel %vm1081_vm3, %v1077_v17, %v975_v20 }
 0x10b   : > { %2657 = vmatprep.mubr.msk.bf16.mxu0 %vm1276_vm4, %v1115_v19  ;;  %2681 = vmatprep.mubr.msk.bf16.mxu1 %vm1276_vm4, %v1147_v22 }
 0x10c   : > { %2658 = vmatmul.mubr.msk.bf16.gmra.mrb[24].mxu0 %vm1276_vm4, %v2313_v18  ;;  %2682 = vmatmul.mubr.msk.bf16.gmra.mrb[20].mxu1 %vm1276_vm4, %v2317_v21 }
 0x164   : > { %v2635_v41 = vpop.f32.mrb[0].mxu0 }
 0x165   : > { %v1611_v25 = vmul.f32 %v2635_v41, %v3187_v23  ;;  %v1396_v26 = vpop.f32.mrb[1].mxu0 }
 0x166   : > { %v1609_v27 = vmul.f32 %v3187_v23, %v1396_v26  ;;  %v2636_v28 = vpop.f32.mrb[2].mxu0 }
 0x167   : > { %v1669_v29 = vadd.f32 %v3192_v24, %v1611_v25  ;;  %v1612_v30 = vmul.f32 %v2636_v28, %v3187_v23  ;;  %v1399_v31 = vpop.f32.mrb[3].mxu0 }
 0x168   : > { %v1667_v32 = vadd.f32 %v3192_v24, %v1609_v27  ;;  %v1610_v33 = vmul.f32 %v3187_v23, %v1399_v31 }
 0x169   : > { %v1670_v34 = vadd.f32 %v3192_v24, %v1612_v30  ;;  %v1720_v36 = vmax.f32 %v1669_v29, 0.0 }
 0x16a   : > { %v1668_v35 = vadd.f32 %v3192_v24, %v1610_v33  ;;  %v1718_v38 = vmax.f32 %v1667_v32, 0.0 }
 0x16b   : > { %v1721_v37 = vmax.f32 %v1670_v34, 0.0 }
 0x16c   : > { %v1719_v39 = vmax.f32 %v1668_v35, 0.0 }
 0x16d   : > { %v2460_v40 = vpack.c.bf16 %v1721_v37, %v1720_v36 }
 0x16e   : > { %v2455_v42 = vpack.c.bf16 %v1719_v39, %v1718_v38 }
 0x16f   : > { %2577 = vst [vmem:[%s3206_s17 + $0x8] sm:$0xff] %v2460_v40  }
 0x170   : > { %2456 = vst [vmem:[%s3206_s17] sm:$0xff] %v2455_v42  }
 0x176   : > { %v2639_v43 = vpop.f32.mrb[4].mxu0  ;;  %v2663_v45 = vpop.f32.mrb[0].mxu1 }
 0x177   : > { %v1615_v44 = vmul.f32 %v2639_v43, %v3187_v23  ;;  %v1412_v46 = vpop.f32.mrb[5].mxu0  ;;  %v1639_v47 = vmul.f32 %v2663_v45, %v3187_v23  ;;  %v1508_v49 = vpop.f32.mrb[1].mxu1 }
 0x178   : > { %v1613_v48 = vmul.f32 %v3187_v23, %v1412_v46  ;;  %v2640_v50 = vpop.f32.mrb[6].mxu0  ;;  %v1637_v52 = vmul.f32 %v3187_v23, %v1508_v49  ;;  %v2664_v54 = vpop.f32.mrb[2].mxu1 }
 0x179   : > { %v1673_v51 = vadd.f32 %v3192_v24, %v1615_v44  ;;  %v1616_v53 = vmul.f32 %v2640_v50, %v3187_v23  ;;  %v1415_v55 = vpop.f32.mrb[7].mxu0  ;;  %v1697_v56 = vadd.f32 %v3192_v24, %v1639_v47  ;;  %v1640_v58 = vmul.f32 %v2664_v54, %v3187_v23  ;;  %v1511_v60 = vpop.f32.mrb[3].mxu1 }
 0x17a   : > { %v1671_v57 = vadd.f32 %v3192_v24, %v1613_v48  ;;  %v1614_v59 = vmul.f32 %v3187_v23, %v1415_v55  ;;  %v1695_v61 = vadd.f32 %v3192_v24, %v1637_v52  ;;  %v1638_v63 = vmul.f32 %v3187_v23, %v1511_v60 }
 0x17b   : > { %v1674_v62 = vadd.f32 %v3192_v24, %v1616_v53  ;;  %v1698_v0 = vadd.f32 %v3192_v24, %v1640_v58  ;;  %v1724_v2 = vmax.f32 %v1673_v51, 0.0  ;;  %v1748_v5 = vmax.f32 %v1697_v56, 0.0 }
 0x17c   : > { %v1672_v1 = vadd.f32 %v3192_v24, %v1614_v59  ;;  %v1696_v4 = vadd.f32 %v3192_v24, %v1638_v63  ;;  %v1722_v6 = vmax.f32 %v1671_v57, 0.0  ;;  %v1746_v9 = vmax.f32 %v1695_v61, 0.0 }
 0x17d   : > { %v1725_v3 = vmax.f32 %v1674_v62, 0.0  ;;  %v1749_v7 = vmax.f32 %v1698_v0, 0.0 }
 0x17e   : > { %v1723_v8 = vmax.f32 %v1672_v1, 0.0  ;;  %v1747_v11 = vmax.f32 %v1696_v4, 0.0 }
 0x17f   : > { %v2470_v10 = vpack.c.bf16 %v1725_v3, %v1724_v2  ;;  %v2530_v12 = vpack.c.bf16 %v1749_v7, %v1748_v5 }
 0x180   : > { %v2465_v13 = vpack.c.bf16 %v1723_v8, %v1722_v6  ;;  %v2525_v14 = vpack.c.bf16 %v1747_v11, %v1746_v9 }
 0x181   : > { %2579 = vst [vmem:[%s3206_s17 + $0x18] sm:$0xff] %v2470_v10   ;;  %2591 = vst [vmem:[%s3206_s17 + $0x78] sm:$0xff] %v2530_v12  }
 0x182   : > { %2578 = vst [vmem:[%s3206_s17 + $0x10] sm:$0xff] %v2465_v13   ;;  %2590 = vst [vmem:[%s3206_s17 + $0x70] sm:$0xff] %v2525_v14  }
 0x191   : > { %v2643_v15 = vpop.f32.mrb[8].mxu0  ;;  %v2667_v17 = vpop.f32.mrb[4].mxu1 }
 0x192   : > { %v1619_v16 = vmul.f32 %v2643_v15, %v3187_v23  ;;  %v1428_v18 = vpop.f32.mrb[9].mxu0  ;;  %v1643_v19 = vmul.f32 %v2667_v17, %v3187_v23  ;;  %v1524_v21 = vpop.f32.mrb[5].mxu1 }
 0x193   : > { %v1617_v20 = vmul.f32 %v3187_v23, %v1428_v18  ;;  %v2644_v22 = vpop.f32.mrb[10].mxu0  ;;  %v1641_v25 = vmul.f32 %v3187_v23, %v1524_v21  ;;  %v2668_v27 = vpop.f32.mrb[6].mxu1 }
 0x194   : > { %v1677_v41 = vadd.f32 %v3192_v24, %v1619_v16  ;;  %v1620_v26 = vmul.f32 %v2644_v22, %v3187_v23  ;;  %v1431_v28 = vpop.f32.mrb[11].mxu0  ;;  %v1701_v29 = vadd.f32 %v3192_v24, %v1643_v19  ;;  %v1644_v31 = vmul.f32 %v2668_v27, %v3187_v23  ;;  %v1527_v33 = vpop.f32.mrb[7].mxu1 }
 0x195   : > { %v1675_v30 = vadd.f32 %v3192_v24, %v1617_v20  ;;  %v1618_v32 = vmul.f32 %v3187_v23, %v1431_v28  ;;  %v1699_v34 = vadd.f32 %v3192_v24, %v1641_v25  ;;  %v1642_v36 = vmul.f32 %v3187_v23, %v1527_v33 }
 0x196   : > { %v1678_v35 = vadd.f32 %v3192_v24, %v1620_v26  ;;  %v1702_v37 = vadd.f32 %v3192_v24, %v1644_v31  ;;  %v1728_v39 = vmax.f32 %v1677_v41, 0.0  ;;  %v1752_v43 = vmax.f32 %v1701_v29, 0.0 }
 0x197   : > { %v1676_v38 = vadd.f32 %v3192_v24, %v1618_v32  ;;  %v1700_v42 = vadd.f32 %v3192_v24, %v1642_v36  ;;  %v1726_v44 = vmax.f32 %v1675_v30, 0.0  ;;  %v1750_v47 = vmax.f32 %v1699_v34, 0.0 }
 0x198   : > { %v1729_v40 = vmax.f32 %v1678_v35, 0.0  ;;  %v1753_v45 = vmax.f32 %v1702_v37, 0.0 }
 0x199   : > { %v1727_v46 = vmax.f32 %v1676_v38, 0.0  ;;  %v1751_v49 = vmax.f32 %v1700_v42, 0.0 }
 0x19a   : > { %v2480_v48 = vpack.c.bf16 %v1729_v40, %v1728_v39  ;;  %v2540_v50 = vpack.c.bf16 %v1753_v45, %v1752_v43 }
 0x19b   : > { %v2475_v51 = vpack.c.bf16 %v1727_v46, %v1726_v44  ;;  %v2535_v52 = vpack.c.bf16 %v1751_v49, %v1750_v47 }
 0x19c   : > { %2581 = vst [vmem:[%s3206_s17 + $0x28] sm:$0xff] %v2480_v48   ;;  %2593 = vst [vmem:[%s3206_s17 + $0x88] sm:$0xff] %v2540_v50  }
 0x19d   : > { %2580 = vst [vmem:[%s3206_s17 + $0x20] sm:$0xff] %v2475_v51   ;;  %2592 = vst [vmem:[%s3206_s17 + $0x80] sm:$0xff] %v2535_v52  }
 0x1a7   : > { %v2647_v53 = vpop.f32.mrb[12].mxu0  ;;  %v2671_v55 = vpop.f32.mrb[8].mxu1 }
 0x1a8   : > { %v1623_v54 = vmul.f32 %v2647_v53, %v3187_v23  ;;  %v1444_v56 = vpop.f32.mrb[13].mxu0  ;;  %v1647_v57 = vmul.f32 %v2671_v55, %v3187_v23  ;;  %v1540_v59 = vpop.f32.mrb[9].mxu1 }
 0x1a9   : > { %v1621_v58 = vmul.f32 %v3187_v23, %v1444_v56  ;;  %v2648_v60 = vpop.f32.mrb[14].mxu0  ;;  %v1645_v62 = vmul.f32 %v3187_v23, %v1540_v59  ;;  %v2672_v0 = vpop.f32.mrb[10].mxu1 }
 0x1aa   : > { %v1681_v61 = vadd.f32 %v3192_v24, %v1623_v54  ;;  %v1624_v63 = vmul.f32 %v2648_v60, %v3187_v23  ;;  %v1447_v1 = vpop.f32.mrb[15].mxu0  ;;  %v1705_v2 = vadd.f32 %v3192_v24, %v1647_v57  ;;  %v1648_v4 = vmul.f32 %v2672_v0, %v3187_v23  ;;  %v1543_v6 = vpop.f32.mrb[11].mxu1 }
 0x1ab   : > { %v1679_v3 = vadd.f32 %v3192_v24, %v1621_v58  ;;  %v1622_v5 = vmul.f32 %v3187_v23, %v1447_v1  ;;  %v1703_v7 = vadd.f32 %v3192_v24, %v1645_v62  ;;  %v1646_v9 = vmul.f32 %v3187_v23, %v1543_v6 }
 0x1ac   : > { %v1682_v8 = vadd.f32 %v3192_v24, %v1624_v63  ;;  %v1706_v10 = vadd.f32 %v3192_v24, %v1648_v4  ;;  %v1732_v12 = vmax.f32 %v1681_v61, 0.0  ;;  %v1756_v15 = vmax.f32 %v1705_v2, 0.0 }
 0x1ad   : > { %v1680_v11 = vadd.f32 %v3192_v24, %v1622_v5  ;;  %v1704_v14 = vadd.f32 %v3192_v24, %v1646_v9  ;;  %v1730_v16 = vmax.f32 %v1679_v3, 0.0  ;;  %v1754_v19 = vmax.f32 %v1703_v7, 0.0 }
 0x1ae   : > { %v1733_v13 = vmax.f32 %v1682_v8, 0.0  ;;  %v1757_v17 = vmax.f32 %v1706_v10, 0.0 }
 0x1af   : > { %v1731_v18 = vmax.f32 %v1680_v11, 0.0  ;;  %v1755_v21 = vmax.f32 %v1704_v14, 0.0 }
 0x1b0   : > { %v2490_v20 = vpack.c.bf16 %v1733_v13, %v1732_v12  ;;  %v2550_v22 = vpack.c.bf16 %v1757_v17, %v1756_v15 }
 0x1b1   : > { %v2485_v41 = vpack.c.bf16 %v1731_v18, %v1730_v16  ;;  %v2545_v25 = vpack.c.bf16 %v1755_v21, %v1754_v19 }
 0x1b2   : > { %2583 = vst [vmem:[%s3206_s17 + $0x38] sm:$0xff] %v2490_v20   ;;  %2595 = vst [vmem:[%s3206_s17 + $0x98] sm:$0xff] %v2550_v22  }
 0x1b3   : > { %2582 = vst [vmem:[%s3206_s17 + $0x30] sm:$0xff] %v2485_v41   ;;  %2594 = vst [vmem:[%s3206_s17 + $0x90] sm:$0xff] %v2545_v25  }
 0x1b6   : > { %v2651_v26 = vpop.f32.mrb[16].mxu0  ;;  %v2675_v28 = vpop.f32.mrb[12].mxu1 }
 0x1b7   : > { %v1627_v27 = vmul.f32 %v2651_v26, %v3187_v23  ;;  %v1460_v29 = vpop.f32.mrb[17].mxu0  ;;  %v1651_v30 = vmul.f32 %v2675_v28, %v3187_v23  ;;  %v1556_v32 = vpop.f32.mrb[13].mxu1 }
 0x1b8   : > { %v1625_v31 = vmul.f32 %v3187_v23, %v1460_v29  ;;  %v2652_v33 = vpop.f32.mrb[18].mxu0  ;;  %v1649_v35 = vmul.f32 %v3187_v23, %v1556_v32  ;;  %v2676_v37 = vpop.f32.mrb[14].mxu1 }
 0x1b9   : > { %v1685_v34 = vadd.f32 %v3192_v24, %v1627_v27  ;;  %v1628_v36 = vmul.f32 %v2652_v33, %v3187_v23  ;;  %v1463_v38 = vpop.f32.mrb[19].mxu0  ;;  %v1709_v39 = vadd.f32 %v3192_v24, %v1651_v30  ;;  %v1652_v42 = vmul.f32 %v2676_v37, %v3187_v23  ;;  %v1559_v44 = vpop.f32.mrb[15].mxu1 }
 0x1ba   : > { %v1683_v40 = vadd.f32 %v3192_v24, %v1625_v31  ;;  %v1626_v43 = vmul.f32 %v3187_v23, %v1463_v38  ;;  %v1707_v45 = vadd.f32 %v3192_v24, %v1649_v35  ;;  %v1650_v47 = vmul.f32 %v3187_v23, %v1559_v44 }
 0x1bb   : > { %v1686_v46 = vadd.f32 %v3192_v24, %v1628_v36  ;;  %v1710_v48 = vadd.f32 %v3192_v24, %v1652_v42  ;;  %v1736_v50 = vmax.f32 %v1685_v34, 0.0  ;;  %v1760_v53 = vmax.f32 %v1709_v39, 0.0 }
 0x1bc   : > { %v1684_v49 = vadd.f32 %v3192_v24, %v1626_v43  ;;  %v1708_v52 = vadd.f32 %v3192_v24, %v1650_v47  ;;  %v1734_v54 = vmax.f32 %v1683_v40, 0.0  ;;  %v1758_v57 = vmax.f32 %v1707_v45, 0.0 }
 0x1bd   : > { %v1737_v51 = vmax.f32 %v1686_v46, 0.0  ;;  %v1761_v55 = vmax.f32 %v1710_v48, 0.0 }
 0x1be   : > { %v1735_v56 = vmax.f32 %v1684_v49, 0.0  ;;  %v1759_v59 = vmax.f32 %v1708_v52, 0.0 }
 0x1bf   : > { %v2500_v58 = vpack.c.bf16 %v1737_v51, %v1736_v50  ;;  %v2560_v60 = vpack.c.bf16 %v1761_v55, %v1760_v53 }
 0x1c0   : > { %v2495_v61 = vpack.c.bf16 %v1735_v56, %v1734_v54  ;;  %v2555_v62 = vpack.c.bf16 %v1759_v59, %v1758_v57 }
 0x1c1   : > { %2585 = vst [vmem:[%s3206_s17 + $0x48] sm:$0xff] %v2500_v58   ;;  %2597 = vst [vmem:[%s3206_s17 + $0xa8] sm:$0xff] %v2560_v60  }
 0x1c2   : > { %2584 = vst [vmem:[%s3206_s17 + $0x40] sm:$0xff] %v2495_v61   ;;  %2596 = vst [vmem:[%s3206_s17 + $0xa0] sm:$0xff] %v2555_v62  }
 0x1d1   : > { %v2655_v63 = vpop.f32.mrb[20].mxu0  ;;  %v2679_v1 = vpop.f32.mrb[16].mxu1 }
 0x1d2   : > { %v1631_v0 = vmul.f32 %v2655_v63, %v3187_v23  ;;  %v1476_v2 = vpop.f32.mrb[21].mxu0  ;;  %v1655_v3 = vmul.f32 %v2679_v1, %v3187_v23  ;;  %v1572_v5 = vpop.f32.mrb[17].mxu1 }
 0x1d3   : > { %v1629_v4 = vmul.f32 %v3187_v23, %v1476_v2  ;;  %v2656_v6 = vpop.f32.mrb[22].mxu0  ;;  %v1653_v8 = vmul.f32 %v3187_v23, %v1572_v5  ;;  %v2680_v10 = vpop.f32.mrb[18].mxu1 }
 0x1d4   : > { %v1689_v7 = vadd.f32 %v3192_v24, %v1631_v0  ;;  %v1632_v9 = vmul.f32 %v2656_v6, %v3187_v23  ;;  %v1479_v11 = vpop.f32.mrb[23].mxu0  ;;  %v1713_v12 = vadd.f32 %v3192_v24, %v1655_v3  ;;  %v1656_v14 = vmul.f32 %v2680_v10, %v3187_v23  ;;  %v1575_v16 = vpop.f32.mrb[19].mxu1 }
 0x1d5   : > { %v1687_v13 = vadd.f32 %v3192_v24, %v1629_v4  ;;  %v1630_v15 = vmul.f32 %v3187_v23, %v1479_v11  ;;  %v1711_v17 = vadd.f32 %v3192_v24, %v1653_v8  ;;  %v1654_v19 = vmul.f32 %v3187_v23, %v1575_v16 }
 0x1d6   : > { %v1690_v18 = vadd.f32 %v3192_v24, %v1632_v9  ;;  %v1714_v20 = vadd.f32 %v3192_v24, %v1656_v14  ;;  %v1740_v22 = vmax.f32 %v1689_v7, 0.0  ;;  %v1764_v26 = vmax.f32 %v1713_v12, 0.0 }
 0x1d7   : > { %v1688_v21 = vadd.f32 %v3192_v24, %v1630_v15  ;;  %v1712_v25 = vadd.f32 %v3192_v24, %v1654_v19  ;;  %v1738_v27 = vmax.f32 %v1687_v13, 0.0  ;;  %v1762_v30 = vmax.f32 %v1711_v17, 0.0 }
 0x1d8   : > { %v1741_v41 = vmax.f32 %v1690_v18, 0.0  ;;  %v1765_v28 = vmax.f32 %v1714_v20, 0.0 }
 0x1d9   : > { %v1739_v29 = vmax.f32 %v1688_v21, 0.0  ;;  %v1763_v32 = vmax.f32 %v1712_v25, 0.0 }
 0x1da   : > { %v2510_v31 = vpack.c.bf16 %v1741_v41, %v1740_v22  ;;  %v2570_v33 = vpack.c.bf16 %v1765_v28, %v1764_v26 }
 0x1db   : > { %v2505_v34 = vpack.c.bf16 %v1739_v29, %v1738_v27  ;;  %v2565_v35 = vpack.c.bf16 %v1763_v32, %v1762_v30 }
 0x1dc   : > { %2587 = vst [vmem:[%s3206_s17 + $0x58] sm:$0xff] %v2510_v31   ;;  %2599 = vst [vmem:[%s3206_s17 + $0xb8] sm:$0xff] %v2570_v33  }
 0x1dd   : > { %2586 = vst [vmem:[%s3206_s17 + $0x50] sm:$0xff] %v2505_v34   ;;  %2598 = vst [vmem:[%s3206_s17 + $0xb0] sm:$0xff] %v2565_v35  }
 0x1df   : > { %v2659_v36 = vpop.f32.mrb[24].mxu0  ;;  %v2683_v38 = vpop.f32.mrb[20].mxu1 }
 0x1e0   : > { %v1635_v37 = vmul.f32 %v2659_v36, %v3187_v23  ;;  %v1492_v39 = vpop.f32.mrb[25].mxu0  ;;  %v1659_v40 = vmul.f32 %v2683_v38, %v3187_v23  ;;  %v1588_v43 = vpop.f32.mrb[21].mxu1 }
 0x1e1   : > { %v1633_v42 = vmul.f32 %v3187_v23, %v1492_v39  ;;  %v2660_v44 = vpop.f32.mrb[26].mxu0  ;;  %v1657_v46 = vmul.f32 %v3187_v23, %v1588_v43  ;;  %v2684_v48 = vpop.f32.mrb[22].mxu1 }
 0x1e2   : > { %v1693_v45 = vadd.f32 %v3192_v24, %v1635_v37  ;;  %v1636_v47 = vmul.f32 %v2660_v44, %v3187_v23  ;;  %v1495_v49 = vpop.f32.mrb[27].mxu0  ;;  %v1717_v50 = vadd.f32 %v3192_v24, %v1659_v40  ;;  %v1591_v53 = vpop.f32.mrb[23].mxu1 }
 0x1e3   : > { %v1691_v51 = vadd.f32 %v3192_v24, %v1633_v42  ;;  %v1634_v52 = vmul.f32 %v3187_v23, %v1495_v49  ;;  %v1715_v54 = vadd.f32 %v3192_v24, %v1657_v46  ;;  %v1658_v56 = vmul.f32 %v3187_v23, %v1591_v53 }
 0x1e4   : > { %v1694_v55 = vadd.f32 %v3192_v24, %v1636_v47  ;;  %v1768_v57 = vmax.f32 %v1717_v50, 0.0  ;;  %v1744_v59 = vmax.f32 %v1693_v45, 0.0 }
 0x1e5   : > { %v1692_v58 = vadd.f32 %v3192_v24, %v1634_v52  ;;  %v1716_v61 = vadd.f32 %v3192_v24, %v1658_v56  ;;  %v1742_v63 = vmax.f32 %v1691_v51, 0.0  ;;  %v1766_v1 = vmax.f32 %v1715_v54, 0.0 }
 0x1e6   : > { %v1745_v60 = vmax.f32 %v1694_v55, 0.0  ;;  %v2451_v62 = vpack.c.bf16 %v1768_v57, %v1768_v57 }
 0x1e7   : > { %v1743_v0 = vmax.f32 %v1692_v58, 0.0  ;;  %v1767_v3 = vmax.f32 %v1716_v61, 0.0 }
 0x1e8   : > { %v2520_v2 = vpack.c.bf16 %v1745_v60, %v1744_v59  ;;  %2040 = vst [vmem:[%s3206_s17 + $0xc8] sm:$0xf] %v2451_v62 }
 0x1e9   : > { %v2515_v4 = vpack.c.bf16 %v1743_v0, %v1742_v63  ;;  %v2575_v5 = vpack.c.bf16 %v1767_v3, %v1766_v1 }
 0x1ea   : > { %2589 = vst [vmem:[%s3206_s17 + $0x68] sm:$0xff] %v2520_v2  }
 0x1eb   : > { %2588 = vst [vmem:[%s3206_s17 + $0x60] sm:$0xff] %v2515_v4   ;;  %2600 = vst [vmem:[%s3206_s17 + $0xc0] sm:$0xff] %v2575_v5  }
 0x1ec PF: > { %s15_s20 = sadd.s32 1, %s2844_s20   ;;  %s3343_s18 = smov %s2840_s19 }
 0x1ed   : > { %p12_p5 = scmp.ge.s32.totalorder %s15_s20, 4   ;;  %s3344_s19 = smov %s3346_s21 }
 0x1ef   :  { %14 = sbr.rel (!%p12_p5) target bundleno = 2 (0x2), region = 76 }

// kernel: stem_v2_forward.14
= control target key start
LH: loop header
LB: loop body
LE: loop exit
PB: predicated region body
PF: predicated region fallthrough
CT: control target
= control target key end

     0   :  { %s4439_s15 = smov 0   ;;  %s4441_s16 = smov 0   ;;  %s5426_s0 = inlined_call_operand.vmem [shape: bf16[2,17,18,128], index: 0, kind: input, shape index: {}]   ;;  %s5427_s1 = inlined_call_operand.vmem [shape: bf16[1152,128], index: 1, kind: input, shape index: {}]   ;;  %s5428_s2 = inlined_call_operand.vmem [shape: f32[1,128], index: 2, kind: input, shape index: {}]   ;;  %s5429_s3 = inlined_call_operand.vmem [shape: f32[1,128], index: 3, kind: input, shape index: {}]   ;;  %s5430_s4 = inlined_call_operand.vmem [shape: bf16[2,15,16,128], index: 4, kind: output, shape index: {}]  }
   0x1   :  { %s4443_s17 = smov 0  }
   0x2 LB: > { %s26_s18 = sadd.s32 1, %s4406_s16  ;;  %p3239_p0 = scmp.ge.s32.totalorder %s4410_s17, 1  ;;  %s4410_s17 = sphi %s4443_s17, %s14_s17   ;;  %s4406_s16 = sphi %s4441_s16, %s5432_s16   ;;  %s4402_s15 = sphi %s4439_s15, %s5431_s15  }
   0x3   : > { %p28_p1 = scmp.ge.s32.totalorder %s26_s18, 2  ;;  %p176_p2 = scmp.lt.s32.totalorder %s4410_s17, 3 }
   0x5   : > { %s5434_s18 = smov (%p28_p1, %s26_s18), 0  ;;  %p177_p3 = pnand %p3239_p0, %p176_p2 }
   0x6   : > { %v4214_v0 = vld [vmem:[%s5427_s1 + $0x40] sm:$0xff] (!%p177_p3)   ;;  %v4216_v2 = vld [vmem:[%s5427_s1 + $0x48] sm:$0xff] (!%p177_p3)   ;;  %p207_p4 = scmp.lt.s32.totalorder (!%p177_p3), %s4402_s15, 1  ;;  %v4218_v4 = vld [vmem:[%s5427_s1 + $0x50] sm:$0xff] (!%p177_p3)   ;;  %vm506_vm0 = vsmask.f32 (!%p177_p3), 7424 }
   0x7   : > { %180 = sbr.rel (%p177_p3) target bundleno = 560 (0x230), region = 36  ;;  %v4215_v1 = vld [vmem:[%s5427_s1] sm:$0xff] (!%p177_p3)   ;;  %3647 = vmatprep.subr.bf16.mxu0 (!%p177_p3), %v4214_v0  ;;  %4170 = vmatprep.subr.bf16.mxu1 (!%p177_p3), %v4214_v0  ;;  %v4217_v3 = vld [vmem:[%s5427_s1 + $0x8] sm:$0xff] (!%p177_p3)   ;;  %v4219_v5 = vld [vmem:[%s5427_s1 + $0x10] sm:$0xff] (!%p177_p3)   ;;  %vm702_vm1 = vcmask (!%p177_p3), 1046528   ;;  %vm4413_vm2 = vmmov (!%p177_p3), 0  }
   0x8   : > { %3648 = vmatpush3.bf16.msra.mxu0 (!%p177_p3), %v4215_v1  ;;  %4178 = vmatpush3.bf16.msra.mxu1 (!%p177_p3), %v4215_v1  ;;  %v4220_v6 = vld [vmem:[%s5427_s1 + $0x58] sm:$0xff] (!%p177_p3)   ;;  %v4222_v8 = vld [vmem:[%s5427_s1 + $0x60] sm:$0xff] (!%p177_p3)   ;;  %v4224_v10 = vld [vmem:[%s5427_s1 + $0x68] sm:$0xff] (!%p177_p3)  }
   0x9   : > { %3649 = vmatprep.subr.bf16.mxu0 (!%p177_p3), %v4216_v2  ;;  %4171 = vmatprep.subr.bf16.mxu1 (!%p177_p3), %v4216_v2  ;;  %v4221_v7 = vld [vmem:[%s5427_s1 + $0x18] sm:$0xff] (!%p177_p3)   ;;  %v4223_v9 = vld [vmem:[%s5427_s1 + $0x20] sm:$0xff] (!%p177_p3)   ;;  %v4225_v11 = vld [vmem:[%s5427_s1 + $0x28] sm:$0xff] (!%p177_p3)  }
   0xa   : > { %v4226_v18 = vld [vmem:[%s5427_s1 + $0x70] sm:$0xff] (!%p177_p3)   ;;  %v4228_v25 = vld [vmem:[%s5427_s1 + $0x78] sm:$0xff] (!%p177_p3)   ;;  %v4234_v35 = vld [vmem:[%s5427_s1 + $0x140] sm:$0xff] (!%p177_p3)  }
   0xb   : > { %v4227_v20 = vld [vmem:[%s5427_s1 + $0x30] sm:$0xff] (!%p177_p3)   ;;  %v4229_v32 = vld [vmem:[%s5427_s1 + $0x38] sm:$0xff] (!%p177_p3)   ;;  %v4236_v41 = vld [vmem:[%s5427_s1 + $0xc0] sm:$0xff] (!%p177_p3)  }
   0xc   : > { %3650 = vmatpush3.bf16.msra.mxu0 (!%p177_p3), %v4217_v3  ;;  %4179 = vmatpush3.bf16.msra.mxu1 (!%p177_p3), %v4217_v3  ;;  %v4235_v45 = vld [vmem:[%s5427_s1 + $0x100] sm:$0xff] (!%p177_p3)   ;;  %v4242_v53 = vld [vmem:[%s5427_s1 + $0x148] sm:$0xff] (!%p177_p3)  }
   0xd   : > { %3651 = vmatprep.subr.bf16.mxu0 (!%p177_p3), %v4218_v4  ;;  %4172 = vmatprep.subr.bf16.mxu1 (!%p177_p3), %v4218_v4  ;;  %v4237_v46 = vld [vmem:[%s5427_s1 + $0x80] sm:$0xff] (!%p177_p3)   ;;  %v4244_v55 = vld [vmem:[%s5427_s1 + $0xc8] sm:$0xff] (!%p177_p3)  }
   0xe   : > { %s5436_s15 = smov (!%p207_p4, %s4402_s15), 1  ;;  %v4243_v58 = vld [vmem:[%s5427_s1 + $0x108] sm:$0xff]  }
   0xf   : > { %s4186_s7 = smul.u32 204, %s5436_s15  ;;  %v4245_v59 = vld [vmem:[%s5427_s1 + $0x88] sm:$0xff]  }
  0x10   : > { %3652 = vmatpush3.bf16.msra.mxu0 %v4219_v5  ;;  %4180 = vmatpush3.bf16.msra.mxu1 %v4219_v5  ;;  %s4187_s22 = smul.u32 120, %s5436_s15 }
  0x11   : > { %3653 = vmatprep.subr.bf16.mxu0 %v4220_v6  ;;  %4173 = vmatprep.subr.bf16.mxu1 %v4220_v6  ;;  %s4493_s20 = scalar_lea.vmem %s5426_s0, %s4186_s7  ;;  %v4250_v6 = vld [vmem:[%s5427_s1 + $0x150] sm:$0xff]  }
  0x12   : > { %v4502_v12 = vld [vmem:[%s4493_s20] sm:$0xff]   ;;  %v4505_v13 = vld [vmem:[%s4493_s20 + $0x8] ss:$0 sps:$4 sm:$0x11]   ;;  %v4523_v31 = vld [vmem:[%s4493_s20 + $0xc] sm:$0xff]   ;;  %s5318_s25 = scalar_lea.vmem %s5430_s4, %s4187_s22 }
  0x13   : > { %v508_v14 = vshrl.u32 %v4502_v12, 16  ;;  %v510_v15 = vshll.u32 %v4502_v12, 16  ;;  %v515_v16 = vshll.u32 %v4505_v13, 16  ;;  %v4232_v17 = vld [vmem:[%s4493_s20 + $0x60] sm:$0xff]   ;;  %v704_v28 = vrot.slane %v4505_v13, 1  ;;  %v4538_v39 = vld [vmem:[%s4493_s20 + $0x6c] sm:$0xff]  }
  0x14   : > { %3654 = vmatpush3.bf16.msra.mxu0 %v4221_v7  ;;  %4181 = vmatpush3.bf16.msra.mxu1 %v4221_v7  ;;  %v4233_v19 = vld [vmem:[%s4493_s20 + $0x68] ss:$0 sps:$4 sm:$0x11]   ;;  %v604_v23 = vshrl.u32 %v4232_v17, 16  ;;  %v606_v24 = vshll.u32 %v4232_v17, 16  ;;  %v520_v37 = vshrl.u32 %v4523_v31, 16 }
  0x15   : > { %3655 = vmatprep.subr.bf16.mxu0 %v4222_v8  ;;  %4174 = vmatprep.subr.bf16.mxu1 %v4222_v8  ;;  %v512_v21 = vrot.slane %v510_v15, 1  ;;  %v517_v22 = vrot.slane %v515_v16, 1  ;;  %v611_v26 = vshll.u32 %v4233_v19, 16  ;;  %v4533_v36 = vld [vmem:[%s4493_s20 + $0x14] ss:$0 sps:$4 sm:$0x11]  }
  0x16   : > { %v608_v29 = vrot.slane %v606_v24, 1  ;;  %v522_v38 = vshll.u32 %v4523_v31, 16  ;;  %v527_v43 = vshll.u32 %v4533_v36, 16  ;;  %v4241_v44 = vld [vmem:[%s4493_s20 + $0x74] ss:$0 sps:$4 sm:$0x11]  }
  0x17   : > { %v513_v27 = vor.u32 %v512_v21, %v508_v14  ;;  %v613_v30 = vrot.slane %v611_v26, 1  ;;  %v616_v47 = vshrl.u32 %v4538_v39, 16  ;;  %v618_v48 = vshll.u32 %v4538_v39, 16  ;;  %v4570_v61 = vld [vmem:[%s4493_s20 + $0x18] sm:$0xff]   ;;  %v4252_v15 = vld [vmem:[%s5427_s1 + $0x110] sm:$0xff]  }
  0x18   : > { %3656 = vmatpush3.bf16.msra.mxu0 %v4223_v9  ;;  %4182 = vmatpush3.bf16.msra.mxu1 %v4223_v9  ;;  %v609_v34 = vor.u32 %v608_v29, %v604_v23  ;;  %v524_v42 = vrot.slane %v522_v38, 1  ;;  %v529_v50 = vrot.slane %v527_v43, 1  ;;  %v623_v51 = vshll.u32 %v4241_v44, 16  ;;  %v4573_v62 = vld [vmem:[%s4493_s20 + $0x20] ss:$0 sps:$4 sm:$0x11]  }
  0x19   : > { %3657 = vmatprep.subr.bf16.mxu0 %v4224_v10  ;;  %4175 = vmatprep.subr.bf16.mxu1 %v4224_v10  ;;  %v518_v33 = vsel %vm506_vm0, %v513_v27, %v517_v22  ;;  %v620_v52 = vrot.slane %v618_v48, 1  ;;  %v703_v60 = vrot.slane %v4502_v12, 1  ;;  %v532_v1 = vshrl.u32 %v4570_v61, 16  ;;  %v4248_v4 = vld [vmem:[%s4493_s20 + $0x78] sm:$0xff]   ;;  %v4256_v23 = vld [vmem:[%s4493_s20 + $0x84] sm:$0xff]  }
  0x1a   : > { %2151 = vmatprep.mubr.bf16.mxu0 %v518_v33  ;;  %v614_v40 = vsel %vm506_vm0, %v609_v34, %v613_v30  ;;  %v525_v49 = vor.u32 %v524_v42, %v520_v37  ;;  %v625_v54 = vrot.slane %v623_v51, 1  ;;  %v534_v2 = vshll.u32 %v4570_v61, 16  ;;  %v4249_v5 = vld [vmem:[%s4493_s20 + $0x80] ss:$0 sps:$4 sm:$0x11]   ;;  %v4259_v37 = vld [vmem:[%s5427_s1 + $0x158] sm:$0xff]  }
  0x1b   : > { %2215 = vmatprep.mubr.bf16.mxu1 %v614_v40  ;;  %v621_v57 = vor.u32 %v620_v52, %v616_v47  ;;  %v4577_v0 = vsel %vm702_vm1, %v703_v60, %v704_v28  ;;  %v539_v3 = vshll.u32 %v4573_v62, 16  ;;  %v628_v9 = vshrl.u32 %v4248_v4, 16  ;;  %v4604_v22 = vld [vmem:[%s4493_s20 + $0x2c] ss:$0 sps:$4 sm:$0x11]   ;;  %v4261_v43 = vld [vmem:[%s5427_s1 + $0x118] sm:$0xff]  }
  0x1c   : > { %3658 = vmatpush3.bf16.msra.mxu0 %v4225_v11  ;;  %4183 = vmatpush3.bf16.msra.mxu1 %v4225_v11  ;;  %v530_v56 = vsel %vm506_vm0, %v525_v49, %v529_v50  ;;  %v536_v7 = vrot.slane %v534_v2, 1  ;;  %v630_v10 = vshll.u32 %v4248_v4, 16  ;;  %v635_v11 = vshll.u32 %v4249_v5, 16  ;;  %v4257_v28 = vld [vmem:[%s4493_s20 + $0x8c] ss:$0 sps:$4 sm:$0x11]  }
  0x1d   : > { %3659 = vmatprep.subr.bf16.mxu0 %v4226_v18  ;;  %4176 = vmatprep.subr.bf16.mxu1 %v4226_v18  ;;  %v626_v63 = vsel %vm506_vm0, %v621_v57, %v625_v54  ;;  %v541_v8 = vrot.slane %v539_v3, 1  ;;  %v706_v21 = vrot.slane %v4523_v31, 1  ;;  %v551_v27 = vshll.u32 %v4604_v22, 16  ;;  %v4632_v47 = vld [vmem:[%s4493_s20 + $0x38] ss:$0 sps:$4 sm:$0x11]  }
  0x1e   : > { %v537_v13 = vor.u32 %v536_v7, %v532_v1  ;;  %v632_v14 = vrot.slane %v630_v10, 1  ;;  %v637_v16 = vrot.slane %v635_v11, 1  ;;  %v640_v29 = vshrl.u32 %v4256_v23, 16  ;;  %v4265_v52 = vld [vmem:[%s4493_s20 + $0x98] ss:$0 sps:$4 sm:$0x11]  }
  0x1f   : > { %v642_v30 = vshll.u32 %v4256_v23, 16  ;;  %v553_v33 = vrot.slane %v551_v27, 1  ;;  %v707_v44 = vrot.slane %v4533_v36, 1  ;;  %v563_v51 = vshll.u32 %v4632_v47, 16  ;;  %v4264_v36 = vld [vmem:[%s4493_s20 + $0x90] sm:$0xff]   ;;  %v4268_v1 = vld [vmem:[%s5427_s1 + $0x160] sm:$0xff]  }
  0x20   : > { %3660 = vmatpush3.bf16.msra.mxu0 %v4227_v20  ;;  %4184 = vmatpush3.bf16.msra.mxu1 %v4227_v20  ;;  %v542_v18 = vsel %vm506_vm0, %v537_v13, %v541_v8  ;;  %v633_v19 = vor.u32 %v632_v14, %v628_v9  ;;  %v4600_v20 = vld [vmem:[%s4493_s20 + $0x24] sm:$0xff]   ;;  %v654_v57 = vshll.u32 %v4264_v36, 16  ;;  %v709_v7 = vrot.slane %v4570_v61, 1  ;;  %v4661_v8 = vld [vmem:[%s4493_s20 + $0x3c] sm:$0xff]  }
  0x21   : > { %3661 = vmatprep.subr.bf16.mxu0 %v4228_v25  ;;  %4177 = vmatprep.subr.bf16.mxu1 %v4228_v25  ;;  %v544_v25 = vshrl.u32 %v4600_v20, 16  ;;  %v546_v26 = vshll.u32 %v4600_v20, 16  ;;  %v644_v34 = vrot.slane %v642_v30, 1  ;;  %v4635_v48 = vsel %vm702_vm1, %v706_v21, %v707_v44  ;;  %v4269_v3 = vld [vmem:[%s5427_s1 + $0x120] sm:$0xff]  }
  0x22   : > { %v638_v24 = vsel %vm506_vm0, %v633_v19, %v637_v16  ;;  %v710_v9 = vrot.slane %v4573_v62, 1  ;;  %v4666_v11 = vld [vmem:[%s4493_s20 + $0x44] ss:$0 sps:$4 sm:$0x11]   ;;  %v568_v13 = vshrl.u32 %v4661_v8, 16  ;;  %v570_v14 = vshll.u32 %v4661_v8, 16 }
  0x23   : > { %v4274_v16 = vld [vmem:[%s4493_s20 + $0xa4] ss:$0 sps:$4 sm:$0x11]   ;;  %v4275_v19 = vld [vmem:[%s5427_s1 + $0xa8] sm:$0xff]  }
  0x24   : > { %3662 = vmatpush3.bf16.msra.mxu0 %v4229_v32  ;;  %4185 = vmatpush3.bf16.msra.mxu1 %v4229_v32  ;;  %v548_v32 = vrot.slane %v546_v26, 1  ;;  %v572_v62 = vrot.slane %v570_v14, 1 }
  0x25   : > { %3859 = vmatprep.subr.bf16.mxu0 %v4234_v35  ;;  %3753 = vmatprep.subr.bf16.mxu1 %v4236_v41  ;;  %v647_v35 = vshll.u32 %v4257_v28, 16  ;;  %v4260_v41 = vld [vmem:[%s5427_s1 + $0x98] sm:$0xff]  }
  0x26   : > { %v549_v38 = vor.u32 %v548_v32, %v544_v25  ;;  %v4276_v25 = vld [vmem:[%s5427_s1 + $0x168] sm:$0xff]   ;;  %v573_v26 = vor.u32 %v572_v62, %v568_v13  ;;  %v4278_v32 = vld [vmem:[%s5427_s1 + $0xf0] sm:$0xff]   ;;  %v4294_v13 = vld [vmem:[%s5427_s1 + $0x180] sm:$0xff]  }
  0x27   : > { %2152 = vmatmul.mubr.bf16.vlgmr.msra.gmra.mrb[0].mxu0 %v4502_v12  ;;  %2216 = vmatmul.mubr.bf16.vlgmr.msra.gmra.mrb[0].mxu1 %v4232_v17  ;;  %v4251_v12 = vld [vmem:[%s5427_s1 + $0xd0] sm:$0xff]   ;;  %v649_v40 = vrot.slane %v647_v35, 1  ;;  %v713_v35 = vrot.slane %v4604_v22, 1  ;;  %v4295_v62 = vld [vmem:[%s4493_s20 + $0x18] sm:$0xff]  }
  0x28   : > { %3860 = vmatpush3.bf16.msra.mxu0 %v4235_v45  ;;  %3754 = vmatpush3.bf16.msra.mxu1 %v4237_v46  ;;  %v4253_v17 = vld [vmem:[%s5427_s1 + $0x90] sm:$0xff]   ;;  %v554_v42 = vsel %vm506_vm0, %v549_v38, %v553_v33 }
  0x29   : > { %2159 = vmatprep.mubr.bf16.mxu0 %v530_v56  ;;  %2223 = vmatprep.mubr.bf16.mxu1 %v626_v63  ;;  %v4629_v46 = vld [vmem:[%s4493_s20 + $0x30] sm:$0xff]   ;;  %v652_v56 = vshrl.u32 %v4264_v36, 16  ;;  %v656_v63 = vrot.slane %v654_v57, 1 }
  0x2a   : > { %3861 = vmatprep.subr.bf16.mxu0 %v4242_v53  ;;  %3755 = vmatprep.subr.bf16.mxu1 %v4244_v55  ;;  %v556_v49 = vshrl.u32 %v4629_v46, 16  ;;  %v558_v50 = vshll.u32 %v4629_v46, 16  ;;  %v4266_v53 = vld [vmem:[%s5427_s1 + $0xe0] sm:$0xff]   ;;  %v565_v55 = vrot.slane %v563_v51, 1  ;;  %v4284_v22 = vld [vmem:[%s5427_s1 + $0x170] sm:$0xff]  }
  0x2b   : > { %v657_v5 = vor.u32 %v656_v63, %v652_v56  ;;  %v4700_v38 = vld [vmem:[%s4493_s20 + $0x50] ss:$0 sps:$4 sm:$0x11]   ;;  %v4287_v56 = vld [vmem:[%s5427_s1 + $0xb8] sm:$0xff]  }
  0x2c   : > { %3862 = vmatpush3.bf16.msra.mxu0 %v4243_v58  ;;  %3756 = vmatpush3.bf16.msra.mxu1 %v4245_v59  ;;  %v560_v54 = vrot.slane %v558_v50, 1  ;;  %v659_v58 = vshll.u32 %v4265_v52, 16  ;;  %v4267_v59 = vld [vmem:[%s5427_s1 + $0xa0] sm:$0xff]   ;;  %v4290_v63 = vld [vmem:[%s4493_s20 + $0xc] sm:$0xff]  }
  0x2d   : > { %3863 = vmatprep.subr.bf16.mxu0 %v4250_v6  ;;  %3757 = vmatprep.subr.bf16.mxu1 %v4251_v12  ;;  %v4270_v6 = vld [vmem:[%s5427_s1 + $0xe8] sm:$0xff]   ;;  %v4273_v12 = vld [vmem:[%s4493_s20 + $0x9c] sm:$0xff]   ;;  %v1093_v14 = vrot.slane %v4290_v63, 1 }
  0x2e   : > { %v561_v60 = vor.u32 %v560_v54, %v556_v49  ;;  %v661_v2 = vrot.slane %v659_v58, 1  ;;  %v4286_v54 = vld [vmem:[%s5427_s1 + $0xf8] sm:$0xff]  }
  0x2f   : > { %2160 = vmatmul.mubr.bf16.gmra.mrb[4].mxu0 %v4523_v31  ;;  %2224 = vmatmul.mubr.bf16.gmra.mrb[4].mxu1 %v4538_v39  ;;  %v4258_v31 = vld [vmem:[%s5427_s1 + $0xd8] sm:$0xff]   ;;  %v645_v39 = vor.u32 %v644_v34, %v640_v29  ;;  %v4277_v29 = vld [vmem:[%s5427_s1 + $0x128] sm:$0xff]   ;;  %v4279_v34 = vld [vmem:[%s5427_s1 + $0xb0] sm:$0xff]  }
  0x30   : > { %2167 = vmatprep.mubr.bf16.mxu0 %v542_v18  ;;  %3864 = vmatpush3.bf16.msra.mxu0 %v4252_v15  ;;  %v662_v10 = vsel %vm506_vm0, %v657_v5, %v661_v2  ;;  %v4672_v15 = vsel %vm702_vm1, %v709_v7, %v710_v9  ;;  %v666_v18 = vshll.u32 %v4273_v12, 16  ;;  %v4291_v5 = vld [vmem:[%s5427_s1 + $0x178] sm:$0xff]  }
  0x31   : > { %3758 = vmatpush3.bf16.msra.mxu1 %v4253_v17  ;;  %2231 = vmatprep.mubr.bf16.mxu1 %v638_v24  ;;  %v650_v45 = vsel %vm506_vm0, %v645_v39, %v649_v40  ;;  %v664_v17 = vshrl.u32 %v4273_v12, 16  ;;  %v671_v24 = vshll.u32 %v4274_v16, 16  ;;  %v4292_v7 = vld [vmem:[%s5427_s1 + $0x138] sm:$0xff]  }
  0x32   : > { %3759 = vmatprep.subr.bf16.mxu1 %v4258_v31  ;;  %3865 = vmatprep.subr.bf16.mxu0 %v4259_v37  ;;  %v712_v31 = vrot.slane %v4600_v20, 1  ;;  %v4697_v37 = vld [vmem:[%s4493_s20 + $0x48] sm:$0xff]  }
  0x33   : > { %v673_v28 = vrot.slane %v671_v24, 1  ;;  %v580_v39 = vshrl.u32 %v4697_v37, 16  ;;  %v582_v40 = vshll.u32 %v4697_v37, 16 }
  0x34   : > { %3866 = vmatpush3.bf16.msra.mxu0 %v4261_v43  ;;  %v4712_v43 = vld [vmem:[%s4493_s20 + $0xb0] ss:$0 sps:$4 sm:$0x11]  }
  0x35   : > { %3760 = vmatpush3.bf16.msra.mxu1 %v4260_v41  ;;  %3867 = vmatprep.subr.bf16.mxu0 %v4268_v1  ;;  %v587_v41 = vshll.u32 %v4700_v38, 16  ;;  %v584_v44 = vrot.slane %v582_v40, 1  ;;  %v683_v51 = vshll.u32 %v4712_v43, 16 }
  0x36   : > { %3761 = vmatprep.subr.bf16.mxu1 %v4266_v53 }
  0x37   : > { %2168 = vmatmul.mubr.bf16.gmra.mrb[8].mxu0 %v4570_v61  ;;  %2232 = vmatmul.mubr.bf16.gmra.mrb[8].mxu1 %v4248_v4  ;;  %v566_v4 = vsel %vm506_vm0, %v561_v60, %v565_v55  ;;  %v575_v61 = vshll.u32 %v4666_v11, 16  ;;  %v585_v52 = vor.u32 %v584_v44, %v580_v39  ;;  %v685_v55 = vrot.slane %v683_v51, 1  ;;  %v4735_v60 = vld [vmem:[%s4493_s20 + $0x5c] ss:$0 sps:$4 sm:$0x11]  }
  0x38   : > { %2175 = vmatprep.mubr.bf16.mxu0 %v554_v42  ;;  %2239 = vmatprep.mubr.bf16.mxu1 %v650_v45  ;;  %v4709_v42 = vld [vmem:[%s4493_s20 + $0xa8] sm:$0xff]   ;;  %v589_v45 = vrot.slane %v587_v41, 1  ;;  %v715_v44 = vrot.slane %v4629_v46, 1 }
  0x39   : > { %3762 = vmatpush3.bf16.msra.mxu1 %v4267_v59  ;;  %3868 = vmatpush3.bf16.msra.mxu0 %v4269_v3  ;;  %v577_v21 = vrot.slane %v575_v61, 1  ;;  %v676_v49 = vshrl.u32 %v4709_v42, 16  ;;  %v678_v50 = vshll.u32 %v4709_v42, 16  ;;  %v4732_v59 = vld [vmem:[%s4493_s20 + $0x54] sm:$0xff]   ;;  %v4412_v61 = vmov 0.0  }
  0x3a   : > { %3763 = vmatprep.subr.bf16.mxu1 %v4270_v6  ;;  %3869 = vmatprep.subr.bf16.mxu0 %v4276_v25  ;;  %v590_v57 = vsel %vm506_vm0, %v585_v52, %v589_v45  ;;  %v592_v2 = vshrl.u32 %v4732_v59, 16  ;;  %v594_v3 = vshll.u32 %v4732_v59, 16  ;;  %v4299_v25 = vld [vmem:[%s4493_s20 + $0x20] ss:$0 sps:$4 sm:$0x11]  }
  0x3b   : > { %v578_v30 = vsel %vm506_vm0, %v573_v26, %v577_v21  ;;  %v680_v53 = vrot.slane %v678_v50, 1  ;;  %v918_v40 = vshll.u32 %v4299_v25, 16  ;;  %v4303_v41 = vld [vmem:[%s4493_s20 + $0x2c] ss:$0 sps:$4 sm:$0x11]   ;;  %v716_v50 = vrot.slane %v4632_v47, 1 }
  0x3c   : > { %v596_v6 = vrot.slane %v594_v3, 1 }
  0x3d   : > { %3764 = vmatpush3.bf16.msra.mxu1 %v4275_v19  ;;  %3870 = vmatpush3.bf16.msra.mxu0 %v4277_v29  ;;  %v681_v58 = vor.u32 %v680_v53, %v676_v49  ;;  %v899_v19 = vshrl.u32 %v4290_v63, 16  ;;  %v1100_v53 = vrot.slane %v4303_v41, 1  ;;  %v4791_v47 = vsel %vm702_vm1, %v715_v44, %v716_v50  ;;  %v4312_v50 = vld [vmem:[%s4493_s20 + $0x54] sm:$0xff]  }
  0x3e   : > { %3765 = vmatprep.subr.bf16.mxu1 %v4278_v32  ;;  %3871 = vmatprep.subr.bf16.mxu0 %v4284_v22  ;;  %v4301_v32 = vld [vmem:[%s5427_s1 + $0x188] sm:$0xff]  }
  0x3f   : > { %2176 = vmatmul.mubr.bf16.gmra.mrb[12].mxu0 %v4600_v20  ;;  %2240 = vmatmul.mubr.bf16.gmra.mrb[12].mxu1 %v4256_v23  ;;  %v668_v23 = vrot.slane %v666_v18, 1  ;;  %v4703_v20 = vsel %vm702_vm1, %v712_v31, %v713_v35  ;;  %v686_v1 = vsel %vm506_vm0, %v681_v58, %v685_v55  ;;  %v901_v18 = vshll.u32 %v4290_v63, 16  ;;  %v4302_v55 = vld [vmem:[%s4493_s20 + $0x30] sm:$0xff]  }
  0x40   : > { %2183 = vmatprep.mubr.bf16.mxu0 %v566_v4  ;;  %2247 = vmatprep.mubr.bf16.mxu1 %v662_v10  ;;  %v599_v4 = vshll.u32 %v4735_v60, 16  ;;  %v4293_v10 = vld [vmem:[%s5427_s1 + $0x1c0] sm:$0xff]   ;;  %v1096_v31 = vrot.slane %v4295_v62, 1  ;;  %v911_v35 = vshrl.u32 %v4295_v62, 16  ;;  %v930_v58 = vshll.u32 %v4303_v41, 16 }
  0x41   : > { %v669_v27 = vor.u32 %v668_v23, %v664_v17  ;;  %3766 = vmatpush3.bf16.msra.mxu1 %v4279_v34  ;;  %v4296_v17 = vld [vmem:[%s4493_s20 + $0x14] ss:$0 sps:$4 sm:$0x11]   ;;  %v903_v24 = vrot.slane %v901_v18, 1  ;;  %v1097_v34 = vrot.slane %v4299_v25, 1 }
  0x42   : > { %3767 = vmatprep.subr.bf16.mxu1 %v4286_v54  ;;  %v601_v9 = vrot.slane %v599_v4, 1  ;;  %v906_v21 = vshll.u32 %v4296_v17, 16  ;;  %v1094_v23 = vrot.slane %v4296_v17, 1  ;;  %v4304_v54 = vld [vmem:[%s5427_s1 + $0x208] sm:$0xff]  }
  0x43   : > { %v674_v33 = vsel %vm506_vm0, %v669_v27, %v673_v28  ;;  %v913_v27 = vshll.u32 %v4295_v62, 16  ;;  %v904_v28 = vor.u32 %v903_v24, %v899_v19  ;;  %v1098_v45 = vsel %vm702_vm1, %v1096_v31, %v1097_v34  ;;  %v4306_v4 = vld [vmem:[%s4493_s20 + $0x38] ss:$0 sps:$4 sm:$0x11]  }
  0x44   : > { %v1095_v26 = vsel %vm702_vm1, %v1093_v14, %v1094_v23  ;;  %v908_v29 = vrot.slane %v906_v21, 1  ;;  %v935_v14 = vshrl.u32 %v4302_v55, 16  ;;  %v4310_v21 = vld [vmem:[%s4493_s20 + $0x44] ss:$0 sps:$4 sm:$0x11]  }
  0x45   : > { %3768 = vmatpush3.bf16.msra.mxu1 %v4287_v56  ;;  %v915_v39 = vrot.slane %v913_v27, 1  ;;  %v4321_v23 = vld [vmem:[%s5427_s1 + $0x1e0] sm:$0xff]   ;;  %v4313_v31 = vld [vmem:[%s4493_s20 + $0x50] ss:$0 sps:$4 sm:$0x11]   ;;  %v954_v34 = vshll.u32 %v4310_v21, 16 }
  0x46   : > { %3965 = vmatprep.subr.bf16.mxu1 %v4293_v10  ;;  %v909_v22 = vsel %vm506_vm0, %v904_v28, %v908_v29  ;;  %v1102_v10 = vrot.slane %v4302_v55, 1  ;;  %v1106_v28 = vrot.slane %v4310_v21, 1  ;;  %v4322_v29 = vld [vmem:[%s5427_s1 + $0x1a0] sm:$0xff]  }
  0x47   : > { %2184 = vmatmul.mubr.bf16.gmra.mrb[16].mxu0 %v4629_v46  ;;  %2248 = vmatmul.mubr.bf16.gmra.mrb[16].mxu1 %v4264_v36  ;;  %v4285_v36 = vld [vmem:[%s5427_s1 + $0x130] sm:$0xff]   ;;  %v916_v51 = vor.u32 %v915_v39, %v911_v35 }
  0x48   : > { %2191 = vmatprep.mubr.bf16.mxu0 %v578_v30  ;;  %2255 = vmatprep.mubr.bf16.mxu1 %v674_v33  ;;  %v4300_v30 = vld [vmem:[%s5427_s1 + $0x1c8] sm:$0xff]   ;;  %v4307_v46 = vld [vmem:[%s5427_s1 + $0x1d0] sm:$0xff]  }
  0x49   : > { %3872 = vmatpush3.bf16.msra.mxu0 %v4285_v36  ;;  %v4298_v33 = vld [vmem:[%s4493_s20 + $0x24] sm:$0xff]   ;;  %v920_v36 = vrot.slane %v918_v40, 1 }
  0x4a   : > { %3873 = vmatprep.subr.bf16.mxu0 %v4291_v5  ;;  %v925_v49 = vshll.u32 %v4298_v33, 16  ;;  %v1099_v52 = vrot.slane %v4298_v33, 1  ;;  %v923_v56 = vshrl.u32 %v4298_v33, 16  ;;  %v4311_v5 = vld [vmem:[%s5427_s1 + $0x210] sm:$0xff]   ;;  %v4326_v40 = vld [vmem:[%s5427_s1 + $0x1e8] sm:$0xff]  }
  0x4c   : > { %v1101_v3 = vsel %vm702_vm1, %v1099_v52, %v1100_v53  ;;  %v966_v52 = vshll.u32 %v4313_v31, 16 }
  0x4d   : > { %3874 = vmatpush3.bf16.msra.mxu0 %v4292_v7  ;;  %v937_v7 = vshll.u32 %v4302_v55, 16 }
  0x4e   : > { %4094 = vmatprep.subr.bf16.mxu0 %v4412_v61 }
  0x4f   : > { %2192 = vmatmul.mubr.bf16.gmra.mrb[20].mxu0 %v4661_v8  ;;  %2256 = vmatmul.mubr.bf16.gmra.mrb[20].mxu1 %v4273_v12  ;;  %v597_v12 = vor.u32 %v596_v6, %v592_v2  ;;  %v719_v2 = vrot.slane %v4666_v11, 1  ;;  %v932_v11 = vrot.slane %v930_v58, 1  ;;  %v939_v18 = vrot.slane %v937_v7, 1  ;;  %v4320_v7 = vld [vmem:[%s4493_s20 + $0x68] ss:$0 sps:$4 sm:$0x11]  }
  0x50   : > { %2199 = vmatprep.mubr.bf16.mxu0 %v590_v57  ;;  %2263 = vmatprep.mubr.bf16.mxu1 %v686_v1  ;;  %v927_v57 = vrot.slane %v925_v49, 1  ;;  %v718_v1 = vrot.slane %v4661_v8, 1  ;;  %v4329_v49 = vld [vmem:[%s5427_s1 + $0x1a8] sm:$0xff]   ;;  %v973_v58 = vshll.u32 %v4312_v50, 16 }
  0x51   : > { %v602_v16 = vsel %vm506_vm0, %v597_v12, %v601_v9  ;;  %v4314_v9 = vld [vmem:[%s5427_s1 + $0x1d8] sm:$0xff]   ;;  %v1103_v12 = vrot.slane %v4306_v4, 1  ;;  %v940_v24 = vor.u32 %v939_v18, %v935_v14  ;;  %v1115_v18 = vrot.slane %v4320_v7, 1 }
  0x52   : > { %v4804_v6 = vsel %vm702_vm1, %v718_v1, %v719_v2  ;;  %v928_v8 = vor.u32 %v927_v57, %v923_v56  ;;  %v722_v56 = vrot.slane %v4700_v38, 1  ;;  %v968_v57 = vrot.slane %v966_v52, 1  ;;  %v4317_v38 = vld [vmem:[%s4493_s20 + $0x60] sm:$0xff]  }
  0x53   : > { %v1104_v19 = vsel %vm702_vm1, %v1102_v10, %v1103_v12  ;;  %v1111_v1 = vrot.slane %v4312_v50, 1  ;;  %v724_v10 = vrot.slane %v4732_v59, 1  ;;  %v725_v12 = vrot.slane %v4735_v60, 1 }
  0x54   : > { %v933_v17 = vsel %vm506_vm0, %v928_v8, %v932_v11  ;;  %v985_v14 = vshll.u32 %v4317_v38, 16  ;;  %v983_v21 = vshrl.u32 %v4317_v38, 16 }
  0x55   : > { %v726_v60 = vsel %vm702_vm1, %v724_v10, %v725_v12  ;;  %v4331_v10 = vld [vmem:[%s4493_s20 + $0x90] sm:$0xff]  }
  0x57   : > { %2200 = vmatmul.mubr.bf16.gmra.mrb[24].mxu0 %v4697_v37  ;;  %2264 = vmatmul.mubr.bf16.gmra.mrb[24].mxu1 %v4709_v42 }
  0x58   : > { %2304 = vmatprep.mubr.bf16.mxu1 %v4290_v63  ;;  %2207 = vmatprep.mubr.bf16.mxu0 %v602_v16  ;;  %v921_v63 = vsel %vm506_vm0, %v916_v51, %v920_v36  ;;  %v4316_v16 = vld [vmem:[%s5427_s1 + $0x218] sm:$0xff]  }
  0x5f   : > { %2208 = vmatmul.mubr.bf16.gmra.mrb[28].mxu0 %v4732_v59  ;;  %2305 = vmatmul.mubr.bf16.vlgmr.msra.gmra.mrb[28].mxu1 %v4577_v0  ;;  %v4297_v0 = vld [vmem:[%s5427_s1 + $0x200] sm:$0xff]   ;;  %v4341_v59 = vld [vmem:[%s5427_s1 + $0x1b8] sm:$0xff]  }
  0x60   : > { %3966 = vmatpush3.bf16.msra.mxu1 %v4294_v13  ;;  %2312 = vmatprep.mubr.bf16.mxu1 %v4295_v62  ;;  %v4305_v13 = vld [vmem:[%s4493_s20 + $0x3c] sm:$0xff]   ;;  %v942_v62 = vshll.u32 %v4306_v4, 16 }
  0x61   : > { %2457 = vmatprep.mubr.bf16.mxu0 %v1095_v26  ;;  %3967 = vmatprep.subr.bf16.mxu1 %v4300_v30  ;;  %v949_v26 = vshll.u32 %v4305_v13, 16  ;;  %v1105_v27 = vrot.slane %v4305_v13, 1  ;;  %v4309_v30 = vld [vmem:[%s4493_s20 + $0x48] sm:$0xff]  }
  0x62   : > { %v944_v25 = vrot.slane %v942_v62, 1  ;;  %v961_v39 = vshll.u32 %v4309_v30, 16  ;;  %v1108_v44 = vrot.slane %v4309_v30, 1  ;;  %v959_v51 = vshrl.u32 %v4309_v30, 16 }
  0x63   : > { %v1107_v35 = vsel %vm702_vm1, %v1105_v27, %v1106_v28  ;;  %v4344_v27 = vld [vmem:[%s5427_s1 + $0x238] sm:$0xff]   ;;  %v4376_v28 = vld [vmem:[%s4493_s20 + $0x60] sm:$0xff]  }
  0x64   : > { %3968 = vmatpush3.bf16.msra.mxu1 %v4301_v32  ;;  %v947_v32 = vshrl.u32 %v4305_v13, 16  ;;  %v963_v36 = vrot.slane %v961_v39, 1 }
  0x65   : > { %3969 = vmatprep.subr.bf16.mxu1 %v4307_v46  ;;  %v4330_v46 = vld [vmem:[%s5427_s1 + $0x228] sm:$0xff]  }
  0x67   : > { %2313 = vmatmul.mubr.bf16.gmra.mrb[32].mxu1 %v4635_v48  ;;  %2458 = vmatmul.mubr.bf16.vlgmr.msra.gmra.mrb[32].mxu0 %v909_v22  ;;  %v4308_v48 = vld [vmem:[%s5427_s1 + $0x190] sm:$0xff]   ;;  %v956_v22 = vrot.slane %v954_v34, 1 }
  0x68   : > { %4095 = vmatpush3.bf16.msra.mxu0 %v4297_v0  ;;  %2320 = vmatprep.mubr.bf16.mxu1 %v4298_v33  ;;  %v945_v0 = vsel %vm506_vm0, %v940_v24, %v944_v25  ;;  %v951_v33 = vrot.slane %v949_v26, 1  ;;  %v990_v24 = vshll.u32 %v4320_v7, 16  ;;  %v4325_v26 = vld [vmem:[%s4493_s20 + $0x74] ss:$0 sps:$4 sm:$0x11]  }
  0x69   : > { %2465 = vmatprep.mubr.bf16.mxu0 %v1098_v45  ;;  %4096 = vmatprep.subr.bf16.mxu0 %v4412_v61  ;;  %v1109_v45 = vrot.slane %v4313_v31, 1  ;;  %v1118_v34 = vrot.slane %v4325_v26, 1 }
  0x6a   : > { %3970 = vmatpush3.bf16.msra.mxu1 %v4308_v48  ;;  %v952_v41 = vor.u32 %v951_v33, %v947_v32  ;;  %v992_v31 = vrot.slane %v990_v24, 1  ;;  %v1033_v24 = vshll.u32 %v4331_v10, 16 }
  0x6b   : > { %3971 = vmatprep.subr.bf16.mxu1 %v4314_v9  ;;  %v1110_v48 = vsel %vm702_vm1, %v1108_v44, %v1109_v45  ;;  %v4337_v9 = vld [vmem:[%s5427_s1 + $0x230] sm:$0xff]   ;;  %v1002_v44 = vshll.u32 %v4325_v26, 16 }
  0x6c   : > { %4097 = vmatpush3.bf16.msra.mxu0 %v4304_v54  ;;  %v957_v53 = vsel %vm506_vm0, %v952_v41, %v956_v22  ;;  %v4318_v54 = vld [vmem:[%s4493_s20 + $0x5c] ss:$0 sps:$4 sm:$0x11]  }
  0x6d   : > { %4098 = vmatprep.subr.bf16.mxu0 %v4412_v61  ;;  %v1112_v2 = vrot.slane %v4318_v54, 1  ;;  %v978_v8 = vshll.u32 %v4318_v54, 16  ;;  %v1004_v54 = vrot.slane %v1002_v44, 1 }
  0x6f   : > { %2321 = vmatmul.mubr.bf16.gmra.mrb[36].mxu1 %v4672_v15  ;;  %2466 = vmatmul.mubr.bf16.gmra.mrb[36].mxu0 %v921_v63  ;;  %v4315_v15 = vld [vmem:[%s5427_s1 + $0x198] sm:$0xff]   ;;  %v964_v63 = vor.u32 %v963_v36, %v959_v51  ;;  %v1113_v11 = vsel %vm702_vm1, %v1111_v1, %v1112_v2  ;;  %v4379_v36 = vld [vmem:[%s4493_s20 + $0x74] ss:$0 sps:$4 sm:$0x11]  }
  0x70   : > { %2328 = vmatprep.mubr.bf16.mxu1 %v4302_v55  ;;  %2473 = vmatprep.mubr.bf16.mxu0 %v1101_v3  ;;  %v721_v55 = vrot.slane %v4697_v37, 1  ;;  %v4334_v3 = vld [vmem:[%s5427_s1 + $0x1b0] sm:$0xff]   ;;  %v731_v52 = vrot.slane %v4379_v36, 1 }
  0x71   : > { %4099 = vmatpush3.bf16.msra.mxu0 %v4311_v5  ;;  %3972 = vmatpush3.bf16.msra.mxu1 %v4315_v15  ;;  %v969_v37 = vsel %vm506_vm0, %v964_v63, %v968_v57  ;;  %v971_v5 = vshrl.u32 %v4312_v50, 16  ;;  %v980_v15 = vrot.slane %v978_v8, 1  ;;  %v4327_v57 = vld [vmem:[%s4493_s20 + $0x84] sm:$0xff]  }
  0x72   : > { %4100 = vmatprep.subr.bf16.mxu0 %v4412_v61  ;;  %3973 = vmatprep.subr.bf16.mxu1 %v4321_v23  ;;  %v723_v4 = vsel %vm702_vm1, %v721_v55, %v722_v56  ;;  %v987_v23 = vrot.slane %v985_v14, 1  ;;  %v1123_v7 = vrot.slane %v4327_v57, 1  ;;  %v1019_v12 = vshrl.u32 %v4327_v57, 16 }
  0x74   : > { %v988_v32 = vor.u32 %v987_v23, %v983_v21 }
  0x75   : > { %4101 = vmatpush3.bf16.msra.mxu0 %v4316_v16  ;;  %3974 = vmatpush3.bf16.msra.mxu1 %v4322_v29  ;;  %v4340_v16 = vld [vmem:[%s5427_s1 + $0x1f8] sm:$0xff]   ;;  %v727_v29 = vrot.slane %v4376_v28, 1 }
  0x76   : > { %4102 = vmatprep.subr.bf16.mxu0 %v4412_v61  ;;  %3975 = vmatprep.subr.bf16.mxu1 %v4326_v40  ;;  %v993_v39 = vsel %vm506_vm0, %v988_v32, %v992_v31  ;;  %v4324_v40 = vld [vmem:[%s4493_s20 + $0x78] sm:$0xff]   ;;  %v4339_v31 = vld [vmem:[%s4493_s20 + $0xa4] ss:$0 sps:$4 sm:$0x11]  }
  0x77   : > { %2329 = vmatmul.mubr.bf16.gmra.mrb[40].mxu1 %v4703_v20  ;;  %2474 = vmatmul.mubr.bf16.gmra.mrb[40].mxu0 %v933_v17  ;;  %v4323_v20 = vld [vmem:[%s5427_s1 + $0x220] sm:$0xff]   ;;  %v1114_v17 = vrot.slane %v4317_v38, 1 }
  0x78   : > { %2336 = vmatprep.mubr.bf16.mxu1 %v4305_v13  ;;  %2481 = vmatprep.mubr.bf16.mxu0 %v1104_v19  ;;  %v4319_v19 = vld [vmem:[%s4493_s20 + $0x6c] sm:$0xff]   ;;  %v4335_v28 = vld [vmem:[%s4493_s20 + $0x9c] sm:$0xff]  }
  0x79   : > { %4103 = vmatpush3.bf16.msra.mxu0 %v4323_v20  ;;  %3976 = vmatpush3.bf16.msra.mxu1 %v4329_v49  ;;  %v1116_v25 = vsel %vm702_vm1, %v1114_v17, %v1115_v18  ;;  %v4377_v20 = vld [vmem:[%s4493_s20 + $0x68] ss:$0 sps:$4 sm:$0x11]   ;;  %v1117_v33 = vrot.slane %v4319_v19, 1  ;;  %v995_v41 = vshrl.u32 %v4319_v19, 16  ;;  %v1129_v44 = vrot.slane %v4335_v28, 1 }
  0x7a   : > { %4104 = vmatprep.subr.bf16.mxu0 %v4412_v61  ;;  %v4328_v49 = vld [vmem:[%s4493_s20 + $0x80] ss:$0 sps:$4 sm:$0x11]   ;;  %v4336_v18 = vld [vmem:[%s4493_s20 + $0x98] ss:$0 sps:$4 sm:$0x11]  }
  0x7b   : > { %v1119_v45 = vsel %vm702_vm1, %v1117_v33, %v1118_v34  ;;  %v1014_v1 = vshll.u32 %v4328_v49, 16  ;;  %v1127_v26 = vrot.slane %v4336_v18, 1  ;;  %v1038_v32 = vshll.u32 %v4336_v18, 16  ;;  %v4384_v33 = vld [vmem:[%s4493_s20 + $0x90] sm:$0xff]  }
  0x7c   : > { %v739_v34 = vrot.slane %v4384_v33, 1 }
  0x7d   : > { %4105 = vmatpush3.bf16.msra.mxu0 %v4330_v46  ;;  %v1009_v46 = vshll.u32 %v4324_v40, 16  ;;  %v1016_v8 = vrot.slane %v1014_v1, 1 }
  0x7e   : > { %4106 = vmatprep.subr.bf16.mxu0 %v4412_v61 }
  0x7f   : > { %2337 = vmatmul.mubr.bf16.gmra.mrb[44].mxu1 %v4791_v47  ;;  %2482 = vmatmul.mubr.bf16.gmra.mrb[44].mxu0 %v945_v0  ;;  %v4333_v47 = vld [vmem:[%s5427_s1 + $0x1f0] sm:$0xff]   ;;  %v997_v0 = vshll.u32 %v4319_v19, 16  ;;  %v1011_v63 = vrot.slane %v1009_v46, 1 }
  0x80   : > { %2344 = vmatprep.mubr.bf16.mxu1 %v4309_v30  ;;  %2489 = vmatprep.mubr.bf16.mxu0 %v1107_v35  ;;  %v728_v30 = vrot.slane %v4377_v20, 1  ;;  %v1031_v20 = vshrl.u32 %v4331_v10, 16 }
  0x81   : > { %3977 = vmatprep.subr.bf16.mxu1 %v4333_v47  ;;  %4107 = vmatpush3.bf16.msra.mxu0 %v4337_v9  ;;  %v999_v22 = vrot.slane %v997_v0, 1  ;;  %v1121_v47 = vrot.slane %v4328_v49, 1  ;;  %v4338_v49 = vld [vmem:[%s4493_s20 + $0xa8] sm:$0xff]  }
  0x82   : > { %3978 = vmatpush3.bf16.msra.mxu1 %v4334_v3  ;;  %4108 = vmatprep.subr.bf16.mxu0 %v4412_v61  ;;  %v729_v35 = vsel %vm702_vm1, %v727_v29, %v728_v30  ;;  %v4332_v3 = vld [vmem:[%s4493_s20 + $0x8c] ss:$0 sps:$4 sm:$0x11]   ;;  %v1035_v30 = vrot.slane %v1033_v24, 1  ;;  %v1057_v1 = vshll.u32 %v4338_v49, 16 }
  0x83   : > { %3979 = vmatprep.subr.bf16.mxu1 %v4340_v16  ;;  %v1124_v9 = vrot.slane %v4332_v3, 1  ;;  %v1026_v16 = vshll.u32 %v4332_v3, 16  ;;  %v4349_v24 = vld [vmem:[%s4493_s20 + $0x2c] ss:$0 sps:$4 sm:$0x11]  }
  0x85   : > { %4109 = vmatpush3.bf16.msra.mxu0 %v4344_v27  ;;  %v1125_v17 = vsel %vm702_vm1, %v1123_v7, %v1124_v9  ;;  %v1028_v23 = vrot.slane %v1026_v16, 1  ;;  %v4345_v9 = vld [vmem:[%s4493_s20 + $0xbc] ss:$0 sps:$4 sm:$0x11]   ;;  %v745_v16 = vrot.slane %v4709_v42, 1 }
  0x86   : > { %3980 = vmatpush3.bf16.msra.mxu1 %v4341_v59  ;;  %v4382_v59 = vld [vmem:[%s4493_s20 + $0x84] sm:$0xff]  }
  0x87   : > { %2345 = vmatmul.mubr.bf16.gmra.mrb[48].mxu1 %v4804_v6  ;;  %2490 = vmatmul.mubr.bf16.gmra.mrb[48].mxu0 %v957_v53  ;;  %v975_v6 = vrot.slane %v973_v58, 1  ;;  %v1000_v53 = vor.u32 %v999_v22, %v995_v41  ;;  %v1007_v58 = vshrl.u32 %v4324_v40, 16  ;;  %v1040_v41 = vrot.slane %v1038_v32, 1 }
  0x88   : > { %2352 = vmatprep.mubr.bf16.mxu1 %v4312_v50  ;;  %2497 = vmatprep.mubr.bf16.mxu0 %v1110_v48  ;;  %v4378_v50 = vld [vmem:[%s4493_s20 + $0x6c] sm:$0xff]   ;;  %v1120_v48 = vrot.slane %v4324_v40, 1  ;;  %v1045_v22 = vshll.u32 %v4335_v28, 16 }
  0x89   : > { %v976_v13 = vor.u32 %v975_v6, %v971_v5  ;;  %v730_v51 = vrot.slane %v4378_v50, 1  ;;  %v1005_v56 = vsel %vm506_vm0, %v1000_v53, %v1004_v54  ;;  %v1012_v6 = vor.u32 %v1011_v63, %v1007_v58  ;;  %v4343_v54 = vld [vmem:[%s4493_s20 + $0xb0] ss:$0 sps:$4 sm:$0x11]  }
  0x8a   : > { %v1122_v2 = vsel %vm702_vm1, %v1120_v48, %v1121_v47  ;;  %v1043_v50 = vshrl.u32 %v4335_v28, 16  ;;  %v1047_v53 = vrot.slane %v1045_v22, 1  ;;  %v4922_v48 = vld [vmem:[%s4493_s20 + $0x18] sm:$0xff]   ;;  %v1133_v3 = vrot.slane %v4343_v54, 1 }
  0x8b   : > { %v981_v62 = vsel %vm506_vm0, %v976_v13, %v980_v15  ;;  %v732_v55 = vsel %vm702_vm1, %v730_v51, %v731_v52  ;;  %v1017_v15 = vsel %vm506_vm0, %v1012_v6, %v1016_v8  ;;  %v1050_v51 = vshll.u32 %v4339_v31, 16  ;;  %v4386_v47 = vld [vmem:[%s4493_s20 + $0x9c] sm:$0xff]  }
  0x8c   : > { %v1048_v58 = vor.u32 %v1047_v53, %v1043_v50  ;;  %v1055_v8 = vshrl.u32 %v4338_v49, 16  ;;  %v1062_v7 = vshll.u32 %v4343_v54, 16 }
  0x8d   : > { %v1052_v63 = vrot.slane %v1050_v51, 1  ;;  %v4352_v51 = vld [vmem:[%s4493_s20 + $0x3c] sm:$0xff]  }
  0x8f   : > { %2353 = vmatmul.mubr.bf16.gmra.mrb[52].mxu1 %v723_v4  ;;  %2498 = vmatmul.mubr.bf16.gmra.mrb[52].mxu0 %v969_v37  ;;  %v4380_v4 = vld [vmem:[%s4493_s20 + $0x78] sm:$0xff]   ;;  %v1053_v6 = vsel %vm506_vm0, %v1048_v58, %v1052_v63 }
  0x90   : > { %2360 = vmatprep.mubr.bf16.mxu1 %v4317_v38  ;;  %2505 = vmatprep.mubr.bf16.mxu0 %v1113_v11  ;;  %v733_v37 = vrot.slane %v4380_v4, 1  ;;  %v4381_v38 = vld [vmem:[%s4493_s20 + $0x80] ss:$0 sps:$4 sm:$0x11]   ;;  %v1021_v11 = vshll.u32 %v4327_v57, 16 }
  0x91   : > { %v734_v5 = vrot.slane %v4381_v38, 1  ;;  %v4927_v4 = vld [vmem:[%s4493_s20 + $0x20] ss:$0 sps:$4 sm:$0x11]  }
  0x92   : > { %v1023_v14 = vrot.slane %v1021_v11, 1  ;;  %v1059_v11 = vrot.slane %v1057_v1, 1  ;;  %v4963_v1 = vld [vmem:[%s4493_s20 + $0x48] sm:$0xff]  }
  0x93   : > { %v735_v13 = vsel %vm702_vm1, %v733_v37, %v734_v5  ;;  %v1291_v37 = vshll.u32 %v4922_v48, 16  ;;  %v4342_v5 = vld [vmem:[%s4493_s20 + $0xb4] sm:$0xff]  }
  0x94   : > { %v1024_v21 = vor.u32 %v1023_v14, %v1019_v12  ;;  %v1289_v12 = vshrl.u32 %v4922_v48, 16  ;;  %v4938_v14 = vld [vmem:[%s4493_s20 + $0x24] sm:$0xff]   ;;  %v1135_v18 = vrot.slane %v4342_v5, 1 }
  0x96   : > { %v1029_v29 = vsel %vm506_vm0, %v1024_v21, %v1028_v23 }
  0x97   : > { %2361 = vmatmul.mubr.bf16.gmra.mrb[56].mxu1 %v726_v60  ;;  %2506 = vmatmul.mubr.bf16.gmra.mrb[56].mxu0 %v981_v62  ;;  %v736_v60 = vrot.slane %v4382_v59, 1  ;;  %v4383_v62 = vld [vmem:[%s4493_s20 + $0x8c] ss:$0 sps:$4 sm:$0x11]   ;;  %v1060_v59 = vor.u32 %v1059_v11, %v1055_v8  ;;  %v1337_v8 = vshrl.u32 %v4963_v1, 16 }
  0x98   : > { %2368 = vmatprep.mubr.bf16.mxu1 %v4319_v19  ;;  %2513 = vmatprep.mubr.bf16.mxu0 %v1116_v25  ;;  %v737_v19 = vrot.slane %v4383_v62, 1  ;;  %v1126_v25 = vrot.slane %v4331_v10, 1  ;;  %v1136_v62 = vrot.slane %v4345_v9, 1 }
  0x9a   : > { %v738_v27 = vsel %vm702_vm1, %v736_v60, %v737_v19  ;;  %v1128_v0 = vsel %vm702_vm1, %v1126_v25, %v1127_v26  ;;  %v1064_v60 = vrot.slane %v1062_v7, 1  ;;  %v1069_v19 = vshll.u32 %v4342_v5, 16 }
  0x9b   : > { %v1303_v25 = vshll.u32 %v4938_v14, 16 }
  0x9c   : > { %v1065_v42 = vsel %vm506_vm0, %v1060_v59, %v1064_v60 }
  0x9d   : > { %v1305_v32 = vrot.slane %v1303_v25, 1 }
  0x9f   : > { %2369 = vmatmul.mubr.bf16.gmra.mrb[60].mxu1 %v729_v35  ;;  %2514 = vmatmul.mubr.bf16.gmra.mrb[60].mxu0 %v993_v39  ;;  %v4385_v35 = vld [vmem:[%s4493_s20 + $0x98] ss:$0 sps:$4 sm:$0x11]  }
  0xa0   : > { %2376 = vmatprep.mubr.bf16.mxu1 %v4324_v40  ;;  %2521 = vmatprep.mubr.bf16.mxu0 %v1119_v45  ;;  %v740_v39 = vrot.slane %v4385_v35, 1  ;;  %v1036_v40 = vor.u32 %v1035_v30, %v1031_v20  ;;  %v1130_v45 = vrot.slane %v4339_v31, 1  ;;  %v1301_v30 = vshrl.u32 %v4938_v14, 16 }
  0xa1   : > { %v1308_v31 = vshll.u32 %v4349_v24, 16 }
  0xa2   : > { %v741_v36 = vsel %vm702_vm1, %v739_v34, %v740_v39  ;;  %v1041_v52 = vsel %vm506_vm0, %v1036_v40, %v1040_v41  ;;  %v1131_v46 = vsel %vm702_vm1, %v1129_v44, %v1130_v45  ;;  %v1306_v35 = vor.u32 %v1305_v32, %v1301_v30  ;;  %v4351_v40 = vld [vmem:[%s4493_s20 + $0x38] ss:$0 sps:$4 sm:$0x11]   ;;  %v5001_v30 = vld [vmem:[%s4493_s20 + $0x6c] sm:$0xff]  }
  0xa3   : > { %v1310_v39 = vrot.slane %v1308_v31, 1  ;;  %v1320_v50 = vshll.u32 %v4351_v40, 16  ;;  %v1495_v32 = vrot.slane %v4963_v1, 1 }
  0xa5   : > { %v1311_v44 = vsel %vm506_vm0, %v1306_v35, %v1310_v39  ;;  %v1322_v54 = vrot.slane %v1320_v50, 1  ;;  %v1375_v35 = vshll.u32 %v5001_v30, 16 }
  0xa7   : > { %2377 = vmatmul.mubr.bf16.gmra.mrb[64].mxu1 %v732_v55  ;;  %2522 = vmatmul.mubr.bf16.gmra.mrb[64].mxu0 %v1005_v56  ;;  %v742_v55 = vrot.slane %v4386_v47, 1  ;;  %v4387_v56 = vld [vmem:[%s4493_s20 + $0xa4] ss:$0 sps:$4 sm:$0x11]   ;;  %v1327_v47 = vshll.u32 %v4352_v51, 16 }
  0xa8   : > { %2384 = vmatprep.mubr.bf16.mxu1 %v4327_v57  ;;  %2529 = vmatprep.mubr.bf16.mxu0 %v1122_v2  ;;  %v743_v57 = vrot.slane %v4387_v56, 1  ;;  %v1132_v2 = vrot.slane %v4338_v49, 1 }
  0xa9   : > { %v1329_v58 = vrot.slane %v1327_v47, 1 }
  0xaa   : > { %v744_v38 = vsel %vm702_vm1, %v742_v55, %v743_v57  ;;  %v1325_v57 = vshrl.u32 %v4352_v51, 16 }
  0xaf   : > { %2385 = vmatmul.mubr.bf16.gmra.mrb[68].mxu1 %v735_v13  ;;  %2530 = vmatmul.mubr.bf16.gmra.mrb[68].mxu0 %v1017_v15  ;;  %v1293_v13 = vrot.slane %v1291_v37, 1  ;;  %v1296_v15 = vshll.u32 %v4927_v4, 16  ;;  %v4355_v37 = vld [vmem:[%s4493_s20 + $0x50] ss:$0 sps:$4 sm:$0x11]  }
  0xb0   : > { %2392 = vmatprep.mubr.bf16.mxu1 %v4331_v10  ;;  %2537 = vmatprep.mubr.bf16.mxu0 %v1125_v17  ;;  %v1134_v10 = vsel %vm702_vm1, %v1132_v2, %v1133_v3  ;;  %v746_v17 = vrot.slane %v4712_v43, 1  ;;  %v1137_v43 = vsel %vm702_vm1, %v1135_v18, %v1136_v62  ;;  %v1487_v2 = vrot.slane %v4349_v24, 1 }
  0xb1   : > { %v1294_v21 = vor.u32 %v1293_v13, %v1289_v12  ;;  %v1298_v23 = vrot.slane %v1296_v15, 1  ;;  %v1330_v3 = vor.u32 %v1329_v58, %v1325_v57  ;;  %v1344_v7 = vshll.u32 %v4355_v37, 16 }
  0xb2   : > { %v747_v26 = vsel %vm702_vm1, %v745_v16, %v746_v17  ;;  %v1490_v12 = vrot.slane %v4351_v40, 1  ;;  %v1496_v31 = vrot.slane %v4355_v37, 1 }
  0xb3   : > { %v1299_v20 = vsel %vm506_vm0, %v1294_v21, %v1298_v23  ;;  %v1346_v15 = vrot.slane %v1344_v7, 1  ;;  %v1492_v21 = vrot.slane %v4352_v51, 1 }
  0xb7   : > { %2393 = vmatmul.mubr.bf16.gmra.mrb[72].mxu1 %v738_v27  ;;  %2538 = vmatmul.mubr.bf16.gmra.mrb[72].mxu0 %v1029_v29  ;;  %v1067_v27 = vshrl.u32 %v4342_v5, 16  ;;  %v1074_v29 = vshll.u32 %v4345_v9, 16  ;;  %v4975_v9 = vld [vmem:[%s4493_s20 + $0x54] sm:$0xff]  }
  0xb8   : > { %2400 = vmatprep.mubr.bf16.mxu1 %v4335_v28  ;;  %2545 = vmatprep.mubr.bf16.mxu0 %v1128_v0  ;;  %v1071_v28 = vrot.slane %v1069_v19, 1  ;;  %v4350_v0 = vld [vmem:[%s4493_s20 + $0x30] sm:$0xff]   ;;  %v1351_v16 = vshll.u32 %v4975_v9, 16  ;;  %v1349_v59 = vshrl.u32 %v4975_v9, 16  ;;  %v4988_v19 = vld [vmem:[%s4493_s20 + $0x60] sm:$0xff]   ;;  %v1498_v58 = vrot.slane %v4975_v9, 1 }
  0xb9   : > { %v1076_v34 = vrot.slane %v1074_v29, 1  ;;  %v1315_v41 = vshll.u32 %v4350_v0, 16  ;;  %v1313_v45 = vshrl.u32 %v4350_v0, 16 }
  0xba   : > { %v1072_v33 = vor.u32 %v1071_v28, %v1067_v27  ;;  %v1353_v60 = vrot.slane %v1351_v16, 1  ;;  %v1363_v27 = vshll.u32 %v4988_v19, 16  ;;  %v1361_v28 = vshrl.u32 %v4988_v19, 16 }
  0xbc   : > { %v1077_v22 = vsel %vm506_vm0, %v1072_v33, %v1076_v34  ;;  %v1354_v24 = vor.u32 %v1353_v60, %v1349_v59  ;;  %v1365_v29 = vrot.slane %v1363_v27, 1  ;;  %v5008_v34 = vld [vmem:[%s4493_s20 + $0x74] ss:$0 sps:$4 sm:$0x11]   ;;  %v1501_v60 = vrot.slane %v4988_v19, 1 }
  0xbd   : > { %v1380_v47 = vshll.u32 %v5008_v34, 16 }
  0xbf   : > { %2401 = vmatmul.mubr.bf16.gmra.mrb[76].mxu1 %v741_v36  ;;  %2546 = vmatmul.mubr.bf16.gmra.mrb[76].mxu0 %v1041_v52  ;;  %v1483_v36 = vrot.slane %v4922_v48, 1  ;;  %v1484_v52 = vrot.slane %v4927_v4, 1 }
  0xc0   : > { %2408 = vmatprep.mubr.bf16.mxu1 %v4338_v49  ;;  %2553 = vmatprep.mubr.bf16.mxu0 %v1131_v46  ;;  %v1317_v49 = vrot.slane %v1315_v41, 1  ;;  %v4353_v46 = vld [vmem:[%s4493_s20 + $0x44] ss:$0 sps:$4 sm:$0x11]  }
  0xc1   : > { %v1485_v55 = vsel %vm702_vm1, %v1483_v36, %v1484_v52  ;;  %v1332_v63 = vshll.u32 %v4353_v46, 16  ;;  %v1493_v23 = vrot.slane %v4353_v46, 1  ;;  %v1377_v46 = vrot.slane %v1375_v35, 1 }
  0xc2   : > { %v1318_v53 = vor.u32 %v1317_v49, %v1313_v45 }
  0xc3   : > { %v1334_v4 = vrot.slane %v1332_v63, 1 }
  0xc4   : > { %v1323_v56 = vsel %vm506_vm0, %v1318_v53, %v1322_v54  ;;  %v1373_v54 = vshrl.u32 %v5001_v30, 16 }
  0xc7   : > { %2409 = vmatmul.mubr.bf16.gmra.mrb[80].mxu1 %v744_v38  ;;  %2554 = vmatmul.mubr.bf16.gmra.mrb[80].mxu0 %v1053_v6  ;;  %v1339_v38 = vshll.u32 %v4963_v1, 16  ;;  %v1335_v6 = vsel %vm506_vm0, %v1330_v3, %v1334_v4 }
  0xc8   : > { %2416 = vmatprep.mubr.bf16.mxu1 %v4342_v5  ;;  %2561 = vmatprep.mubr.bf16.mxu0 %v1134_v10  ;;  %v1489_v10 = vrot.slane %v4350_v0, 1 }
  0xc9   : > { %v1341_v11 = vrot.slane %v1339_v38, 1 }
  0xca   : > { %v1491_v17 = vsel %vm702_vm1, %v1489_v10, %v1490_v12 }
  0xcb   : > { %v1342_v13 = vor.u32 %v1341_v11, %v1337_v8 }
  0xcd   : > { %v1347_v18 = vsel %vm506_vm0, %v1342_v13, %v1346_v15 }
  0xcf   : > { %2417 = vmatmul.mubr.bf16.gmra.mrb[84].mxu1 %v747_v26  ;;  %2562 = vmatmul.mubr.bf16.gmra.mrb[84].mxu0 %v1065_v42  ;;  %v4993_v26 = vld [vmem:[%s4493_s20 + $0x68] ss:$0 sps:$4 sm:$0x11]   ;;  %v1494_v42 = vsel %vm702_vm1, %v1492_v21, %v1493_v23 }
  0xd0   : > { %2569 = vmatprep.mubr.bf16.mxu0 %v1137_v43  ;;  %2610 = vmatprep.mubr.bf16.mxu1 %v1299_v20  ;;  %v1368_v20 = vshll.u32 %v4993_v26, 16 }
  0xd2   : > { %v1370_v33 = vrot.slane %v1368_v20, 1 }
  0xd7   : > { %2570 = vmatmul.mubr.bf16.gmra.mrb[88].mxu0 %v1077_v22  ;;  %2611 = vmatmul.mubr.bf16.vlgmr.msra.gmra.mrb[88].mxu1 %v4922_v48  ;;  %v1486_v48 = vrot.slane %v4938_v14, 1 }
  0xd8   : > { %2618 = vmatprep.mubr.bf16.mxu1 %v1311_v44  ;;  %4110 = vmatprep.mubr.msk.bf16.mxu0 %vm4413_vm2, %v4412_v61 }
  0xd9   : > { %v1488_v5 = vsel %vm702_vm1, %v1486_v48, %v1487_v2  ;;  %v1382_v48 = vrot.slane %v1380_v47, 1  ;;  %v5032_v2 = vld [vmem:[%s4493_s20 + $0x80] ss:$0 sps:$4 sm:$0x11]  }
  0xda   : > { %v1392_v16 = vshll.u32 %v5032_v2, 16 }
  0xdc   : > { %v1394_v23 = vrot.slane %v1392_v16, 1 }
  0xdf   : > { %2619 = vmatmul.mubr.bf16.gmra.mrb[92].mxu1 %v4938_v14  ;;  %4111 = vmatmul.mubr.bf16.vlgmr.msra.gmra.mrb[92].mxu0 %v1485_v55  ;;  %v4980_v14 = vld [vmem:[%s4493_s20 + $0x5c] ss:$0 sps:$4 sm:$0x11]  }
  0xe0   : > { %2626 = vmatprep.mubr.bf16.mxu1 %v1323_v56  ;;  %4114 = vmatprep.mubr.msk.bf16.mxu0 %vm4413_vm2, %v4412_v61  ;;  %v1356_v62 = vshll.u32 %v4980_v14, 16  ;;  %v5020_v55 = vld [vmem:[%s4493_s20 + $0x78] sm:$0xff]   ;;  %v1499_v63 = vrot.slane %v4980_v14, 1 }
  0xe1   : > { %v1387_v3 = vshll.u32 %v5020_v55, 16  ;;  %v1385_v15 = vshrl.u32 %v5020_v55, 16 }
  0xe2   : > { %v1358_v25 = vrot.slane %v1356_v62, 1  ;;  %v1502_v62 = vrot.slane %v4993_v26, 1 }
  0xe3   : > { %v1389_v14 = vrot.slane %v1387_v3, 1 }
  0xe4   : > { %v1359_v43 = vsel %vm506_vm0, %v1354_v24, %v1358_v25  ;;  %v5056_v24 = vld [vmem:[%s4493_s20 + $0x8c] ss:$0 sps:$4 sm:$0x11]  }
  0xe5   : > { %v1390_v21 = vor.u32 %v1389_v14, %v1385_v15  ;;  %v1508_v15 = vrot.slane %v5032_v2, 1 }
  0xe7   : > { %2627 = vmatmul.mubr.bf16.gmra.mrb[96].mxu1 %v4350_v0  ;;  %4115 = vmatmul.mubr.bf16.gmra.mrb[96].mxu0 %v1488_v5  ;;  %v1366_v0 = vor.u32 %v1365_v29, %v1361_v28 }
  0xe8   : > { %2634 = vmatprep.mubr.bf16.mxu1 %v1335_v6  ;;  %4118 = vmatprep.mubr.msk.bf16.mxu0 %vm4413_vm2, %v4412_v61 }
  0xe9   : > { %v1371_v53 = vsel %vm506_vm0, %v1366_v0, %v1370_v33  ;;  %v1395_v33 = vsel %vm506_vm0, %v1390_v21, %v1394_v23 }
  0xef   : > { %2635 = vmatmul.mubr.bf16.gmra.mrb[100].mxu1 %v4352_v51  ;;  %4119 = vmatmul.mubr.bf16.gmra.mrb[100].mxu0 %v1491_v17  ;;  %v1497_v51 = vsel %vm702_vm1, %v1495_v32, %v1496_v31  ;;  %v5044_v17 = vld [vmem:[%s4493_s20 + $0x84] sm:$0xff]  }
  0xf0   : > { %2642 = vmatprep.mubr.bf16.mxu1 %v1347_v18  ;;  %4122 = vmatprep.mubr.msk.bf16.mxu0 %vm4413_vm2, %v4412_v61  ;;  %v1399_v25 = vshll.u32 %v5044_v17, 16  ;;  %v1397_v35 = vshrl.u32 %v5044_v17, 16 }
  0xf7   : > { %2643 = vmatmul.mubr.bf16.gmra.mrb[104].mxu1 %v4963_v1  ;;  %4123 = vmatmul.mubr.bf16.gmra.mrb[104].mxu0 %v1494_v42  ;;  %v1378_v1 = vor.u32 %v1377_v46, %v1373_v54 }
  0xf8   : > { %2650 = vmatprep.mubr.bf16.mxu1 %v1359_v43  ;;  %4126 = vmatprep.mubr.msk.bf16.mxu0 %vm4413_vm2, %v4412_v61 }
  0xf9   : > { %v1383_v13 = vsel %vm506_vm0, %v1378_v1, %v1382_v48 }
  0xfa   : > { %v3663_v39 = vpop.f32.mrb[0].mxu0  ;;  %v3711_v40 = vpop.f32.mrb[0].mxu1 }
  0xfb   : > { %v3664_v41 = vpop.f32.mrb[1].mxu0  ;;  %v3712_v22 = vpop.f32.mrb[1].mxu1 }
  0xfc   : > { %v5011_v44 = vadd.f32 %v3664_v41, %v3663_v39  ;;  %v3666_v45 = vpop.f32.mrb[2].mxu0  ;;  %v5013_v49 = vadd.f32 %v3712_v22, %v3711_v40  ;;  %v3714_v50 = vpop.f32.mrb[2].mxu1  ;;  %v1401_v39 = vrot.slane %v1399_v25, 1  ;;  %v1404_v40 = vshll.u32 %v5056_v24, 16  ;;  %v5068_v41 = vld [vmem:[%s4493_s20 + $0x90] sm:$0xff]  }
  0xfd   : > { %v3667_v36 = vpop.f32.mrb[3].mxu0  ;;  %v3715_v52 = vpop.f32.mrb[3].mxu1  ;;  %v1411_v54 = vshll.u32 %v5068_v41, 16 }
  0xfe   : > { %v5022_v56 = vadd.f32 %v3667_v36, %v3666_v45  ;;  %v5024_v57 = vadd.f32 %v3715_v52, %v3714_v50  ;;  %v1504_v50 = vrot.slane %v5001_v30, 1  ;;  %v1402_v36 = vor.u32 %v1401_v39, %v1397_v35  ;;  %v5116_v35 = vld [vmem:[%s4493_s20 + $0xa8] sm:$0xff]  }
  0xff   : > { %2651 = vmatmul.mubr.bf16.gmra.mrb[108].mxu1 %v4975_v9  ;;  %4127 = vmatmul.mubr.bf16.gmra.mrb[108].mxu0 %v1497_v51  ;;  %v1500_v9 = vsel %vm702_vm1, %v1498_v58, %v1499_v63  ;;  %v1505_v51 = vrot.slane %v5008_v34, 1  ;;  %v1406_v52 = vrot.slane %v1404_v40, 1 }
 0x100   : > { %2658 = vmatprep.mubr.bf16.mxu1 %v1371_v53  ;;  %4130 = vmatprep.mubr.msk.bf16.mxu0 %vm4413_vm2, %v4412_v61  ;;  %v5080_v53 = vld [vmem:[%s4493_s20 + $0x98] ss:$0 sps:$4 sm:$0x11]  }
 0x102   : > { %v3669_v4 = vpop.f32.mrb[4].mxu0  ;;  %v3717_v37 = vpop.f32.mrb[4].mxu1 }
 0x103   : > { %v3670_v38 = vpop.f32.mrb[5].mxu0  ;;  %v3718_v5 = vpop.f32.mrb[5].mxu1 }
 0x104   : > { %v5035_v6 = vadd.f32 %v3670_v38, %v3669_v4  ;;  %v3672_v8 = vpop.f32.mrb[6].mxu0  ;;  %v5037_v11 = vadd.f32 %v3718_v5, %v3717_v37  ;;  %v3720_v7 = vpop.f32.mrb[6].mxu1  ;;  %v1407_v38 = vsel %vm506_vm0, %v1402_v36, %v1406_v52  ;;  %v1409_v5 = vshrl.u32 %v5068_v41, 16 }
 0x105   : > { %v3673_v10 = vpop.f32.mrb[7].mxu0  ;;  %v3721_v12 = vpop.f32.mrb[7].mxu1 }
 0x106   : > { %v5046_v18 = vadd.f32 %v3673_v10, %v3672_v8  ;;  %v5048_v59 = vadd.f32 %v3721_v12, %v3720_v7  ;;  %v1413_v8 = vrot.slane %v1411_v54, 1  ;;  %v1416_v7 = vshll.u32 %v5080_v53, 16  ;;  %v5128_v54 = vld [vmem:[%s4493_s20 + $0xb0] ss:$0 sps:$4 sm:$0x11]  }
 0x107   : > { %2659 = vmatmul.mubr.bf16.gmra.mrb[112].mxu1 %v4988_v19  ;;  %4131 = vmatmul.mubr.bf16.gmra.mrb[112].mxu0 %v1500_v9  ;;  %v1503_v19 = vsel %vm702_vm1, %v1501_v60, %v1502_v62  ;;  %v5092_v9 = vld [vmem:[%s4493_s20 + $0x9c] sm:$0xff]   ;;  %v5104_v60 = vld [vmem:[%s4493_s20 + $0xa4] ss:$0 sps:$4 sm:$0x11]  }
 0x108   : > { %2666 = vmatprep.mubr.bf16.mxu1 %v1383_v13  ;;  %4134 = vmatprep.mubr.msk.bf16.mxu0 %vm4413_vm2, %v4412_v61  ;;  %v1507_v13 = vrot.slane %v5020_v55, 1  ;;  %v1414_v14 = vor.u32 %v1413_v8, %v1409_v5  ;;  %v1418_v16 = vrot.slane %v1416_v7, 1  ;;  %v1423_v62 = vshll.u32 %v5092_v9, 16 }
 0x109   : > { %v1433_v8 = vshrl.u32 %v5116_v35, 16 }
 0x10a   : > { %v3675_v27 = vpop.f32.mrb[8].mxu0  ;;  %v3723_v42 = vpop.f32.mrb[8].mxu1 }
 0x10b   : > { %v3676_v43 = vpop.f32.mrb[9].mxu0  ;;  %v3724_v28 = vpop.f32.mrb[9].mxu1 }
 0x10c   : > { %v5059_v29 = vadd.f32 %v3676_v43, %v3675_v27  ;;  %v3678_v20 = vpop.f32.mrb[10].mxu0  ;;  %v5061_v32 = vadd.f32 %v3724_v28, %v3723_v42  ;;  %v3726_v31 = vpop.f32.mrb[10].mxu1 }
 0x10d   : > { %v3679_v26 = vpop.f32.mrb[11].mxu0  ;;  %v3727_v0 = vpop.f32.mrb[11].mxu1 }
 0x10e   : > { %v5070_v22 = vadd.f32 %v3679_v26, %v3678_v20  ;;  %v5072_v45 = vadd.f32 %v3727_v0, %v3726_v31  ;;  %v1421_v26 = vshrl.u32 %v5092_v9, 16  ;;  %v1425_v0 = vrot.slane %v1423_v62, 1 }
 0x10f   : > { %2667 = vmatmul.mubr.bf16.gmra.mrb[116].mxu1 %v5001_v30  ;;  %4135 = vmatmul.mubr.bf16.gmra.mrb[116].mxu0 %v1503_v19  ;;  %v1506_v30 = vsel %vm702_vm1, %v1504_v50, %v1505_v51  ;;  %v1419_v19 = vsel %vm506_vm0, %v1414_v14, %v1418_v16  ;;  %v1510_v50 = vrot.slane %v5044_v17, 1  ;;  %v1511_v51 = vrot.slane %v5056_v24, 1 }
 0x110   : > { %2674 = vmatprep.mubr.bf16.mxu1 %v1395_v33  ;;  %4138 = vmatprep.mubr.msk.bf16.mxu0 %vm4413_vm2, %v4412_v61  ;;  %v1428_v33 = vshll.u32 %v5104_v60, 16  ;;  %v1426_v36 = vor.u32 %v1425_v0, %v1421_v26  ;;  %v1513_v62 = vrot.slane %v5068_v41, 1 }
 0x112   : > { %v3681_v46 = vpop.f32.mrb[12].mxu0  ;;  %v3729_v47 = vpop.f32.mrb[12].mxu1  ;;  %v1430_v52 = vrot.slane %v1428_v33, 1 }
 0x113   : > { %v3682_v58 = vpop.f32.mrb[13].mxu0  ;;  %v3730_v63 = vpop.f32.mrb[13].mxu1 }
 0x114   : > { %v5083_v1 = vadd.f32 %v3682_v58, %v3681_v46  ;;  %v3684_v48 = vpop.f32.mrb[14].mxu0  ;;  %v5085_v3 = vadd.f32 %v3730_v63, %v3729_v47  ;;  %v3732_v4 = vpop.f32.mrb[14].mxu1  ;;  %v1435_v46 = vshll.u32 %v5116_v35, 16  ;;  %v1431_v5 = vsel %vm506_vm0, %v1426_v36, %v1430_v52 }
 0x115   : > { %v3685_v34 = vpop.f32.mrb[15].mxu0  ;;  %v3733_v37 = vpop.f32.mrb[15].mxu1 }
 0x116   : > { %v5094_v10 = vadd.f32 %v3685_v34, %v3684_v48  ;;  %v5096_v12 = vadd.f32 %v3733_v37, %v3732_v4  ;;  %v1437_v7 = vrot.slane %v1435_v46, 1 }
 0x117   : > { %2675 = vmatmul.mubr.bf16.gmra.mrb[120].mxu1 %v5020_v55  ;;  %4139 = vmatmul.mubr.bf16.gmra.mrb[120].mxu0 %v1506_v30  ;;  %v1509_v55 = vsel %vm702_vm1, %v1507_v13, %v1508_v15  ;;  %v1440_v13 = vshll.u32 %v5128_v54, 16  ;;  %v5140_v15 = vld [vmem:[%s4493_s20 + $0xb4] sm:$0xff]  }
 0x118   : > { %2682 = vmatprep.mubr.bf16.mxu1 %v1407_v38  ;;  %4142 = vmatprep.mubr.msk.bf16.mxu0 %vm4413_vm2, %v4412_v61  ;;  %v1445_v36 = vshrl.u32 %v5140_v15, 16 }
 0x11a   : > { %v3687_v21 = vpop.f32.mrb[16].mxu0  ;;  %v3735_v23 = vpop.f32.mrb[16].mxu1 }
 0x11b   : > { %v3688_v25 = vpop.f32.mrb[17].mxu0  ;;  %v3736_v27 = vpop.f32.mrb[17].mxu1 }
 0x11c   : > { %v5107_v42 = vadd.f32 %v3688_v25, %v3687_v21  ;;  %v3690_v43 = vpop.f32.mrb[18].mxu0  ;;  %v5109_v28 = vadd.f32 %v3736_v27, %v3735_v23  ;;  %v3738_v20 = vpop.f32.mrb[18].mxu1  ;;  %v1514_v21 = vrot.slane %v5080_v53, 1  ;;  %v1438_v23 = vor.u32 %v1437_v7, %v1433_v8  ;;  %v5152_v27 = vld [vmem:[%s4493_s20 + $0xbc] ss:$0 sps:$4 sm:$0x11]  }
 0x11d   : > { %v3691_v2 = vpop.f32.mrb[19].mxu0  ;;  %v3739_v31 = vpop.f32.mrb[19].mxu1  ;;  %v1442_v25 = vrot.slane %v1440_v13, 1  ;;  %v1452_v46 = vshll.u32 %v5152_v27, 16 }
 0x11e   : > { %v5118_v39 = vadd.f32 %v3691_v2, %v3690_v43  ;;  %v5120_v40 = vadd.f32 %v3739_v31, %v3738_v20  ;;  %v1447_v43 = vshll.u32 %v5140_v15, 16 }
 0x11f   : > { %2683 = vmatmul.mubr.bf16.gmra.mrb[124].mxu1 %v5044_v17  ;;  %4143 = vmatmul.mubr.bf16.gmra.mrb[124].mxu0 %v1509_v55  ;;  %v1512_v17 = vsel %vm702_vm1, %v1510_v50, %v1511_v51  ;;  %v1443_v51 = vsel %vm506_vm0, %v1438_v23, %v1442_v25 }
 0x120   : > { %2690 = vmatprep.mubr.bf16.mxu1 %v1419_v19  ;;  %4146 = vmatprep.mubr.msk.bf16.mxu0 %vm4413_vm2, %v4412_v61  ;;  %v1449_v52 = vrot.slane %v1447_v43, 1 }
 0x122   : > { %v3693_v47 = vpop.f32.mrb[20].mxu0  ;;  %v3741_v58 = vpop.f32.mrb[20].mxu1 }
 0x123   : > { %v3694_v63 = vpop.f32.mrb[21].mxu0  ;;  %v3742_v48 = vpop.f32.mrb[21].mxu1 }
 0x124   : > { %v5131_v4 = vadd.f32 %v3694_v63, %v3693_v47  ;;  %v3696_v30 = vpop.f32.mrb[22].mxu0  ;;  %v5133_v34 = vadd.f32 %v3742_v48, %v3741_v58  ;;  %v3744_v37 = vpop.f32.mrb[22].mxu1  ;;  %v5164_v47 = vld [vmem:[%s4493_s20 + $0xc0] sm:$0xff]   ;;  %v1516_v48 = vrot.slane %v5092_v9, 1 }
 0x125   : > { %v3697_v24 = vpop.f32.mrb[23].mxu0  ;;  %v3745_v38 = vpop.f32.mrb[23].mxu1 }
 0x126   : > { %v5142_v14 = vadd.f32 %v3697_v24, %v3696_v30  ;;  %v5144_v16 = vadd.f32 %v3745_v38, %v3744_v37  ;;  %v1517_v30 = vrot.slane %v5104_v60, 1  ;;  %v1450_v37 = vor.u32 %v1449_v52, %v1445_v36  ;;  %v5176_v24 = vld [vmem:[%s4493_s20 + $0xc8] ss:$0 sps:$4 sm:$0x11]  }
 0x127   : > { %2691 = vmatmul.mubr.bf16.gmra.mrb[128].mxu1 %v5068_v41  ;;  %4147 = vmatmul.mubr.bf16.gmra.mrb[128].mxu0 %v1512_v17  ;;  %v1515_v41 = vsel %vm702_vm1, %v1513_v62, %v1514_v21  ;;  %v1454_v17 = vrot.slane %v1452_v46, 1  ;;  %v1459_v38 = vshll.u32 %v5164_v47, 16 }
 0x128   : > { %2698 = vmatprep.mubr.bf16.mxu1 %v1431_v5  ;;  %4150 = vmatprep.mubr.msk.bf16.mxu0 %vm4413_vm2, %v4412_v61  ;;  %v1518_v43 = vsel %vm702_vm1, %v1516_v48, %v1517_v30 }
 0x129   : > { %v1455_v60 = vsel %vm506_vm0, %v1450_v37, %v1454_v17 }
 0x12a   : > { %v3699_v20 = vpop.f32.mrb[24].mxu0  ;;  %v3747_v55 = vpop.f32.mrb[24].mxu1 }
 0x12b   : > { %v3700_v2 = vpop.f32.mrb[25].mxu0  ;;  %v3748_v31 = vpop.f32.mrb[25].mxu1 }
 0x12c   : > { %v5155_v19 = vadd.f32 %v3700_v2, %v3699_v20  ;;  %v3702_v26 = vpop.f32.mrb[26].mxu0  ;;  %v5157_v0 = vadd.f32 %v3748_v31, %v3747_v55  ;;  %v3750_v33 = vpop.f32.mrb[26].mxu1  ;;  %v1457_v55 = vshrl.u32 %v5164_v47, 16  ;;  %v1461_v2 = vrot.slane %v1459_v38, 1 }
 0x12d   : > { %v3703_v53 = vpop.f32.mrb[27].mxu0  ;;  %v3751_v50 = vpop.f32.mrb[27].mxu1  ;;  %v1464_v31 = vshll.u32 %v5176_v24, 16 }
 0x12e   : > { %v5166_v58 = vadd.f32 %v3703_v53, %v3702_v26  ;;  %v5168_v63 = vadd.f32 %v3751_v50, %v3750_v33  ;;  %v1519_v50 = vrot.slane %v5116_v35, 1  ;;  %v1462_v36 = vor.u32 %v1461_v2, %v1457_v55 }
 0x12f   : > { %2699 = vmatmul.mubr.bf16.gmra.mrb[132].mxu1 %v5092_v9  ;;  %4151 = vmatmul.mubr.bf16.gmra.mrb[132].mxu0 %v1515_v41  ;;  %v1466_v52 = vrot.slane %v1464_v31, 1 }
 0x130   : > { %2706 = vmatprep.mubr.bf16.mxu1 %v1443_v51  ;;  %4154 = vmatprep.mubr.msk.bf16.mxu0 %vm4413_vm2, %v4412_v61  ;;  %v1520_v51 = vrot.slane %v5128_v54, 1 }
 0x132   : > { %v3705_v5 = vpop.f32.mrb[28].mxu0  ;;  %v3769_v8 = vpop.f32.mrb[28].mxu1 }
 0x133   : > { %v3706_v7 = vpop.f32.mrb[29].mxu0  ;;  %v3770_v13 = vpop.f32.mrb[29].mxu1 }
 0x134   : > { %v5179_v62 = vadd.f32 %v3706_v7, %v3705_v5  ;;  %v3771_v21 = vadd.f32 %v3770_v13, %v3769_v8  ;;  %v3708_v23 = vpop.f32.mrb[30].mxu0  ;;  %v3772_v25 = vpop.f32.mrb[30].mxu1  ;;  %v1467_v13 = vsel %vm506_vm0, %v1462_v36, %v1466_v52 }
 0x135   : > { %v3709_v9 = vpop.f32.mrb[31].mxu0  ;;  %v3773_v20 = vpop.f32.mrb[31].mxu1 }
 0x136   : > { %v2307_v26 = vadd.f32 %v3771_v21, %v5011_v44  ;;  %v5186_v33 = vadd.f32 %v3709_v9, %v3708_v23  ;;  %v3774_v41 = vadd.f32 %v3773_v20, %v3772_v25  ;;  %v1522_v9 = vrot.slane %v5140_v15, 1 }
 0x137   : > { %2707 = vmatmul.mubr.bf16.gmra.mrb[136].mxu1 %v5116_v35  ;;  %4155 = vmatmul.mubr.bf16.gmra.mrb[136].mxu0 %v1518_v43  ;;  %v1523_v20 = vrot.slane %v5152_v27, 1 }
 0x138   : > { %v2310_v53 = vadd.f32 %v3774_v41, %v5022_v56  ;;  %2714 = vmatprep.mubr.bf16.mxu1 %v1455_v60  ;;  %4158 = vmatprep.mubr.msk.bf16.mxu0 %vm4413_vm2, %v4412_v61  ;;  %v1521_v56 = vsel %vm702_vm1, %v1519_v50, %v1520_v51 }
 0x13a   : > { %v3775_v46 = vpop.f32.mrb[32].mxu1  ;;  %v3875_v44 = vpop.f32.mrb[32].mxu0 }
 0x13b   : > { %v3776_v48 = vpop.f32.mrb[33].mxu1  ;;  %v3876_v30 = vpop.f32.mrb[33].mxu0 }
 0x13c   : > { %v3777_v37 = vadd.f32 %v3776_v48, %v3775_v46  ;;  %v3877_v17 = vadd.f32 %v3876_v30, %v3875_v44  ;;  %v3778_v38 = vpop.f32.mrb[34].mxu1  ;;  %v3878_v5 = vpop.f32.mrb[34].mxu0  ;;  %v1525_v48 = vrot.slane %v5164_v47, 1  ;;  %v1526_v30 = vrot.slane %v5176_v24, 1 }
 0x13d   : > { %v3779_v8 = vpop.f32.mrb[35].mxu1  ;;  %v3879_v7 = vpop.f32.mrb[35].mxu0 }
 0x13e   : > { %v2315_v35 = vadd.f32 %v3777_v37, %v5035_v6  ;;  %v5197_v21 = vadd.f32 %v3877_v17, %v2307_v26  ;;  %v3780_v54 = vadd.f32 %v3779_v8, %v3778_v38  ;;  %v3880_v23 = vadd.f32 %v3879_v7, %v3878_v5 }
 0x13f   : > { %2715 = vmatmul.mubr.bf16.gmra.mrb[140].mxu1 %v5140_v15  ;;  %4159 = vmatmul.mubr.bf16.gmra.mrb[140].mxu0 %v1521_v56 }
 0x140   : > { %v2318_v25 = vadd.f32 %v3780_v54, %v5046_v18  ;;  %v5201_v43 = vadd.f32 %v3880_v23, %v2310_v53  ;;  %2722 = vmatprep.mubr.bf16.mxu1 %v1467_v13  ;;  %4162 = vmatprep.mubr.msk.bf16.mxu0 %vm4413_vm2, %v4412_v61  ;;  %v1524_v18 = vsel %vm702_vm1, %v1522_v9, %v1523_v20 }
 0x141   : > { %v1527_v13 = vsel %vm702_vm1, %v1525_v48, %v1526_v30 }
 0x142   : > { %v3781_v6 = vpop.f32.mrb[36].mxu1  ;;  %v3881_v60 = vpop.f32.mrb[36].mxu0 }
 0x143   : > { %v3782_v55 = vpop.f32.mrb[37].mxu1  ;;  %v3882_v2 = vpop.f32.mrb[37].mxu0 }
 0x144   : > { %v3783_v31 = vadd.f32 %v3782_v55, %v3781_v6  ;;  %v3883_v26 = vadd.f32 %v3882_v2, %v3881_v60  ;;  %v3784_v41 = vpop.f32.mrb[38].mxu1  ;;  %v3884_v50 = vpop.f32.mrb[38].mxu0 }
 0x145   : > { %v3785_v53 = vpop.f32.mrb[39].mxu1  ;;  %v3885_v51 = vpop.f32.mrb[39].mxu0 }
 0x146   : > { %v2323_v36 = vadd.f32 %v3783_v31, %v5059_v29  ;;  %v5209_v52 = vadd.f32 %v3883_v26, %v2315_v35  ;;  %v3786_v46 = vadd.f32 %v3785_v53, %v3784_v41  ;;  %v3886_v15 = vadd.f32 %v3885_v51, %v3884_v50 }
 0x147   : > { %2723 = vmatmul.mubr.bf16.gmra.mrb[144].mxu1 %v5164_v47  ;;  %4163 = vmatmul.mubr.bf16.gmra.mrb[144].mxu0 %v1524_v18 }
 0x148   : > { %v2326_v27 = vadd.f32 %v3786_v46, %v5070_v22  ;;  %v5213_v44 = vadd.f32 %v3886_v15, %v2318_v25  ;;  %4166 = vmatprep.mubr.msk.bf16.mxu0 %vm4413_vm2, %v4412_v61 }
 0x14a   : > { %v3787_v37 = vpop.f32.mrb[40].mxu1  ;;  %v3887_v29 = vpop.f32.mrb[40].mxu0 }
 0x14b   : > { %v3788_v17 = vpop.f32.mrb[41].mxu1  ;;  %v3888_v38 = vpop.f32.mrb[41].mxu0 }
 0x14c   : > { %v3789_v5 = vadd.f32 %v3788_v17, %v3787_v37  ;;  %v3889_v56 = vadd.f32 %v3888_v38, %v3887_v29  ;;  %v3790_v8 = vpop.f32.mrb[42].mxu1  ;;  %v3890_v7 = vpop.f32.mrb[42].mxu0 }
 0x14d   : > { %v3791_v22 = vpop.f32.mrb[43].mxu1  ;;  %v3891_v35 = vpop.f32.mrb[43].mxu0 }
 0x14e   : > { %v2331_v54 = vadd.f32 %v3789_v5, %v5083_v1  ;;  %v5221_v23 = vadd.f32 %v3889_v56, %v2323_v36  ;;  %v3792_v61 = vadd.f32 %v3791_v22, %v3790_v8  ;;  %v3892_v47 = vadd.f32 %v3891_v35, %v3890_v7 }
 0x14f   : > { %4167 = vmatmul.mubr.bf16.gmra.mrb[148].mxu0 %v1527_v13 }
 0x150   : > { %v2334_v24 = vadd.f32 %v3792_v61, %v5094_v10  ;;  %v5224_v25 = vadd.f32 %v3892_v47, %v2326_v27 }
 0x152   : > { %v3793_v9 = vpop.f32.mrb[44].mxu1  ;;  %v3893_v20 = vpop.f32.mrb[44].mxu0 }
 0x153   : > { %v3794_v6 = vpop.f32.mrb[45].mxu1  ;;  %v3894_v60 = vpop.f32.mrb[45].mxu0 }
 0x154   : > { %v3795_v55 = vadd.f32 %v3794_v6, %v3793_v9  ;;  %v3895_v2 = vadd.f32 %v3894_v60, %v3893_v20  ;;  %v3796_v31 = vpop.f32.mrb[46].mxu1  ;;  %v3896_v26 = vpop.f32.mrb[46].mxu0 }
 0x155   : > { %v3797_v41 = vpop.f32.mrb[47].mxu1  ;;  %v3897_v50 = vpop.f32.mrb[47].mxu0 }
 0x156   : > { %v2339_v1 = vadd.f32 %v3795_v55, %v5107_v42  ;;  %v5227_v18 = vadd.f32 %v3895_v2, %v2331_v54  ;;  %v3798_v53 = vadd.f32 %v3797_v41, %v3796_v31  ;;  %v3898_v51 = vadd.f32 %v3897_v50, %v3896_v26 }
 0x158   : > { %v2342_v10 = vadd.f32 %v3798_v53, %v5118_v39  ;;  %v5230_v36 = vadd.f32 %v3898_v51, %v2334_v24 }
 0x15a   : > { %v3799_v46 = vpop.f32.mrb[48].mxu1  ;;  %v3899_v15 = vpop.f32.mrb[48].mxu0 }
 0x15b   : > { %v3800_v27 = vpop.f32.mrb[49].mxu1  ;;  %v3900_v48 = vpop.f32.mrb[49].mxu0 }
 0x15c   : > { %v3801_v30 = vadd.f32 %v3800_v27, %v3799_v46  ;;  %v3901_v37 = vadd.f32 %v3900_v48, %v3899_v15  ;;  %v3802_v29 = vpop.f32.mrb[50].mxu1  ;;  %v3902_v17 = vpop.f32.mrb[50].mxu0 }
 0x15d   : > { %v3803_v38 = vpop.f32.mrb[51].mxu1  ;;  %v3903_v5 = vpop.f32.mrb[51].mxu0 }
 0x15e   : > { %v2347_v42 = vadd.f32 %v3801_v30, %v5131_v4  ;;  %v5233_v56 = vadd.f32 %v3901_v37, %v2339_v1  ;;  %v3804_v8 = vadd.f32 %v3803_v38, %v3802_v29  ;;  %v3904_v7 = vadd.f32 %v3903_v5, %v3902_v17 }
 0x160   : > { %v2350_v39 = vadd.f32 %v3804_v8, %v5142_v14  ;;  %v5236_v13 = vadd.f32 %v3904_v7, %v2342_v10 }
 0x162   : > { %v3805_v22 = vpop.f32.mrb[52].mxu1  ;;  %v3905_v35 = vpop.f32.mrb[52].mxu0 }
 0x163   : > { %v3806_v54 = vpop.f32.mrb[53].mxu1  ;;  %v3906_v61 = vpop.f32.mrb[53].mxu0 }
 0x164   : > { %v3807_v47 = vadd.f32 %v3806_v54, %v3805_v22  ;;  %v3907_v24 = vadd.f32 %v3906_v61, %v3905_v35  ;;  %v3808_v9 = vpop.f32.mrb[54].mxu1  ;;  %v3908_v20 = vpop.f32.mrb[54].mxu0 }
 0x165   : > { %v3809_v6 = vpop.f32.mrb[55].mxu1  ;;  %v3909_v60 = vpop.f32.mrb[55].mxu0 }
 0x166   : > { %v2355_v4 = vadd.f32 %v3807_v47, %v5155_v19  ;;  %v5239_v55 = vadd.f32 %v3907_v24, %v2347_v42  ;;  %v3810_v2 = vadd.f32 %v3809_v6, %v3808_v9  ;;  %v3910_v31 = vadd.f32 %v3909_v60, %v3908_v20 }
 0x168   : > { %v2358_v14 = vadd.f32 %v3810_v2, %v5166_v58  ;;  %v5242_v26 = vadd.f32 %v3910_v31, %v2350_v39 }
 0x16a   : > { %v3811_v41 = vpop.f32.mrb[56].mxu1  ;;  %v3911_v50 = vpop.f32.mrb[56].mxu0 }
 0x16b   : > { %v3812_v1 = vpop.f32.mrb[57].mxu1  ;;  %v3912_v53 = vpop.f32.mrb[57].mxu0 }
 0x16c   : > { %v3813_v51 = vadd.f32 %v3812_v1, %v3811_v41  ;;  %v3913_v10 = vadd.f32 %v3912_v53, %v3911_v50  ;;  %v3814_v46 = vpop.f32.mrb[58].mxu1  ;;  %v3914_v15 = vpop.f32.mrb[58].mxu0 }
 0x16d   : > { %v3815_v27 = vpop.f32.mrb[59].mxu1  ;;  %v3915_v48 = vpop.f32.mrb[59].mxu0 }
 0x16e   : > { %v2363_v19 = vadd.f32 %v3813_v51, %v5179_v62  ;;  %v5245_v30 = vadd.f32 %v3913_v10, %v2355_v4  ;;  %v3816_v37 = vadd.f32 %v3815_v27, %v3814_v46  ;;  %v3916_v29 = vadd.f32 %v3915_v48, %v3914_v15 }
 0x170   : > { %v2366_v58 = vadd.f32 %v3816_v37, %v5186_v33  ;;  %v5248_v17 = vadd.f32 %v3916_v29, %v2358_v14 }
 0x172   : > { %v3817_v38 = vpop.f32.mrb[60].mxu1  ;;  %v3917_v5 = vpop.f32.mrb[60].mxu0 }
 0x173   : > { %v3818_v42 = vpop.f32.mrb[61].mxu1  ;;  %v3918_v8 = vpop.f32.mrb[61].mxu0 }
 0x174   : > { %v3819_v7 = vadd.f32 %v3818_v42, %v3817_v38  ;;  %v3919_v39 = vadd.f32 %v3918_v8, %v3917_v5  ;;  %v3820_v22 = vpop.f32.mrb[62].mxu1  ;;  %v3920_v35 = vpop.f32.mrb[62].mxu0 }
 0x175   : > { %v3821_v54 = vpop.f32.mrb[63].mxu1  ;;  %v3921_v61 = vpop.f32.mrb[63].mxu0 }
 0x176   : > { %v2371_v62 = vadd.f32 %v3819_v7, %v5013_v49  ;;  %v5251_v47 = vadd.f32 %v3919_v39, %v2363_v19  ;;  %v3822_v24 = vadd.f32 %v3821_v54, %v3820_v22  ;;  %v3922_v9 = vadd.f32 %v3921_v61, %v3920_v35 }
 0x178   : > { %v2374_v33 = vadd.f32 %v3822_v24, %v5024_v57  ;;  %v5254_v20 = vadd.f32 %v3922_v9, %v2366_v58 }
 0x17a   : > { %v3823_v6 = vpop.f32.mrb[64].mxu1  ;;  %v3923_v60 = vpop.f32.mrb[64].mxu0 }
 0x17b   : > { %v3824_v4 = vpop.f32.mrb[65].mxu1  ;;  %v3924_v2 = vpop.f32.mrb[65].mxu0 }
 0x17c   : > { %v3825_v31 = vadd.f32 %v3824_v4, %v3823_v6  ;;  %v3925_v14 = vadd.f32 %v3924_v2, %v3923_v60  ;;  %v3826_v41 = vpop.f32.mrb[66].mxu1  ;;  %v3926_v50 = vpop.f32.mrb[66].mxu0 }
 0x17d   : > { %v3827_v1 = vpop.f32.mrb[67].mxu1  ;;  %v3927_v53 = vpop.f32.mrb[67].mxu0 }
 0x17e   : > { %v2379_v49 = vadd.f32 %v3825_v31, %v5037_v11  ;;  %v5257_v51 = vadd.f32 %v3925_v14, %v2371_v62  ;;  %v3828_v10 = vadd.f32 %v3827_v1, %v3826_v41  ;;  %v3928_v46 = vadd.f32 %v3927_v53, %v3926_v50 }
 0x180   : > { %v2382_v57 = vadd.f32 %v3828_v10, %v5048_v59  ;;  %v5260_v15 = vadd.f32 %v3928_v46, %v2374_v33 }
 0x182   : > { %v3829_v27 = vpop.f32.mrb[68].mxu1  ;;  %v3929_v48 = vpop.f32.mrb[68].mxu0 }
 0x183   : > { %v3830_v19 = vpop.f32.mrb[69].mxu1  ;;  %v3930_v37 = vpop.f32.mrb[69].mxu0 }
 0x184   : > { %v3831_v29 = vadd.f32 %v3830_v19, %v3829_v27  ;;  %v3931_v58 = vadd.f32 %v3930_v37, %v3929_v48  ;;  %v3832_v38 = vpop.f32.mrb[70].mxu1  ;;  %v3932_v5 = vpop.f32.mrb[70].mxu0 }
 0x185   : > { %v3833_v42 = vpop.f32.mrb[71].mxu1  ;;  %v3933_v8 = vpop.f32.mrb[71].mxu0 }
 0x186   : > { %v2387_v11 = vadd.f32 %v3831_v29, %v5061_v32  ;;  %v5263_v7 = vadd.f32 %v3931_v58, %v2379_v49  ;;  %v3834_v39 = vadd.f32 %v3833_v42, %v3832_v38  ;;  %v3934_v22 = vadd.f32 %v3933_v8, %v3932_v5 }
 0x188   : > { %v2390_v59 = vadd.f32 %v3834_v39, %v5072_v45  ;;  %v5266_v35 = vadd.f32 %v3934_v22, %v2382_v57 }
 0x18a   : > { %v3835_v54 = vpop.f32.mrb[72].mxu1  ;;  %v3935_v61 = vpop.f32.mrb[72].mxu0 }
 0x18b   : > { %v3836_v62 = vpop.f32.mrb[73].mxu1  ;;  %v3936_v24 = vpop.f32.mrb[73].mxu0 }
 0x18c   : > { %v3837_v9 = vadd.f32 %v3836_v62, %v3835_v54  ;;  %v3937_v33 = vadd.f32 %v3936_v24, %v3935_v61  ;;  %v3838_v6 = vpop.f32.mrb[74].mxu1  ;;  %v3938_v60 = vpop.f32.mrb[74].mxu0 }
 0x18d   : > { %v3839_v4 = vpop.f32.mrb[75].mxu1  ;;  %v3939_v2 = vpop.f32.mrb[75].mxu0 }
 0x18e   : > { %v2395_v32 = vadd.f32 %v3837_v9, %v5085_v3  ;;  %v5269_v31 = vadd.f32 %v3937_v33, %v2387_v11  ;;  %v3840_v14 = vadd.f32 %v3839_v4, %v3838_v6  ;;  %v3940_v41 = vadd.f32 %v3939_v2, %v3938_v60 }
 0x190   : > { %v2398_v45 = vadd.f32 %v3840_v14, %v5096_v12  ;;  %v5272_v50 = vadd.f32 %v3940_v41, %v2390_v59 }
 0x192   : > { %v3841_v1 = vpop.f32.mrb[76].mxu1  ;;  %v3941_v53 = vpop.f32.mrb[76].mxu0 }
 0x193   : > { %v3842_v49 = vpop.f32.mrb[77].mxu1  ;;  %v3942_v10 = vpop.f32.mrb[77].mxu0 }
 0x194   : > { %v3843_v46 = vadd.f32 %v3842_v49, %v3841_v1  ;;  %v3943_v57 = vadd.f32 %v3942_v10, %v3941_v53  ;;  %v3844_v27 = vpop.f32.mrb[78].mxu1  ;;  %v3944_v48 = vpop.f32.mrb[78].mxu0 }
 0x195   : > { %v3845_v19 = vpop.f32.mrb[79].mxu1  ;;  %v3945_v37 = vpop.f32.mrb[79].mxu0 }
 0x196   : > { %v2403_v3 = vadd.f32 %v3843_v46, %v5109_v28  ;;  %v5275_v29 = vadd.f32 %v3943_v57, %v2395_v32  ;;  %v3846_v58 = vadd.f32 %v3845_v19, %v3844_v27  ;;  %v3946_v38 = vadd.f32 %v3945_v37, %v3944_v48 }
 0x198   : > { %v2406_v12 = vadd.f32 %v3846_v58, %v5120_v40  ;;  %v5278_v5 = vadd.f32 %v3946_v38, %v2398_v45 }
 0x19a   : > { %v3847_v42 = vpop.f32.mrb[80].mxu1  ;;  %v3947_v8 = vpop.f32.mrb[80].mxu0 }
 0x19b   : > { %v3848_v11 = vpop.f32.mrb[81].mxu1  ;;  %v3948_v39 = vpop.f32.mrb[81].mxu0 }
 0x19c   : > { %v3849_v22 = vadd.f32 %v3848_v11, %v3847_v42  ;;  %v3949_v59 = vadd.f32 %v3948_v39, %v3947_v8  ;;  %v3850_v54 = vpop.f32.mrb[82].mxu1  ;;  %v3950_v61 = vpop.f32.mrb[82].mxu0 }
 0x19d   : > { %v3851_v62 = vpop.f32.mrb[83].mxu1  ;;  %v3951_v24 = vpop.f32.mrb[83].mxu0 }
 0x19e   : > { %v2411_v28 = vadd.f32 %v3849_v22, %v5133_v34  ;;  %v5281_v9 = vadd.f32 %v3949_v59, %v2403_v3  ;;  %v3852_v33 = vadd.f32 %v3851_v62, %v3850_v54  ;;  %v3952_v6 = vadd.f32 %v3951_v24, %v3950_v61 }
 0x1a0   : > { %v2414_v40 = vadd.f32 %v3852_v33, %v5144_v16  ;;  %v5284_v60 = vadd.f32 %v3952_v6, %v2406_v12 }
 0x1a2   : > { %v3853_v4 = vpop.f32.mrb[84].mxu1  ;;  %v3953_v2 = vpop.f32.mrb[84].mxu0 }
 0x1a3   : > { %v3854_v32 = vpop.f32.mrb[85].mxu1  ;;  %v3954_v14 = vpop.f32.mrb[85].mxu0 }
 0x1a4   : > { %v3855_v41 = vadd.f32 %v3854_v32, %v3853_v4  ;;  %v3955_v45 = vadd.f32 %v3954_v14, %v3953_v2  ;;  %v3856_v1 = vpop.f32.mrb[86].mxu1  ;;  %v3956_v53 = vpop.f32.mrb[86].mxu0  ;;  %v5306_v4 = vld [vmem:[%s5429_s3] ss:$0 sm:$0xff] }
 0x1a5   : > { %v3857_v49 = vpop.f32.mrb[87].mxu1  ;;  %v3957_v10 = vpop.f32.mrb[87].mxu0 }
 0x1a6   : > { %v2419_v34 = vadd.f32 %v3855_v41, %v5157_v0  ;;  %v5287_v46 = vadd.f32 %v3955_v45, %v2411_v28  ;;  %v3858_v57 = vadd.f32 %v3857_v49, %v3856_v1  ;;  %v3958_v27 = vadd.f32 %v3957_v10, %v3956_v53  ;;  %v5301_v28 = vld [vmem:[%s5428_s2] ss:$0 sm:$0xff] }
 0x1a8   : > { %v2422_v16 = vadd.f32 %v3858_v57, %v5168_v63  ;;  %v5290_v48 = vadd.f32 %v3958_v27, %v2414_v40 }
 0x1aa   : > { %v3959_v19 = vpop.f32.mrb[88].mxu0  ;;  %v3981_v37 = vpop.f32.mrb[88].mxu1 }
 0x1ab   : > { %v3960_v3 = vpop.f32.mrb[89].mxu0  ;;  %v3982_v58 = vpop.f32.mrb[89].mxu1 }
 0x1ac   : > { %v3961_v38 = vadd.f32 %v3960_v3, %v3959_v19  ;;  %v3983_v12 = vadd.f32 %v3982_v58, %v3981_v37  ;;  %v3962_v42 = vpop.f32.mrb[90].mxu0  ;;  %v3984_v8 = vpop.f32.mrb[90].mxu1 }
 0x1ad   : > { %v3963_v11 = vpop.f32.mrb[91].mxu0  ;;  %v3985_v39 = vpop.f32.mrb[91].mxu1 }
 0x1ae   : > { %v5292_v22 = vadd.f32 %v3961_v38, %v2419_v34  ;;  %v3964_v0 = vadd.f32 %v3963_v11, %v3962_v42  ;;  %v3986_v59 = vadd.f32 %v3985_v39, %v3984_v8  ;;  %v2613_v54 = vadd.f32 %v3983_v12, %v5197_v21 }
 0x1b0   : > { %v5295_v61 = vadd.f32 %v3964_v0, %v2422_v16  ;;  %v2616_v63 = vadd.f32 %v3986_v59, %v5201_v43 }
 0x1b2   : > { %v3987_v62 = vpop.f32.mrb[92].mxu1  ;;  %v2765_v24 = vpop.f32.mrb[92].mxu0 }
 0x1b3   : > { %v2766_v33 = vadd.f32 %v2765_v24, %v2613_v54  ;;  %v3988_v6 = vpop.f32.mrb[93].mxu1  ;;  %v4112_v40 = vpop.f32.mrb[93].mxu0 }
 0x1b4   : > { %v3989_v21 = vadd.f32 %v3988_v6, %v3987_v62  ;;  %v3990_v2 = vpop.f32.mrb[94].mxu1  ;;  %v2768_v32 = vpop.f32.mrb[94].mxu0 }
 0x1b5   : > { %v2891_v43 = vmul.f32 %v5301_v28, %v2766_v33  ;;  %v2769_v14 = vadd.f32 %v2768_v32, %v2616_v63  ;;  %v3991_v41 = vpop.f32.mrb[95].mxu1  ;;  %v4113_v45 = vpop.f32.mrb[95].mxu0 }
 0x1b6   : > { %v3992_v1 = vadd.f32 %v3991_v41, %v3990_v2  ;;  %v2621_v53 = vadd.f32 %v3989_v21, %v5209_v52 }
 0x1b7   : > { %v2928_v49 = vadd.f32 %v5306_v4, %v2891_v43  ;;  %v2892_v10 = vmul.f32 %v5301_v28, %v2769_v14 }
 0x1b8   : > { %v2624_v34 = vadd.f32 %v3992_v1, %v5213_v44 }
 0x1b9   : > { %v2929_v57 = vadd.f32 %v5306_v4, %v2892_v10  ;;  %v2958_v19 = vmax.f32 %v2928_v49, 0.0 }
 0x1ba   : > { %v3993_v27 = vpop.f32.mrb[96].mxu1  ;;  %v2773_v16 = vpop.f32.mrb[96].mxu0 }
 0x1bb   : > { %v2959_v37 = vmax.f32 %v2929_v57, 0.0  ;;  %v2774_v3 = vadd.f32 %v2773_v16, %v2621_v53  ;;  %v3994_v58 = vpop.f32.mrb[97].mxu1  ;;  %v4116_v38 = vpop.f32.mrb[97].mxu0 }
 0x1bc   : > { %v3995_v52 = vadd.f32 %v3994_v58, %v3993_v27  ;;  %v3996_v12 = vpop.f32.mrb[98].mxu1  ;;  %v2776_v42 = vpop.f32.mrb[98].mxu0 }
 0x1bd   : > { %v3561_v8 = vpack.c.bf16 %v2959_v37, %v2958_v19  ;;  %v2893_v44 = vmul.f32 %v5301_v28, %v2774_v3  ;;  %v2777_v11 = vadd.f32 %v2776_v42, %v2624_v34  ;;  %v3997_v39 = vpop.f32.mrb[99].mxu1  ;;  %v4117_v0 = vpop.f32.mrb[99].mxu0 }
 0x1be   : > { %v3998_v59 = vadd.f32 %v3997_v39, %v3996_v12  ;;  %v2629_v54 = vadd.f32 %v3995_v52, %v5221_v23 }
 0x1bf   : > { %3562 = vst [vmem:[%s5318_s25] sm:$0xff] %v3561_v8   ;;  %v2930_v63 = vadd.f32 %v5306_v4, %v2893_v44  ;;  %v2894_v62 = vmul.f32 %v5301_v28, %v2777_v11 }
 0x1c0   : > { %v2632_v24 = vadd.f32 %v3998_v59, %v5224_v25 }
 0x1c1   : > { %v2931_v33 = vadd.f32 %v5306_v4, %v2894_v62  ;;  %v2960_v21 = vmax.f32 %v2930_v63, 0.0 }
 0x1c2   : > { %v3999_v6 = vpop.f32.mrb[100].mxu1  ;;  %v2781_v40 = vpop.f32.mrb[100].mxu0 }
 0x1c3   : > { %v2961_v2 = vmax.f32 %v2931_v33, 0.0  ;;  %v2782_v32 = vadd.f32 %v2781_v40, %v2629_v54  ;;  %v4000_v43 = vpop.f32.mrb[101].mxu1  ;;  %v4120_v14 = vpop.f32.mrb[101].mxu0 }
 0x1c4   : > { %v4001_v41 = vadd.f32 %v4000_v43, %v3999_v6  ;;  %v4002_v45 = vpop.f32.mrb[102].mxu1  ;;  %v2784_v23 = vpop.f32.mrb[102].mxu0 }
 0x1c5   : > { %v3566_v1 = vpack.c.bf16 %v2961_v2, %v2960_v21  ;;  %v2895_v53 = vmul.f32 %v5301_v28, %v2782_v32  ;;  %v2785_v49 = vadd.f32 %v2784_v23, %v2632_v24  ;;  %v4003_v10 = vpop.f32.mrb[103].mxu1  ;;  %v4121_v34 = vpop.f32.mrb[103].mxu0 }
 0x1c6   : > { %v4004_v25 = vadd.f32 %v4003_v10, %v4002_v45  ;;  %v2637_v57 = vadd.f32 %v4001_v41, %v5227_v18 }
 0x1c7   : > { %3633 = vst [vmem:[%s5318_s25 + $0x8] sm:$0xff] %v3566_v1   ;;  %v2932_v27 = vadd.f32 %v5306_v4, %v2895_v53  ;;  %v2896_v16 = vmul.f32 %v5301_v28, %v2785_v49 }
 0x1c8   : > { %v2640_v19 = vadd.f32 %v4004_v25, %v5230_v36 }
 0x1c9   : > { %v2933_v37 = vadd.f32 %v5306_v4, %v2896_v16  ;;  %v2962_v38 = vmax.f32 %v2932_v27, 0.0 }
 0x1ca   : > { %v4005_v3 = vpop.f32.mrb[104].mxu1  ;;  %v2789_v58 = vpop.f32.mrb[104].mxu0 }
 0x1cb   : > { %v2963_v52 = vmax.f32 %v2933_v37, 0.0  ;;  %v2790_v12 = vadd.f32 %v2789_v58, %v2637_v57  ;;  %v4006_v42 = vpop.f32.mrb[105].mxu1  ;;  %v4124_v8 = vpop.f32.mrb[105].mxu0 }
 0x1cc   : > { %v4007_v44 = vadd.f32 %v4006_v42, %v4005_v3  ;;  %v4008_v11 = vpop.f32.mrb[106].mxu1  ;;  %v2792_v18 = vpop.f32.mrb[106].mxu0 }
 0x1cd   : > { %v3571_v39 = vpack.c.bf16 %v2963_v52, %v2962_v38  ;;  %v2897_v0 = vmul.f32 %v5301_v28, %v2790_v12  ;;  %v2793_v59 = vadd.f32 %v2792_v18, %v2640_v19  ;;  %v4009_v54 = vpop.f32.mrb[107].mxu1  ;;  %v4125_v63 = vpop.f32.mrb[107].mxu0 }
 0x1ce   : > { %v4010_v36 = vadd.f32 %v4009_v54, %v4008_v11  ;;  %v2645_v62 = vadd.f32 %v4007_v44, %v5233_v56 }
 0x1cf   : > { %3634 = vst [vmem:[%s5318_s25 + $0x10] sm:$0xff] %v3571_v39   ;;  %v2934_v24 = vadd.f32 %v5306_v4, %v2897_v0  ;;  %v2898_v33 = vmul.f32 %v5301_v28, %v2793_v59 }
 0x1d0   : > { %v2648_v6 = vadd.f32 %v4010_v36, %v5236_v13 }
 0x1d1   : > { %v2935_v40 = vadd.f32 %v5306_v4, %v2898_v33  ;;  %v2964_v32 = vmax.f32 %v2934_v24, 0.0 }
 0x1d2   : > { %v4011_v21 = vpop.f32.mrb[108].mxu1  ;;  %v2797_v2 = vpop.f32.mrb[108].mxu0 }
 0x1d3   : > { %v2965_v43 = vmax.f32 %v2935_v40, 0.0  ;;  %v2798_v14 = vadd.f32 %v2797_v2, %v2645_v62  ;;  %v4012_v41 = vpop.f32.mrb[109].mxu1  ;;  %v4128_v45 = vpop.f32.mrb[109].mxu0 }
 0x1d4   : > { %v4013_v23 = vadd.f32 %v4012_v41, %v4011_v21  ;;  %v4014_v1 = vpop.f32.mrb[110].mxu1  ;;  %v2800_v56 = vpop.f32.mrb[110].mxu0 }
 0x1d5   : > { %v3576_v53 = vpack.c.bf16 %v2965_v43, %v2964_v32  ;;  %v2899_v49 = vmul.f32 %v5301_v28, %v2798_v14  ;;  %v2801_v10 = vadd.f32 %v2800_v56, %v2648_v6  ;;  %v4015_v34 = vpop.f32.mrb[111].mxu1  ;;  %v4129_v25 = vpop.f32.mrb[111].mxu0 }
 0x1d6   : > { %v4016_v13 = vadd.f32 %v4015_v34, %v4014_v1  ;;  %v2653_v57 = vadd.f32 %v4013_v23, %v5239_v55 }
 0x1d7   : > { %3635 = vst [vmem:[%s5318_s25 + $0x18] sm:$0xff] %v3576_v53   ;;  %v2936_v27 = vadd.f32 %v5306_v4, %v2899_v49  ;;  %v2900_v16 = vmul.f32 %v5301_v28, %v2801_v10 }
 0x1d8   : > { %v2656_v19 = vadd.f32 %v4016_v13, %v5242_v26 }
 0x1d9   : > { %v2937_v37 = vadd.f32 %v5306_v4, %v2900_v16  ;;  %v2966_v38 = vmax.f32 %v2936_v27, 0.0 }
 0x1da   : > { %v4017_v3 = vpop.f32.mrb[112].mxu1  ;;  %v2805_v58 = vpop.f32.mrb[112].mxu0 }
 0x1db   : > { %v2967_v52 = vmax.f32 %v2937_v37, 0.0  ;;  %v2806_v12 = vadd.f32 %v2805_v58, %v2653_v57  ;;  %v4018_v42 = vpop.f32.mrb[113].mxu1  ;;  %v4132_v8 = vpop.f32.mrb[113].mxu0 }
 0x1dc   : > { %v4019_v44 = vadd.f32 %v4018_v42, %v4017_v3  ;;  %v4020_v11 = vpop.f32.mrb[114].mxu1  ;;  %v2808_v55 = vpop.f32.mrb[114].mxu0 }
 0x1dd   : > { %v3581_v18 = vpack.c.bf16 %v2967_v52, %v2966_v38  ;;  %v2901_v39 = vmul.f32 %v5301_v28, %v2806_v12  ;;  %v2809_v0 = vadd.f32 %v2808_v55, %v2656_v19  ;;  %v4021_v59 = vpop.f32.mrb[115].mxu1  ;;  %v4133_v54 = vpop.f32.mrb[115].mxu0 }
 0x1de   : > { %v4022_v26 = vadd.f32 %v4021_v59, %v4020_v11  ;;  %v2661_v63 = vadd.f32 %v4019_v44, %v5245_v30 }
 0x1df   : > { %3636 = vst [vmem:[%s5318_s25 + $0x20] sm:$0xff] %v3581_v18   ;;  %v2938_v36 = vadd.f32 %v5306_v4, %v2901_v39  ;;  %v2902_v62 = vmul.f32 %v5301_v28, %v2809_v0 }
 0x1e0   : > { %v2664_v24 = vadd.f32 %v4022_v26, %v5248_v17 }
 0x1e1   : > { %v2939_v33 = vadd.f32 %v5306_v4, %v2902_v62  ;;  %v2968_v21 = vmax.f32 %v2938_v36, 0.0 }
 0x1e2   : > { %v4023_v6 = vpop.f32.mrb[116].mxu1  ;;  %v2813_v40 = vpop.f32.mrb[116].mxu0 }
 0x1e3   : > { %v2969_v2 = vmax.f32 %v2939_v33, 0.0  ;;  %v2814_v32 = vadd.f32 %v2813_v40, %v2661_v63  ;;  %v4024_v43 = vpop.f32.mrb[117].mxu1  ;;  %v4136_v14 = vpop.f32.mrb[117].mxu0 }
 0x1e4   : > { %v4025_v41 = vadd.f32 %v4024_v43, %v4023_v6  ;;  %v4026_v45 = vpop.f32.mrb[118].mxu1  ;;  %v2816_v30 = vpop.f32.mrb[118].mxu0 }
 0x1e5   : > { %v3586_v23 = vpack.c.bf16 %v2969_v2, %v2968_v21  ;;  %v2903_v1 = vmul.f32 %v5301_v28, %v2814_v32  ;;  %v2817_v56 = vadd.f32 %v2816_v30, %v2664_v24  ;;  %v4027_v53 = vpop.f32.mrb[119].mxu1  ;;  %v4137_v49 = vpop.f32.mrb[119].mxu0 }
 0x1e6   : > { %v4028_v17 = vadd.f32 %v4027_v53, %v4026_v45  ;;  %v2669_v10 = vadd.f32 %v4025_v41, %v5251_v47 }
 0x1e7   : > { %3637 = vst [vmem:[%s5318_s25 + $0x28] sm:$0xff] %v3586_v23   ;;  %v2940_v34 = vadd.f32 %v5306_v4, %v2903_v1  ;;  %v2904_v25 = vmul.f32 %v5301_v28, %v2817_v56 }
 0x1e8   : > { %v2672_v13 = vadd.f32 %v4028_v17, %v5254_v20 }
 0x1e9   : > { %v2941_v57 = vadd.f32 %v5306_v4, %v2904_v25  ;;  %v2970_v19 = vmax.f32 %v2940_v34, 0.0 }
 0x1ea   : > { %v4029_v27 = vpop.f32.mrb[120].mxu1  ;;  %v2821_v16 = vpop.f32.mrb[120].mxu0 }
 0x1eb   : > { %v2971_v37 = vmax.f32 %v2941_v57, 0.0  ;;  %v2822_v3 = vadd.f32 %v2821_v16, %v2669_v10  ;;  %v4030_v58 = vpop.f32.mrb[121].mxu1  ;;  %v4140_v38 = vpop.f32.mrb[121].mxu0 }
 0x1ec   : > { %v4031_v52 = vadd.f32 %v4030_v58, %v4029_v27  ;;  %v4032_v12 = vpop.f32.mrb[122].mxu1  ;;  %v2824_v47 = vpop.f32.mrb[122].mxu0 }
 0x1ed   : > { %v3591_v42 = vpack.c.bf16 %v2971_v37, %v2970_v19  ;;  %v2905_v8 = vmul.f32 %v5301_v28, %v2822_v3  ;;  %v2825_v44 = vadd.f32 %v2824_v47, %v2672_v13  ;;  %v4033_v11 = vpop.f32.mrb[123].mxu1  ;;  %v4141_v55 = vpop.f32.mrb[123].mxu0 }
 0x1ee   : > { %v4034_v20 = vadd.f32 %v4033_v11, %v4032_v12  ;;  %v2677_v18 = vadd.f32 %v4031_v52, %v5257_v51 }
 0x1ef   : > { %3638 = vst [vmem:[%s5318_s25 + $0x30] sm:$0xff] %v3591_v42   ;;  %v2942_v39 = vadd.f32 %v5306_v4, %v2905_v8  ;;  %v2906_v0 = vmul.f32 %v5301_v28, %v2825_v44 }
 0x1f0   : > { %v2680_v59 = vadd.f32 %v4034_v20, %v5260_v15 }
 0x1f1   : > { %v2943_v54 = vadd.f32 %v5306_v4, %v2906_v0  ;;  %v2972_v36 = vmax.f32 %v2942_v39, 0.0 }
 0x1f2   : > { %v4035_v26 = vpop.f32.mrb[124].mxu1  ;;  %v2829_v63 = vpop.f32.mrb[124].mxu0 }
 0x1f3   : > { %v2973_v62 = vmax.f32 %v2943_v54, 0.0  ;;  %v2830_v24 = vadd.f32 %v2829_v63, %v2677_v18  ;;  %v4036_v33 = vpop.f32.mrb[125].mxu1  ;;  %v4144_v6 = vpop.f32.mrb[125].mxu0 }
 0x1f4   : > { %v4037_v40 = vadd.f32 %v4036_v33, %v4035_v26  ;;  %v4038_v21 = vpop.f32.mrb[126].mxu1  ;;  %v2832_v51 = vpop.f32.mrb[126].mxu0 }
 0x1f5   : > { %v3596_v2 = vpack.c.bf16 %v2973_v62, %v2972_v36  ;;  %v2907_v32 = vmul.f32 %v5301_v28, %v2830_v24  ;;  %v2833_v43 = vadd.f32 %v2832_v51, %v2680_v59  ;;  %v4039_v14 = vpop.f32.mrb[127].mxu1  ;;  %v4145_v41 = vpop.f32.mrb[127].mxu0 }
 0x1f6   : > { %v4040_v15 = vadd.f32 %v4039_v14, %v4038_v21  ;;  %v2685_v45 = vadd.f32 %v4037_v40, %v5263_v7 }
 0x1f7   : > { %3639 = vst [vmem:[%s5318_s25 + $0x38] sm:$0xff] %v3596_v2   ;;  %v2944_v30 = vadd.f32 %v5306_v4, %v2907_v32  ;;  %v2908_v23 = vmul.f32 %v5301_v28, %v2833_v43 }
 0x1f8   : > { %v2688_v1 = vadd.f32 %v4040_v15, %v5266_v35 }
 0x1f9   : > { %v2945_v56 = vadd.f32 %v5306_v4, %v2908_v23  ;;  %v2974_v17 = vmax.f32 %v2944_v30, 0.0 }
 0x1fa   : > { %v4041_v53 = vpop.f32.mrb[128].mxu1  ;;  %v2837_v49 = vpop.f32.mrb[128].mxu0 }
 0x1fb   : > { %v2975_v10 = vmax.f32 %v2945_v56, 0.0  ;;  %v2838_v34 = vadd.f32 %v2837_v49, %v2685_v45  ;;  %v4042_v25 = vpop.f32.mrb[129].mxu1  ;;  %v4148_v13 = vpop.f32.mrb[129].mxu0 }
 0x1fc   : > { %v4043_v57 = vadd.f32 %v4042_v25, %v4041_v53  ;;  %v4044_v27 = vpop.f32.mrb[130].mxu1  ;;  %v2840_v7 = vpop.f32.mrb[130].mxu0 }
 0x1fd   : > { %v3601_v16 = vpack.c.bf16 %v2975_v10, %v2974_v17  ;;  %v2909_v19 = vmul.f32 %v5301_v28, %v2838_v34  ;;  %v2841_v37 = vadd.f32 %v2840_v7, %v2688_v1  ;;  %v4045_v3 = vpop.f32.mrb[131].mxu1  ;;  %v4149_v58 = vpop.f32.mrb[131].mxu0 }
 0x1fe   : > { %v4046_v35 = vadd.f32 %v4045_v3, %v4044_v27  ;;  %v2693_v38 = vadd.f32 %v4043_v57, %v5269_v31 }
 0x1ff   : > { %3640 = vst [vmem:[%s5318_s25 + $0x40] sm:$0xff] %v3601_v16   ;;  %v2946_v52 = vadd.f32 %v5306_v4, %v2909_v19  ;;  %v2910_v12 = vmul.f32 %v5301_v28, %v2841_v37 }
 0x200   : > { %v2696_v47 = vadd.f32 %v4046_v35, %v5272_v50 }
 0x201   : > { %v2947_v42 = vadd.f32 %v5306_v4, %v2910_v12  ;;  %v2976_v11 = vmax.f32 %v2946_v52, 0.0 }
 0x202   : > { %v4047_v8 = vpop.f32.mrb[132].mxu1  ;;  %v2845_v44 = vpop.f32.mrb[132].mxu0 }
 0x203   : > { %v2977_v55 = vmax.f32 %v2947_v42, 0.0  ;;  %v2846_v20 = vadd.f32 %v2845_v44, %v2693_v38  ;;  %v4048_v18 = vpop.f32.mrb[133].mxu1  ;;  %v4152_v39 = vpop.f32.mrb[133].mxu0 }
 0x204   : > { %v4049_v0 = vadd.f32 %v4048_v18, %v4047_v8  ;;  %v4050_v59 = vpop.f32.mrb[134].mxu1  ;;  %v2848_v31 = vpop.f32.mrb[134].mxu0 }
 0x205   : > { %v3606_v54 = vpack.c.bf16 %v2977_v55, %v2976_v11  ;;  %v2911_v26 = vmul.f32 %v5301_v28, %v2846_v20  ;;  %v2849_v63 = vadd.f32 %v2848_v31, %v2696_v47  ;;  %v4051_v36 = vpop.f32.mrb[135].mxu1  ;;  %v4153_v62 = vpop.f32.mrb[135].mxu0 }
 0x206   : > { %v4052_v50 = vadd.f32 %v4051_v36, %v4050_v59  ;;  %v2701_v24 = vadd.f32 %v4049_v0, %v5275_v29 }
 0x207   : > { %3641 = vst [vmem:[%s5318_s25 + $0x48] sm:$0xff] %v3606_v54   ;;  %v2948_v33 = vadd.f32 %v5306_v4, %v2911_v26  ;;  %v2912_v6 = vmul.f32 %v5301_v28, %v2849_v63 }
 0x208   : > { %v2704_v40 = vadd.f32 %v4052_v50, %v5278_v5 }
 0x209   : > { %v2949_v21 = vadd.f32 %v5306_v4, %v2912_v6  ;;  %v2978_v32 = vmax.f32 %v2948_v33, 0.0 }
 0x20a   : > { %v4053_v51 = vpop.f32.mrb[136].mxu1  ;;  %v2853_v2 = vpop.f32.mrb[136].mxu0 }
 0x20b   : > { %v2979_v43 = vmax.f32 %v2949_v21, 0.0  ;;  %v2854_v14 = vadd.f32 %v2853_v2, %v2701_v24  ;;  %v4054_v41 = vpop.f32.mrb[137].mxu1  ;;  %v4156_v15 = vpop.f32.mrb[137].mxu0 }
 0x20c   : > { %v4055_v45 = vadd.f32 %v4054_v41, %v4053_v51  ;;  %v4056_v30 = vpop.f32.mrb[138].mxu1  ;;  %v2856_v29 = vpop.f32.mrb[138].mxu0 }
 0x20d   : > { %v3611_v23 = vpack.c.bf16 %v2979_v43, %v2978_v32  ;;  %v2913_v1 = vmul.f32 %v5301_v28, %v2854_v14  ;;  %v2857_v56 = vadd.f32 %v2856_v29, %v2704_v40  ;;  %v4057_v53 = vpop.f32.mrb[139].mxu1  ;;  %v4157_v49 = vpop.f32.mrb[139].mxu0 }
 0x20e   : > { %v4058_v5 = vadd.f32 %v4057_v53, %v4056_v30  ;;  %v2709_v17 = vadd.f32 %v4055_v45, %v5281_v9 }
 0x20f   : > { %3642 = vst [vmem:[%s5318_s25 + $0x50] sm:$0xff] %v3611_v23   ;;  %v2950_v10 = vadd.f32 %v5306_v4, %v2913_v1  ;;  %v2914_v34 = vmul.f32 %v5301_v28, %v2857_v56 }
 0x210   : > { %v2712_v25 = vadd.f32 %v4058_v5, %v5284_v60 }
 0x211   : > { %v2951_v13 = vadd.f32 %v5306_v4, %v2914_v34  ;;  %v2980_v7 = vmax.f32 %v2950_v10, 0.0 }
 0x212   : > { %v4059_v57 = vpop.f32.mrb[140].mxu1  ;;  %v2861_v27 = vpop.f32.mrb[140].mxu0 }
 0x213   : > { %v2981_v16 = vmax.f32 %v2951_v13, 0.0  ;;  %v2862_v19 = vadd.f32 %v2861_v27, %v2709_v17  ;;  %v4060_v37 = vpop.f32.mrb[141].mxu1  ;;  %v4160_v3 = vpop.f32.mrb[141].mxu0 }
 0x214   : > { %v4061_v58 = vadd.f32 %v4060_v37, %v4059_v57  ;;  %v4062_v35 = vpop.f32.mrb[142].mxu1  ;;  %v2864_v9 = vpop.f32.mrb[142].mxu0 }
 0x215   : > { %v3616_v38 = vpack.c.bf16 %v2981_v16, %v2980_v7  ;;  %v2915_v52 = vmul.f32 %v5301_v28, %v2862_v19  ;;  %v2865_v12 = vadd.f32 %v2864_v9, %v2712_v25  ;;  %v4063_v47 = vpop.f32.mrb[143].mxu1  ;;  %v4161_v42 = vpop.f32.mrb[143].mxu0 }
 0x216   : > { %v4064_v60 = vadd.f32 %v4063_v47, %v4062_v35  ;;  %v2717_v8 = vadd.f32 %v4061_v58, %v5287_v46 }
 0x217   : > { %3643 = vst [vmem:[%s5318_s25 + $0x58] sm:$0xff] %v3616_v38   ;;  %v2952_v44 = vadd.f32 %v5306_v4, %v2915_v52  ;;  %v2916_v11 = vmul.f32 %v5301_v28, %v2865_v12 }
 0x218   : > { %v2720_v55 = vadd.f32 %v4064_v60, %v5290_v48 }
 0x219   : > { %v2953_v20 = vadd.f32 %v5306_v4, %v2916_v11  ;;  %v2982_v0 = vmax.f32 %v2952_v44, 0.0 }
 0x21a   : > { %v4065_v18 = vpop.f32.mrb[144].mxu1  ;;  %v2869_v39 = vpop.f32.mrb[144].mxu0 }
 0x21b   : > { %v2983_v59 = vmax.f32 %v2953_v20, 0.0  ;;  %v2870_v31 = vadd.f32 %v2869_v39, %v2717_v8  ;;  %v4066_v54 = vpop.f32.mrb[145].mxu1  ;;  %v4164_v26 = vpop.f32.mrb[145].mxu0 }
 0x21c   : > { %v4067_v63 = vadd.f32 %v4066_v54, %v4065_v18  ;;  %v4068_v36 = vpop.f32.mrb[146].mxu1  ;;  %v2872_v46 = vpop.f32.mrb[146].mxu0 }
 0x21d   : > { %v3621_v62 = vpack.c.bf16 %v2983_v59, %v2982_v0  ;;  %v2917_v50 = vmul.f32 %v5301_v28, %v2870_v31  ;;  %v2873_v24 = vadd.f32 %v2872_v46, %v2720_v55  ;;  %v4069_v33 = vpop.f32.mrb[147].mxu1  ;;  %v4165_v6 = vpop.f32.mrb[147].mxu0 }
 0x21e   : > { %v4070_v48 = vadd.f32 %v4069_v33, %v4068_v36  ;;  %v2725_v40 = vadd.f32 %v4067_v63, %v5292_v22 }
 0x21f   : > { %3644 = vst [vmem:[%s5318_s25 + $0x60] sm:$0xff] %v3621_v62   ;;  %v2954_v21 = vadd.f32 %v5306_v4, %v2917_v50  ;;  %v2918_v51 = vmul.f32 %v5301_v28, %v2873_v24 }
 0x220   : > { %v2728_v2 = vadd.f32 %v4070_v48, %v5295_v61 }
 0x221   : > { %v2955_v32 = vadd.f32 %v5306_v4, %v2918_v51  ;;  %v2984_v14 = vmax.f32 %v2954_v21, 0.0 }
 0x222   : > { %v2877_v43 = vpop.f32.mrb[148].mxu0 }
 0x223   : > { %v2985_v41 = vmax.f32 %v2955_v32, 0.0  ;;  %v2878_v15 = vadd.f32 %v2877_v43, %v2725_v40  ;;  %v4168_v45 = vpop.f32.mrb[149].mxu0 }
 0x224   : > { %v2880_v30 = vpop.f32.mrb[150].mxu0 }
 0x225   : > { %v3626_v29 = vpack.c.bf16 %v2985_v41, %v2984_v14  ;;  %v2919_v22 = vmul.f32 %v5301_v28, %v2878_v15  ;;  %v2881_v23 = vadd.f32 %v2880_v30, %v2728_v2  ;;  %v4169_v1 = vpop.f32.mrb[151].mxu0 }
 0x227   : > { %3645 = vst [vmem:[%s5318_s25 + $0x68] sm:$0xff] %v3626_v29   ;;  %v2956_v56 = vadd.f32 %v5306_v4, %v2919_v22  ;;  %v2920_v53 = vmul.f32 %v5301_v28, %v2881_v23 }
 0x229   : > { %v2957_v61 = vadd.f32 %v5306_v4, %v2920_v53  ;;  %v2986_v49 = vmax.f32 %v2956_v56, 0.0 }
 0x22b   : > { %v2987_v5 = vmax.f32 %v2957_v61, 0.0 }
 0x22d   : > { %v3631_v17 = vpack.c.bf16 %v2987_v5, %v2986_v49 }
 0x22f   : > { %3646 = vst [vmem:[%s5318_s25 + $0x70] sm:$0xff] %v3631_v17  }
 0x230 PF: > { %s14_s17 = sadd.s32 1, %s4410_s17   ;;  %s5431_s15 = smov %s4406_s16 }
 0x231   : > { %p11_p5 = scmp.ge.s32.totalorder %s14_s17, 4   ;;  %s5432_s16 = smov %s5434_s18 }
 0x233   :  { %13 = sbr.rel (!%p11_p5) target bundleno = 2 (0x2), region = 69 }

// kernel: stem_v2_forward.16
= control target key start
LH: loop header
LB: loop body
LE: loop exit
PB: predicated region body
PF: predicated region fallthrough
CT: control target
= control target key end

     0   :  { %s575_s9 = smov 0   ;;  %s577_s10 = smov 0   ;;  %s684_s0 = inlined_call_operand.vmem [shape: bf16[2,8,8,384], index: 0, kind: input, shape index: {}]   ;;  %s685_s1 = inlined_call_operand.vmem [shape: bf16[2,8,8,384], index: 1, kind: input, shape index: {}]   ;;  %s686_s2 = inlined_call_operand.vmem [shape: bf16[2,7,8,128], index: 2, kind: output, shape index: {}]  }
   0x1   :  { %s579_s11 = smov 0  }
   0x2 LB: > { %s24_s12 = sadd.s32 1, %s554_s10  ;;  %p470_p0 = scmp.ge.s32.totalorder %s558_s11, 1  ;;  %s558_s11 = sphi %s579_s11, %s12_s11   ;;  %s554_s10 = sphi %s577_s10, %s688_s10   ;;  %s550_s9 = sphi %s575_s9, %s687_s9  }
   0x3   : > { %p26_p1 = scmp.ge.s32.totalorder %s24_s12, 2  ;;  %p136_p2 = scmp.lt.s32.totalorder %s558_s11, 3 }
   0x5   : > { %s690_s12 = smov (%p26_p1, %s24_s12), 0  ;;  %p137_p3 = pnand %p470_p0, %p136_p2 }
   0x6   : > { %p167_p4 = scmp.lt.s32.totalorder (!%p137_p3), %s550_s9, 1 }
   0x7   : > { %140 = sbr.rel (%p137_p3) target bundleno = 47 (0x2f), region = 28 }
   0xe   : > { %s692_s9 = smov (!%p167_p4, %s550_s9), 1 }
   0xf   : > { %s510_s13 = smul.u32 96, %s692_s9 }
  0x10   : > { %s511_s20 = smul.u32 28, %s692_s9 }
  0x11   : > { %s599_s16 = scalar_lea.vmem %s684_s0, %s510_s13  ;;  %s604_s19 = scalar_lea.vmem %s685_s1, %s510_s13 }
  0x12   : > { %v191_v0 = vld [vmem:[%s599_s16] sm:$0xff]  ;;  %v608_v1 = vld [vmem:[%s599_s16 + $0xc] sm:$0xff]  ;;  %v192_v5 = vld [vmem:[%s599_s16 + $0x8] sm:$0xf]  ;;  %s660_s23 = scalar_lea.vmem %s686_s2, %s511_s20 }
  0x13   : > { %v212_v2 = vrot.slane %v191_v0, 4  ;;  %v213_v3 = vrot.slane %v608_v1, 4  ;;  %v242_v4 = vld [vmem:[%s604_s19] sm:$0xff]  ;;  %v194_v6 = vld [vmem:[%s599_s16 + $0x14] sm:$0xf]  ;;  %v244_v7 = vld [vmem:[%s604_s19 + $0xc] sm:$0xff] }
  0x14   : > { %v476_v10 = vld [vmem:[%s599_s16 + $0x18] sm:$0xff]  ;;  %v270_v11 = vrot.slane %v242_v4, 4  ;;  %v620_v13 = vld [vmem:[%s599_s16 + $0x24] sm:$0xff]  ;;  %v271_v16 = vrot.slane %v244_v7, 4  ;;  %v196_v17 = vld [vmem:[%s599_s16 + $0x20] sm:$0xf] }
  0x15   : > { %v226_v8 = vmax.bf16 %v212_v2, %v191_v0  ;;  %v227_v9 = vmax.bf16 %v213_v3, %v608_v1  ;;  %v331_v12 = vrot.slane %v476_v10, 4  ;;  %v215_v18 = vrot.slane %v620_v13, 4  ;;  %v246_v19 = vld [vmem:[%s604_s19 + $0x18] sm:$0xff]  ;;  %v248_v20 = vld [vmem:[%s604_s19 + $0x24] sm:$0xff]  ;;  %v198_v21 = vld [vmem:[%s599_s16 + $0x2c] sm:$0xf] }
  0x16   : > { %v243_v23 = vld [vmem:[%s604_s19 + $0x8] sm:$0xf]  ;;  %v245_v24 = vld [vmem:[%s604_s19 + $0x14] sm:$0xf]  ;;  %v272_v30 = vrot.slane %v246_v19, 4  ;;  %v273_v31 = vrot.slane %v248_v20, 4 }
  0x17   : > { %v233_v14 = vmax.bf16 %v226_v8, %v192_v5  ;;  %v234_v15 = vmax.bf16 %v227_v9, %v194_v6  ;;  %v228_v22 = vmax.bf16 %v476_v10, %v331_v12  ;;  %v229_v27 = vmax.bf16 %v215_v18, %v620_v13  ;;  %v480_v28 = vld [vmem:[%s599_s16 + $0x30] sm:$0xff]  ;;  %v634_v33 = vld [vmem:[%s599_s16 + $0x3c] sm:$0xff]  ;;  %v200_v38 = vld [vmem:[%s599_s16 + $0x38] sm:$0xf] }
  0x18   : > { %v333_v32 = vrot.slane %v480_v28, 4  ;;  %v250_v34 = vld [vmem:[%s604_s19 + $0x30] sm:$0xff]  ;;  %v217_v39 = vrot.slane %v634_v33, 4  ;;  %v252_v40 = vld [vmem:[%s604_s19 + $0x3c] sm:$0xff]  ;;  %v202_v42 = vld [vmem:[%s599_s16 + $0x44] sm:$0xf] }
  0x19   : > { %v256_v25 = vmax.bf16 %v242_v4, %v233_v14  ;;  %v257_v26 = vmax.bf16 %v244_v7, %v234_v15  ;;  %v235_v29 = vmax.bf16 %v228_v22, %v196_v17  ;;  %v236_v37 = vmax.bf16 %v229_v27, %v198_v21  ;;  %v484_v45 = vld [vmem:[%s599_s16 + $0x48] sm:$0xff]  ;;  %v247_v48 = vld [vmem:[%s604_s19 + $0x20] sm:$0xf]  ;;  %v204_v60 = vld [vmem:[%s599_s16 + $0x50] sm:$0xf] }
  0x1a   : > { %v230_v43 = vmax.bf16 %v480_v28, %v333_v32  ;;  %v274_v44 = vrot.slane %v250_v34, 4  ;;  %v231_v50 = vmax.bf16 %v217_v39, %v634_v33  ;;  %v249_v51 = vld [vmem:[%s604_s19 + $0x2c] sm:$0xf]  ;;  %v275_v54 = vrot.slane %v252_v40, 4  ;;  %v475_v62 = vld [vmem:[%s599_s16 + $0x14] sm:$0xf] }
  0x1b   : > { %v284_v35 = vmax.bf16 %v270_v11, %v256_v25  ;;  %v285_v36 = vmax.bf16 %v271_v16, %v257_v26  ;;  %v258_v41 = vmax.bf16 %v246_v19, %v235_v29  ;;  %v259_v49 = vmax.bf16 %v248_v20, %v236_v37  ;;  %v254_v61 = vld [vmem:[%s604_s19 + $0x48] sm:$0xff]  ;;  %v477_v63 = vld [vmem:[%s599_s16 + $0x20] sm:$0xf]  ;;  %v251_v8 = vld [vmem:[%s604_s19 + $0x38] sm:$0xf] }
  0x1c   : > { %v237_v53 = vmax.bf16 %v230_v43, %v200_v38  ;;  %v335_v55 = vrot.slane %v484_v45, 4  ;;  %v238_v59 = vmax.bf16 %v231_v50, %v202_v42  ;;  %v253_v11 = vld [vmem:[%s604_s19 + $0x44] sm:$0xf]  ;;  %v276_v16 = vrot.slane %v254_v61, 4  ;;  %v479_v20 = vld [vmem:[%s599_s16 + $0x2c] sm:$0xf] }
  0x1d   : > { %v291_v46 = vmax.bf16 %v284_v35, %v243_v23  ;;  %v292_v47 = vmax.bf16 %v285_v36, %v245_v24  ;;  %v286_v52 = vmax.bf16 %v272_v30, %v258_v41  ;;  %v287_v58 = vmax.bf16 %v273_v31, %v259_v49  ;;  %v255_v27 = vld [vmem:[%s604_s19 + $0x50] sm:$0xf]  ;;  %v483_v35 = vld [vmem:[%s599_s16 + $0x44] sm:$0xf] }
  0x1e   : > { %v260_v2 = vmax.bf16 %v250_v34, %v237_v53  ;;  %v232_v4 = vmax.bf16 %v484_v45, %v335_v55  ;;  %v261_v9 = vmax.bf16 %v252_v40, %v238_v59 }
  0x1f   : > { %v316_v56 = vmax.bf16 %v291_v46, %v608_v1  ;;  %v317_v57 = vmax.bf16 %v476_v10, %v292_v47  ;;  %v293_v0 = vmax.bf16 %v286_v52, %v247_v48  ;;  %v294_v7 = vmax.bf16 %v287_v58, %v249_v51  ;;  %v481_v1 = vld [vmem:[%s599_s16 + $0x38] sm:$0xf] }
  0x20   : > { %v288_v14 = vmax.bf16 %v274_v44, %v260_v2  ;;  %v239_v15 = vmax.bf16 %v232_v4, %v204_v60  ;;  %v289_v22 = vmax.bf16 %v275_v54, %v261_v9  ;;  %v487_v44 = vld [vmem:[%s599_s16 + $0x5c] sm:$0xf] }
  0x21   : > { %v344_v5 = vmax.bf16 %v316_v56, %v213_v3  ;;  %v345_v6 = vmax.bf16 %v331_v12, %v317_v57  ;;  %v318_v10 = vmax.bf16 %v293_v0, %v620_v13  ;;  %v319_v21 = vmax.bf16 %v480_v28, %v294_v7  ;;  %v486_v28 = vld [vmem:[%s599_s16 + $0x54] sm:$0xff] }
  0x22   : > { %v295_v12 = vmax.bf16 %v288_v14, %v251_v8  ;;  %v262_v23 = vmax.bf16 %v254_v61, %v239_v15  ;;  %v296_v26 = vmax.bf16 %v289_v22, %v253_v11  ;;  %v336_v38 = vrot.slane %v486_v28, 4 }
  0x23   : > { %v351_v17 = vmax.bf16 %v475_v62, %v344_v5  ;;  %v352_v19 = vmax.bf16 %v477_v63, %v345_v6  ;;  %v346_v3 = vmax.bf16 %v318_v10, %v215_v18  ;;  %v347_v25 = vmax.bf16 %v333_v32, %v319_v21  ;;  %v485_v18 = vld [vmem:[%s599_s16 + $0x50] sm:$0xf] }
  0x24   : > { %v320_v30 = vmax.bf16 %v295_v12, %v634_v33  ;;  %v290_v31 = vmax.bf16 %v276_v16, %v262_v23  ;;  %v321_v13 = vmax.bf16 %v484_v45, %v296_v26 }
  0x25   : > { %v505_v24 = vcombine.low %v351_v17, %v352_v19  ;;  %v353_v29 = vmax.bf16 %v479_v20, %v346_v3  ;;  %v354_v34 = vmax.bf16 %v481_v1, %v347_v25 }
  0x26   : > { %v348_v36 = vmax.bf16 %v320_v30, %v217_v39  ;;  %v297_v37 = vmax.bf16 %v290_v31, %v255_v27  ;;  %v349_v40 = vmax.bf16 %v335_v55, %v321_v13 }
  0x27   : > { %494 = vst [vmem:[%s660_s23] sm:$0xff] %v505_v24   ;;  %v506_v32 = vcombine.low %v353_v29, %v354_v34 }
  0x28   : > { %v355_v41 = vmax.bf16 %v483_v35, %v348_v36  ;;  %v322_v42 = vmax.bf16 %v486_v28, %v297_v37  ;;  %v356_v43 = vmax.bf16 %v485_v18, %v349_v40 }
  0x29   : > { %507 = vst [vmem:[%s660_s23 + $0x8] sm:$0xff] %v506_v32  }
  0x2a   : > { %v350_v33 = vmax.bf16 %v336_v38, %v322_v42  ;;  %v508_v46 = vcombine.low %v355_v41, %v356_v43 }
  0x2c   : > { %v357_v47 = vmax.bf16 %v487_v44, %v350_v33  ;;  %509 = vst [vmem:[%s660_s23 + $0x10] sm:$0xff] %v508_v46  }
  0x2e   : > { %364 = vst [vmem:[%s660_s23 + $0x18] sm:$0xf] %v357_v47 }
  0x2f PF: > { %s12_s11 = sadd.s32 1, %s558_s11   ;;  %s687_s9 = smov %s554_s10 }
  0x30   : > { %p9_p5 = scmp.ge.s32.totalorder %s12_s11, 4   ;;  %s688_s10 = smov %s690_s12 }
  0x32   :  { %11 = sbr.rel (!%p9_p5) target bundleno = 2 (0x2), region = 64 }

// kernel: stem_v2_forward.17
= control target key start
LH: loop header
LB: loop body
LE: loop exit
PB: predicated region body
PF: predicated region fallthrough
CT: control target
= control target key end

     0   :  { %s2098_s18 = smov 0   ;;  %s2100_s19 = smov 0   ;;  %s2442_s0 = inlined_call_operand.vmem [shape: bf16[2,8,8,384], index: 0, kind: input, shape index: {}]   ;;  %s2443_s1 = inlined_call_operand.vmem [shape: bf16[2,8,8,384], index: 1, kind: input, shape index: {}]   ;;  %s2444_s2 = inlined_call_operand.vmem [shape: bf16[1152,128], index: 2, kind: input, shape index: {}]   ;;  %s2445_s3 = inlined_call_operand.vmem [shape: f32[1,128], index: 3, kind: input, shape index: {}]   ;;  %s2446_s4 = inlined_call_operand.vmem [shape: f32[1,128], index: 4, kind: input, shape index: {}]   ;;  %s2447_s5 = inlined_call_operand.vmem [shape: bf16[2,7,8,128], index: 5, kind: output, shape index: {}]  }
   0x1   :  { %s2102_s20 = smov 0  }
   0x2 LB: > { %s27_s21 = sadd.s32 1, %s2062_s19  ;;  %p1548_p0 = scmp.ge.s32.totalorder %s2066_s20, 1  ;;  %s2066_s20 = sphi %s2102_s20, %s15_s20   ;;  %s2062_s19 = sphi %s2100_s19, %s2449_s19   ;;  %s2058_s18 = sphi %s2098_s18, %s2448_s18  }
   0x3   : > { %p29_p1 = scmp.ge.s32.totalorder %s27_s21, 2  ;;  %p211_p2 = scmp.lt.s32.totalorder %s2066_s20, 3 }
   0x5   : > { %s2451_s21 = smov (%p29_p1, %s27_s21), 0  ;;  %p212_p3 = pnand %p1548_p0, %p211_p2 }
   0x6   : > { %v1933_v0 = vld [vmem:[%s2444_s2 + $0x40] sm:$0xff] (!%p212_p3)   ;;  %v1937_v4 = vld [vmem:[%s2444_s2 + $0x48] sm:$0xff] (!%p212_p3)   ;;  %v1941_v8 = vld [vmem:[%s2444_s2 + $0x50] sm:$0xff] (!%p212_p3)   ;;  %p248_p4 = scmp.lt.s32.totalorder (!%p212_p3), %s2058_s18, 1 }
   0x7   : > { %215 = sbr.rel (%p212_p3) target bundleno = 331 (0x14b), region = 40  ;;  %v1934_v1 = vld [vmem:[%s2444_s2 + $0xc0] sm:$0xff] (!%p212_p3)   ;;  %1695 = vmatprep.subr.bf16.mxu0 (!%p212_p3), %v1933_v0  ;;  %v1938_v5 = vld [vmem:[%s2444_s2 + $0xc8] sm:$0xff] (!%p212_p3)   ;;  %v1942_v9 = vld [vmem:[%s2444_s2 + $0xd0] sm:$0xff] (!%p212_p3)  }
   0x8   : > { %v1935_v2 = vld [vmem:[%s2444_s2] sm:$0xff] (!%p212_p3)   ;;  %1735 = vmatprep.subr.bf16.mxu1 (!%p212_p3), %v1934_v1  ;;  %v1939_v6 = vld [vmem:[%s2444_s2 + $0x8] sm:$0xff] (!%p212_p3)   ;;  %v1943_v10 = vld [vmem:[%s2444_s2 + $0x10] sm:$0xff] (!%p212_p3)  }
   0x9   : > { %v1936_v3 = vld [vmem:[%s2444_s2 + $0x80] sm:$0xff] (!%p212_p3)   ;;  %1696 = vmatpush3.bf16.msra.mxu0 (!%p212_p3), %v1935_v2  ;;  %v1940_v7 = vld [vmem:[%s2444_s2 + $0x88] sm:$0xff] (!%p212_p3)   ;;  %v1944_v11 = vld [vmem:[%s2444_s2 + $0x90] sm:$0xff] (!%p212_p3)  }
   0xa   : > { %1736 = vmatpush3.bf16.msra.mxu1 (!%p212_p3), %v1936_v3  ;;  %1697 = vmatprep.subr.bf16.mxu0 (!%p212_p3), %v1937_v4  ;;  %v1945_v12 = vld [vmem:[%s2444_s2 + $0x58] sm:$0xff] (!%p212_p3)   ;;  %v1949_v16 = vld [vmem:[%s2444_s2 + $0x60] sm:$0xff] (!%p212_p3)   ;;  %v1953_v20 = vld [vmem:[%s2444_s2 + $0x68] sm:$0xff] (!%p212_p3)  }
   0xb   : > { %1737 = vmatprep.subr.bf16.mxu1 (!%p212_p3), %v1938_v5  ;;  %v1946_v13 = vld [vmem:[%s2444_s2 + $0xd8] sm:$0xff] (!%p212_p3)   ;;  %v1950_v17 = vld [vmem:[%s2444_s2 + $0xe0] sm:$0xff] (!%p212_p3)   ;;  %v1954_v21 = vld [vmem:[%s2444_s2 + $0xe8] sm:$0xff] (!%p212_p3)  }
   0xc   : > { %v1947_v14 = vld [vmem:[%s2444_s2 + $0x18] sm:$0xff] (!%p212_p3)   ;;  %v1951_v18 = vld [vmem:[%s2444_s2 + $0x20] sm:$0xff] (!%p212_p3)   ;;  %v1955_v22 = vld [vmem:[%s2444_s2 + $0x28] sm:$0xff] (!%p212_p3)  }
   0xd   : > { %1698 = vmatpush3.bf16.msra.mxu0 (!%p212_p3), %v1939_v6  ;;  %v1948_v15 = vld [vmem:[%s2444_s2 + $0x98] sm:$0xff] (!%p212_p3)   ;;  %v1952_v19 = vld [vmem:[%s2444_s2 + $0xa0] sm:$0xff] (!%p212_p3)   ;;  %v1956_v23 = vld [vmem:[%s2444_s2 + $0xa8] sm:$0xff] (!%p212_p3)  }
   0xe   : > { %1738 = vmatpush3.bf16.msra.mxu1 %v1940_v7  ;;  %1699 = vmatprep.subr.bf16.mxu0 %v1941_v8  ;;  %s2453_s18 = smov (!%p248_p4, %s2058_s18), 1  ;;  %v1957_v24 = vld [vmem:[%s2444_s2 + $0x70] sm:$0xff]   ;;  %v1961_v28 = vld [vmem:[%s2444_s2 + $0x78] sm:$0xff]   ;;  %v1971_v38 = vld [vmem:[%s2444_s2 + $0x140] sm:$0xff]  }
   0xf   : > { %1739 = vmatprep.subr.bf16.mxu1 %v1942_v9  ;;  %v1958_v25 = vld [vmem:[%s2444_s2 + $0xf0] sm:$0xff]   ;;  %s1907_s7 = smul.u32 96, %s2453_s18  ;;  %v1962_v29 = vld [vmem:[%s2444_s2 + $0xf8] sm:$0xff]   ;;  %v1972_v39 = vld [vmem:[%s2444_s2 + $0x1c0] sm:$0xff]  }
  0x10   : > { %v1959_v26 = vld [vmem:[%s2444_s2 + $0x30] sm:$0xff]   ;;  %v1963_v30 = vld [vmem:[%s2444_s2 + $0x38] sm:$0xff]   ;;  %v1973_v40 = vld [vmem:[%s2444_s2 + $0x100] sm:$0xff]   ;;  %s1908_s11 = smul.u32 28, %s2453_s18 }
  0x11   : > { %1700 = vmatpush3.bf16.msra.mxu0 %v1943_v10  ;;  %v1960_v27 = vld [vmem:[%s2444_s2 + $0xb0] sm:$0xff]   ;;  %s2216_s22 = scalar_lea.vmem %s2442_s0, %s1907_s7  ;;  %s2224_s27 = scalar_lea.vmem %s2443_s1, %s1907_s7  ;;  %v1964_v31 = vld [vmem:[%s2444_s2 + $0xb8] sm:$0xff]   ;;  %v1974_v41 = vld [vmem:[%s2444_s2 + $0x180] sm:$0xff]  }
  0x12   : > { %1740 = vmatpush3.bf16.msra.mxu1 %v1944_v11  ;;  %1701 = vmatprep.subr.bf16.mxu0 %v1945_v12  ;;  %v273_v32 = vld [vmem:[%s2216_s22] sm:$0xff]  ;;  %v2231_v33 = vld [vmem:[%s2216_s22 + $0xc] sm:$0xff]  ;;  %v1970_v37 = vld [vmem:[%s2216_s22 + $0x8] ss:$12 sps:$4 sm:$0xff]   ;;  %s266_s14 = scalar_lea.vmem %s2447_s5, %s1908_s11 }
  0x13   : > { %1741 = vmatprep.subr.bf16.mxu1 %v1946_v13  ;;  %v1566_v34 = vcombine.low %v273_v32, %v2231_v33  ;;  %v1567_v35 = vcombine.high %v273_v32, %v2231_v33  ;;  %v1967_v36 = vld [vmem:[%s2224_s27] ss:$12 sps:$4 sm:$0xff]   ;;  %v2262_v46 = vld [vmem:[%s2216_s22 + $0x18] sm:$0xff]  ;;  %v2265_v47 = vld [vmem:[%s2216_s22 + $0x24] sm:$0xff] }
  0x14   : > { %1170 = vmatprep.mubr.bf16.mxu1 %v1967_v36  ;;  %v1975_v42 = vld [vmem:[%s2444_s2 + $0x148] sm:$0xff]   ;;  %v1576_v48 = vcombine.high %v2262_v46, %v2265_v47  ;;  %v1980_v49 = vld [vmem:[%s2224_s27 + $0x18] ss:$12 sps:$4 sm:$0xff]   ;;  %v1575_v50 = vcombine.low %v2262_v46, %v2265_v47  ;;  %v1984_v52 = vld [vmem:[%s2444_s2 + $0x150] sm:$0xff]  }
  0x15   : > { %1702 = vmatpush3.bf16.msra.mxu0 %v1947_v14  ;;  %1106 = vmatprep.mubr.bf16.mxu0 %v1567_v35  ;;  %v1976_v43 = vld [vmem:[%s2444_s2 + $0x1c8] sm:$0xff]   ;;  %v1985_v53 = vld [vmem:[%s2444_s2 + $0x1d0] sm:$0xff]   ;;  %v1988_v56 = vld [vmem:[%s2444_s2 + $0x158] sm:$0xff]  }
  0x16   : > { %1742 = vmatpush3.bf16.msra.mxu1 %v1948_v15  ;;  %1703 = vmatprep.subr.bf16.mxu0 %v1949_v16  ;;  %v1977_v44 = vld [vmem:[%s2444_s2 + $0x108] sm:$0xff]   ;;  %v1986_v54 = vld [vmem:[%s2444_s2 + $0x110] sm:$0xff]   ;;  %v1989_v57 = vld [vmem:[%s2444_s2 + $0x1d8] sm:$0xff]  }
  0x17   : > { %1743 = vmatprep.subr.bf16.mxu1 %v1950_v17  ;;  %v1978_v45 = vld [vmem:[%s2444_s2 + $0x188] sm:$0xff]   ;;  %v1987_v55 = vld [vmem:[%s2444_s2 + $0x190] sm:$0xff]   ;;  %v1990_v58 = vld [vmem:[%s2444_s2 + $0x118] sm:$0xff]   ;;  %v1573_v17 = vcombine.high %v2231_v33, %v2262_v46 }
  0x18   : > { %v1983_v51 = vld [vmem:[%s2216_s22 + $0x20] ss:$12 sps:$4 sm:$0xff]   ;;  %v1991_v59 = vld [vmem:[%s2444_s2 + $0x198] sm:$0xff]   ;;  %v2298_v60 = vld [vmem:[%s2216_s22 + $0x30] sm:$0xff] }
  0x19   : > { %1704 = vmatpush3.bf16.msra.mxu0 %v1951_v18  ;;  %v2301_v61 = vld [vmem:[%s2216_s22 + $0x3c] sm:$0xff]  ;;  %v1996_v1 = vld [vmem:[%s2216_s22 + $0x38] ss:$12 sps:$4 sm:$0xff]   ;;  %v2001_v6 = vld [vmem:[%s2444_s2 + $0x168] sm:$0xff]  }
  0x1a   : > { %1744 = vmatpush3.bf16.msra.mxu1 %v1952_v19  ;;  %1705 = vmatprep.subr.bf16.mxu0 %v1953_v20  ;;  %v1585_v62 = vcombine.high %v2298_v60, %v2301_v61  ;;  %v1993_v63 = vld [vmem:[%s2224_s27 + $0x30] ss:$12 sps:$4 sm:$0xff]   ;;  %v1584_v0 = vcombine.low %v2298_v60, %v2301_v61  ;;  %v1997_v2 = vld [vmem:[%s2444_s2 + $0x160] sm:$0xff]   ;;  %v2002_v7 = vld [vmem:[%s2444_s2 + $0x1e8] sm:$0xff]  }
  0x1b   : > { %1745 = vmatprep.subr.bf16.mxu1 %v1954_v21  ;;  %v1998_v3 = vld [vmem:[%s2444_s2 + $0x1e0] sm:$0xff]   ;;  %v2003_v8 = vld [vmem:[%s2444_s2 + $0x128] sm:$0xff]   ;;  %v2008_v15 = vld [vmem:[%s2216_s22 + $0x50] ss:$0 sps:$4 sm:$0xff]  }
  0x1c   : > { %v1999_v4 = vld [vmem:[%s2444_s2 + $0x120] sm:$0xff]   ;;  %v2004_v9 = vld [vmem:[%s2444_s2 + $0x1a8] sm:$0xff]   ;;  %v2009_v16 = vld [vmem:[%s2444_s2 + $0x170] sm:$0xff]  }
  0x1d   : > { %1706 = vmatpush3.bf16.msra.mxu0 %v1955_v22  ;;  %v2000_v5 = vld [vmem:[%s2444_s2 + $0x1a0] sm:$0xff]   ;;  %v2334_v10 = vld [vmem:[%s2216_s22 + $0x48] sm:$0xff]  ;;  %v2010_v18 = vld [vmem:[%s2444_s2 + $0x1f0] sm:$0xff]  }
  0x1e   : > { %1746 = vmatpush3.bf16.msra.mxu1 %v1956_v23  ;;  %1707 = vmatprep.subr.bf16.mxu0 %v1957_v24  ;;  %v2337_v11 = vld [vmem:[%s2224_s27 + $0x48] sm:$0xff]  ;;  %v1594_v12 = vcombine.high %v2334_v10, %v2334_v10  ;;  %v1593_v14 = vcombine.low %v2334_v10, %v2334_v10  ;;  %v2011_v19 = vld [vmem:[%s2444_s2 + $0x130] sm:$0xff]   ;;  %v2013_v21 = vld [vmem:[%s2444_s2 + $0x178] sm:$0xff]  }
  0x1f   : > { %1747 = vmatprep.subr.bf16.mxu1 %v1958_v25  ;;  %v1596_v13 = vcombine.low %v2337_v11, %v2337_v11  ;;  %v2012_v20 = vld [vmem:[%s2444_s2 + $0x1b0] sm:$0xff]   ;;  %v2014_v23 = vld [vmem:[%s2444_s2 + $0x1f8] sm:$0xff]  }
  0x20   : > { %v1969_v22 = vld [vmem:[%s2224_s27 + $0x4] ss:$12 sps:$4 sm:$0xff]   ;;  %v2015_v24 = vld [vmem:[%s2444_s2 + $0x138] sm:$0xff]  }
  0x21   : > { %1708 = vmatpush3.bf16.msra.mxu0 %v1959_v26  ;;  %v2016_v25 = vld [vmem:[%s2444_s2 + $0x1b8] sm:$0xff]   ;;  %v2017_v26 = vld [vmem:[%s2224_s27 + $0x8] ss:$12 sps:$4 sm:$0xff]  }
  0x22   : > { %1748 = vmatpush3.bf16.msra.mxu1 %v1960_v27  ;;  %1709 = vmatprep.subr.bf16.mxu0 %v1961_v28  ;;  %v1572_v27 = vcombine.low %v2231_v33, %v2262_v46  ;;  %v2020_v28 = vld [vmem:[%s2444_s2 + $0x200] sm:$0xff]   ;;  %v2026_v32 = vld [vmem:[%s2444_s2 + $0x210] sm:$0xff]   ;;  %v2024_v33 = vld [vmem:[%s2224_s27 + $0x1c] ss:$12 sps:$4 sm:$0xff]   ;;  %v1597_v46 = vcombine.high %v2337_v11, %v2337_v11 }
  0x23   : > { %1749 = vmatprep.subr.bf16.mxu1 %v1962_v29  ;;  %v2021_v29 = vld [vmem:[%s2444_s2 + $0x208] sm:$0xff]   ;;  %v2028_v35 = vld [vmem:[%s2224_s27 + $0x38] ss:$12 sps:$4 sm:$0xff]  }
  0x24   : > { %v2027_v36 = vld [vmem:[%s2444_s2 + $0x218] sm:$0xff]  }
  0x25   : > { %1710 = vmatpush3.bf16.msra.mxu0 %v1963_v30  ;;  %v2022_v30 = vld [vmem:[%s2224_s27 + $0x20] ss:$12 sps:$4 sm:$0xff]  }
  0x26   : > { %1750 = vmatpush3.bf16.msra.mxu1 %v1964_v31  ;;  %1775 = vmatprep.subr.bf16.mxu0 %v1971_v38  ;;  %v1582_v31 = vcombine.high %v2265_v47, %v2298_v60  ;;  %v2032_v38 = vld [vmem:[%s2444_s2 + $0x220] sm:$0xff]  }
  0x27   : > { %1815 = vmatprep.subr.bf16.mxu1 %v1972_v39  ;;  %v2030_v39 = vld [vmem:[%s2224_s27 + $0x34] ss:$12 sps:$4 sm:$0xff]  }
  0x28   : > { %1107 = vmatmul.mubr.bf16.vlgmr.msra.gmra.mrb[0].mxu0 %v1566_v34  ;;  %v1581_v34 = vcombine.low %v2265_v47, %v2298_v60 }
  0x29   : > { %1171 = vmatmul.mubr.bf16.vlgmr.msra.gmra.mrb[0].mxu1 %v1970_v37  ;;  %1776 = vmatpush3.bf16.msra.mxu0 %v1973_v40  ;;  %v1591_v37 = vcombine.high %v2301_v61, %v2334_v10  ;;  %v1590_v40 = vcombine.low %v2301_v61, %v2334_v10 }
  0x2a   : > { %1816 = vmatpush3.bf16.msra.mxu1 %v1974_v41  ;;  %1777 = vmatprep.subr.bf16.mxu0 %v1975_v42  ;;  %v2034_v41 = vld [vmem:[%s2224_s27 + $0x50] ss:$0 sps:$4 sm:$0xff]   ;;  %v1564_v42 = vld [vmem:[%s2216_s22 + $0x54] sm:$0xff] }
  0x2b   : > { %1817 = vmatprep.subr.bf16.mxu1 %v1976_v43  ;;  %1114 = vmatprep.mubr.bf16.mxu0 %v1576_v48  ;;  %v2033_v43 = vld [vmem:[%s2444_s2 + $0x228] sm:$0xff]   ;;  %v1599_v47 = vcombine.low %v1564_v42, %v1564_v42  ;;  %v2040_v48 = vld [vmem:[%s2216_s22 + $0x14] ss:$12 sps:$4 sm:$0xff]  }
  0x2c   : > { %1178 = vmatprep.mubr.bf16.mxu1 %v1980_v49  ;;  %v2039_v49 = vld [vmem:[%s2444_s2 + $0x238] sm:$0xff]  }
  0x2d   : > { %1778 = vmatpush3.bf16.msra.mxu0 %v1977_v44  ;;  %v1600_v44 = vcombine.high %v1564_v42, %v1564_v42 }
  0x2e   : > { %1818 = vmatpush3.bf16.msra.mxu1 %v1978_v45  ;;  %1779 = vmatprep.subr.bf16.mxu0 %v1984_v52  ;;  %v2038_v45 = vld [vmem:[%s2444_s2 + $0x230] sm:$0xff]   ;;  %v2043_v52 = vld [vmem:[%s2216_s22 + $0x5c] ss:$0 sps:$4 sm:$0xff]  }
  0x2f   : > { %1819 = vmatprep.subr.bf16.mxu1 %v1985_v53 }
  0x30   : > { %1115 = vmatmul.mubr.bf16.gmra.mrb[4].mxu0 %v1575_v50  ;;  %v2041_v50 = vld [vmem:[%s2216_s22 + $0x44] ss:$12 sps:$4 sm:$0xff]  }
  0x31   : > { %1179 = vmatmul.mubr.bf16.gmra.mrb[4].mxu1 %v1983_v51  ;;  %1780 = vmatpush3.bf16.msra.mxu0 %v1986_v54  ;;  %v2042_v51 = vld [vmem:[%s2216_s22 + $0x2c] ss:$12 sps:$4 sm:$0xff]  }
  0x32   : > { %1820 = vmatpush3.bf16.msra.mxu1 %v1987_v55  ;;  %1781 = vmatprep.subr.bf16.mxu0 %v1988_v56 }
  0x33   : > { %1821 = vmatprep.subr.bf16.mxu1 %v1989_v57  ;;  %1122 = vmatprep.mubr.bf16.mxu0 %v1585_v62 }
  0x34   : > { %1186 = vmatprep.mubr.bf16.mxu1 %v1993_v63 }
  0x35   : > { %1782 = vmatpush3.bf16.msra.mxu0 %v1990_v58 }
  0x36   : > { %1822 = vmatpush3.bf16.msra.mxu1 %v1991_v59  ;;  %1783 = vmatprep.subr.bf16.mxu0 %v1997_v2 }
  0x37   : > { %1823 = vmatprep.subr.bf16.mxu1 %v1998_v3 }
  0x38   : > { %1123 = vmatmul.mubr.bf16.gmra.mrb[8].mxu0 %v1584_v0 }
  0x39   : > { %1187 = vmatmul.mubr.bf16.gmra.mrb[8].mxu1 %v1996_v1  ;;  %1784 = vmatpush3.bf16.msra.mxu0 %v1999_v4 }
  0x3a   : > { %1824 = vmatpush3.bf16.msra.mxu1 %v2000_v5  ;;  %1785 = vmatprep.subr.bf16.mxu0 %v2001_v6 }
  0x3b   : > { %1825 = vmatprep.subr.bf16.mxu1 %v2002_v7  ;;  %1130 = vmatprep.mubr.bf16.mxu0 %v1594_v12 }
  0x3c   : > { %1194 = vmatprep.mubr.bf16.mxu1 %v1596_v13 }
  0x3d   : > { %1786 = vmatpush3.bf16.msra.mxu0 %v2003_v8 }
  0x3e   : > { %1826 = vmatpush3.bf16.msra.mxu1 %v2004_v9  ;;  %1787 = vmatprep.subr.bf16.mxu0 %v2009_v16 }
  0x3f   : > { %1827 = vmatprep.subr.bf16.mxu1 %v2010_v18 }
  0x40   : > { %1131 = vmatmul.mubr.bf16.gmra.mrb[12].mxu0 %v1593_v14 }
  0x41   : > { %1195 = vmatmul.mubr.bf16.gmra.mrb[12].mxu1 %v2008_v15  ;;  %1788 = vmatpush3.bf16.msra.mxu0 %v2011_v19 }
  0x42   : > { %1298 = vmatprep.mubr.bf16.mxu1 %v1573_v17  ;;  %1828 = vmatpush3.bf16.msra.mxu1 %v2012_v20 }
  0x43   : > { %1789 = vmatprep.subr.bf16.mxu0 %v2013_v21  ;;  %1829 = vmatprep.subr.bf16.mxu1 %v2014_v23 }
  0x44   : > { %1234 = vmatprep.mubr.bf16.mxu0 %v2017_v26 }
  0x45   : > { %1790 = vmatpush3.bf16.msra.mxu0 %v2015_v24 }
  0x46   : > { %1830 = vmatpush3.bf16.msra.mxu1 %v2016_v25  ;;  %1867 = vmatprep.subr.bf16.mxu0 %v2020_v28 }
  0x47   : > { %1891 = vmatprep.subr.bf16.mxu1 %v2020_v28 }
  0x48   : > { %1235 = vmatmul.mubr.bf16.vlgmr.msra.gmra.mrb[16].mxu0 %v1969_v22 }
  0x49   : > { %1299 = vmatmul.mubr.bf16.vlgmr.msra.gmra.mrb[16].mxu1 %v1572_v27  ;;  %1868 = vmatpush3.bf16.msra.mxu0 %v2020_v28 }
  0x4a   : > { %1899 = vmatpush3.bf16.msra.mxu1 %v2020_v28  ;;  %1869 = vmatprep.subr.bf16.mxu0 %v2021_v29 }
  0x4b   : > { %1892 = vmatprep.subr.bf16.mxu1 %v2021_v29  ;;  %1242 = vmatprep.mubr.bf16.mxu0 %v2022_v30 }
  0x4c   : > { %1306 = vmatprep.mubr.bf16.mxu1 %v1582_v31 }
  0x4d   : > { %1870 = vmatpush3.bf16.msra.mxu0 %v2021_v29 }
  0x4e   : > { %1900 = vmatpush3.bf16.msra.mxu1 %v2021_v29  ;;  %1871 = vmatprep.subr.bf16.mxu0 %v2026_v32 }
  0x4f   : > { %1893 = vmatprep.subr.bf16.mxu1 %v2026_v32 }
  0x50   : > { %1243 = vmatmul.mubr.bf16.gmra.mrb[20].mxu0 %v2024_v33 }
  0x51   : > { %1307 = vmatmul.mubr.bf16.gmra.mrb[20].mxu1 %v1581_v34  ;;  %1250 = vmatprep.mubr.bf16.mxu0 %v2028_v35 }
  0x52   : > { %1872 = vmatpush3.bf16.msra.mxu0 %v2026_v32  ;;  %1901 = vmatpush3.bf16.msra.mxu1 %v2026_v32 }
  0x53   : > { %1873 = vmatprep.subr.bf16.mxu0 %v2027_v36  ;;  %1894 = vmatprep.subr.bf16.mxu1 %v2027_v36 }
  0x54   : > { %1314 = vmatprep.mubr.bf16.mxu1 %v1591_v37 }
  0x56   : > { %1874 = vmatpush3.bf16.msra.mxu0 %v2027_v36  ;;  %1902 = vmatpush3.bf16.msra.mxu1 %v2027_v36 }
  0x57   : > { %1875 = vmatprep.subr.bf16.mxu0 %v2032_v38  ;;  %1895 = vmatprep.subr.bf16.mxu1 %v2032_v38 }
  0x58   : > { %1251 = vmatmul.mubr.bf16.gmra.mrb[24].mxu0 %v2030_v39 }
  0x59   : > { %1315 = vmatmul.mubr.bf16.gmra.mrb[24].mxu1 %v1590_v40  ;;  %1258 = vmatprep.mubr.bf16.mxu0 %v2034_v41 }
  0x5a   : > { %1876 = vmatpush3.bf16.msra.mxu0 %v2032_v38  ;;  %1903 = vmatpush3.bf16.msra.mxu1 %v2032_v38 }
  0x5b   : > { %1877 = vmatprep.subr.bf16.mxu0 %v2033_v43  ;;  %1896 = vmatprep.subr.bf16.mxu1 %v2033_v43 }
  0x5c   : > { %1322 = vmatprep.mubr.bf16.mxu1 %v1600_v44 }
  0x5e   : > { %1878 = vmatpush3.bf16.msra.mxu0 %v2033_v43  ;;  %1904 = vmatpush3.bf16.msra.mxu1 %v2033_v43 }
  0x5f   : > { %1879 = vmatprep.subr.bf16.mxu0 %v2038_v45  ;;  %1897 = vmatprep.subr.bf16.mxu1 %v2038_v45 }
  0x60   : > { %1259 = vmatmul.mubr.bf16.gmra.mrb[28].mxu0 %v1597_v46 }
  0x61   : > { %1323 = vmatmul.mubr.bf16.gmra.mrb[28].mxu1 %v1599_v47  ;;  %1883 = vmatprep.mubr.bf16.mxu0 %v2040_v48 }
  0x62   : > { %1880 = vmatpush3.bf16.msra.mxu0 %v2038_v45  ;;  %1905 = vmatpush3.bf16.msra.mxu1 %v2038_v45 }
  0x63   : > { %1881 = vmatprep.subr.bf16.mxu0 %v2039_v49  ;;  %1898 = vmatprep.subr.bf16.mxu1 %v2039_v49 }
  0x64   : > { %1887 = vmatprep.mubr.bf16.mxu1 %v2041_v50 }
  0x66   : > { %1882 = vmatpush3.bf16.msra.mxu0 %v2039_v49  ;;  %1906 = vmatpush3.bf16.msra.mxu1 %v2039_v49 }
  0x69   : > { %1884 = vmatmul.mubr.bf16.vlgmr.msra.gmra.mrb[32].mxu0 %v2042_v51  ;;  %1888 = vmatmul.mubr.bf16.vlgmr.msra.gmra.mrb[32].mxu1 %v2043_v52 }
  0xfb   : > { %v1711_v53 = vpop.f32.mrb[0].mxu0 }
  0xfc   : > { %v1751_v54 = vpop.f32.mrb[0].mxu1  ;;  %v1712_v55 = vpop.f32.mrb[1].mxu0 }
  0xfd   : > { %v1752_v56 = vpop.f32.mrb[1].mxu1  ;;  %v1713_v57 = vadd.f32 %v1712_v55, %v1711_v53  ;;  %v1714_v59 = vpop.f32.mrb[2].mxu0 }
  0xfe   : > { %v1753_v58 = vadd.f32 %v1752_v56, %v1751_v54  ;;  %v1754_v60 = vpop.f32.mrb[2].mxu1  ;;  %v1715_v61 = vpop.f32.mrb[3].mxu0 }
  0xff   : > { %v1755_v62 = vpop.f32.mrb[3].mxu1  ;;  %v1716_v0 = vadd.f32 %v1715_v61, %v1714_v59 }
 0x100   : > { %v1173_v63 = vadd.f32 %v1753_v58, %v1713_v57  ;;  %v1756_v1 = vadd.f32 %v1755_v62, %v1754_v60 }
 0x102   : > { %v1176_v2 = vadd.f32 %v1756_v1, %v1716_v0 }
 0x103   : > { %v1717_v3 = vpop.f32.mrb[4].mxu0 }
 0x104   : > { %v1757_v4 = vpop.f32.mrb[4].mxu1  ;;  %v1718_v5 = vpop.f32.mrb[5].mxu0 }
 0x105   : > { %v1758_v6 = vpop.f32.mrb[5].mxu1  ;;  %v1719_v7 = vadd.f32 %v1718_v5, %v1717_v3  ;;  %v1720_v9 = vpop.f32.mrb[6].mxu0 }
 0x106   : > { %v1759_v8 = vadd.f32 %v1758_v6, %v1757_v4  ;;  %v1760_v10 = vpop.f32.mrb[6].mxu1  ;;  %v1721_v11 = vpop.f32.mrb[7].mxu0 }
 0x107   : > { %v1761_v12 = vpop.f32.mrb[7].mxu1  ;;  %v1722_v14 = vadd.f32 %v1721_v11, %v1720_v9 }
 0x108   : > { %v1181_v13 = vadd.f32 %v1759_v8, %v1719_v7  ;;  %v1762_v15 = vadd.f32 %v1761_v12, %v1760_v10 }
 0x10a   : > { %v1184_v16 = vadd.f32 %v1762_v15, %v1722_v14 }
 0x10b   : > { %v1723_v17 = vpop.f32.mrb[8].mxu0 }
 0x10c   : > { %v1763_v18 = vpop.f32.mrb[8].mxu1  ;;  %v1724_v19 = vpop.f32.mrb[9].mxu0 }
 0x10d   : > { %v1764_v20 = vpop.f32.mrb[9].mxu1  ;;  %v1725_v21 = vadd.f32 %v1724_v19, %v1723_v17  ;;  %v1726_v23 = vpop.f32.mrb[10].mxu0 }
 0x10e   : > { %v1765_v22 = vadd.f32 %v1764_v20, %v1763_v18  ;;  %v1766_v24 = vpop.f32.mrb[10].mxu1  ;;  %v1727_v25 = vpop.f32.mrb[11].mxu0 }
 0x10f   : > { %v1767_v26 = vpop.f32.mrb[11].mxu1  ;;  %v1728_v28 = vadd.f32 %v1727_v25, %v1726_v23 }
 0x110   : > { %v1189_v27 = vadd.f32 %v1765_v22, %v1725_v21  ;;  %v1768_v29 = vadd.f32 %v1767_v26, %v1766_v24 }
 0x112   : > { %v1192_v30 = vadd.f32 %v1768_v29, %v1728_v28 }
 0x113   : > { %v1729_v31 = vpop.f32.mrb[12].mxu0 }
 0x114   : > { %v1769_v32 = vpop.f32.mrb[12].mxu1  ;;  %v1730_v33 = vpop.f32.mrb[13].mxu0 }
 0x115   : > { %v1770_v34 = vpop.f32.mrb[13].mxu1  ;;  %v1731_v35 = vadd.f32 %v1730_v33, %v1729_v31  ;;  %v1732_v37 = vpop.f32.mrb[14].mxu0 }
 0x116   : > { %v1771_v36 = vadd.f32 %v1770_v34, %v1769_v32  ;;  %v1772_v38 = vpop.f32.mrb[14].mxu1  ;;  %v1733_v39 = vpop.f32.mrb[15].mxu0 }
 0x117   : > { %v1773_v40 = vpop.f32.mrb[15].mxu1 }
 0x118   : > { %v1197_v41 = vadd.f32 %v1771_v36, %v1731_v35 }
 0x11b   : > { %v1791_v42 = vpop.f32.mrb[16].mxu0 }
 0x11c   : > { %v1831_v43 = vpop.f32.mrb[16].mxu1  ;;  %v1792_v44 = vpop.f32.mrb[17].mxu0 }
 0x11d   : > { %v1793_v45 = vadd.f32 %v1792_v44, %v1791_v42  ;;  %v1832_v46 = vpop.f32.mrb[17].mxu1  ;;  %v1794_v47 = vpop.f32.mrb[18].mxu0 }
 0x11e   : > { %v1833_v48 = vadd.f32 %v1832_v46, %v1831_v43  ;;  %v1834_v49 = vpop.f32.mrb[18].mxu1  ;;  %v1795_v50 = vpop.f32.mrb[19].mxu0  ;;  %v1675_v46 = vld [vmem:[%s2446_s4] ss:$0 sm:$0xff] }
 0x11f   : > { %v1237_v51 = vadd.f32 %v1793_v45, %v1173_v63  ;;  %v1796_v52 = vadd.f32 %v1795_v50, %v1794_v47  ;;  %v1835_v53 = vpop.f32.mrb[19].mxu1 }
 0x120   : > { %v1836_v54 = vadd.f32 %v1835_v53, %v1834_v49 }
 0x121   : > { %v1240_v55 = vadd.f32 %v1796_v52, %v1176_v2  ;;  %v1301_v56 = vadd.f32 %v1833_v48, %v1237_v51 }
 0x123   : > { %v1797_v57 = vpop.f32.mrb[20].mxu0  ;;  %v2420_v58 = vadd.f32 %v1836_v54, %v1240_v55 }
 0x124   : > { %v1837_v59 = vpop.f32.mrb[20].mxu1  ;;  %v1798_v60 = vpop.f32.mrb[21].mxu0 }
 0x125   : > { %v1799_v61 = vadd.f32 %v1798_v60, %v1797_v57  ;;  %v1838_v62 = vpop.f32.mrb[21].mxu1  ;;  %v1800_v0 = vpop.f32.mrb[22].mxu0 }
 0x126   : > { %v1839_v1 = vadd.f32 %v1838_v62, %v1837_v59  ;;  %v1840_v3 = vpop.f32.mrb[22].mxu1  ;;  %v1801_v4 = vpop.f32.mrb[23].mxu0 }
 0x127   : > { %v1245_v5 = vadd.f32 %v1799_v61, %v1181_v13  ;;  %v1802_v6 = vadd.f32 %v1801_v4, %v1800_v0  ;;  %v1841_v7 = vpop.f32.mrb[23].mxu1 }
 0x128   : > { %v1842_v63 = vadd.f32 %v1841_v7, %v1840_v3 }
 0x129   : > { %v1248_v8 = vadd.f32 %v1802_v6, %v1184_v16  ;;  %v1309_v9 = vadd.f32 %v1839_v1, %v1245_v5 }
 0x12b   : > { %v1803_v10 = vpop.f32.mrb[24].mxu0  ;;  %v1312_v2 = vadd.f32 %v1842_v63, %v1248_v8 }
 0x12c   : > { %v1843_v11 = vpop.f32.mrb[24].mxu1  ;;  %v1804_v12 = vpop.f32.mrb[25].mxu0 }
 0x12d   : > { %v1805_v14 = vadd.f32 %v1804_v12, %v1803_v10  ;;  %v1844_v15 = vpop.f32.mrb[25].mxu1  ;;  %v1806_v17 = vpop.f32.mrb[26].mxu0 }
 0x12e   : > { %v1845_v18 = vadd.f32 %v1844_v15, %v1843_v11  ;;  %v1846_v19 = vpop.f32.mrb[26].mxu1  ;;  %v1807_v20 = vpop.f32.mrb[27].mxu0 }
 0x12f   : > { %v1253_v21 = vadd.f32 %v1805_v14, %v1189_v27  ;;  %v1808_v22 = vadd.f32 %v1807_v20, %v1806_v17  ;;  %v1847_v23 = vpop.f32.mrb[27].mxu1  ;;  %v1674_v27 = vld [vmem:[%s2445_s3] ss:$0 sm:$0xff] }
 0x130   : > { %v1848_v24 = vadd.f32 %v1847_v23, %v1846_v19 }
 0x131   : > { %v1256_v13 = vadd.f32 %v1808_v22, %v1192_v30  ;;  %v1317_v25 = vadd.f32 %v1845_v18, %v1253_v21 }
 0x133   : > { %v1809_v26 = vpop.f32.mrb[28].mxu0  ;;  %v1320_v28 = vadd.f32 %v1848_v24, %v1256_v13 }
 0x134   : > { %v1849_v16 = vpop.f32.mrb[28].mxu1  ;;  %v1810_v29 = vpop.f32.mrb[29].mxu0 }
 0x135   : > { %v1811_v31 = vadd.f32 %v1810_v29, %v1809_v26  ;;  %v1850_v32 = vpop.f32.mrb[29].mxu1  ;;  %v1812_v33 = vpop.f32.mrb[30].mxu0 }
 0x136   : > { %v1851_v34 = vadd.f32 %v1850_v32, %v1849_v16  ;;  %v1852_v35 = vpop.f32.mrb[30].mxu1  ;;  %v1813_v36 = vpop.f32.mrb[31].mxu0 }
 0x137   : > { %v1261_v37 = vadd.f32 %v1811_v31, %v1197_v41  ;;  %v1853_v38 = vpop.f32.mrb[31].mxu1 }
 0x139   : > { %v1325_v39 = vadd.f32 %v1851_v34, %v1261_v37 }
 0x13c   : > { %v1885_v40 = vpop.f32.mrb[32].mxu0  ;;  %v1889_v30 = vpop.f32.mrb[32].mxu1 }
 0x13d   : > { %v1373_v42 = vadd.f32 %v1885_v40, %v1309_v9  ;;  %v1389_v43 = vadd.f32 %v1889_v30, %v1325_v39  ;;  %v1364_v44 = vpop.f32.mrb[33].mxu0  ;;  %v1380_v45 = vpop.f32.mrb[33].mxu1 }
 0x13e   : > { %v1365_v47 = vadd.f32 %v1364_v44, %v1301_v56  ;;  %v1381_v48 = vadd.f32 %v1380_v45, %v1317_v25  ;;  %v1886_v41 = vpop.f32.mrb[34].mxu0  ;;  %v1890_v49 = vpop.f32.mrb[34].mxu1 }
 0x13f   : > { %v1403_v50 = vmul.f32 %v1674_v27, %v1373_v42  ;;  %v1407_v51 = vmul.f32 %v1674_v27, %v1389_v43  ;;  %v1376_v52 = vadd.f32 %v1886_v41, %v1312_v2  ;;  %v1367_v53 = vpop.f32.mrb[35].mxu0  ;;  %v1383_v54 = vpop.f32.mrb[35].mxu1 }
 0x140   : > { %v1401_v55 = vmul.f32 %v1674_v27, %v1365_v47  ;;  %v1405_v57 = vmul.f32 %v1674_v27, %v1381_v48  ;;  %v1368_v59 = vadd.f32 %v1367_v53, %v2420_v58  ;;  %v1384_v60 = vadd.f32 %v1383_v54, %v1320_v28 }
 0x141   : > { %v1417_v61 = vadd.f32 %v1675_v46, %v1403_v50  ;;  %v1421_v62 = vadd.f32 %v1675_v46, %v1407_v51  ;;  %v1404_v0 = vmul.f32 %v1674_v27, %v1376_v52 }
 0x142   : > { %v1415_v1 = vadd.f32 %v1675_v46, %v1401_v55  ;;  %v1419_v3 = vadd.f32 %v1675_v46, %v1405_v57  ;;  %v1402_v56 = vmul.f32 %v1674_v27, %v1368_v59  ;;  %v1406_v4 = vmul.f32 %v1674_v27, %v1384_v60 }
 0x143   : > { %v1428_v5 = vmax.f32 %v1421_v62, 0.0  ;;  %v1418_v6 = vadd.f32 %v1675_v46, %v1404_v0  ;;  %v1424_v8 = vmax.f32 %v1417_v61, 0.0 }
 0x144   : > { %v1416_v7 = vadd.f32 %v1675_v46, %v1402_v56  ;;  %v1420_v63 = vadd.f32 %v1675_v46, %v1406_v4  ;;  %v1422_v58 = vmax.f32 %v1415_v1, 0.0  ;;  %v1426_v2 = vmax.f32 %v1419_v3, 0.0 }
 0x145   : > { %v1435_v9 = vpack.c.bf16 %v1428_v5, %v1428_v5  ;;  %v1425_v10 = vmax.f32 %v1418_v6, 0.0 }
 0x146   : > { %v1423_v11 = vmax.f32 %v1416_v7, 0.0  ;;  %v1427_v12 = vmax.f32 %v1420_v63, 0.0 }
 0x147   : > { %1442 = vst [vmem:[%s266_s14 + $0x18] sm:$0xf] %v1435_v9  ;;  %v1686_v14 = vpack.c.bf16 %v1425_v10, %v1424_v8 }
 0x148   : > { %v1681_v15 = vpack.c.bf16 %v1423_v11, %v1422_v58  ;;  %v1691_v17 = vpack.c.bf16 %v1427_v12, %v1426_v2 }
 0x149   : > { %1693 = vst [vmem:[%s266_s14 + $0x8] sm:$0xff] %v1686_v14  }
 0x14a   : > { %1682 = vst [vmem:[%s266_s14] sm:$0xff] %v1681_v15   ;;  %1694 = vst [vmem:[%s266_s14 + $0x10] sm:$0xff] %v1691_v17  }
 0x14b PF: > { %s15_s20 = sadd.s32 1, %s2066_s20   ;;  %s2448_s18 = smov %s2062_s19 }
 0x14c   : > { %p12_p5 = scmp.ge.s32.totalorder %s15_s20, 4   ;;  %s2449_s19 = smov %s2451_s21 }
 0x14e   :  { %14 = sbr.rel (!%p12_p5) target bundleno = 2 (0x2), region = 76 }

// kernel: stem_v2_forward.20
= control target key start
LH: loop header
LB: loop body
LE: loop exit
PB: predicated region body
PF: predicated region fallthrough
CT: control target
= control target key end

     0   :  { %s804_s15 = smov 0   ;;  %s806_s16 = smov 0   ;;  %s904_s0 = inlined_call_operand.vmem [shape: bf16[2,7,8,256], index: 0, kind: input, shape index: {}]   ;;  %s905_s1 = inlined_call_operand.vmem [shape: bf16[256,128], index: 1, kind: input, shape index: {}]   ;;  %s906_s2 = inlined_call_operand.vmem [shape: f32[1,128], index: 2, kind: input, shape index: {}]   ;;  %s907_s3 = inlined_call_operand.vmem [shape: f32[1,128], index: 3, kind: input, shape index: {}]   ;;  %s908_s4 = inlined_call_operand.vmem [shape: bf16[2,7,8,128], index: 4, kind: output, shape index: {}]  }
   0x1   :  { %s808_s17 = smov 0  }
   0x2 LB: > { %s26_s18 = sadd.s32 1, %s773_s16  ;;  %p598_p0 = scmp.ge.s32.totalorder %s777_s17, 1  ;;  %s777_s17 = sphi %s808_s17, %s14_s17   ;;  %s773_s16 = sphi %s806_s16, %s910_s16   ;;  %s769_s15 = sphi %s804_s15, %s909_s15  }
   0x3   : > { %p28_p1 = scmp.ge.s32.totalorder %s26_s18, 2  ;;  %p176_p2 = scmp.lt.s32.totalorder %s777_s17, 3 }
   0x5   : > { %s912_s18 = smov (%p28_p1, %s26_s18), 0  ;;  %p177_p3 = pnand %p598_p0, %p176_p2 }
   0x6   : > { %v728_v0 = vld [vmem:[%s905_s1 + $0x40] sm:$0xff] (!%p177_p3)   ;;  %v730_v2 = vld [vmem:[%s905_s1 + $0x48] sm:$0xff] (!%p177_p3)   ;;  %p206_p4 = scmp.lt.s32.totalorder (!%p177_p3), %s769_s15, 1  ;;  %v732_v4 = vld [vmem:[%s905_s1 + $0x50] sm:$0xff] (!%p177_p3)  }
   0x7   : > { %180 = sbr.rel (%p177_p3) target bundleno = 274 (0x112), region = 36  ;;  %v729_v1 = vld [vmem:[%s905_s1] sm:$0xff] (!%p177_p3)   ;;  %646 = vmatprep.subr.bf16.mxu0 (!%p177_p3), %v728_v0  ;;  %686 = vmatprep.subr.bf16.mxu1 (!%p177_p3), %v728_v0  ;;  %v731_v3 = vld [vmem:[%s905_s1 + $0x8] sm:$0xff] (!%p177_p3)   ;;  %v733_v5 = vld [vmem:[%s905_s1 + $0x10] sm:$0xff] (!%p177_p3)  }
   0x8   : > { %647 = vmatpush3.bf16.msra.mxu0 (!%p177_p3), %v729_v1  ;;  %694 = vmatpush3.bf16.msra.mxu1 (!%p177_p3), %v729_v1  ;;  %v734_v6 = vld [vmem:[%s905_s1 + $0x58] sm:$0xff] (!%p177_p3)   ;;  %v736_v8 = vld [vmem:[%s905_s1 + $0x60] sm:$0xff] (!%p177_p3)   ;;  %v738_v10 = vld [vmem:[%s905_s1 + $0x68] sm:$0xff] (!%p177_p3)  }
   0x9   : > { %648 = vmatprep.subr.bf16.mxu0 (!%p177_p3), %v730_v2  ;;  %687 = vmatprep.subr.bf16.mxu1 (!%p177_p3), %v730_v2  ;;  %v735_v7 = vld [vmem:[%s905_s1 + $0x18] sm:$0xff] (!%p177_p3)   ;;  %v737_v9 = vld [vmem:[%s905_s1 + $0x20] sm:$0xff] (!%p177_p3)   ;;  %v739_v13 = vld [vmem:[%s905_s1 + $0x28] sm:$0xff] (!%p177_p3)  }
   0xa   : > { %v740_v14 = vld [vmem:[%s905_s1 + $0x70] sm:$0xff] (!%p177_p3)   ;;  %v742_v16 = vld [vmem:[%s905_s1 + $0x78] sm:$0xff] (!%p177_p3)   ;;  %v625_v28 = vld [vmem:[%s906_s2] ss:$0 sm:$0xff] (!%p177_p3) }
   0xb   : > { %v741_v15 = vld [vmem:[%s905_s1 + $0x30] sm:$0xff] (!%p177_p3)   ;;  %v743_v17 = vld [vmem:[%s905_s1 + $0x38] sm:$0xff] (!%p177_p3)   ;;  %v626_v34 = vld [vmem:[%s907_s3] ss:$0 sm:$0xff] (!%p177_p3) }
   0xc   : > { %649 = vmatpush3.bf16.msra.mxu0 (!%p177_p3), %v731_v3  ;;  %695 = vmatpush3.bf16.msra.mxu1 (!%p177_p3), %v731_v3 }
   0xd   : > { %650 = vmatprep.subr.bf16.mxu0 (!%p177_p3), %v732_v4  ;;  %688 = vmatprep.subr.bf16.mxu1 (!%p177_p3), %v732_v4 }
   0xe   : > { %s914_s15 = smov (!%p206_p4, %s769_s15), 1 }
   0xf   : > { %s702_s7 = smul.u32 56, %s914_s15 }
  0x10   : > { %651 = vmatpush3.bf16.msra.mxu0 %v733_v5  ;;  %696 = vmatpush3.bf16.msra.mxu1 %v733_v5  ;;  %s703_s11 = smul.u32 28, %s914_s15 }
  0x11   : > { %652 = vmatprep.subr.bf16.mxu0 %v734_v6  ;;  %689 = vmatprep.subr.bf16.mxu1 %v734_v6  ;;  %s855_s14 = scalar_lea.vmem %s904_s0, %s702_s7 }
  0x12   : > { %v746_v11 = vld [vmem:[%s855_s14 + $0x4] ss:$8 sps:$4 sm:$0xff]   ;;  %v232_v18 = vld [vmem:[%s855_s14 + $0x30] sm:$0xff]  ;;  %v744_v19 = vld [vmem:[%s855_s14] ss:$8 sps:$4 sm:$0xff]  }
  0x13   : > { %v749_v12 = vld [vmem:[%s855_s14 + $0x24] ss:$8 sps:$4 sm:$0xff]   ;;  %430 = vmatprep.mubr.bf16.mxu0 %v746_v11  ;;  %v747_v20 = vld [vmem:[%s855_s14 + $0x20] ss:$8 sps:$4 sm:$0xff]   ;;  %v750_v21 = vld [vmem:[%s855_s14 + $0x14] ss:$8 sps:$4 sm:$0xff]   ;;  %v608_v22 = vcombine.high %v232_v18, %v232_v18  ;;  %v607_v24 = vcombine.low %v232_v18, %v232_v18 }
  0x14   : > { %653 = vmatpush3.bf16.msra.mxu0 %v735_v7  ;;  %697 = vmatpush3.bf16.msra.mxu1 %v735_v7  ;;  %v753_v23 = vld [vmem:[%s855_s14 + $0x10] ss:$8 sps:$4 sm:$0xff]   ;;  %s219_s14 = scalar_lea.vmem %s908_s4, %s703_s11 }
  0x15   : > { %654 = vmatprep.subr.bf16.mxu0 %v736_v8  ;;  %690 = vmatprep.subr.bf16.mxu1 %v736_v8 }
  0x16   : > { %446 = vmatprep.mubr.bf16.mxu1 %v749_v12 }
  0x18   : > { %655 = vmatpush3.bf16.msra.mxu0 %v737_v9  ;;  %698 = vmatpush3.bf16.msra.mxu1 %v737_v9 }
  0x19   : > { %656 = vmatprep.subr.bf16.mxu0 %v738_v10  ;;  %691 = vmatprep.subr.bf16.mxu1 %v738_v10 }
  0x1c   : > { %657 = vmatpush3.bf16.msra.mxu0 %v739_v13  ;;  %699 = vmatpush3.bf16.msra.mxu1 %v739_v13 }
  0x1d   : > { %658 = vmatprep.subr.bf16.mxu0 %v740_v14  ;;  %692 = vmatprep.subr.bf16.mxu1 %v740_v14 }
  0x20   : > { %659 = vmatpush3.bf16.msra.mxu0 %v741_v15  ;;  %700 = vmatpush3.bf16.msra.mxu1 %v741_v15 }
  0x21   : > { %660 = vmatprep.subr.bf16.mxu0 %v742_v16  ;;  %693 = vmatprep.subr.bf16.mxu1 %v742_v16 }
  0x24   : > { %661 = vmatpush3.bf16.msra.mxu0 %v743_v17  ;;  %701 = vmatpush3.bf16.msra.mxu1 %v743_v17 }
  0x27   : > { %431 = vmatmul.mubr.bf16.vlgmr.msra.gmra.mrb[0].mxu0 %v744_v19  ;;  %447 = vmatmul.mubr.bf16.vlgmr.msra.gmra.mrb[0].mxu1 %v747_v20 }
  0x28   : > { %438 = vmatprep.mubr.bf16.mxu0 %v750_v21  ;;  %454 = vmatprep.mubr.bf16.mxu1 %v608_v22 }
  0x2f   : > { %439 = vmatmul.mubr.bf16.gmra.mrb[4].mxu0 %v753_v23  ;;  %455 = vmatmul.mubr.bf16.gmra.mrb[4].mxu1 %v607_v24 }
  0xfa   : > { %v662_v25 = vpop.f32.mrb[0].mxu0  ;;  %v674_v26 = vpop.f32.mrb[0].mxu1 }
  0xfb   : > { %v663_v27 = vpop.f32.mrb[1].mxu0  ;;  %v675_v29 = vpop.f32.mrb[1].mxu1 }
  0xfc   : > { %v664_v30 = vadd.f32 %v663_v27, %v662_v25  ;;  %v676_v31 = vadd.f32 %v675_v29, %v674_v26  ;;  %v665_v32 = vpop.f32.mrb[2].mxu0  ;;  %v677_v33 = vpop.f32.mrb[2].mxu1 }
  0xfd   : > { %v666_v35 = vpop.f32.mrb[3].mxu0  ;;  %v678_v36 = vpop.f32.mrb[3].mxu1 }
  0xfe   : > { %v469_v37 = vmul.f32 %v664_v30, %v625_v28  ;;  %v473_v38 = vmul.f32 %v676_v31, %v625_v28  ;;  %v667_v39 = vadd.f32 %v666_v35, %v665_v32  ;;  %v679_v40 = vadd.f32 %v678_v36, %v677_v33 }
 0x100   : > { %v483_v41 = vadd.f32 %v626_v34, %v469_v37  ;;  %v487_v42 = vadd.f32 %v626_v34, %v473_v38  ;;  %v470_v43 = vmul.f32 %v667_v39, %v625_v28  ;;  %v474_v44 = vmul.f32 %v679_v40, %v625_v28 }
 0x102   : > { %v494_v45 = vmax.f32 %v487_v42, 0.0  ;;  %v484_v46 = vadd.f32 %v626_v34, %v470_v43  ;;  %v488_v47 = vadd.f32 %v626_v34, %v474_v44  ;;  %v668_v48 = vpop.f32.mrb[4].mxu0  ;;  %v680_v49 = vpop.f32.mrb[4].mxu1  ;;  %v490_v50 = vmax.f32 %v483_v41, 0.0 }
 0x103   : > { %v669_v51 = vpop.f32.mrb[5].mxu0  ;;  %v681_v52 = vpop.f32.mrb[5].mxu1 }
 0x104   : > { %v491_v53 = vmax.f32 %v484_v46, 0.0  ;;  %v495_v54 = vmax.f32 %v488_v47, 0.0  ;;  %v670_v55 = vadd.f32 %v669_v51, %v668_v48  ;;  %v682_v56 = vadd.f32 %v681_v52, %v680_v49  ;;  %v671_v57 = vpop.f32.mrb[6].mxu0  ;;  %v683_v58 = vpop.f32.mrb[6].mxu1 }
 0x105   : > { %v672_v59 = vpop.f32.mrb[7].mxu0  ;;  %v684_v60 = vpop.f32.mrb[7].mxu1 }
 0x106   : > { %v632_v61 = vpack.c.bf16 %v491_v53, %v490_v50  ;;  %v642_v62 = vpack.c.bf16 %v495_v54, %v494_v45  ;;  %v471_v63 = vmul.f32 %v670_v55, %v625_v28  ;;  %v475_v0 = vmul.f32 %v682_v56, %v625_v28 }
 0x107   : > { %v673_v1 = vadd.f32 %v672_v59, %v671_v57 }
 0x108   : > { %633 = vst [vmem:[%s219_s14] sm:$0xff] %v632_v61   ;;  %645 = vst [vmem:[%s219_s14 + $0x10] sm:$0xff] %v642_v62   ;;  %v489_v2 = vadd.f32 %v626_v34, %v475_v0  ;;  %v485_v3 = vadd.f32 %v626_v34, %v471_v63 }
 0x109   : > { %v472_v4 = vmul.f32 %v673_v1, %v625_v28 }
 0x10a   : > { %v496_v5 = vmax.f32 %v489_v2, 0.0  ;;  %v492_v8 = vmax.f32 %v485_v3, 0.0 }
 0x10b   : > { %v486_v6 = vadd.f32 %v626_v34, %v472_v4 }
 0x10c   : > { %v503_v7 = vpack.c.bf16 %v496_v5, %v496_v5 }
 0x10d   : > { %v493_v9 = vmax.f32 %v486_v6, 0.0 }
 0x10e   : > { %510 = vst [vmem:[%s219_s14 + $0x18] sm:$0xf] %v503_v7 }
 0x10f   : > { %v637_v10 = vpack.c.bf16 %v493_v9, %v492_v8 }
 0x111   : > { %644 = vst [vmem:[%s219_s14 + $0x8] sm:$0xff] %v637_v10  }
 0x112 PF: > { %s14_s17 = sadd.s32 1, %s777_s17   ;;  %s909_s15 = smov %s773_s16 }
 0x113   : > { %p11_p5 = scmp.ge.s32.totalorder %s14_s17, 4   ;;  %s910_s16 = smov %s912_s18 }
 0x115   :  { %13 = sbr.rel (!%p11_p5) target bundleno = 2 (0x2), region = 67 }

// kernel: stem_v2_forward.21
= control target key start
LH: loop header
LB: loop body
LE: loop exit
PB: predicated region body
PF: predicated region fallthrough
CT: control target
= control target key end

     0   :  { %s1775_s15 = smov 0   ;;  %s1777_s16 = smov 0   ;;  %s2044_s0 = inlined_call_operand.vmem [shape: bf16[2,13,8,128], index: 0, kind: input, shape index: {}]   ;;  %s2045_s1 = inlined_call_operand.vmem [shape: bf16[896,128], index: 1, kind: input, shape index: {}]   ;;  %s2046_s2 = inlined_call_operand.vmem [shape: f32[1,128], index: 2, kind: input, shape index: {}]   ;;  %s2047_s3 = inlined_call_operand.vmem [shape: f32[1,128], index: 3, kind: input, shape index: {}]   ;;  %s2048_s4 = inlined_call_operand.vmem [shape: bf16[2,7,8,128], index: 4, kind: output, shape index: {}]  }
   0x1   :  { %s1779_s17 = smov 0  }
   0x2 LB: > { %s26_s18 = sadd.s32 1, %s1744_s16  ;;  %p1310_p0 = scmp.ge.s32.totalorder %s1748_s17, 1  ;;  %s1748_s17 = sphi %s1779_s17, %s14_s17   ;;  %s1744_s16 = sphi %s1777_s16, %s2050_s16   ;;  %s1740_s15 = sphi %s1775_s15, %s2049_s15  }
   0x3   : > { %p28_p1 = scmp.ge.s32.totalorder %s26_s18, 2  ;;  %p176_p2 = scmp.lt.s32.totalorder %s1748_s17, 3 }
   0x5   : > { %s2052_s18 = smov (%p28_p1, %s26_s18), 0  ;;  %p177_p3 = pnand %p1310_p0, %p176_p2 }
   0x6   : > { %v1642_v0 = vld [vmem:[%s2045_s1 + $0x40] sm:$0xff] (!%p177_p3)   ;;  %v1646_v4 = vld [vmem:[%s2045_s1 + $0x48] sm:$0xff] (!%p177_p3)   ;;  %v1650_v8 = vld [vmem:[%s2045_s1 + $0x50] sm:$0xff] (!%p177_p3)   ;;  %p206_p4 = scmp.lt.s32.totalorder (!%p177_p3), %s1740_s15, 1 }
   0x7   : > { %180 = sbr.rel (%p177_p3) target bundleno = 324 (0x144), region = 36  ;;  %v1643_v1 = vld [vmem:[%s2045_s1 + $0xc0] sm:$0xff] (!%p177_p3)   ;;  %1460 = vmatprep.subr.bf16.mxu0 (!%p177_p3), %v1642_v0  ;;  %v1647_v5 = vld [vmem:[%s2045_s1 + $0xc8] sm:$0xff] (!%p177_p3)   ;;  %v1651_v9 = vld [vmem:[%s2045_s1 + $0xd0] sm:$0xff] (!%p177_p3)  }
   0x8   : > { %v1644_v2 = vld [vmem:[%s2045_s1] sm:$0xff] (!%p177_p3)   ;;  %1500 = vmatprep.subr.bf16.mxu1 (!%p177_p3), %v1643_v1  ;;  %v1648_v6 = vld [vmem:[%s2045_s1 + $0x8] sm:$0xff] (!%p177_p3)   ;;  %v1652_v10 = vld [vmem:[%s2045_s1 + $0x10] sm:$0xff] (!%p177_p3)  }
   0x9   : > { %v1645_v3 = vld [vmem:[%s2045_s1 + $0x80] sm:$0xff] (!%p177_p3)   ;;  %1461 = vmatpush3.bf16.msra.mxu0 (!%p177_p3), %v1644_v2  ;;  %v1649_v7 = vld [vmem:[%s2045_s1 + $0x88] sm:$0xff] (!%p177_p3)   ;;  %v1653_v11 = vld [vmem:[%s2045_s1 + $0x90] sm:$0xff] (!%p177_p3)  }
   0xa   : > { %1501 = vmatpush3.bf16.msra.mxu1 (!%p177_p3), %v1645_v3  ;;  %1462 = vmatprep.subr.bf16.mxu0 (!%p177_p3), %v1646_v4  ;;  %v1654_v12 = vld [vmem:[%s2045_s1 + $0x58] sm:$0xff] (!%p177_p3)   ;;  %v1658_v16 = vld [vmem:[%s2045_s1 + $0x60] sm:$0xff] (!%p177_p3)   ;;  %v1662_v20 = vld [vmem:[%s2045_s1 + $0x68] sm:$0xff] (!%p177_p3)  }
   0xb   : > { %1502 = vmatprep.subr.bf16.mxu1 (!%p177_p3), %v1647_v5  ;;  %v1655_v13 = vld [vmem:[%s2045_s1 + $0xd8] sm:$0xff] (!%p177_p3)   ;;  %v1659_v17 = vld [vmem:[%s2045_s1 + $0xe0] sm:$0xff] (!%p177_p3)   ;;  %v1663_v21 = vld [vmem:[%s2045_s1 + $0xe8] sm:$0xff] (!%p177_p3)  }
   0xc   : > { %v1656_v14 = vld [vmem:[%s2045_s1 + $0x18] sm:$0xff] (!%p177_p3)   ;;  %v1660_v18 = vld [vmem:[%s2045_s1 + $0x20] sm:$0xff] (!%p177_p3)   ;;  %v1664_v22 = vld [vmem:[%s2045_s1 + $0x28] sm:$0xff] (!%p177_p3)  }
   0xd   : > { %1463 = vmatpush3.bf16.msra.mxu0 (!%p177_p3), %v1648_v6  ;;  %v1657_v15 = vld [vmem:[%s2045_s1 + $0x98] sm:$0xff] (!%p177_p3)   ;;  %v1661_v19 = vld [vmem:[%s2045_s1 + $0xa0] sm:$0xff] (!%p177_p3)   ;;  %v1665_v23 = vld [vmem:[%s2045_s1 + $0xa8] sm:$0xff] (!%p177_p3)  }
   0xe   : > { %1503 = vmatpush3.bf16.msra.mxu1 %v1649_v7  ;;  %1464 = vmatprep.subr.bf16.mxu0 %v1650_v8  ;;  %s2054_s15 = smov (!%p206_p4, %s1740_s15), 1  ;;  %v1666_v24 = vld [vmem:[%s2045_s1 + $0x70] sm:$0xff]   ;;  %v1670_v28 = vld [vmem:[%s2045_s1 + $0x78] sm:$0xff]   ;;  %v1678_v36 = vld [vmem:[%s2045_s1 + $0x140] sm:$0xff]  }
   0xf   : > { %1504 = vmatprep.subr.bf16.mxu1 %v1651_v9  ;;  %v1667_v25 = vld [vmem:[%s2045_s1 + $0xf0] sm:$0xff]   ;;  %s1616_s27 = smul.u32 52, %s2054_s15  ;;  %v1671_v29 = vld [vmem:[%s2045_s1 + $0xf8] sm:$0xff]   ;;  %v1679_v37 = vld [vmem:[%s2045_s1 + $0x100] sm:$0xff]  }
  0x10   : > { %v1668_v26 = vld [vmem:[%s2045_s1 + $0x30] sm:$0xff]   ;;  %v1672_v30 = vld [vmem:[%s2045_s1 + $0x38] sm:$0xff]   ;;  %v1680_v38 = vld [vmem:[%s2045_s1 + $0x148] sm:$0xff]   ;;  %s1617_s30 = smul.u32 28, %s2054_s15 }
  0x11   : > { %1465 = vmatpush3.bf16.msra.mxu0 %v1652_v10  ;;  %v1669_v27 = vld [vmem:[%s2045_s1 + $0xb0] sm:$0xff]   ;;  %s1893_s12 = scalar_lea.vmem %s2044_s0, %s1616_s27  ;;  %v1673_v31 = vld [vmem:[%s2045_s1 + $0xb8] sm:$0xff]   ;;  %v1681_v39 = vld [vmem:[%s2045_s1 + $0x180] sm:$0xff]  }
  0x12   : > { %1505 = vmatpush3.bf16.msra.mxu1 %v1653_v11  ;;  %1466 = vmatprep.subr.bf16.mxu0 %v1654_v12  ;;  %v1674_v32 = vld [vmem:[%s1893_s12 + $0x4] sm:$0xff]   ;;  %v1675_v33 = vld [vmem:[%s1893_s12 + $0xc] sm:$0xff]   ;;  %v1684_v42 = vld [vmem:[%s1893_s12 + $0x14] sm:$0xff]   ;;  %s2021_s7 = scalar_lea.vmem %s2048_s4, %s1617_s30 }
  0x13   : > { %1506 = vmatprep.subr.bf16.mxu1 %v1655_v13  ;;  %926 = vmatprep.mubr.bf16.mxu0 %v1674_v32  ;;  %v1676_v34 = vld [vmem:[%s1893_s12] sm:$0xff]   ;;  %v1677_v35 = vld [vmem:[%s1893_s12 + $0x8] sm:$0xff]   ;;  %v1686_v44 = vld [vmem:[%s1893_s12 + $0x10] sm:$0xff]  }
  0x14   : > { %990 = vmatprep.mubr.bf16.mxu1 %v1675_v33  ;;  %v1682_v40 = vld [vmem:[%s2045_s1 + $0x108] sm:$0xff]   ;;  %v1687_v45 = vld [vmem:[%s2045_s1 + $0x150] sm:$0xff]   ;;  %v1690_v48 = vld [vmem:[%s2045_s1 + $0x158] sm:$0xff]  }
  0x15   : > { %1467 = vmatpush3.bf16.msra.mxu0 %v1656_v14  ;;  %v1683_v41 = vld [vmem:[%s1893_s12 + $0xc] sm:$0xff]   ;;  %v1692_v50 = vld [vmem:[%s2045_s1 + $0x118] sm:$0xff]   ;;  %v1697_v55 = vld [vmem:[%s2045_s1 + $0x160] sm:$0xff]  }
  0x16   : > { %1507 = vmatpush3.bf16.msra.mxu1 %v1657_v15  ;;  %1468 = vmatprep.subr.bf16.mxu0 %v1658_v16  ;;  %v1685_v43 = vld [vmem:[%s1893_s12 + $0x8] sm:$0xff]   ;;  %v1689_v47 = vld [vmem:[%s2045_s1 + $0x110] sm:$0xff]   ;;  %v1694_v52 = vld [vmem:[%s1893_s12 + $0x1c] sm:$0xff]  }
  0x17   : > { %1508 = vmatprep.subr.bf16.mxu1 %v1659_v17  ;;  %v1688_v46 = vld [vmem:[%s2045_s1 + $0x188] sm:$0xff]   ;;  %v1691_v49 = vld [vmem:[%s2045_s1 + $0x190] sm:$0xff]   ;;  %v1696_v54 = vld [vmem:[%s1893_s12 + $0x18] sm:$0xff]  }
  0x18   : > { %v1693_v51 = vld [vmem:[%s1893_s12 + $0x14] sm:$0xff]   ;;  %v1699_v57 = vld [vmem:[%s2045_s1 + $0x120] sm:$0xff]   ;;  %v1700_v58 = vld [vmem:[%s2045_s1 + $0x168] sm:$0xff]  }
  0x19   : > { %1469 = vmatpush3.bf16.msra.mxu0 %v1660_v18  ;;  %v1695_v53 = vld [vmem:[%s1893_s12 + $0x10] sm:$0xff]   ;;  %v1698_v56 = vld [vmem:[%s2045_s1 + $0x198] sm:$0xff]   ;;  %v1701_v59 = vld [vmem:[%s2045_s1 + $0x1a0] sm:$0xff]  }
  0x1a   : > { %1509 = vmatpush3.bf16.msra.mxu1 %v1661_v19  ;;  %1470 = vmatprep.subr.bf16.mxu0 %v1662_v20  ;;  %v1702_v60 = vld [vmem:[%s2045_s1 + $0x128] sm:$0xff]   ;;  %v1703_v61 = vld [vmem:[%s1893_s12 + $0x1c] ss:$0 sps:$4 sm:$0xff]   ;;  %v1704_v62 = vld [vmem:[%s1893_s12 + $0x24] ss:$0 sps:$4 sm:$0xff]  }
  0x1b   : > { %1510 = vmatprep.subr.bf16.mxu1 %v1663_v21  ;;  %v1705_v63 = vld [vmem:[%s1893_s12 + $0x18] ss:$0 sps:$4 sm:$0xff]   ;;  %v1706_v0 = vld [vmem:[%s1893_s12 + $0x20] ss:$0 sps:$4 sm:$0xff]   ;;  %v1707_v1 = vld [vmem:[%s2045_s1 + $0x170] sm:$0xff]  }
  0x1c   : > { %v1708_v2 = vld [vmem:[%s2045_s1 + $0x1a8] sm:$0xff]   ;;  %v1709_v3 = vld [vmem:[%s2045_s1 + $0x130] sm:$0xff]   ;;  %v1710_v4 = vld [vmem:[%s2045_s1 + $0x178] sm:$0xff]  }
  0x1d   : > { %1471 = vmatpush3.bf16.msra.mxu0 %v1664_v22  ;;  %v1711_v5 = vld [vmem:[%s2045_s1 + $0x1b0] sm:$0xff]   ;;  %v1712_v6 = vld [vmem:[%s2045_s1 + $0x138] sm:$0xff]   ;;  %v1717_v11 = vld [vmem:[%s1893_s12 + $0x20] sm:$0xff]  }
  0x1e   : > { %1511 = vmatpush3.bf16.msra.mxu1 %v1665_v23  ;;  %1472 = vmatprep.subr.bf16.mxu0 %v1666_v24  ;;  %v1713_v7 = vld [vmem:[%s1893_s12 + $0x14] sm:$0xff]   ;;  %v1718_v12 = vld [vmem:[%s1893_s12 + $0x1c] sm:$0xff]   ;;  %v1722_v14 = vld [vmem:[%s1893_s12 + $0x28] sm:$0xff]  }
  0x1f   : > { %1512 = vmatprep.subr.bf16.mxu1 %v1667_v25  ;;  %v1714_v8 = vld [vmem:[%s1893_s12 + $0x10] sm:$0xff]   ;;  %v1715_v9 = vld [vmem:[%s2045_s1 + $0x1b8] sm:$0xff]   ;;  %v1720_v15 = vld [vmem:[%s1893_s12 + $0x24] sm:$0xff]  }
  0x20   : > { %v1716_v10 = vld [vmem:[%s1893_s12 + $0x18] sm:$0xff]   ;;  %v1723_v16 = vld [vmem:[%s1893_s12 + $0x30] ss:$0 sps:$4 sm:$0xff]   ;;  %v1721_v17 = vld [vmem:[%s1893_s12 + $0x20] sm:$0xff]  }
  0x21   : > { %1473 = vmatpush3.bf16.msra.mxu0 %v1668_v26  ;;  %v1719_v13 = vld [vmem:[%s1893_s12 + $0x18] sm:$0xff]   ;;  %v1724_v18 = vld [vmem:[%s1893_s12 + $0x2c] ss:$0 sps:$4 sm:$0xff]   ;;  %v1725_v19 = vld [vmem:[%s1893_s12 + $0x28] ss:$0 sps:$4 sm:$0xff]  }
  0x22   : > { %1513 = vmatpush3.bf16.msra.mxu1 %v1669_v27  ;;  %1474 = vmatprep.subr.bf16.mxu0 %v1670_v28 }
  0x23   : > { %1514 = vmatprep.subr.bf16.mxu1 %v1671_v29 }
  0x25   : > { %1475 = vmatpush3.bf16.msra.mxu0 %v1672_v30 }
  0x26   : > { %1515 = vmatpush3.bf16.msra.mxu1 %v1673_v31  ;;  %1540 = vmatprep.subr.bf16.mxu0 %v1678_v36 }
  0x27   : > { %1592 = vmatprep.subr.bf16.mxu1 %v1681_v39 }
  0x28   : > { %927 = vmatmul.mubr.bf16.vlgmr.msra.gmra.mrb[0].mxu0 %v1676_v34 }
  0x29   : > { %991 = vmatmul.mubr.bf16.vlgmr.msra.gmra.mrb[0].mxu1 %v1677_v35  ;;  %1541 = vmatpush3.bf16.msra.mxu0 %v1679_v37 }
  0x2a   : > { %1542 = vmatprep.subr.bf16.mxu0 %v1680_v38  ;;  %1593 = vmatpush3.bf16.msra.mxu1 %v1681_v39 }
  0x2b   : > { %934 = vmatprep.mubr.bf16.mxu0 %v1683_v41  ;;  %998 = vmatprep.mubr.bf16.mxu1 %v1684_v42 }
  0x2c   : > { %1594 = vmatprep.subr.bf16.mxu1 %v1688_v46 }
  0x2d   : > { %1543 = vmatpush3.bf16.msra.mxu0 %v1682_v40 }
  0x2e   : > { %1544 = vmatprep.subr.bf16.mxu0 %v1687_v45  ;;  %1595 = vmatpush3.bf16.msra.mxu1 %v1688_v46 }
  0x2f   : > { %1596 = vmatprep.subr.bf16.mxu1 %v1691_v49 }
  0x30   : > { %935 = vmatmul.mubr.bf16.gmra.mrb[4].mxu0 %v1685_v43 }
  0x31   : > { %999 = vmatmul.mubr.bf16.gmra.mrb[4].mxu1 %v1686_v44  ;;  %1545 = vmatpush3.bf16.msra.mxu0 %v1689_v47 }
  0x32   : > { %1546 = vmatprep.subr.bf16.mxu0 %v1690_v48  ;;  %1597 = vmatpush3.bf16.msra.mxu1 %v1691_v49 }
  0x33   : > { %942 = vmatprep.mubr.bf16.mxu0 %v1693_v51  ;;  %1006 = vmatprep.mubr.bf16.mxu1 %v1694_v52 }
  0x34   : > { %1598 = vmatprep.subr.bf16.mxu1 %v1698_v56 }
  0x35   : > { %1547 = vmatpush3.bf16.msra.mxu0 %v1692_v50 }
  0x36   : > { %1548 = vmatprep.subr.bf16.mxu0 %v1697_v55  ;;  %1599 = vmatpush3.bf16.msra.mxu1 %v1698_v56 }
  0x37   : > { %1600 = vmatprep.subr.bf16.mxu1 %v1701_v59 }
  0x38   : > { %943 = vmatmul.mubr.bf16.gmra.mrb[8].mxu0 %v1695_v53 }
  0x39   : > { %1007 = vmatmul.mubr.bf16.gmra.mrb[8].mxu1 %v1696_v54  ;;  %1549 = vmatpush3.bf16.msra.mxu0 %v1699_v57 }
  0x3a   : > { %1550 = vmatprep.subr.bf16.mxu0 %v1700_v58  ;;  %1601 = vmatpush3.bf16.msra.mxu1 %v1701_v59 }
  0x3b   : > { %950 = vmatprep.mubr.bf16.mxu0 %v1703_v61  ;;  %1014 = vmatprep.mubr.bf16.mxu1 %v1704_v62 }
  0x3c   : > { %1602 = vmatprep.subr.bf16.mxu1 %v1708_v2 }
  0x3d   : > { %1551 = vmatpush3.bf16.msra.mxu0 %v1702_v60 }
  0x3e   : > { %1552 = vmatprep.subr.bf16.mxu0 %v1707_v1  ;;  %1603 = vmatpush3.bf16.msra.mxu1 %v1708_v2 }
  0x3f   : > { %1604 = vmatprep.subr.bf16.mxu1 %v1711_v5 }
  0x40   : > { %951 = vmatmul.mubr.bf16.gmra.mrb[12].mxu0 %v1705_v63 }
  0x41   : > { %1015 = vmatmul.mubr.bf16.gmra.mrb[12].mxu1 %v1706_v0  ;;  %1553 = vmatpush3.bf16.msra.mxu0 %v1709_v3 }
  0x42   : > { %1554 = vmatprep.subr.bf16.mxu0 %v1710_v4  ;;  %1605 = vmatpush3.bf16.msra.mxu1 %v1711_v5 }
  0x43   : > { %1054 = vmatprep.mubr.bf16.mxu0 %v1713_v7  ;;  %1606 = vmatprep.subr.bf16.mxu1 %v1715_v9 }
  0x44   : > { %1608 = vmatprep.mubr.bf16.mxu1 %v1716_v10 }
  0x45   : > { %1555 = vmatpush3.bf16.msra.mxu0 %v1712_v6 }
  0x46   : > { %1607 = vmatpush3.bf16.msra.mxu1 %v1715_v9 }
  0x48   : > { %1055 = vmatmul.mubr.bf16.vlgmr.msra.gmra.mrb[16].mxu0 %v1714_v8 }
  0x49   : > { %1062 = vmatprep.mubr.bf16.mxu0 %v1718_v12  ;;  %1609 = vmatmul.mubr.bf16.vlgmr.msra.gmra.mrb[16].mxu1 %v1717_v11 }
  0x4a   : > { %1612 = vmatprep.mubr.bf16.mxu1 %v1722_v14 }
  0x50   : > { %1063 = vmatmul.mubr.bf16.gmra.mrb[20].mxu0 %v1719_v13 }
  0x51   : > { %1070 = vmatprep.mubr.bf16.mxu0 %v1720_v15  ;;  %1613 = vmatmul.mubr.bf16.gmra.mrb[20].mxu1 %v1723_v16 }
  0x58   : > { %1071 = vmatmul.mubr.bf16.gmra.mrb[24].mxu0 %v1721_v17 }
  0x59   : > { %1078 = vmatprep.mubr.bf16.mxu0 %v1724_v18  ;;  %v2010_v18 = vld [vmem:[%s2046_s2] ss:$0 sm:$0xff] }
  0x60   : > { %1079 = vmatmul.mubr.bf16.gmra.mrb[28].mxu0 %v1725_v19 }
  0xfb   : > { %v1476_v20 = vpop.f32.mrb[0].mxu0 }
  0xfc   : > { %v1516_v21 = vpop.f32.mrb[0].mxu1  ;;  %v1477_v22 = vpop.f32.mrb[1].mxu0 }
  0xfd   : > { %v1478_v23 = vadd.f32 %v1477_v22, %v1476_v20  ;;  %v1517_v24 = vpop.f32.mrb[1].mxu1  ;;  %v1479_v25 = vpop.f32.mrb[2].mxu0  ;;  %v1440_v22 = vld [vmem:[%s2047_s3] ss:$0 sm:$0xff] }
  0xfe   : > { %v1518_v26 = vadd.f32 %v1517_v24, %v1516_v21  ;;  %v1519_v27 = vpop.f32.mrb[2].mxu1  ;;  %v1480_v28 = vpop.f32.mrb[3].mxu0 }
  0xff   : > { %v1481_v29 = vadd.f32 %v1480_v28, %v1479_v25  ;;  %v1520_v30 = vpop.f32.mrb[3].mxu1 }
 0x100   : > { %v993_v31 = vadd.f32 %v1518_v26, %v1478_v23  ;;  %v1521_v32 = vadd.f32 %v1520_v30, %v1519_v27 }
 0x102   : > { %v996_v33 = vadd.f32 %v1521_v32, %v1481_v29 }
 0x103   : > { %v1482_v34 = vpop.f32.mrb[4].mxu0 }
 0x104   : > { %v1522_v35 = vpop.f32.mrb[4].mxu1  ;;  %v1483_v36 = vpop.f32.mrb[5].mxu0 }
 0x105   : > { %v1484_v37 = vadd.f32 %v1483_v36, %v1482_v34  ;;  %v1523_v38 = vpop.f32.mrb[5].mxu1  ;;  %v1485_v39 = vpop.f32.mrb[6].mxu0 }
 0x106   : > { %v1524_v40 = vadd.f32 %v1523_v38, %v1522_v35  ;;  %v1525_v41 = vpop.f32.mrb[6].mxu1  ;;  %v1486_v42 = vpop.f32.mrb[7].mxu0 }
 0x107   : > { %v1487_v43 = vadd.f32 %v1486_v42, %v1485_v39  ;;  %v1526_v44 = vpop.f32.mrb[7].mxu1 }
 0x108   : > { %v1001_v45 = vadd.f32 %v1524_v40, %v1484_v37  ;;  %v1527_v46 = vadd.f32 %v1526_v44, %v1525_v41 }
 0x10a   : > { %v1004_v47 = vadd.f32 %v1527_v46, %v1487_v43 }
 0x10b   : > { %v1488_v48 = vpop.f32.mrb[8].mxu0 }
 0x10c   : > { %v1528_v49 = vpop.f32.mrb[8].mxu1  ;;  %v1489_v50 = vpop.f32.mrb[9].mxu0 }
 0x10d   : > { %v1490_v51 = vadd.f32 %v1489_v50, %v1488_v48  ;;  %v1529_v52 = vpop.f32.mrb[9].mxu1  ;;  %v1491_v53 = vpop.f32.mrb[10].mxu0 }
 0x10e   : > { %v1530_v54 = vadd.f32 %v1529_v52, %v1528_v49  ;;  %v1531_v55 = vpop.f32.mrb[10].mxu1  ;;  %v1492_v56 = vpop.f32.mrb[11].mxu0 }
 0x10f   : > { %v1493_v57 = vadd.f32 %v1492_v56, %v1491_v53  ;;  %v1532_v58 = vpop.f32.mrb[11].mxu1 }
 0x110   : > { %v2001_v59 = vadd.f32 %v1530_v54, %v1490_v51  ;;  %v1533_v60 = vadd.f32 %v1532_v58, %v1531_v55 }
 0x112   : > { %v2003_v61 = vadd.f32 %v1533_v60, %v1493_v57 }
 0x113   : > { %v1494_v62 = vpop.f32.mrb[12].mxu0 }
 0x114   : > { %v1534_v63 = vpop.f32.mrb[12].mxu1  ;;  %v1495_v0 = vpop.f32.mrb[13].mxu0 }
 0x115   : > { %v1535_v1 = vpop.f32.mrb[13].mxu1  ;;  %v1496_v2 = vadd.f32 %v1495_v0, %v1494_v62  ;;  %v1497_v4 = vpop.f32.mrb[14].mxu0 }
 0x116   : > { %v1536_v3 = vadd.f32 %v1535_v1, %v1534_v63  ;;  %v1537_v5 = vpop.f32.mrb[14].mxu1  ;;  %v1498_v6 = vpop.f32.mrb[15].mxu0 }
 0x117   : > { %v1538_v7 = vpop.f32.mrb[15].mxu1 }
 0x118   : > { %v2005_v8 = vadd.f32 %v1536_v3, %v1496_v2 }
 0x11b   : > { %v1556_v9 = vpop.f32.mrb[16].mxu0 }
 0x11c   : > { %v1557_v10 = vpop.f32.mrb[17].mxu0  ;;  %v1610_v15 = vpop.f32.mrb[16].mxu1 }
 0x11d   : > { %v1558_v11 = vadd.f32 %v1557_v10, %v1556_v9  ;;  %v1559_v12 = vpop.f32.mrb[18].mxu0  ;;  %v1120_v17 = vpop.f32.mrb[17].mxu1 }
 0x11e   : > { %v1560_v13 = vpop.f32.mrb[19].mxu0  ;;  %v1611_v20 = vpop.f32.mrb[18].mxu1 }
 0x11f   : > { %v1561_v14 = vadd.f32 %v1560_v13, %v1559_v12  ;;  %v1057_v16 = vadd.f32 %v1558_v11, %v993_v31  ;;  %v1123_v23 = vpop.f32.mrb[19].mxu1 }
 0x121   : > { %v1121_v19 = vadd.f32 %v1120_v17, %v1057_v16  ;;  %v1060_v21 = vadd.f32 %v1561_v14, %v996_v33 }
 0x123   : > { %v1157_v24 = vmul.f32 %v2010_v18, %v1121_v19  ;;  %v1124_v25 = vadd.f32 %v1123_v23, %v1060_v21  ;;  %v1562_v26 = vpop.f32.mrb[20].mxu0 }
 0x124   : > { %v1563_v27 = vpop.f32.mrb[21].mxu0  ;;  %v1614_v36 = vpop.f32.mrb[20].mxu1 }
 0x125   : > { %v1171_v28 = vadd.f32 %v1440_v22, %v1157_v24  ;;  %v1158_v29 = vmul.f32 %v2010_v18, %v1124_v25  ;;  %v1564_v30 = vadd.f32 %v1563_v27, %v1562_v26  ;;  %v1565_v31 = vpop.f32.mrb[22].mxu0  ;;  %v1136_v37 = vpop.f32.mrb[21].mxu1 }
 0x126   : > { %v1566_v32 = vpop.f32.mrb[23].mxu0  ;;  %v1615_v42 = vpop.f32.mrb[22].mxu1 }
 0x127   : > { %v1172_v34 = vadd.f32 %v1440_v22, %v1158_v29  ;;  %v1065_v35 = vadd.f32 %v1564_v30, %v1001_v45  ;;  %v1567_v33 = vadd.f32 %v1566_v32, %v1565_v31  ;;  %v1178_v38 = vmax.f32 %v1171_v28, 0.0  ;;  %v1139_v43 = vpop.f32.mrb[23].mxu1 }
 0x129   : > { %v1179_v39 = vmax.f32 %v1172_v34, 0.0  ;;  %v1129_v40 = vadd.f32 %v1610_v15, %v1065_v35  ;;  %v1068_v41 = vadd.f32 %v1567_v33, %v1004_v47 }
 0x12b   : > { %v1446_v44 = vpack.c.bf16 %v1179_v39, %v1178_v38  ;;  %v1159_v46 = vmul.f32 %v2010_v18, %v1129_v40  ;;  %v1132_v48 = vadd.f32 %v1611_v20, %v1068_v41  ;;  %v1568_v45 = vpop.f32.mrb[24].mxu0 }
 0x12c   : > { %v1569_v49 = vpop.f32.mrb[25].mxu0 }
 0x12d   : > { %1447 = vst [vmem:[%s2021_s7] sm:$0xff] %v1446_v44   ;;  %v1173_v50 = vadd.f32 %v1440_v22, %v1159_v46  ;;  %v1160_v51 = vmul.f32 %v2010_v18, %v1132_v48  ;;  %v1570_v47 = vadd.f32 %v1569_v49, %v1568_v45  ;;  %v1571_v52 = vpop.f32.mrb[26].mxu0 }
 0x12e   : > { %v1572_v53 = vpop.f32.mrb[27].mxu0 }
 0x12f   : > { %v1174_v54 = vadd.f32 %v1440_v22, %v1160_v51  ;;  %v1573_v55 = vadd.f32 %v1572_v53, %v1571_v52  ;;  %v1073_v56 = vadd.f32 %v1570_v47, %v2001_v59  ;;  %v1180_v57 = vmax.f32 %v1173_v50, 0.0 }
 0x131   : > { %v1181_v58 = vmax.f32 %v1174_v54, 0.0  ;;  %v1137_v60 = vadd.f32 %v1136_v37, %v1073_v56  ;;  %v1076_v62 = vadd.f32 %v1573_v55, %v2003_v61 }
 0x133   : > { %v1451_v63 = vpack.c.bf16 %v1181_v58, %v1180_v57  ;;  %v1161_v0 = vmul.f32 %v2010_v18, %v1137_v60  ;;  %v1140_v1 = vadd.f32 %v1139_v43, %v1076_v62  ;;  %v1574_v2 = vpop.f32.mrb[28].mxu0 }
 0x134   : > { %v1575_v3 = vpop.f32.mrb[29].mxu0 }
 0x135   : > { %1458 = vst [vmem:[%s2021_s7 + $0x8] sm:$0xff] %v1451_v63   ;;  %v1175_v4 = vadd.f32 %v1440_v22, %v1161_v0  ;;  %v1162_v5 = vmul.f32 %v2010_v18, %v1140_v1  ;;  %v1576_v6 = vadd.f32 %v1575_v3, %v1574_v2  ;;  %v1577_v7 = vpop.f32.mrb[30].mxu0 }
 0x136   : > { %v1578_v59 = vpop.f32.mrb[31].mxu0 }
 0x137   : > { %v1176_v9 = vadd.f32 %v1440_v22, %v1162_v5  ;;  %v1081_v10 = vadd.f32 %v1576_v6, %v2005_v8  ;;  %v1182_v11 = vmax.f32 %v1175_v4, 0.0 }
 0x139   : > { %v1183_v61 = vmax.f32 %v1176_v9, 0.0  ;;  %v1145_v12 = vadd.f32 %v1614_v36, %v1081_v10 }
 0x13b   : > { %v1456_v13 = vpack.c.bf16 %v1183_v61, %v1182_v11  ;;  %v1163_v14 = vmul.f32 %v2010_v18, %v1145_v12 }
 0x13d   : > { %1459 = vst [vmem:[%s2021_s7 + $0x10] sm:$0xff] %v1456_v13   ;;  %v1177_v15 = vadd.f32 %v1440_v22, %v1163_v14 }
 0x13f   : > { %v1184_v16 = vmax.f32 %v1177_v15, 0.0 }
 0x141   : > { %v1191_v17 = vpack.c.bf16 %v1184_v16, %v1184_v16 }
 0x143   : > { %1198 = vst [vmem:[%s2021_s7 + $0x18] sm:$0xf] %v1191_v17 }
 0x144 PF: > { %s14_s17 = sadd.s32 1, %s1748_s17   ;;  %s2049_s15 = smov %s1744_s16 }
 0x145   : > { %p11_p5 = scmp.ge.s32.totalorder %s14_s17, 4   ;;  %s2050_s16 = smov %s2052_s18 }
 0x147   :  { %13 = sbr.rel (!%p11_p5) target bundleno = 2 (0x2), region = 73 }

// kernel: stem_v2_forward.22
= control target key start
LH: loop header
LB: loop body
LE: loop exit
PB: predicated region body
PF: predicated region fallthrough
CT: control target
= control target key end

     0   :  { %s1738_s15 = smov 0   ;;  %s1740_s16 = smov 0   ;;  %s2111_s0 = inlined_call_operand.vmem [shape: bf16[2,7,14,128], index: 0, kind: input, shape index: {}]   ;;  %s2112_s1 = inlined_call_operand.vmem [shape: bf16[896,128], index: 1, kind: input, shape index: {}]   ;;  %s2113_s2 = inlined_call_operand.vmem [shape: f32[1,128], index: 2, kind: input, shape index: {}]   ;;  %s2114_s3 = inlined_call_operand.vmem [shape: f32[1,128], index: 3, kind: input, shape index: {}]   ;;  %s2115_s4 = inlined_call_operand.vmem [shape: bf16[2,7,8,128], index: 4, kind: output, shape index: {}]  }
   0x1   :  { %s1742_s17 = smov 0  }
   0x2 LB: > { %s26_s18 = sadd.s32 1, %s1707_s16  ;;  %p1325_p0 = scmp.ge.s32.totalorder %s1711_s17, 1  ;;  %s1711_s17 = sphi %s1742_s17, %s14_s17   ;;  %s1707_s16 = sphi %s1740_s16, %s2117_s16   ;;  %s1703_s15 = sphi %s1738_s15, %s2116_s15  }
   0x3   : > { %p28_p1 = scmp.ge.s32.totalorder %s26_s18, 2  ;;  %p176_p2 = scmp.lt.s32.totalorder %s1711_s17, 3 }
   0x5   : > { %s2119_s18 = smov (%p28_p1, %s26_s18), 0  ;;  %p177_p3 = pnand %p1325_p0, %p176_p2 }
   0x6   : > { %v1622_v0 = vld [vmem:[%s2112_s1 + $0x40] sm:$0xff] (!%p177_p3)   ;;  %v1626_v4 = vld [vmem:[%s2112_s1 + $0x48] sm:$0xff] (!%p177_p3)   ;;  %v1630_v8 = vld [vmem:[%s2112_s1 + $0x50] sm:$0xff] (!%p177_p3)   ;;  %p206_p4 = scmp.lt.s32.totalorder (!%p177_p3), %s1703_s15, 1 }
   0x7   : > { %180 = sbr.rel (%p177_p3) target bundleno = 324 (0x144), region = 36  ;;  %v1623_v1 = vld [vmem:[%s2112_s1 + $0xc0] sm:$0xff] (!%p177_p3)   ;;  %1440 = vmatprep.subr.bf16.mxu0 (!%p177_p3), %v1622_v0  ;;  %v1627_v5 = vld [vmem:[%s2112_s1 + $0xc8] sm:$0xff] (!%p177_p3)   ;;  %v1631_v9 = vld [vmem:[%s2112_s1 + $0xd0] sm:$0xff] (!%p177_p3)  }
   0x8   : > { %v1624_v2 = vld [vmem:[%s2112_s1] sm:$0xff] (!%p177_p3)   ;;  %1480 = vmatprep.subr.bf16.mxu1 (!%p177_p3), %v1623_v1  ;;  %v1628_v6 = vld [vmem:[%s2112_s1 + $0x8] sm:$0xff] (!%p177_p3)   ;;  %v1632_v10 = vld [vmem:[%s2112_s1 + $0x10] sm:$0xff] (!%p177_p3)  }
   0x9   : > { %v1625_v3 = vld [vmem:[%s2112_s1 + $0x80] sm:$0xff] (!%p177_p3)   ;;  %1441 = vmatpush3.bf16.msra.mxu0 (!%p177_p3), %v1624_v2  ;;  %v1629_v7 = vld [vmem:[%s2112_s1 + $0x88] sm:$0xff] (!%p177_p3)   ;;  %v1633_v11 = vld [vmem:[%s2112_s1 + $0x90] sm:$0xff] (!%p177_p3)  }
   0xa   : > { %1481 = vmatpush3.bf16.msra.mxu1 (!%p177_p3), %v1625_v3  ;;  %1442 = vmatprep.subr.bf16.mxu0 (!%p177_p3), %v1626_v4  ;;  %v1634_v12 = vld [vmem:[%s2112_s1 + $0x58] sm:$0xff] (!%p177_p3)   ;;  %v1638_v16 = vld [vmem:[%s2112_s1 + $0x60] sm:$0xff] (!%p177_p3)   ;;  %v1642_v20 = vld [vmem:[%s2112_s1 + $0x68] sm:$0xff] (!%p177_p3)  }
   0xb   : > { %1482 = vmatprep.subr.bf16.mxu1 (!%p177_p3), %v1627_v5  ;;  %v1635_v13 = vld [vmem:[%s2112_s1 + $0xd8] sm:$0xff] (!%p177_p3)   ;;  %v1639_v17 = vld [vmem:[%s2112_s1 + $0xe0] sm:$0xff] (!%p177_p3)   ;;  %v1643_v21 = vld [vmem:[%s2112_s1 + $0xe8] sm:$0xff] (!%p177_p3)  }
   0xc   : > { %v1636_v14 = vld [vmem:[%s2112_s1 + $0x18] sm:$0xff] (!%p177_p3)   ;;  %v1640_v18 = vld [vmem:[%s2112_s1 + $0x20] sm:$0xff] (!%p177_p3)   ;;  %v1644_v22 = vld [vmem:[%s2112_s1 + $0x28] sm:$0xff] (!%p177_p3)  }
   0xd   : > { %1443 = vmatpush3.bf16.msra.mxu0 (!%p177_p3), %v1628_v6  ;;  %v1637_v15 = vld [vmem:[%s2112_s1 + $0x98] sm:$0xff] (!%p177_p3)   ;;  %v1641_v19 = vld [vmem:[%s2112_s1 + $0xa0] sm:$0xff] (!%p177_p3)   ;;  %v1645_v23 = vld [vmem:[%s2112_s1 + $0xa8] sm:$0xff] (!%p177_p3)  }
   0xe   : > { %1483 = vmatpush3.bf16.msra.mxu1 %v1629_v7  ;;  %1444 = vmatprep.subr.bf16.mxu0 %v1630_v8  ;;  %s2121_s15 = smov (!%p206_p4, %s1703_s15), 1  ;;  %v1646_v24 = vld [vmem:[%s2112_s1 + $0x70] sm:$0xff]   ;;  %v1650_v28 = vld [vmem:[%s2112_s1 + $0x78] sm:$0xff]   ;;  %v1657_v38 = vld [vmem:[%s2112_s1 + $0x140] sm:$0xff]  }
   0xf   : > { %1484 = vmatprep.subr.bf16.mxu1 %v1631_v9  ;;  %v1647_v25 = vld [vmem:[%s2112_s1 + $0xf0] sm:$0xff]   ;;  %s1596_s27 = smul.u32 56, %s2121_s15  ;;  %v1651_v29 = vld [vmem:[%s2112_s1 + $0xf8] sm:$0xff]   ;;  %v1660_v48 = vld [vmem:[%s2112_s1 + $0x180] sm:$0xff]  }
  0x10   : > { %v1648_v26 = vld [vmem:[%s2112_s1 + $0x30] sm:$0xff]   ;;  %v1652_v30 = vld [vmem:[%s2112_s1 + $0x38] sm:$0xff]   ;;  %v1658_v57 = vld [vmem:[%s2112_s1 + $0x100] sm:$0xff]   ;;  %s1597_s30 = smul.u32 28, %s2121_s15 }
  0x11   : > { %1445 = vmatpush3.bf16.msra.mxu0 %v1632_v10  ;;  %v1649_v27 = vld [vmem:[%s2112_s1 + $0xb0] sm:$0xff]   ;;  %s1856_s12 = scalar_lea.vmem %s2111_s0, %s1596_s27  ;;  %v1653_v31 = vld [vmem:[%s2112_s1 + $0xb8] sm:$0xff]   ;;  %v1659_v63 = vld [vmem:[%s2112_s1 + $0x148] sm:$0xff]  }
  0x12   : > { %1485 = vmatpush3.bf16.msra.mxu1 %v1633_v11  ;;  %1446 = vmatprep.subr.bf16.mxu0 %v1634_v12  ;;  %v226_v32 = vld [vmem:[%s1856_s12] sm:$0xf]  ;;  %v227_v33 = vld [vmem:[%s1856_s12 + $0x4] sm:$0x7]  ;;  %v228_v34 = vld [vmem:[%s1856_s12 + $0x8] sm:$0xf]  ;;  %s2093_s7 = scalar_lea.vmem %s2115_s4, %s1597_s30 }
  0x13   : > { %1486 = vmatprep.subr.bf16.mxu1 %v1635_v13  ;;  %v229_v35 = vld [vmem:[%s1856_s12 + $0xc] sm:$0x7]  ;;  %v1868_v36 = vcombine.low %v226_v32, %v227_v33  ;;  %v1900_v54 = vld [vmem:[%s1856_s12 + $0x10] sm:$0xf]  ;;  %v231_v58 = vld [vmem:[%s1856_s12 + $0x14] sm:$0x7]  ;;  %v1335_v61 = vcombine.low %v226_v32, %v228_v34 }
  0x14   : > { %v1870_v37 = vcombine.low %v228_v34, %v229_v35  ;;  %v232_v59 = vld [vmem:[%s1856_s12 + $0x18] sm:$0xf]  ;;  %v233_v60 = vld [vmem:[%s1856_s12 + $0x1c] sm:$0x7]  ;;  %v1913_v0 = vcombine.low %v1900_v54, %v231_v58  ;;  %v1666_v4 = vld [vmem:[%s2112_s1 + $0x188] sm:$0xff]  }
  0x15   : > { %1447 = vmatpush3.bf16.msra.mxu0 %v1636_v14  ;;  %v1876_v39 = vshrl.u32 %v1868_v36, 16  ;;  %v1879_v40 = vshll.u32 %v1868_v36, 16  ;;  %v324_v43 = vrot.slane %v1868_v36, 1  ;;  %v1915_v1 = vcombine.low %v232_v59, %v233_v60  ;;  %v1661_v9 = vld [vmem:[%s2112_s1 + $0x108] sm:$0xff]   ;;  %v1668_v33 = vld [vmem:[%s2112_s1 + $0x158] sm:$0xff]   ;;  %v1678_v60 = vld [vmem:[%s2112_s1 + $0x1a0] sm:$0xff]  }
  0x16   : > { %1487 = vmatpush3.bf16.msra.mxu1 %v1637_v15  ;;  %1448 = vmatprep.subr.bf16.mxu0 %v1638_v16  ;;  %v1882_v41 = vshrl.u32 %v1870_v37, 16  ;;  %v1885_v42 = vshll.u32 %v1870_v37, 16  ;;  %v325_v44 = vrot.slane %v1870_v37, 1  ;;  %v1921_v5 = vshrl.u32 %v1913_v0, 16 }
  0x17   : > { %1488 = vmatprep.subr.bf16.mxu1 %v1639_v17  ;;  %v280_v45 = vrot.slane %v1879_v40, 1  ;;  %v331_v46 = vrot.slane %v1876_v39, 1  ;;  %v332_v47 = vrot.slane %v1879_v40, 2  ;;  %v1924_v6 = vshll.u32 %v1913_v0, 16 }
  0x18   : > { %v287_v49 = vrot.slane %v1885_v42, 1  ;;  %v334_v50 = vrot.slane %v1882_v41, 1  ;;  %v335_v51 = vrot.slane %v1885_v42, 2  ;;  %v1337_v62 = vcombine.low %v324_v43, %v325_v44 }
  0x19   : > { %1449 = vmatpush3.bf16.msra.mxu0 %v1640_v18  ;;  %v281_v52 = vor.u32 %v280_v45, %v1876_v39  ;;  %v333_v53 = vor.u32 %v332_v47, %v331_v46  ;;  %v1927_v7 = vshrl.u32 %v1915_v1, 16  ;;  %v1930_v8 = vshll.u32 %v1915_v1, 16  ;;  %v1670_v47 = vld [vmem:[%s2112_s1 + $0x118] sm:$0xff]  }
  0x1a   : > { %1489 = vmatpush3.bf16.msra.mxu1 %v1641_v19  ;;  %1450 = vmatprep.subr.bf16.mxu0 %v1642_v20  ;;  %v288_v55 = vor.u32 %v287_v49, %v1882_v41  ;;  %v336_v56 = vor.u32 %v335_v51, %v334_v50  ;;  %v326_v10 = vrot.slane %v1913_v0, 1  ;;  %v327_v11 = vrot.slane %v1915_v1, 1  ;;  %v1674_v50 = vld [vmem:[%s2112_s1 + $0x160] sm:$0xff]  }
  0x1b   : > { %1490 = vmatprep.subr.bf16.mxu1 %v1643_v21  ;;  %v294_v12 = vrot.slane %v1924_v6, 1  ;;  %v301_v13 = vrot.slane %v1930_v8, 1  ;;  %v337_v14 = vrot.slane %v1921_v5, 1  ;;  %v338_v15 = vrot.slane %v1924_v6, 2  ;;  %v1665_v21 = vld [vmem:[%s2112_s1 + $0x150] sm:$0xff]  }
  0x1c   : > { %v1336_v2 = vcombine.low %v281_v52, %v288_v55  ;;  %v1338_v3 = vcombine.low %v333_v53, %v336_v56  ;;  %v340_v16 = vrot.slane %v1927_v7, 1  ;;  %v341_v17 = vrot.slane %v1930_v8, 2 }
  0x1d   : > { %1451 = vmatpush3.bf16.msra.mxu0 %v1644_v22  ;;  %v295_v18 = vor.u32 %v294_v12, %v1921_v5  ;;  %v302_v19 = vor.u32 %v301_v13, %v1927_v7  ;;  %v339_v20 = vor.u32 %v338_v15, %v337_v14  ;;  %v362_v14 = vrot.slane %v1882_v41, 2  ;;  %v1679_v41 = vld [vmem:[%s2112_s1 + $0x128] sm:$0xff]  }
  0x1e   : > { %1491 = vmatpush3.bf16.msra.mxu1 %v1645_v23  ;;  %1452 = vmatprep.subr.bf16.mxu0 %v1646_v24  ;;  %v342_v22 = vor.u32 %v341_v17, %v340_v16  ;;  %v1667_v23 = vld [vmem:[%s2112_s1 + $0x110] sm:$0xff]   ;;  %v363_v15 = vrot.slane %v1885_v42, 3 }
  0x1f   : > { %1492 = vmatprep.subr.bf16.mxu1 %v1647_v25  ;;  %965 = vmatprep.mubr.bf16.mxu0 %v1336_v2  ;;  %v1669_v24 = vld [vmem:[%s2112_s1 + $0x190] sm:$0xff]   ;;  %v1955_v25 = vld [vmem:[%s1856_s12 + $0x20] sm:$0xf] }
  0x20   : > { %1029 = vmatprep.mubr.bf16.mxu1 %v1338_v3  ;;  %v1345_v32 = vcombine.low %v339_v20, %v342_v22  ;;  %v1676_v2 = vld [vmem:[%s2112_s1 + $0x120] sm:$0xff]   ;;  %v238_v3 = vld [vmem:[%s1856_s12 + $0x30] sm:$0xf] }
  0x21   : > { %1453 = vmatpush3.bf16.msra.mxu0 %v1648_v26  ;;  %v1343_v26 = vcombine.low %v295_v18, %v302_v19  ;;  %v1686_v22 = vld [vmem:[%s2112_s1 + $0x1b0] sm:$0xff]  }
  0x22   : > { %1493 = vmatpush3.bf16.msra.mxu1 %v1649_v27  ;;  %1454 = vmatprep.subr.bf16.mxu0 %v1650_v28  ;;  %v1342_v27 = vcombine.low %v1900_v54, %v232_v59  ;;  %v1344_v28 = vcombine.low %v326_v10, %v327_v11  ;;  %v239_v11 = vld [vmem:[%s1856_s12 + $0x34] sm:$0x7] }
  0x23   : > { %1494 = vmatprep.subr.bf16.mxu1 %v1651_v29  ;;  %v235_v29 = vld [vmem:[%s1856_s12 + $0x24] sm:$0x7]  ;;  %v2014_v13 = vcombine.low %v238_v3, %v239_v11 }
  0x24   : > { %v1965_v34 = vcombine.low %v1955_v25, %v235_v29  ;;  %v1356_v29 = vcombine.low %v238_v3, %v238_v3  ;;  %v354_v3 = vrot.slane %v1913_v0, 2 }
  0x25   : > { %1455 = vmatpush3.bf16.msra.mxu0 %v1652_v30  ;;  %v236_v30 = vld [vmem:[%s1856_s12 + $0x28] sm:$0xf]  ;;  %v2022_v16 = vshrl.u32 %v2014_v13, 16  ;;  %v2025_v17 = vshll.u32 %v2014_v13, 16  ;;  %v330_v18 = vrot.slane %v2014_v13, 1 }
  0x26   : > { %1495 = vmatpush3.bf16.msra.mxu1 %v1653_v31  ;;  %1520 = vmatprep.subr.bf16.mxu0 %v1657_v38  ;;  %v237_v31 = vld [vmem:[%s1856_s12 + $0x2c] sm:$0x7]  ;;  %v1675_v38 = vld [vmem:[%s2112_s1 + $0x198] sm:$0xff]   ;;  %v1973_v43 = vshrl.u32 %v1965_v34, 16  ;;  %v1976_v44 = vshll.u32 %v1965_v34, 16 }
  0x27   : > { %1572 = vmatprep.subr.bf16.mxu1 %v1660_v48  ;;  %v1967_v35 = vcombine.low %v236_v30, %v237_v31  ;;  %v322_v42 = vrot.slane %v2025_v17, 1  ;;  %v349_v19 = vrot.slane %v2022_v16, 1  ;;  %v350_v20 = vrot.slane %v2025_v17, 2 }
  0x28   : > { %966 = vmatmul.mubr.bf16.vlgmr.msra.gmra.mrb[0].mxu0 %v1335_v61  ;;  %v308_v51 = vrot.slane %v1976_v44, 1  ;;  %v343_v53 = vrot.slane %v1973_v43, 1  ;;  %v344_v54 = vrot.slane %v1976_v44, 2  ;;  %v359_v61 = vrot.slane %v1876_v39, 2  ;;  %v1677_v39 = vld [vmem:[%s2112_s1 + $0x168] sm:$0xff]  }
  0x29   : > { %1030 = vmatmul.mubr.bf16.vlgmr.msra.gmra.mrb[0].mxu1 %v1337_v62  ;;  %1521 = vmatpush3.bf16.msra.mxu0 %v1658_v57  ;;  %v1979_v45 = vshrl.u32 %v1967_v35, 16  ;;  %v1982_v46 = vshll.u32 %v1967_v35, 16  ;;  %v329_v49 = vrot.slane %v1967_v35, 1  ;;  %v365_v31 = vrot.slane %v1921_v5, 2 }
  0x2a   : > { %1573 = vmatpush3.bf16.msra.mxu1 %v1660_v48  ;;  %1522 = vmatprep.subr.bf16.mxu0 %v1659_v63  ;;  %v328_v48 = vrot.slane %v1965_v34, 1  ;;  %v309_v57 = vor.u32 %v308_v51, %v1973_v43  ;;  %v345_v59 = vor.u32 %v344_v54, %v343_v53  ;;  %v1349_v63 = vcombine.low %v1955_v25, %v236_v30  ;;  %v1687_v54 = vld [vmem:[%s2112_s1 + $0x138] sm:$0xff]  }
  0x2b   : > { %1574 = vmatprep.subr.bf16.mxu1 %v1666_v4  ;;  %973 = vmatprep.mubr.bf16.mxu0 %v1343_v26  ;;  %v315_v52 = vrot.slane %v1982_v46, 1  ;;  %v346_v55 = vrot.slane %v1979_v45, 1  ;;  %v347_v56 = vrot.slane %v1982_v46, 2  ;;  %v323_v25 = vor.u32 %v322_v42, %v2022_v16 }
  0x2c   : > { %1037 = vmatprep.mubr.bf16.mxu1 %v1345_v32  ;;  %v1351_v10 = vcombine.low %v328_v48, %v329_v49  ;;  %v351_v26 = vor.u32 %v350_v20, %v349_v19  ;;  %v1358_v30 = vcombine.low %v330_v18, %v330_v18  ;;  %v366_v32 = vrot.slane %v1924_v6, 3  ;;  %v1688_v6 = vld [vmem:[%s2112_s1 + $0x1b8] sm:$0xff]  }
  0x2d   : > { %1523 = vmatpush3.bf16.msra.mxu0 %v1661_v9  ;;  %v316_v58 = vor.u32 %v315_v52, %v1979_v45  ;;  %v348_v62 = vor.u32 %v347_v56, %v346_v55  ;;  %v368_v48 = vrot.slane %v1927_v7, 2  ;;  %v369_v49 = vrot.slane %v1930_v8, 3 }
  0x2e   : > { %1575 = vmatpush3.bf16.msra.mxu1 %v1666_v4  ;;  %1524 = vmatprep.subr.bf16.mxu0 %v1665_v21  ;;  %v360_v4 = vrot.slane %v1879_v40, 3  ;;  %v1683_v40 = vld [vmem:[%s2112_s1 + $0x1a8] sm:$0xff]   ;;  %v1682_v21 = vld [vmem:[%s2112_s1 + $0x170] sm:$0xff]   ;;  %v352_v52 = vrot.slane %v1868_v36, 2  ;;  %v353_v7 = vrot.slane %v1870_v37, 2  ;;  %v382_v8 = vrot.slane %v1913_v0, 3 }
  0x2f   : > { %1576 = vmatprep.subr.bf16.mxu1 %v1669_v24  ;;  %v1350_v9 = vcombine.low %v309_v57, %v316_v58  ;;  %v1352_v12 = vcombine.low %v345_v59, %v348_v62  ;;  %v383_v53 = vrot.slane %v1915_v1, 3  ;;  %v367_v55 = vor.u32 %v366_v32, %v365_v31 }
  0x30   : > { %974 = vmatmul.mubr.bf16.gmra.mrb[4].mxu0 %v1342_v27  ;;  %v380_v27 = vrot.slane %v1868_v36, 3  ;;  %v370_v56 = vor.u32 %v369_v49, %v368_v48  ;;  %v384_v57 = vrot.slane %v1965_v34, 3  ;;  %v385_v58 = vrot.slane %v1967_v35, 3 }
  0x31   : > { %1038 = vmatmul.mubr.bf16.gmra.mrb[4].mxu1 %v1344_v28  ;;  %1525 = vmatpush3.bf16.msra.mxu0 %v1667_v23  ;;  %v361_v23 = vor.u32 %v360_v4, %v359_v61  ;;  %v381_v28 = vrot.slane %v1870_v37, 3  ;;  %v1339_v36 = vcombine.low %v352_v52, %v353_v7  ;;  %v1348_v37 = vcombine.low %v382_v8, %v383_v53 }
  0x32   : > { %1577 = vmatpush3.bf16.msra.mxu1 %v1669_v24  ;;  %1526 = vmatprep.subr.bf16.mxu0 %v1668_v33  ;;  %v364_v24 = vor.u32 %v363_v15, %v362_v14  ;;  %v1357_v33 = vcombine.low %v323_v25, %v323_v25  ;;  %v371_v59 = vrot.slane %v1973_v43, 2  ;;  %v1347_v61 = vcombine.low %v367_v55, %v370_v56 }
  0x33   : > { %1578 = vmatprep.subr.bf16.mxu1 %v1675_v38  ;;  %981 = vmatprep.mubr.bf16.mxu0 %v1350_v9  ;;  %v1341_v51 = vcombine.low %v380_v27, %v381_v28  ;;  %v374_v62 = vrot.slane %v1979_v45, 2  ;;  %v355_v4 = vrot.slane %v1915_v1, 2  ;;  %v386_v9 = vrot.slane %v2014_v13, 3 }
  0x34   : > { %1045 = vmatprep.mubr.bf16.mxu1 %v1352_v12  ;;  %v1340_v5 = vcombine.low %v361_v23, %v364_v24  ;;  %v377_v45 = vrot.slane %v2022_v16, 2  ;;  %v357_v0 = vrot.slane %v1967_v35, 2  ;;  %v358_v15 = vrot.slane %v2014_v13, 2 }
  0x35   : > { %1527 = vmatpush3.bf16.msra.mxu0 %v1670_v47  ;;  %v1684_v47 = vld [vmem:[%s2112_s1 + $0x130] sm:$0xff]   ;;  %v1362_v11 = vcombine.low %v386_v9, %v386_v9 }
  0x36   : > { %1579 = vmatpush3.bf16.msra.mxu1 %v1675_v38  ;;  %1528 = vmatprep.subr.bf16.mxu0 %v1674_v50  ;;  %v1359_v38 = vcombine.low %v351_v26, %v351_v26  ;;  %v1685_v50 = vld [vmem:[%s2112_s1 + $0x178] sm:$0xff]  }
  0x37   : > { %1580 = vmatprep.subr.bf16.mxu1 %v1678_v60 }
  0x38   : > { %982 = vmatmul.mubr.bf16.gmra.mrb[8].mxu0 %v1349_v63  ;;  %v375_v63 = vrot.slane %v1982_v46, 3  ;;  %v378_v46 = vrot.slane %v2025_v17, 3 }
  0x39   : > { %1046 = vmatmul.mubr.bf16.gmra.mrb[8].mxu1 %v1351_v10  ;;  %1529 = vmatpush3.bf16.msra.mxu0 %v1676_v2  ;;  %v1355_v2 = vcombine.low %v384_v57, %v385_v58 }
  0x3a   : > { %1530 = vmatprep.subr.bf16.mxu0 %v1677_v39  ;;  %1581 = vmatpush3.bf16.msra.mxu1 %v1678_v60  ;;  %v372_v60 = vrot.slane %v1976_v44, 3  ;;  %v376_v10 = vor.u32 %v375_v63, %v374_v62  ;;  %v1346_v44 = vcombine.low %v354_v3, %v355_v4  ;;  %v356_v39 = vrot.slane %v1965_v34, 2 }
  0x3b   : > { %1582 = vmatprep.subr.bf16.mxu1 %v1683_v40  ;;  %989 = vmatprep.mubr.bf16.mxu0 %v1357_v33  ;;  %v379_v1 = vor.u32 %v378_v46, %v377_v45 }
  0x3c   : > { %1053 = vmatprep.mubr.bf16.mxu1 %v1359_v38  ;;  %v373_v43 = vor.u32 %v372_v60, %v371_v59  ;;  %v1353_v14 = vcombine.low %v356_v39, %v357_v0 }
  0x3d   : > { %1531 = vmatpush3.bf16.msra.mxu0 %v1679_v41  ;;  %v1360_v41 = vcombine.low %v358_v15, %v358_v15 }
  0x3e   : > { %1532 = vmatprep.subr.bf16.mxu0 %v1682_v21  ;;  %1583 = vmatpush3.bf16.msra.mxu1 %v1683_v40  ;;  %v1354_v12 = vcombine.low %v373_v43, %v376_v10  ;;  %v1361_v40 = vcombine.low %v379_v1, %v379_v1 }
  0x3f   : > { %1584 = vmatprep.subr.bf16.mxu1 %v1686_v22 }
  0x40   : > { %990 = vmatmul.mubr.bf16.gmra.mrb[12].mxu0 %v1356_v29 }
  0x41   : > { %1054 = vmatmul.mubr.bf16.gmra.mrb[12].mxu1 %v1358_v30  ;;  %1533 = vmatpush3.bf16.msra.mxu0 %v1684_v47 }
  0x42   : > { %1585 = vmatpush3.bf16.msra.mxu1 %v1686_v22  ;;  %1534 = vmatprep.subr.bf16.mxu0 %v1685_v50 }
  0x43   : > { %1093 = vmatprep.mubr.bf16.mxu0 %v1340_v5  ;;  %1586 = vmatprep.subr.bf16.mxu1 %v1688_v6 }
  0x44   : > { %1588 = vmatprep.mubr.bf16.mxu1 %v1341_v51 }
  0x45   : > { %1535 = vmatpush3.bf16.msra.mxu0 %v1687_v54 }
  0x46   : > { %1587 = vmatpush3.bf16.msra.mxu1 %v1688_v6 }
  0x48   : > { %1094 = vmatmul.mubr.bf16.vlgmr.msra.gmra.mrb[16].mxu0 %v1339_v36 }
  0x49   : > { %1589 = vmatmul.mubr.bf16.vlgmr.msra.gmra.mrb[16].mxu1 %v1348_v37  ;;  %1101 = vmatprep.mubr.bf16.mxu0 %v1347_v61 }
  0x4a   : > { %1592 = vmatprep.mubr.bf16.mxu1 %v1355_v2 }
  0x50   : > { %1102 = vmatmul.mubr.bf16.gmra.mrb[20].mxu0 %v1346_v44 }
  0x51   : > { %1593 = vmatmul.mubr.bf16.gmra.mrb[20].mxu1 %v1362_v11  ;;  %1109 = vmatprep.mubr.bf16.mxu0 %v1354_v12 }
  0x58   : > { %1110 = vmatmul.mubr.bf16.gmra.mrb[24].mxu0 %v1353_v14 }
  0x59   : > { %1117 = vmatprep.mubr.bf16.mxu0 %v1361_v40 }
  0x60   : > { %1118 = vmatmul.mubr.bf16.gmra.mrb[28].mxu0 %v1360_v41 }
  0xfb   : > { %v1456_v18 = vpop.f32.mrb[0].mxu0 }
  0xfc   : > { %v1496_v16 = vpop.f32.mrb[0].mxu1  ;;  %v1457_v42 = vpop.f32.mrb[1].mxu0 }
  0xfd   : > { %v1497_v17 = vpop.f32.mrb[1].mxu1  ;;  %v1458_v19 = vadd.f32 %v1457_v42, %v1456_v18  ;;  %v1459_v34 = vpop.f32.mrb[2].mxu0  ;;  %v1419_v18 = vld [vmem:[%s2113_s2] ss:$0 sm:$0xff] }
  0xfe   : > { %v1498_v20 = vadd.f32 %v1497_v17, %v1496_v16  ;;  %v1499_v21 = vpop.f32.mrb[2].mxu1  ;;  %v1460_v35 = vpop.f32.mrb[3].mxu0  ;;  %v1420_v17 = vld [vmem:[%s2114_s3] ss:$0 sm:$0xff] }
  0xff   : > { %v1500_v22 = vpop.f32.mrb[3].mxu1  ;;  %v1461_v24 = vadd.f32 %v1460_v35, %v1459_v34 }
 0x100   : > { %v1032_v23 = vadd.f32 %v1498_v20, %v1458_v19  ;;  %v1501_v25 = vadd.f32 %v1500_v22, %v1499_v21 }
 0x102   : > { %v1035_v26 = vadd.f32 %v1501_v25, %v1461_v24 }
 0x103   : > { %v1462_v27 = vpop.f32.mrb[4].mxu0 }
 0x104   : > { %v1502_v28 = vpop.f32.mrb[4].mxu1  ;;  %v1463_v13 = vpop.f32.mrb[5].mxu0 }
 0x105   : > { %v1503_v29 = vpop.f32.mrb[5].mxu1  ;;  %v1464_v30 = vadd.f32 %v1463_v13, %v1462_v27  ;;  %v1465_v32 = vpop.f32.mrb[6].mxu0 }
 0x106   : > { %v1504_v31 = vadd.f32 %v1503_v29, %v1502_v28  ;;  %v1505_v33 = vpop.f32.mrb[6].mxu1  ;;  %v1466_v38 = vpop.f32.mrb[7].mxu0 }
 0x107   : > { %v1506_v47 = vpop.f32.mrb[7].mxu1  ;;  %v1467_v49 = vadd.f32 %v1466_v38, %v1465_v32 }
 0x108   : > { %v1040_v48 = vadd.f32 %v1504_v31, %v1464_v30  ;;  %v1507_v50 = vadd.f32 %v1506_v47, %v1505_v33 }
 0x10a   : > { %v1043_v5 = vadd.f32 %v1507_v50, %v1467_v49 }
 0x10b   : > { %v1468_v6 = vpop.f32.mrb[8].mxu0 }
 0x10c   : > { %v1508_v51 = vpop.f32.mrb[8].mxu1  ;;  %v1469_v52 = vpop.f32.mrb[9].mxu0 }
 0x10d   : > { %v1470_v7 = vadd.f32 %v1469_v52, %v1468_v6  ;;  %v1509_v8 = vpop.f32.mrb[9].mxu1  ;;  %v1471_v53 = vpop.f32.mrb[10].mxu0 }
 0x10e   : > { %v1510_v54 = vadd.f32 %v1509_v8, %v1508_v51  ;;  %v1511_v55 = vpop.f32.mrb[10].mxu1  ;;  %v1472_v56 = vpop.f32.mrb[11].mxu0 }
 0x10f   : > { %v1473_v57 = vadd.f32 %v1472_v56, %v1471_v53  ;;  %v1512_v58 = vpop.f32.mrb[11].mxu1 }
 0x110   : > { %v2077_v36 = vadd.f32 %v1510_v54, %v1470_v7  ;;  %v1513_v37 = vadd.f32 %v1512_v58, %v1511_v55 }
 0x112   : > { %v2079_v59 = vadd.f32 %v1513_v37, %v1473_v57 }
 0x113   : > { %v1474_v60 = vpop.f32.mrb[12].mxu0 }
 0x114   : > { %v1514_v61 = vpop.f32.mrb[12].mxu1  ;;  %v1475_v62 = vpop.f32.mrb[13].mxu0 }
 0x115   : > { %v1515_v63 = vpop.f32.mrb[13].mxu1  ;;  %v1476_v2 = vadd.f32 %v1475_v62, %v1474_v60  ;;  %v1477_v4 = vpop.f32.mrb[14].mxu0 }
 0x116   : > { %v1516_v3 = vadd.f32 %v1515_v63, %v1514_v61  ;;  %v1517_v9 = vpop.f32.mrb[14].mxu1  ;;  %v1478_v43 = vpop.f32.mrb[15].mxu0 }
 0x117   : > { %v1518_v10 = vpop.f32.mrb[15].mxu1 }
 0x118   : > { %v2081_v44 = vadd.f32 %v1516_v3, %v1476_v2 }
 0x11b   : > { %v1536_v11 = vpop.f32.mrb[16].mxu0 }
 0x11c   : > { %v1590_v12 = vpop.f32.mrb[16].mxu1  ;;  %v1537_v45 = vpop.f32.mrb[17].mxu0 }
 0x11d   : > { %v1159_v46 = vpop.f32.mrb[17].mxu1  ;;  %v1538_v39 = vadd.f32 %v1537_v45, %v1536_v11  ;;  %v1539_v0 = vpop.f32.mrb[18].mxu0 }
 0x11e   : > { %v1591_v1 = vpop.f32.mrb[18].mxu1  ;;  %v1540_v14 = vpop.f32.mrb[19].mxu0 }
 0x11f   : > { %v1162_v40 = vpop.f32.mrb[19].mxu1  ;;  %v1541_v15 = vadd.f32 %v1540_v14, %v1539_v0  ;;  %v1096_v41 = vadd.f32 %v1538_v39, %v1032_v23 }
 0x121   : > { %v1160_v16 = vadd.f32 %v1159_v46, %v1096_v41  ;;  %v1099_v42 = vadd.f32 %v1541_v15, %v1035_v26 }
 0x123   : > { %v1196_v19 = vmul.f32 %v1419_v18, %v1160_v16  ;;  %v1163_v20 = vadd.f32 %v1162_v40, %v1099_v42  ;;  %v1542_v34 = vpop.f32.mrb[20].mxu0 }
 0x124   : > { %v1594_v21 = vpop.f32.mrb[20].mxu1  ;;  %v1543_v35 = vpop.f32.mrb[21].mxu0 }
 0x125   : > { %v1175_v22 = vpop.f32.mrb[21].mxu1  ;;  %v1210_v24 = vadd.f32 %v1420_v17, %v1196_v19  ;;  %v1197_v25 = vmul.f32 %v1419_v18, %v1163_v20  ;;  %v1544_v23 = vadd.f32 %v1543_v35, %v1542_v34  ;;  %v1545_v27 = vpop.f32.mrb[22].mxu0 }
 0x126   : > { %v1595_v28 = vpop.f32.mrb[22].mxu1  ;;  %v1546_v13 = vpop.f32.mrb[23].mxu0 }
 0x127   : > { %v1178_v29 = vpop.f32.mrb[23].mxu1  ;;  %v1211_v30 = vadd.f32 %v1420_v17, %v1197_v25  ;;  %v1104_v26 = vadd.f32 %v1544_v23, %v1040_v48  ;;  %v1547_v31 = vadd.f32 %v1546_v13, %v1545_v27  ;;  %v1217_v32 = vmax.f32 %v1210_v24, 0.0 }
 0x129   : > { %v1218_v33 = vmax.f32 %v1211_v30, 0.0  ;;  %v1168_v38 = vadd.f32 %v1590_v12, %v1104_v26  ;;  %v1107_v47 = vadd.f32 %v1547_v31, %v1043_v5 }
 0x12b   : > { %v1426_v49 = vpack.c.bf16 %v1218_v33, %v1217_v32  ;;  %v1198_v50 = vmul.f32 %v1419_v18, %v1168_v38  ;;  %v1171_v6 = vadd.f32 %v1591_v1, %v1107_v47  ;;  %v1548_v51 = vpop.f32.mrb[24].mxu0 }
 0x12c   : > { %v1549_v52 = vpop.f32.mrb[25].mxu0 }
 0x12d   : > { %1427 = vst [vmem:[%s2093_s7] sm:$0xff] %v1426_v49   ;;  %v1212_v7 = vadd.f32 %v1420_v17, %v1198_v50  ;;  %v1199_v8 = vmul.f32 %v1419_v18, %v1171_v6  ;;  %v1550_v48 = vadd.f32 %v1549_v52, %v1548_v51  ;;  %v1551_v53 = vpop.f32.mrb[26].mxu0 }
 0x12e   : > { %v1552_v54 = vpop.f32.mrb[27].mxu0 }
 0x12f   : > { %v1213_v55 = vadd.f32 %v1420_v17, %v1199_v8  ;;  %v1553_v5 = vadd.f32 %v1552_v54, %v1551_v53  ;;  %v1112_v56 = vadd.f32 %v1550_v48, %v2077_v36  ;;  %v1219_v57 = vmax.f32 %v1212_v7, 0.0 }
 0x131   : > { %v1220_v58 = vmax.f32 %v1213_v55, 0.0  ;;  %v1176_v37 = vadd.f32 %v1175_v22, %v1112_v56  ;;  %v1115_v60 = vadd.f32 %v1553_v5, %v2079_v59 }
 0x133   : > { %v1431_v61 = vpack.c.bf16 %v1220_v58, %v1219_v57  ;;  %v1200_v62 = vmul.f32 %v1419_v18, %v1176_v37  ;;  %v1179_v63 = vadd.f32 %v1178_v29, %v1115_v60  ;;  %v1554_v2 = vpop.f32.mrb[28].mxu0 }
 0x134   : > { %v1555_v3 = vpop.f32.mrb[29].mxu0 }
 0x135   : > { %1438 = vst [vmem:[%s2093_s7 + $0x8] sm:$0xff] %v1431_v61   ;;  %v1214_v4 = vadd.f32 %v1420_v17, %v1200_v62  ;;  %v1201_v9 = vmul.f32 %v1419_v18, %v1179_v63  ;;  %v1556_v43 = vadd.f32 %v1555_v3, %v1554_v2  ;;  %v1557_v10 = vpop.f32.mrb[30].mxu0 }
 0x136   : > { %v1558_v11 = vpop.f32.mrb[31].mxu0 }
 0x137   : > { %v1215_v12 = vadd.f32 %v1420_v17, %v1201_v9  ;;  %v1120_v36 = vadd.f32 %v1556_v43, %v2081_v44  ;;  %v1221_v45 = vmax.f32 %v1214_v4, 0.0 }
 0x139   : > { %v1222_v46 = vmax.f32 %v1215_v12, 0.0  ;;  %v1184_v39 = vadd.f32 %v1594_v21, %v1120_v36 }
 0x13b   : > { %v1436_v59 = vpack.c.bf16 %v1222_v46, %v1221_v45  ;;  %v1202_v0 = vmul.f32 %v1419_v18, %v1184_v39 }
 0x13d   : > { %1439 = vst [vmem:[%s2093_s7 + $0x10] sm:$0xff] %v1436_v59   ;;  %v1216_v1 = vadd.f32 %v1420_v17, %v1202_v0 }
 0x13f   : > { %v1223_v14 = vmax.f32 %v1216_v1, 0.0 }
 0x141   : > { %v1230_v40 = vpack.c.bf16 %v1223_v14, %v1223_v14 }
 0x143   : > { %1237 = vst [vmem:[%s2093_s7 + $0x18] sm:$0xf] %v1230_v40 }
 0x144 PF: > { %s14_s17 = sadd.s32 1, %s1711_s17   ;;  %s2116_s15 = smov %s1707_s16 }
 0x145   : > { %p11_p5 = scmp.ge.s32.totalorder %s14_s17, 4   ;;  %s2117_s16 = smov %s2119_s18 }
 0x147   :  { %13 = sbr.rel (!%p11_p5) target bundleno = 2 (0x2), region = 67 }

// kernel: stem_v2_forward.23
= control target key start
LH: loop header
LB: loop body
LE: loop exit
PB: predicated region body
PF: predicated region fallthrough
CT: control target
= control target key end

     0   :  { %s2051_s15 = smov 0   ;;  %s2053_s16 = smov 0   ;;  %s2432_s0 = inlined_call_operand.vmem [shape: bf16[2,7,10,128], index: 0, kind: input, shape index: {}]   ;;  %s2433_s1 = inlined_call_operand.vmem [shape: bf16[1152,128], index: 1, kind: input, shape index: {}]   ;;  %s2434_s2 = inlined_call_operand.vmem [shape: f32[1,128], index: 2, kind: input, shape index: {}]   ;;  %s2435_s3 = inlined_call_operand.vmem [shape: f32[1,128], index: 3, kind: input, shape index: {}]   ;;  %s2436_s4 = inlined_call_operand.vmem [shape: bf16[2,5,8,128], index: 4, kind: output, shape index: {}]  }
   0x1   :  { %s2055_s17 = smov 0  }
   0x2 LB: > { %s26_s18 = sadd.s32 1, %s2018_s16  ;;  %p1533_p0 = scmp.ge.s32.totalorder %s2022_s17, 1  ;;  %s2022_s17 = sphi %s2055_s17, %s14_s17   ;;  %s2018_s16 = sphi %s2053_s16, %s2438_s16   ;;  %s2014_s15 = sphi %s2051_s15, %s2437_s15  }
   0x3   : > { %p28_p1 = scmp.ge.s32.totalorder %s26_s18, 2  ;;  %p176_p2 = scmp.lt.s32.totalorder %s2022_s17, 3 }
   0x5   : > { %s2440_s18 = smov (%p28_p1, %s26_s18), 0  ;;  %p177_p3 = pnand %p1533_p0, %p176_p2 }
   0x6   : > { %v1904_v0 = vld [vmem:[%s2433_s1 + $0x40] sm:$0xff] (!%p177_p3)   ;;  %v1908_v4 = vld [vmem:[%s2433_s1 + $0x48] sm:$0xff] (!%p177_p3)   ;;  %v1912_v8 = vld [vmem:[%s2433_s1 + $0x50] sm:$0xff] (!%p177_p3)   ;;  %p206_p4 = scmp.lt.s32.totalorder (!%p177_p3), %s2014_s15, 1  ;;  %vm2025_vm0 = vmmov (!%p177_p3), 0  }
   0x7   : > { %180 = sbr.rel (%p177_p3) target bundleno = 337 (0x151), region = 36  ;;  %v1905_v1 = vld [vmem:[%s2433_s1 + $0xc0] sm:$0xff] (!%p177_p3)   ;;  %1685 = vmatprep.subr.bf16.mxu0 (!%p177_p3), %v1904_v0  ;;  %v1909_v5 = vld [vmem:[%s2433_s1 + $0xc8] sm:$0xff] (!%p177_p3)   ;;  %v1913_v9 = vld [vmem:[%s2433_s1 + $0xd0] sm:$0xff] (!%p177_p3)  }
   0x8   : > { %v1906_v2 = vld [vmem:[%s2433_s1] sm:$0xff] (!%p177_p3)   ;;  %1719 = vmatprep.subr.bf16.mxu1 (!%p177_p3), %v1905_v1  ;;  %v1910_v6 = vld [vmem:[%s2433_s1 + $0x8] sm:$0xff] (!%p177_p3)   ;;  %v1914_v10 = vld [vmem:[%s2433_s1 + $0x10] sm:$0xff] (!%p177_p3)  }
   0x9   : > { %v1907_v3 = vld [vmem:[%s2433_s1 + $0x80] sm:$0xff] (!%p177_p3)   ;;  %1686 = vmatpush3.bf16.msra.mxu0 (!%p177_p3), %v1906_v2  ;;  %v1911_v7 = vld [vmem:[%s2433_s1 + $0x88] sm:$0xff] (!%p177_p3)   ;;  %v1915_v11 = vld [vmem:[%s2433_s1 + $0x90] sm:$0xff] (!%p177_p3)  }
   0xa   : > { %1720 = vmatpush3.bf16.msra.mxu1 (!%p177_p3), %v1907_v3  ;;  %1687 = vmatprep.subr.bf16.mxu0 (!%p177_p3), %v1908_v4  ;;  %v1916_v12 = vld [vmem:[%s2433_s1 + $0x58] sm:$0xff] (!%p177_p3)   ;;  %v1920_v16 = vld [vmem:[%s2433_s1 + $0x60] sm:$0xff] (!%p177_p3)   ;;  %v1924_v20 = vld [vmem:[%s2433_s1 + $0x68] sm:$0xff] (!%p177_p3)  }
   0xb   : > { %1721 = vmatprep.subr.bf16.mxu1 (!%p177_p3), %v1909_v5  ;;  %v1917_v13 = vld [vmem:[%s2433_s1 + $0xd8] sm:$0xff] (!%p177_p3)   ;;  %v1921_v17 = vld [vmem:[%s2433_s1 + $0xe0] sm:$0xff] (!%p177_p3)   ;;  %v1925_v21 = vld [vmem:[%s2433_s1 + $0xe8] sm:$0xff] (!%p177_p3)  }
   0xc   : > { %v1918_v14 = vld [vmem:[%s2433_s1 + $0x18] sm:$0xff] (!%p177_p3)   ;;  %v1922_v18 = vld [vmem:[%s2433_s1 + $0x20] sm:$0xff] (!%p177_p3)   ;;  %v1926_v22 = vld [vmem:[%s2433_s1 + $0x28] sm:$0xff] (!%p177_p3)  }
   0xd   : > { %1688 = vmatpush3.bf16.msra.mxu0 (!%p177_p3), %v1910_v6  ;;  %v1919_v15 = vld [vmem:[%s2433_s1 + $0x98] sm:$0xff] (!%p177_p3)   ;;  %v1923_v19 = vld [vmem:[%s2433_s1 + $0xa0] sm:$0xff] (!%p177_p3)   ;;  %v1927_v23 = vld [vmem:[%s2433_s1 + $0xa8] sm:$0xff] (!%p177_p3)  }
   0xe   : > { %1722 = vmatpush3.bf16.msra.mxu1 %v1911_v7  ;;  %1689 = vmatprep.subr.bf16.mxu0 %v1912_v8  ;;  %s2442_s15 = smov (!%p206_p4, %s2014_s15), 1  ;;  %v1928_v24 = vld [vmem:[%s2433_s1 + $0x70] sm:$0xff]   ;;  %v1932_v28 = vld [vmem:[%s2433_s1 + $0x78] sm:$0xff]   ;;  %v1942_v43 = vld [vmem:[%s2433_s1 + $0x140] sm:$0xff]  }
   0xf   : > { %1723 = vmatprep.subr.bf16.mxu1 %v1913_v9  ;;  %v1929_v25 = vld [vmem:[%s2433_s1 + $0xf0] sm:$0xff]   ;;  %s1876_s27 = smul.u32 56, %s2442_s15  ;;  %v1933_v29 = vld [vmem:[%s2433_s1 + $0xf8] sm:$0xff]   ;;  %v1943_v44 = vld [vmem:[%s2433_s1 + $0x1c0] sm:$0xff]  }
  0x10   : > { %v1930_v26 = vld [vmem:[%s2433_s1 + $0x30] sm:$0xff]   ;;  %v1934_v30 = vld [vmem:[%s2433_s1 + $0x38] sm:$0xff]   ;;  %v1945_v52 = vld [vmem:[%s2433_s1 + $0x180] sm:$0xff]   ;;  %s1877_s20 = smul.u32 20, %s2442_s15 }
  0x11   : > { %1690 = vmatpush3.bf16.msra.mxu0 %v1914_v10  ;;  %v1931_v27 = vld [vmem:[%s2433_s1 + $0xb0] sm:$0xff]   ;;  %s2169_s12 = scalar_lea.vmem %s2432_s0, %s1876_s27  ;;  %v1935_v31 = vld [vmem:[%s2433_s1 + $0xb8] sm:$0xff]   ;;  %v1944_v56 = vld [vmem:[%s2433_s1 + $0x100] sm:$0xff]  }
  0x12   : > { %1724 = vmatpush3.bf16.msra.mxu1 %v1915_v11  ;;  %1691 = vmatprep.subr.bf16.mxu0 %v1916_v12  ;;  %v226_v32 = vld [vmem:[%s2169_s12] sm:$0xf]  ;;  %v227_v33 = vld [vmem:[%s2169_s12 + $0x4] sm:$0x1]  ;;  %v228_v34 = vld [vmem:[%s2169_s12 + $0x8] sm:$0xf]  ;;  %s219_s23 = scalar_lea.vmem %s2436_s4, %s1877_s20 }
  0x13   : > { %1725 = vmatprep.subr.bf16.mxu1 %v1917_v13  ;;  %v229_v35 = vld [vmem:[%s2169_s12 + $0xc] sm:$0x1]  ;;  %v1556_v36 = vcombine.low %v226_v32, %v227_v33  ;;  %v1536_v37 = vld [vmem:[%s2169_s12 + $0x8] sm:$0xf]  ;;  %v2183_v39 = vld [vmem:[%s2169_s12 + $0x10] sm:$0xf]  ;;  %v1571_v55 = vcombine.low %v226_v32, %v228_v34 }
  0x14   : > { %v1557_v38 = vcombine.low %v228_v34, %v229_v35  ;;  %v1574_v42 = vcombine.low %v1536_v37, %v2183_v39  ;;  %v1947_v58 = vld [vmem:[%s2433_s1 + $0x1c8] sm:$0xff]   ;;  %v1951_v62 = vld [vmem:[%s2433_s1 + $0x1d0] sm:$0xff]   ;;  %v1954_v3 = vld [vmem:[%s2433_s1 + $0x158] sm:$0xff]  }
  0x15   : > { %1692 = vmatpush3.bf16.msra.mxu0 %v1918_v14  ;;  %v290_v40 = vshrl.u32 %v1556_v36, 16  ;;  %v292_v41 = vshll.u32 %v1556_v36, 16  ;;  %v324_v48 = vrot.slane %v1556_v36, 1  ;;  %v1946_v59 = vld [vmem:[%s2433_s1 + $0x148] sm:$0xff]   ;;  %v1950_v63 = vld [vmem:[%s2433_s1 + $0x150] sm:$0xff]   ;;  %v1955_v4 = vld [vmem:[%s2433_s1 + $0x1d8] sm:$0xff]  }
  0x16   : > { %1726 = vmatpush3.bf16.msra.mxu1 %v1919_v15  ;;  %1693 = vmatprep.subr.bf16.mxu0 %v1920_v16  ;;  %v297_v45 = vshrl.u32 %v1557_v38, 16  ;;  %v299_v46 = vshll.u32 %v1557_v38, 16  ;;  %v325_v50 = vrot.slane %v1557_v38, 1  ;;  %v1949_v60 = vld [vmem:[%s2433_s1 + $0x188] sm:$0xff]   ;;  %v1952_v0 = vld [vmem:[%s2433_s1 + $0x110] sm:$0xff]   ;;  %v1966_v33 = vld [vmem:[%s2433_s1 + $0x120] sm:$0xff]  }
  0x17   : > { %1727 = vmatprep.subr.bf16.mxu1 %v1921_v17  ;;  %v294_v47 = vrot.slane %v292_v41, 1  ;;  %1207 = vmatprep.mubr.bf16.mxu1 %v1574_v42  ;;  %v1948_v61 = vld [vmem:[%s2433_s1 + $0x108] sm:$0xff]   ;;  %v1953_v1 = vld [vmem:[%s2433_s1 + $0x190] sm:$0xff]   ;;  %v232_v7 = vld [vmem:[%s2169_s12 + $0x18] sm:$0xf] }
  0x18   : > { %v301_v49 = vrot.slane %v299_v46, 1  ;;  %v1573_v54 = vcombine.low %v324_v48, %v325_v50  ;;  %v1537_v2 = vld [vmem:[%s2169_s12 + $0xc] sm:$0x1]  ;;  %v230_v5 = vld [vmem:[%s2169_s12 + $0x10] sm:$0xf] }
  0x19   : > { %1694 = vmatpush3.bf16.msra.mxu0 %v1922_v18  ;;  %v295_v51 = vor.u32 %v294_v47, %v290_v40  ;;  %v231_v6 = vld [vmem:[%s2169_s12 + $0x14] sm:$0x1]  ;;  %v233_v8 = vld [vmem:[%s2169_s12 + $0x1c] sm:$0x1]  ;;  %v1540_v10 = vld [vmem:[%s2169_s12 + $0x18] sm:$0xf]  ;;  %v2238_v16 = vcombine.low %v1536_v37, %v1537_v2  ;;  %v1580_v36 = vcombine.low %v230_v5, %v232_v7 }
  0x1a   : > { %1728 = vmatpush3.bf16.msra.mxu1 %v1923_v19  ;;  %1695 = vmatprep.subr.bf16.mxu0 %v1924_v20  ;;  %v302_v53 = vor.u32 %v301_v49, %v297_v45  ;;  %v1558_v9 = vcombine.low %v230_v5, %v231_v6  ;;  %v1539_v11 = vld [vmem:[%s2169_s12 + $0x14] sm:$0x1]  ;;  %v1559_v12 = vcombine.low %v232_v7, %v233_v8  ;;  %v2236_v13 = vld [vmem:[%s2169_s12 + $0x20] sm:$0xf]  ;;  %v1961_v20 = vld [vmem:[%s2433_s1 + $0x118] sm:$0xff]  }
  0x1b   : > { %1729 = vmatprep.subr.bf16.mxu1 %v1925_v21  ;;  %v1583_v19 = vcombine.low %v1540_v10, %v2236_v13  ;;  %v1962_v21 = vld [vmem:[%s2433_s1 + $0x198] sm:$0xff]   ;;  %v1967_v37 = vld [vmem:[%s2433_s1 + $0x1a0] sm:$0xff]   ;;  %v355_v40 = vshrl.u32 %v2238_v16, 16  ;;  %v1969_v41 = vld [vmem:[%s2433_s1 + $0x1e8] sm:$0xff]  }
  0x1c   : > { %v1572_v57 = vcombine.low %v295_v51, %v302_v53  ;;  %v304_v14 = vshrl.u32 %v1558_v9, 16  ;;  %v306_v15 = vshll.u32 %v1558_v9, 16  ;;  %v311_v17 = vshrl.u32 %v1559_v12, 16  ;;  %v1541_v35 = vld [vmem:[%s2169_s12 + $0x1c] sm:$0x1]  ;;  %v1972_v48 = vld [vmem:[%s2433_s1 + $0x128] sm:$0xff]  }
  0x1d   : > { %1696 = vmatpush3.bf16.msra.mxu0 %v1926_v22  ;;  %v313_v18 = vshll.u32 %v1559_v12, 16  ;;  %v2248_v22 = vcombine.low %v2183_v39, %v1539_v11  ;;  %v1968_v39 = vld [vmem:[%s2433_s1 + $0x168] sm:$0xff]   ;;  %v1543_v47 = vld [vmem:[%s2169_s12 + $0x24] sm:$0x1]  ;;  %v2282_v49 = vcombine.low %v1540_v10, %v1541_v35  ;;  %v234_v51 = vld [vmem:[%s2169_s12 + $0x20] sm:$0xf] }
  0x1e   : > { %1730 = vmatpush3.bf16.msra.mxu1 %v1927_v23  ;;  %1697 = vmatprep.subr.bf16.mxu0 %v1928_v24  ;;  %v308_v23 = vrot.slane %v306_v15, 1  ;;  %v326_v24 = vrot.slane %v1558_v9, 1  ;;  %v2273_v42 = vld [vmem:[%s2169_s12 + $0x28] sm:$0xf]  ;;  %v389_v53 = vrot.slane %v2238_v16, 1  ;;  %v1979_v2 = vld [vmem:[%s2433_s1 + $0x1b0] sm:$0xff]   ;;  %v1589_v8 = vcombine.low %v234_v51, %v234_v51 }
  0x1f   : > { %1731 = vmatprep.subr.bf16.mxu1 %v1929_v25  ;;  %1151 = vmatprep.mubr.bf16.mxu0 %v1572_v57  ;;  %v327_v25 = vrot.slane %v1559_v12, 1  ;;  %v364_v34 = vshll.u32 %v2248_v22, 16  ;;  %v1592_v45 = vcombine.low %v2273_v42, %v2273_v42  ;;  %v1973_v50 = vld [vmem:[%s2433_s1 + $0x1a8] sm:$0xff]   ;;  %v1977_v57 = vld [vmem:[%s2433_s1 + $0x1f0] sm:$0xff]   ;;  %v1981_v6 = vld [vmem:[%s2433_s1 + $0x1f8] sm:$0xff]   ;;  %v369_v7 = vshrl.u32 %v2282_v49, 16 }
  0x20   : > { %v1982_v9 = vld [vmem:[%s2433_s1 + $0x138] sm:$0xff]   ;;  %v371_v10 = vshll.u32 %v2282_v49, 16  ;;  %v1547_v15 = vld [vmem:[%s2169_s12 + $0x14] sm:$0x1]  ;;  %v1552_v35 = vld [vmem:[%s2169_s12 + $0x28] sm:$0xf] }
  0x21   : > { %1698 = vmatpush3.bf16.msra.mxu0 %v1930_v26  ;;  %v1964_v26 = vld [vmem:[%s2433_s1 + $0x160] sm:$0xff]   ;;  %v366_v46 = vrot.slane %v364_v34, 1  ;;  %v1983_v12 = vld [vmem:[%s2433_s1 + $0x1b8] sm:$0xff]  }
  0x22   : > { %1732 = vmatpush3.bf16.msra.mxu1 %v1931_v27  ;;  %1699 = vmatprep.subr.bf16.mxu0 %v1932_v28  ;;  %v315_v27 = vrot.slane %v313_v18, 1  ;;  %v1965_v28 = vld [vmem:[%s2433_s1 + $0x1e0] sm:$0xff]   ;;  %v1549_v18 = vld [vmem:[%s2169_s12 + $0x1c] sm:$0x1] }
  0x23   : > { %1733 = vmatprep.subr.bf16.mxu1 %v1933_v29  ;;  %v309_v29 = vor.u32 %v308_v23, %v304_v14  ;;  %v1546_v14 = vld [vmem:[%s2169_s12 + $0x10] sm:$0xf] }
  0x24   : > { %v316_v32 = vor.u32 %v315_v27, %v311_v17  ;;  %v1548_v17 = vld [vmem:[%s2169_s12 + $0x18] sm:$0xf]  ;;  %v373_v27 = vrot.slane %v371_v10, 1 }
  0x25   : > { %1700 = vmatpush3.bf16.msra.mxu0 %v1934_v30  ;;  %v1582_v30 = vcombine.low %v326_v24, %v327_v25  ;;  %v2330_v23 = vcombine.low %v1548_v17, %v1549_v18  ;;  %v2024_v24 = vmov 0.0   ;;  %v1998_v18 = vld [vmem:[%s2433_s1 + $0x230] sm:$0xff]  }
  0x26   : > { %1734 = vmatpush3.bf16.msra.mxu1 %v1935_v31  ;;  %1753 = vmatprep.subr.bf16.mxu0 %v1942_v43  ;;  %v357_v31 = vshll.u32 %v2238_v16, 16  ;;  %v1581_v38 = vcombine.low %v309_v29, %v316_v32  ;;  %v1551_v32 = vld [vmem:[%s2169_s12 + $0x24] sm:$0x1] }
  0x27   : > { %1787 = vmatprep.subr.bf16.mxu1 %v1943_v44  ;;  %v362_v44 = vshrl.u32 %v2248_v22, 16  ;;  %v427_v29 = vshrl.u32 %v2330_v23, 16 }
  0x28   : > { %1152 = vmatmul.mubr.bf16.vlgmr.msra.gmra.mrb[0].mxu0 %v1571_v55  ;;  %v359_v43 = vrot.slane %v357_v31, 1  ;;  %v1976_v55 = vld [vmem:[%s2433_s1 + $0x170] sm:$0xff]   ;;  %v2340_v31 = vld [vmem:[%s2169_s12 + $0x20] sm:$0xf] }
  0x29   : > { %1208 = vmatmul.mubr.bf16.vlgmr.msra.gmra.mrb[0].mxu1 %v1573_v54  ;;  %1754 = vmatpush3.bf16.msra.mxu0 %v1944_v56  ;;  %v390_v56 = vrot.slane %v2248_v22, 1  ;;  %v1545_v22 = vld [vmem:[%s2169_s12 + $0x2c] sm:$0x1]  ;;  %v1586_v10 = vcombine.low %v2340_v31, %v1552_v35 }
  0x2a   : > { %1788 = vmatpush3.bf16.msra.mxu1 %v1945_v52  ;;  %1755 = vmatprep.subr.bf16.mxu0 %v1946_v59  ;;  %v235_v52 = vld [vmem:[%s2169_s12 + $0x24] sm:$0x1] }
  0x2b   : > { %1789 = vmatprep.subr.bf16.mxu1 %v1947_v58  ;;  %1215 = vmatprep.mubr.bf16.mxu1 %v1583_v19  ;;  %v1560_v54 = vcombine.low %v234_v51, %v235_v52  ;;  %v391_v58 = vrot.slane %v2282_v49, 1  ;;  %v2327_v19 = vcombine.low %v1546_v14, %v1547_v15  ;;  %v1554_v51 = vld [vmem:[%s2169_s12 + $0x30] sm:$0xf]  ;;  %v1577_v52 = vcombine.low %v1546_v14, %v1548_v17  ;;  %v1988_v49 = vld [vmem:[%s2433_s1 + $0x208] sm:$0xff]   ;;  %v1995_v15 = vld [vmem:[%s2433_s1 + $0x220] sm:$0xff]  }
  0x2c   : > { %1159 = vmatprep.mubr.bf16.mxu0 %v1581_v38  ;;  %v1565_v38 = vcombine.low %v2273_v42, %v1545_v22  ;;  %v1555_v42 = vld [vmem:[%s2169_s12 + $0x34] sm:$0x1]  ;;  %v1997_v17 = vld [vmem:[%s2433_s1 + $0x228] sm:$0xff]   ;;  %v1999_v22 = vld [vmem:[%s2433_s1 + $0x238] sm:$0xff]  }
  0x2d   : > { %1756 = vmatpush3.bf16.msra.mxu0 %v1948_v61  ;;  %v328_v59 = vrot.slane %v1560_v54, 1  ;;  %v320_v61 = vshll.u32 %v1560_v54, 16  ;;  %v420_v25 = vshrl.u32 %v2327_v19, 16 }
  0x2e   : > { %1790 = vmatpush3.bf16.msra.mxu1 %v1949_v60  ;;  %1757 = vmatprep.subr.bf16.mxu0 %v1950_v63  ;;  %v318_v60 = vshrl.u32 %v1560_v54, 16  ;;  %v2302_v63 = vcombine.low %v2236_v13, %v1543_v47  ;;  %v1576_v13 = vcombine.low %v389_v53, %v390_v56 }
  0x2f   : > { %1791 = vmatprep.subr.bf16.mxu1 %v1951_v62  ;;  %v1978_v62 = vld [vmem:[%s2433_s1 + $0x130] sm:$0xff]  }
  0x30   : > { %1160 = vmatmul.mubr.bf16.gmra.mrb[4].mxu0 %v1580_v36  ;;  %v378_v16 = vshll.u32 %v2302_v63, 16  ;;  %v1553_v36 = vld [vmem:[%s2169_s12 + $0x2c] sm:$0x1] }
  0x31   : > { %1758 = vmatpush3.bf16.msra.mxu0 %v1952_v0  ;;  %1216 = vmatmul.mubr.bf16.gmra.mrb[4].mxu1 %v1582_v30  ;;  %v1591_v0 = vcombine.low %v328_v59, %v328_v59  ;;  %v429_v30 = vshll.u32 %v2330_v23, 16 }
  0x32   : > { %1792 = vmatpush3.bf16.msra.mxu1 %v1953_v1  ;;  %1759 = vmatprep.subr.bf16.mxu0 %v1954_v3  ;;  %v322_v1 = vrot.slane %v320_v61, 1  ;;  %v1980_v3 = vld [vmem:[%s2433_s1 + $0x178] sm:$0xff]   ;;  %v380_v34 = vrot.slane %v378_v16, 1  ;;  %v1595_v16 = vcombine.low %v1554_v51, %v1554_v51 }
  0x33   : > { %1793 = vmatprep.subr.bf16.mxu1 %v1955_v4  ;;  %1223 = vmatprep.mubr.bf16.mxu1 %v1592_v45  ;;  %v392_v4 = vrot.slane %v2302_v63, 1 }
  0x34   : > { %v323_v5 = vor.u32 %v322_v1, %v318_v60  ;;  %v385_v60 = vshll.u32 %v1565_v38, 16  ;;  %v393_v1 = vrot.slane %v1565_v38, 1 }
  0x35   : > { %1760 = vmatpush3.bf16.msra.mxu0 %v1961_v20  ;;  %v360_v20 = vor.u32 %v359_v43, %v355_v40  ;;  %v1987_v40 = vld [vmem:[%s2433_s1 + $0x200] sm:$0xff]   ;;  %v1585_v53 = vcombine.low %v391_v58, %v392_v4 }
  0x36   : > { %1794 = vmatpush3.bf16.msra.mxu1 %v1962_v21  ;;  %1761 = vmatprep.subr.bf16.mxu0 %v1964_v26  ;;  %v1590_v11 = vcombine.low %v323_v5, %v323_v5  ;;  %v367_v21 = vor.u32 %v366_v46, %v362_v44  ;;  %v422_v26 = vshll.u32 %v2327_v19, 16  ;;  %v383_v5 = vshrl.u32 %v1565_v38, 16 }
  0x37   : > { %1795 = vmatprep.subr.bf16.mxu1 %v1965_v28  ;;  %v376_v28 = vshrl.u32 %v2302_v63, 16 }
  0x38   : > { %1167 = vmatprep.mubr.bf16.mxu0 %v1590_v11  ;;  %v1575_v43 = vcombine.low %v360_v20, %v367_v21  ;;  %v454_v20 = vrot.slane %v2327_v19, 1  ;;  %v455_v21 = vrot.slane %v2330_v23, 1 }
  0x39   : > { %1762 = vmatpush3.bf16.msra.mxu0 %v1966_v33  ;;  %1224 = vmatmul.mubr.bf16.gmra.mrb[8].mxu1 %v1591_v0  ;;  %v424_v33 = vrot.slane %v422_v26, 1  ;;  %v381_v61 = vor.u32 %v380_v34, %v376_v28 }
  0x3a   : > { %1796 = vmatpush3.bf16.msra.mxu1 %v1967_v37  ;;  %1763 = vmatprep.subr.bf16.mxu0 %v1968_v39  ;;  %v2346_v37 = vcombine.low %v2340_v31, %v1551_v32  ;;  %v431_v39 = vrot.slane %v429_v30, 1 }
  0x3b   : > { %1797 = vmatprep.subr.bf16.mxu1 %v1969_v41  ;;  %1168 = vmatmul.mubr.bf16.gmra.mrb[8].mxu0 %v1589_v8  ;;  %v2352_v41 = vcombine.low %v1552_v35, %v1553_v36  ;;  %v425_v44 = vor.u32 %v424_v33, %v420_v25  ;;  %v1991_v8 = vld [vmem:[%s2433_s1 + $0x210] sm:$0xff]  }
  0x3c   : > { %1263 = vmatprep.mubr.bf16.mxu0 %v1576_v13  ;;  %v434_v45 = vshrl.u32 %v2346_v37, 16  ;;  %v436_v46 = vshll.u32 %v2346_v37, 16  ;;  %v432_v47 = vor.u32 %v431_v39, %v427_v29  ;;  %v1993_v13 = vld [vmem:[%s2433_s1 + $0x218] sm:$0xff]   ;;  %v456_v25 = vrot.slane %v2346_v37, 1 }
  0x3d   : > { %1764 = vmatpush3.bf16.msra.mxu0 %v1972_v48  ;;  %v441_v48 = vshrl.u32 %v2352_v41, 16  ;;  %v457_v26 = vrot.slane %v2352_v41, 1 }
  0x3e   : > { %1798 = vmatpush3.bf16.msra.mxu1 %v1973_v50  ;;  %1765 = vmatprep.subr.bf16.mxu0 %v1976_v55  ;;  %v443_v50 = vshll.u32 %v2352_v41, 16  ;;  %v438_v54 = vrot.slane %v436_v46, 1  ;;  %v2362_v55 = vcombine.low %v1554_v51, %v1555_v42  ;;  %v1578_v56 = vcombine.low %v425_v44, %v432_v47 }
  0x3f   : > { %1799 = vmatprep.subr.bf16.mxu1 %v1977_v57  ;;  %v374_v57 = vor.u32 %v373_v27, %v369_v7  ;;  %v1579_v27 = vcombine.low %v454_v20, %v455_v21  ;;  %v1588_v28 = vcombine.low %v456_v25, %v457_v26 }
  0x40   : > { %v445_v59 = vrot.slane %v443_v50, 1  ;;  %v448_v63 = vshrl.u32 %v2362_v55, 16  ;;  %v450_v0 = vshll.u32 %v2362_v55, 16  ;;  %1319 = vmatprep.mubr.bf16.mxu1 %v1578_v56  ;;  %v458_v19 = vrot.slane %v2362_v55, 1 }
  0x41   : > { %1766 = vmatpush3.bf16.msra.mxu0 %v1978_v62  ;;  %v439_v62 = vor.u32 %v438_v54, %v434_v45  ;;  %v1584_v4 = vcombine.low %v374_v57, %v381_v61 }
  0x42   : > { %1800 = vmatpush3.bf16.msra.mxu1 %v1979_v2  ;;  %1767 = vmatprep.subr.bf16.mxu0 %v1980_v3  ;;  %v446_v58 = vor.u32 %v445_v59, %v441_v48  ;;  %v452_v2 = vrot.slane %v450_v0, 1  ;;  %v1597_v23 = vcombine.low %v458_v19, %v458_v19 }
  0x43   : > { %1801 = vmatprep.subr.bf16.mxu1 %v1981_v6  ;;  %v387_v6 = vrot.slane %v385_v60, 1 }
  0x44   : > { %v1587_v3 = vcombine.low %v439_v62, %v446_v58  ;;  %v453_v7 = vor.u32 %v452_v2, %v448_v63 }
  0x45   : > { %1768 = vmatpush3.bf16.msra.mxu0 %v1982_v9  ;;  %v1594_v9 = vcombine.low %v393_v1, %v393_v1 }
  0x46   : > { %1832 = vmatprep.subr.bf16.mxu0 %v2024_v24  ;;  %1802 = vmatpush3.bf16.msra.mxu1 %v1983_v12  ;;  %v1596_v11 = vcombine.low %v453_v7, %v453_v7  ;;  %v388_v12 = vor.u32 %v387_v6, %v383_v5 }
  0x47   : > { %1860 = vmatprep.subr.bf16.mxu1 %v2024_v24 }
  0x48   : > { %1264 = vmatmul.mubr.bf16.vlgmr.msra.gmra.mrb[12].mxu0 %v1575_v43  ;;  %v1593_v14 = vcombine.low %v388_v12, %v388_v12 }
  0x49   : > { %1833 = vmatpush3.bf16.msra.mxu0 %v1987_v40  ;;  %1320 = vmatmul.mubr.bf16.vlgmr.msra.gmra.mrb[12].mxu1 %v1577_v52 }
  0x4a   : > { %1834 = vmatprep.subr.bf16.mxu0 %v2024_v24  ;;  %1868 = vmatpush3.bf16.msra.mxu1 %v1987_v40 }
  0x4b   : > { %1271 = vmatprep.mubr.bf16.mxu0 %v1585_v53  ;;  %1861 = vmatprep.subr.bf16.mxu1 %v2024_v24 }
  0x4c   : > { %1327 = vmatprep.mubr.bf16.mxu1 %v1587_v3 }
  0x4d   : > { %1835 = vmatpush3.bf16.msra.mxu0 %v1988_v49 }
  0x4e   : > { %1836 = vmatprep.subr.bf16.mxu0 %v2024_v24  ;;  %1869 = vmatpush3.bf16.msra.mxu1 %v1988_v49 }
  0x4f   : > { %1862 = vmatprep.subr.bf16.mxu1 %v2024_v24 }
  0x50   : > { %1272 = vmatmul.mubr.bf16.gmra.mrb[16].mxu0 %v1584_v4 }
  0x51   : > { %1837 = vmatpush3.bf16.msra.mxu0 %v1991_v8  ;;  %1279 = vmatprep.mubr.bf16.mxu0 %v1594_v9 }
  0x52   : > { %1328 = vmatmul.mubr.bf16.gmra.mrb[16].mxu1 %v1586_v10  ;;  %1838 = vmatprep.subr.bf16.mxu0 %v2024_v24 }
  0x53   : > { %1870 = vmatpush3.bf16.msra.mxu1 %v1991_v8  ;;  %1335 = vmatprep.mubr.bf16.mxu1 %v1596_v11 }
  0x54   : > { %1863 = vmatprep.subr.bf16.mxu1 %v2024_v24 }
  0x55   : > { %1839 = vmatpush3.bf16.msra.mxu0 %v1993_v13 }
  0x56   : > { %1840 = vmatprep.subr.bf16.mxu0 %v2024_v24 }
  0x57   : > { %1871 = vmatpush3.bf16.msra.mxu1 %v1993_v13 }
  0x58   : > { %1280 = vmatmul.mubr.bf16.gmra.mrb[20].mxu0 %v1593_v14  ;;  %1864 = vmatprep.subr.bf16.mxu1 %v2024_v24 }
  0x59   : > { %1841 = vmatpush3.bf16.msra.mxu0 %v1995_v15  ;;  %1848 = vmatprep.mubr.msk.bf16.mxu0 %vm2025_vm0, %v2024_v24 }
  0x5a   : > { %1336 = vmatmul.mubr.bf16.gmra.mrb[20].mxu1 %v1595_v16  ;;  %1842 = vmatprep.subr.bf16.mxu0 %v2024_v24 }
  0x5b   : > { %1872 = vmatpush3.bf16.msra.mxu1 %v1995_v15  ;;  %1852 = vmatprep.mubr.msk.bf16.mxu1 %vm2025_vm0, %v2024_v24 }
  0x5c   : > { %1865 = vmatprep.subr.bf16.mxu1 %v2024_v24 }
  0x5d   : > { %1843 = vmatpush3.bf16.msra.mxu0 %v1997_v17 }
  0x5e   : > { %1844 = vmatprep.subr.bf16.mxu0 %v2024_v24 }
  0x5f   : > { %1873 = vmatpush3.bf16.msra.mxu1 %v1997_v17 }
  0x60   : > { %1866 = vmatprep.subr.bf16.mxu1 %v2024_v24 }
  0x61   : > { %1845 = vmatpush3.bf16.msra.mxu0 %v1998_v18 }
  0x62   : > { %1846 = vmatprep.subr.bf16.mxu0 %v2024_v24 }
  0x63   : > { %1874 = vmatpush3.bf16.msra.mxu1 %v1998_v18 }
  0x64   : > { %1867 = vmatprep.subr.bf16.mxu1 %v2024_v24 }
  0x65   : > { %1847 = vmatpush3.bf16.msra.mxu0 %v1999_v22 }
  0x67   : > { %1875 = vmatpush3.bf16.msra.mxu1 %v1999_v22 }
  0x68   : > { %1849 = vmatmul.mubr.bf16.vlgmr.msra.gmra.mrb[24].mxu0 %v1579_v27 }
  0x6a   : > { %1853 = vmatmul.mubr.bf16.vlgmr.msra.gmra.mrb[24].mxu1 %v1588_v28 }
  0x6b   : > { %1856 = vmatprep.mubr.msk.bf16.mxu1 %vm2025_vm0, %v2024_v24 }
  0x72   : > { %1857 = vmatmul.mubr.bf16.gmra.mrb[28].mxu1 %v1597_v23 }
  0xfb   : > { %v1701_v33 = vpop.f32.mrb[0].mxu0 }
  0xfc   : > { %v1735_v29 = vpop.f32.mrb[0].mxu1  ;;  %v1702_v35 = vpop.f32.mrb[1].mxu0 }
  0xfd   : > { %v1736_v30 = vpop.f32.mrb[1].mxu1  ;;  %v1703_v37 = vadd.f32 %v1702_v35, %v1701_v33  ;;  %v1704_v38 = vpop.f32.mrb[2].mxu0 }
  0xfe   : > { %v1737_v31 = vadd.f32 %v1736_v30, %v1735_v29  ;;  %v1738_v32 = vpop.f32.mrb[2].mxu1  ;;  %v1705_v39 = vpop.f32.mrb[3].mxu0 }
  0xff   : > { %v1739_v34 = vpop.f32.mrb[3].mxu1  ;;  %v1706_v41 = vadd.f32 %v1705_v39, %v1704_v38 }
 0x100   : > { %v1740_v36 = vadd.f32 %v1739_v34, %v1738_v32  ;;  %v1210_v40 = vadd.f32 %v1737_v31, %v1703_v37 }
 0x102   : > { %v1213_v43 = vadd.f32 %v1740_v36, %v1706_v41 }
 0x103   : > { %v1707_v48 = vpop.f32.mrb[4].mxu0 }
 0x104   : > { %v1741_v44 = vpop.f32.mrb[4].mxu1  ;;  %v1708_v51 = vpop.f32.mrb[5].mxu0 }
 0x105   : > { %v1742_v45 = vpop.f32.mrb[5].mxu1  ;;  %v1709_v42 = vadd.f32 %v1708_v51, %v1707_v48  ;;  %v1710_v52 = vpop.f32.mrb[6].mxu0 }
 0x106   : > { %v1743_v46 = vadd.f32 %v1742_v45, %v1741_v44  ;;  %v1744_v24 = vpop.f32.mrb[6].mxu1  ;;  %v1711_v53 = vpop.f32.mrb[7].mxu0 }
 0x107   : > { %v1745_v47 = vpop.f32.mrb[7].mxu1  ;;  %v1712_v55 = vadd.f32 %v1711_v53, %v1710_v52  ;;  %v1671_v52 = vld [vmem:[%s2435_s3] ss:$0 sm:$0xff] }
 0x108   : > { %v1746_v50 = vadd.f32 %v1745_v47, %v1744_v24  ;;  %v1218_v54 = vadd.f32 %v1743_v46, %v1709_v42 }
 0x10a   : > { %v1221_v56 = vadd.f32 %v1746_v50, %v1712_v55  ;;  %v1670_v50 = vld [vmem:[%s2434_s2] ss:$0 sm:$0xff] }
 0x10c   : > { %v1747_v57 = vpop.f32.mrb[8].mxu1 }
 0x10d   : > { %v1748_v59 = vpop.f32.mrb[9].mxu1 }
 0x10e   : > { %v1749_v60 = vadd.f32 %v1748_v59, %v1747_v57  ;;  %v1750_v61 = vpop.f32.mrb[10].mxu1  ;;  %v1713_v63 = vpop.f32.mrb[8].mxu0 }
 0x10f   : > { %v1751_v62 = vpop.f32.mrb[11].mxu1  ;;  %v1714_v0 = vpop.f32.mrb[9].mxu0 }
 0x110   : > { %v1715_v49 = vadd.f32 %v1714_v0, %v1713_v63  ;;  %v1716_v58 = vpop.f32.mrb[10].mxu0 }
 0x111   : > { %v1717_v1 = vpop.f32.mrb[11].mxu0 }
 0x112   : > { %v1226_v2 = vadd.f32 %v1749_v60, %v1715_v49 }
 0x11b   : > { %v1769_v3 = vpop.f32.mrb[12].mxu0 }
 0x11c   : > { %v1770_v4 = vpop.f32.mrb[13].mxu0  ;;  %v1803_v5 = vpop.f32.mrb[12].mxu1 }
 0x11d   : > { %v1771_v6 = vadd.f32 %v1770_v4, %v1769_v3  ;;  %v1772_v7 = vpop.f32.mrb[14].mxu0  ;;  %v1804_v8 = vpop.f32.mrb[13].mxu1 }
 0x11e   : > { %v1773_v9 = vpop.f32.mrb[15].mxu0  ;;  %v1805_v11 = vadd.f32 %v1804_v8, %v1803_v5  ;;  %v1806_v12 = vpop.f32.mrb[14].mxu1 }
 0x11f   : > { %v1266_v10 = vadd.f32 %v1771_v6, %v1210_v40  ;;  %v1774_v13 = vadd.f32 %v1773_v9, %v1772_v7  ;;  %v1807_v14 = vpop.f32.mrb[15].mxu1 }
 0x120   : > { %v1808_v16 = vadd.f32 %v1807_v14, %v1806_v12 }
 0x121   : > { %v1269_v15 = vadd.f32 %v1774_v13, %v1213_v43  ;;  %v1322_v17 = vadd.f32 %v1805_v11, %v1266_v10 }
 0x123   : > { %v1775_v18 = vpop.f32.mrb[16].mxu0  ;;  %v1325_v20 = vadd.f32 %v1808_v16, %v1269_v15 }
 0x124   : > { %v1776_v21 = vpop.f32.mrb[17].mxu0 }
 0x125   : > { %v1777_v22 = vadd.f32 %v1776_v21, %v1775_v18  ;;  %v1778_v25 = vpop.f32.mrb[18].mxu0  ;;  %v1809_v26 = vpop.f32.mrb[16].mxu1 }
 0x126   : > { %v1779_v27 = vpop.f32.mrb[19].mxu0  ;;  %v1810_v28 = vpop.f32.mrb[17].mxu1 }
 0x127   : > { %v1274_v19 = vadd.f32 %v1777_v22, %v1218_v54  ;;  %v1780_v23 = vadd.f32 %v1779_v27, %v1778_v25  ;;  %v1811_v29 = vadd.f32 %v1810_v28, %v1809_v26  ;;  %v1812_v30 = vpop.f32.mrb[18].mxu1 }
 0x128   : > { %v1813_v31 = vpop.f32.mrb[19].mxu1 }
 0x129   : > { %v1277_v32 = vadd.f32 %v1780_v23, %v1221_v56  ;;  %v1814_v33 = vadd.f32 %v1813_v31, %v1812_v30  ;;  %v1330_v34 = vadd.f32 %v1811_v29, %v1274_v19 }
 0x12b   : > { %v1781_v35 = vpop.f32.mrb[20].mxu0  ;;  %v1333_v36 = vadd.f32 %v1814_v33, %v1277_v32 }
 0x12c   : > { %v1782_v37 = vpop.f32.mrb[21].mxu0 }
 0x12d   : > { %v1783_v38 = vadd.f32 %v1782_v37, %v1781_v35  ;;  %v1815_v39 = vpop.f32.mrb[20].mxu1  ;;  %v1784_v40 = vpop.f32.mrb[22].mxu0 }
 0x12e   : > { %v1816_v41 = vpop.f32.mrb[21].mxu1  ;;  %v1785_v43 = vpop.f32.mrb[23].mxu0 }
 0x12f   : > { %v1282_v44 = vadd.f32 %v1783_v38, %v1226_v2  ;;  %v1817_v45 = vadd.f32 %v1816_v41, %v1815_v39  ;;  %v1818_v46 = vpop.f32.mrb[22].mxu1 }
 0x130   : > { %v1819_v24 = vpop.f32.mrb[23].mxu1 }
 0x131   : > { %v1338_v47 = vadd.f32 %v1817_v45, %v1282_v44 }
 0x13b   : > { %v1377_v48 = vpop.f32.mrb[24].mxu0 }
 0x13c   : > { %v1378_v51 = vadd.f32 %v1377_v48, %v1322_v17  ;;  %v1850_v42 = vpop.f32.mrb[25].mxu0 }
 0x13d   : > { %v1385_v53 = vpop.f32.mrb[24].mxu1  ;;  %v1380_v54 = vpop.f32.mrb[26].mxu0 }
 0x13e   : > { %v1406_v55 = vmul.f32 %v1670_v50, %v1378_v51  ;;  %v1386_v56 = vadd.f32 %v1385_v53, %v1330_v34  ;;  %v1854_v57 = vpop.f32.mrb[25].mxu1  ;;  %v1381_v59 = vadd.f32 %v1380_v54, %v1325_v20  ;;  %v1851_v60 = vpop.f32.mrb[27].mxu0 }
 0x13f   : > { %v1388_v61 = vpop.f32.mrb[26].mxu1 }
 0x140   : > { %v1418_v62 = vadd.f32 %v1671_v52, %v1406_v55  ;;  %v1408_v63 = vmul.f32 %v1670_v50, %v1386_v56  ;;  %v1407_v0 = vmul.f32 %v1670_v50, %v1381_v59  ;;  %v1389_v49 = vadd.f32 %v1388_v61, %v1333_v36  ;;  %v1855_v58 = vpop.f32.mrb[27].mxu1 }
 0x142   : > { %v1420_v1 = vadd.f32 %v1671_v52, %v1408_v63  ;;  %v1419_v2 = vadd.f32 %v1671_v52, %v1407_v0  ;;  %v1409_v3 = vmul.f32 %v1670_v50, %v1389_v49  ;;  %v1423_v4 = vmax.f32 %v1418_v62, 0.0 }
 0x144   : > { %v1424_v5 = vmax.f32 %v1419_v2, 0.0  ;;  %v1421_v6 = vadd.f32 %v1671_v52, %v1409_v3  ;;  %v1425_v8 = vmax.f32 %v1420_v1, 0.0 }
 0x145   : > { %v1393_v7 = vpop.f32.mrb[28].mxu1 }
 0x146   : > { %v1677_v9 = vpack.c.bf16 %v1424_v5, %v1423_v4  ;;  %v1426_v10 = vmax.f32 %v1421_v6, 0.0  ;;  %v1394_v11 = vadd.f32 %v1393_v7, %v1338_v47  ;;  %v1858_v12 = vpop.f32.mrb[29].mxu1 }
 0x147   : > { %v1396_v13 = vpop.f32.mrb[30].mxu1 }
 0x148   : > { %1678 = vst [vmem:[%s219_s23] sm:$0xff] %v1677_v9   ;;  %v1682_v14 = vpack.c.bf16 %v1426_v10, %v1425_v8  ;;  %v1410_v15 = vmul.f32 %v1670_v50, %v1394_v11  ;;  %v1859_v16 = vpop.f32.mrb[31].mxu1 }
 0x14a   : > { %1684 = vst [vmem:[%s219_s23 + $0x8] sm:$0xff] %v1682_v14   ;;  %v1422_v17 = vadd.f32 %v1671_v52, %v1410_v15 }
 0x14c   : > { %v1427_v18 = vmax.f32 %v1422_v17, 0.0 }
 0x14e   : > { %v1432_v20 = vpack.c.bf16 %v1427_v18, %v1427_v18 }
 0x150   : > { %1437 = vst [vmem:[%s219_s23 + $0x10] sm:$0xf] %v1432_v20 }
 0x151 PF: > { %s14_s17 = sadd.s32 1, %s2022_s17   ;;  %s2437_s15 = smov %s2018_s16 }
 0x152   : > { %p11_p5 = scmp.ge.s32.totalorder %s14_s17, 4   ;;  %s2438_s16 = smov %s2440_s18 }
 0x154   :  { %13 = sbr.rel (!%p11_p5) target bundleno = 2 (0x2), region = 69 }

// kernel: stem_v2_forward.24
= control target key start
LH: loop header
LB: loop body
LE: loop exit
PB: predicated region body
PF: predicated region fallthrough
CT: control target
= control target key end

     0   :  { %s424_s9 = smov 0   ;;  %s426_s10 = smov 0   ;;  %s475_s0 = inlined_call_operand.vmem [shape: bf16[2,3,8,768], index: 0, kind: input, shape index: {}]   ;;  %s476_s1 = inlined_call_operand.vmem [shape: bf16[2,3,8,768], index: 1, kind: input, shape index: {}]   ;;  %s477_s2 = inlined_call_operand.vmem [shape: bf16[2,2,8,256], index: 2, kind: output, shape index: {}]  }
   0x1   :  { %s428_s11 = smov 0  }
   0x2 LB: > { %s24_s12 = sadd.s32 1, %s403_s10  ;;  %p346_p0 = scmp.ge.s32.totalorder %s407_s11, 1  ;;  %s407_s11 = sphi %s428_s11, %s12_s11   ;;  %s403_s10 = sphi %s426_s10, %s479_s10   ;;  %s399_s9 = sphi %s424_s9, %s478_s9  }
   0x3   : > { %p26_p1 = scmp.ge.s32.totalorder %s24_s12, 2  ;;  %p136_p2 = scmp.lt.s32.totalorder %s407_s11, 3 }
   0x5   : > { %s481_s12 = smov (%p26_p1, %s24_s12), 0  ;;  %p137_p3 = pnand %p346_p0, %p136_p2 }
   0x6   : > { %p168_p4 = scmp.lt.s32.totalorder (!%p137_p3), %s399_s9, 1 }
   0x7   : > { %140 = sbr.rel (%p137_p3) target bundleno = 38 (0x26), region = 28 }
   0xe   : > { %s483_s9 = smov (!%p168_p4, %s399_s9), 1 }
   0xf   : > { %s360_s13 = smul.u32 72, %s483_s9  ;;  %s359_s20 = sshll.u32 %s483_s9, 4 }
  0x10   : > { %s187_s23 = scalar_lea.vmem %s477_s2, %s359_s20 }
  0x11   : > { %s448_s16 = scalar_lea.vmem %s475_s0, %s360_s13  ;;  %s177_s19 = scalar_lea.vmem %s476_s1, %s360_s13 }
  0x12   : > { %v193_v0 = vld [vmem:[%s448_s16] sm:$0xff]  ;;  %v194_v1 = vld [vmem:[%s448_s16 + $0x8] sm:$0xff]  ;;  %v195_v2 = vld [vmem:[%s448_s16 + $0x10] sm:$0xff] }
  0x13   : > { %v199_v3 = vmax.bf16 %v194_v1, %v193_v0  ;;  %v205_v4 = vld [vmem:[%s177_s19] sm:$0xff]  ;;  %v351_v5 = vld [vmem:[%s448_s16 + $0x18] sm:$0xff]  ;;  %v353_v7 = vld [vmem:[%s448_s16 + $0x28] sm:$0xff] }
  0x14   : > { %v352_v6 = vld [vmem:[%s448_s16 + $0x20] sm:$0xff]  ;;  %v206_v10 = vld [vmem:[%s177_s19 + $0x8] sm:$0xff]  ;;  %v208_v11 = vld [vmem:[%s177_s19 + $0x18] sm:$0xff] }
  0x15   : > { %v201_v8 = vmax.bf16 %v199_v3, %v195_v2  ;;  %v200_v9 = vmax.bf16 %v352_v6, %v351_v5  ;;  %v207_v14 = vld [vmem:[%s177_s19 + $0x10] sm:$0xff]  ;;  %v209_v15 = vld [vmem:[%s177_s19 + $0x20] sm:$0xff]  ;;  %v210_v18 = vld [vmem:[%s177_s19 + $0x28] sm:$0xff] }
  0x16   : > { %v354_v21 = vld [vmem:[%s448_s16 + $0x30] sm:$0xff]  ;;  %v355_v24 = vld [vmem:[%s448_s16 + $0x38] sm:$0xff]  ;;  %v356_v27 = vld [vmem:[%s448_s16 + $0x40] sm:$0xff] }
  0x17   : > { %v211_v12 = vmax.bf16 %v205_v4, %v201_v8  ;;  %v202_v13 = vmax.bf16 %v353_v7, %v200_v9 }
  0x19   : > { %v213_v16 = vmax.bf16 %v211_v12, %v206_v10  ;;  %v212_v17 = vmax.bf16 %v208_v11, %v202_v13 }
  0x1b   : > { %v215_v19 = vmax.bf16 %v213_v16, %v207_v14  ;;  %v214_v20 = vmax.bf16 %v212_v17, %v209_v15 }
  0x1d   : > { %v227_v22 = vmax.bf16 %v351_v5, %v215_v19  ;;  %v216_v23 = vmax.bf16 %v214_v20, %v210_v18 }
  0x1f   : > { %v229_v25 = vmax.bf16 %v352_v6, %v227_v22  ;;  %v228_v26 = vmax.bf16 %v354_v21, %v216_v23 }
  0x21   : > { %v231_v28 = vmax.bf16 %v353_v7, %v229_v25  ;;  %v230_v29 = vmax.bf16 %v355_v24, %v228_v26 }
  0x23   : > { %233 = vst [vmem:[%s187_s23] sm:$0xff] %v231_v28  ;;  %v232_v30 = vmax.bf16 %v356_v27, %v230_v29 }
  0x25   : > { %234 = vst [vmem:[%s187_s23 + $0x8] sm:$0xff] %v232_v30 }
  0x26 PF: > { %s12_s11 = sadd.s32 1, %s407_s11   ;;  %s478_s9 = smov %s403_s10 }
  0x27   : > { %p9_p5 = scmp.ge.s32.totalorder %s12_s11, 4   ;;  %s479_s10 = smov %s481_s12 }
  0x29   :  { %11 = sbr.rel (!%p9_p5) target bundleno = 2 (0x2), region = 64 }

// kernel: stem_v2_forward.25
= control target key start
LH: loop header
LB: loop body
LE: loop exit
PB: predicated region body
PF: predicated region fallthrough
CT: control target
= control target key end

     0   :  { %s3558_s18 = smov 0   ;;  %s3560_s19 = smov 0   ;;  %s4529_s0 = inlined_call_operand.vmem [shape: bf16[2,3,8,768], index: 0, kind: input, shape index: {}]   ;;  %s4530_s1 = inlined_call_operand.vmem [shape: bf16[2,3,8,768], index: 1, kind: input, shape index: {}]   ;;  %s4531_s2 = inlined_call_operand.vmem [shape: bf16[2304,256], index: 2, kind: input, shape index: {}]   ;;  %s4532_s3 = inlined_call_operand.vmem [shape: f32[1,256], index: 3, kind: input, shape index: {}]   ;;  %s4533_s4 = inlined_call_operand.vmem [shape: f32[1,256], index: 4, kind: input, shape index: {}]   ;;  %s4534_s5 = inlined_call_operand.vmem [shape: bf16[2,2,8,256], index: 5, kind: output, shape index: {}]  }
   0x1   :  { %s3562_s20 = smov 0  }
   0x2 LB: > { %s27_s21 = sadd.s32 1, %s3522_s19  ;;  %p2668_p0 = scmp.ge.s32.totalorder %s3526_s20, 1  ;;  %s3526_s20 = sphi %s3562_s20, %s15_s20   ;;  %s3522_s19 = sphi %s3560_s19, %s4536_s19   ;;  %s3518_s18 = sphi %s3558_s18, %s4535_s18  }
   0x3   : > { %p29_p1 = scmp.ge.s32.totalorder %s27_s21, 2  ;;  %p211_p2 = scmp.lt.s32.totalorder %s3526_s20, 3 }
   0x5   : > { %s4538_s21 = smov (%p29_p1, %s27_s21), 0  ;;  %p212_p3 = pnand %p2668_p0, %p211_p2 }
   0x6   : > { %v3049_v0 = vld [vmem:[%s4531_s2 + $0x4] ss:$8 sps:$4 sm:$0xff] (!%p212_p3)   ;;  %v3053_v2 = vld [vmem:[%s4531_s2] ss:$8 sps:$4 sm:$0xff] (!%p212_p3)   ;;  %v3055_v4 = vld [vmem:[%s4531_s2 + $0x14] ss:$8 sps:$4 sm:$0xff] (!%p212_p3)  }
   0x7   : > { %215 = sbr.rel (%p212_p3) target bundleno = 554 (0x22a), region = 40  ;;  %v3051_v1 = vld [vmem:[%s4531_s2 + $0x404] ss:$8 sps:$4 sm:$0xff] (!%p212_p3)   ;;  %2116 = vmatprep.subr.bf16.mxu1 (!%p212_p3), %v3049_v0  ;;  %v3054_v3 = vld [vmem:[%s4531_s2 + $0x400] ss:$8 sps:$4 sm:$0xff] (!%p212_p3)   ;;  %p249_p4 = scmp.lt.s32.totalorder (!%p212_p3), %s3518_s18, 1 }
   0x8   : > { %2288 = vmatprep.subr.bf16.mxu0 (!%p212_p3), %v3051_v1  ;;  %2117 = vmatpush1.bf16.msra.mxu1 (!%p212_p3), %v3053_v2  ;;  %v3057_v5 = vld [vmem:[%s4531_s2 + $0x414] ss:$8 sps:$4 sm:$0xff] (!%p212_p3)   ;;  %v3059_v6 = vld [vmem:[%s4531_s2 + $0x10] ss:$8 sps:$4 sm:$0xff] (!%p212_p3)   ;;  %v3061_v8 = vld [vmem:[%s4531_s2 + $0x24] ss:$8 sps:$4 sm:$0xff] (!%p212_p3)  }
   0x9   : > { %2289 = vmatpush1.bf16.msra.mxu0 (!%p212_p3), %v3054_v3  ;;  %2118 = vmatprep.subr.bf16.mxu1 (!%p212_p3), %v3055_v4  ;;  %v3060_v7 = vld [vmem:[%s4531_s2 + $0x410] ss:$8 sps:$4 sm:$0xff] (!%p212_p3)   ;;  %v3063_v9 = vld [vmem:[%s4531_s2 + $0x424] ss:$8 sps:$4 sm:$0xff] (!%p212_p3)   ;;  %v3065_v10 = vld [vmem:[%s4531_s2 + $0x20] ss:$8 sps:$4 sm:$0xff] (!%p212_p3)  }
   0xa   : > { %2290 = vmatprep.subr.bf16.mxu0 (!%p212_p3), %v3057_v5  ;;  %v3066_v11 = vld [vmem:[%s4531_s2 + $0x420] ss:$8 sps:$4 sm:$0xff] (!%p212_p3)   ;;  %v3067_v12 = vld [vmem:[%s4531_s2 + $0x34] ss:$8 sps:$4 sm:$0xff] (!%p212_p3)   ;;  %v3071_v14 = vld [vmem:[%s4531_s2 + $0x30] ss:$8 sps:$4 sm:$0xff] (!%p212_p3)  }
   0xb   : > { %v3069_v13 = vld [vmem:[%s4531_s2 + $0x434] ss:$8 sps:$4 sm:$0xff] (!%p212_p3)   ;;  %v3072_v15 = vld [vmem:[%s4531_s2 + $0x430] ss:$8 sps:$4 sm:$0xff] (!%p212_p3)   ;;  %v3073_v16 = vld [vmem:[%s4531_s2 + $0x44] ss:$8 sps:$4 sm:$0xff] (!%p212_p3)  }
   0xc   : > { %2119 = vmatpush1.bf16.msra.mxu1 (!%p212_p3), %v3059_v6  ;;  %v3075_v17 = vld [vmem:[%s4531_s2 + $0x444] ss:$8 sps:$4 sm:$0xff] (!%p212_p3)   ;;  %v3077_v18 = vld [vmem:[%s4531_s2 + $0x40] ss:$8 sps:$4 sm:$0xff] (!%p212_p3)   ;;  %v3079_v20 = vld [vmem:[%s4531_s2 + $0x54] ss:$8 sps:$4 sm:$0xff] (!%p212_p3)  }
   0xd   : > { %2291 = vmatpush1.bf16.msra.mxu0 (!%p212_p3), %v3060_v7  ;;  %2120 = vmatprep.subr.bf16.mxu1 (!%p212_p3), %v3061_v8  ;;  %v3078_v19 = vld [vmem:[%s4531_s2 + $0x440] ss:$8 sps:$4 sm:$0xff] (!%p212_p3)   ;;  %v3081_v21 = vld [vmem:[%s4531_s2 + $0x454] ss:$8 sps:$4 sm:$0xff] (!%p212_p3)   ;;  %v3083_v22 = vld [vmem:[%s4531_s2 + $0x50] ss:$8 sps:$4 sm:$0xff] (!%p212_p3)  }
   0xe   : > { %2292 = vmatprep.subr.bf16.mxu0 %v3063_v9  ;;  %v3084_v23 = vld [vmem:[%s4531_s2 + $0x450] ss:$8 sps:$4 sm:$0xff]   ;;  %v3085_v24 = vld [vmem:[%s4531_s2 + $0x64] ss:$8 sps:$4 sm:$0xff]   ;;  %v3089_v26 = vld [vmem:[%s4531_s2 + $0x60] ss:$8 sps:$4 sm:$0xff]  }
   0xf   : > { %v3087_v25 = vld [vmem:[%s4531_s2 + $0x464] ss:$8 sps:$4 sm:$0xff]   ;;  %v3090_v27 = vld [vmem:[%s4531_s2 + $0x460] ss:$8 sps:$4 sm:$0xff]   ;;  %v3091_v28 = vld [vmem:[%s4531_s2 + $0x74] ss:$8 sps:$4 sm:$0xff]  }
  0x10   : > { %2121 = vmatpush1.bf16.msra.mxu1 %v3065_v10  ;;  %v3093_v29 = vld [vmem:[%s4531_s2 + $0x474] ss:$8 sps:$4 sm:$0xff]   ;;  %v3095_v30 = vld [vmem:[%s4531_s2 + $0x70] ss:$8 sps:$4 sm:$0xff]   ;;  %v3097_v32 = vld [vmem:[%s4531_s2 + $0x84] ss:$8 sps:$4 sm:$0xff]  }
  0x11   : > { %2293 = vmatpush1.bf16.msra.mxu0 %v3066_v11  ;;  %2122 = vmatprep.subr.bf16.mxu1 %v3067_v12  ;;  %v3096_v31 = vld [vmem:[%s4531_s2 + $0x470] ss:$8 sps:$4 sm:$0xff]   ;;  %v3099_v33 = vld [vmem:[%s4531_s2 + $0x484] ss:$8 sps:$4 sm:$0xff]   ;;  %v3101_v34 = vld [vmem:[%s4531_s2 + $0x80] ss:$8 sps:$4 sm:$0xff]  }
  0x12   : > { %2294 = vmatprep.subr.bf16.mxu0 %v3069_v13  ;;  %v3102_v35 = vld [vmem:[%s4531_s2 + $0x480] ss:$8 sps:$4 sm:$0xff]   ;;  %s4540_s18 = smov (!%p249_p4, %s3518_s18), 1  ;;  %v3103_v36 = vld [vmem:[%s4531_s2 + $0x94] ss:$8 sps:$4 sm:$0xff]  }
  0x13   : > { %v3105_v37 = vld [vmem:[%s4531_s2 + $0x494] ss:$8 sps:$4 sm:$0xff]   ;;  %v3107_v38 = vld [vmem:[%s4531_s2 + $0x90] ss:$8 sps:$4 sm:$0xff]   ;;  %s3024_s12 = smul.u32 72, %s4540_s18 }
  0x14   : > { %2123 = vmatpush1.bf16.msra.mxu1 %v3071_v14  ;;  %v3108_v39 = vld [vmem:[%s4531_s2 + $0x490] ss:$8 sps:$4 sm:$0xff]   ;;  %v3109_v40 = vld [vmem:[%s4531_s2 + $0xa4] ss:$8 sps:$4 sm:$0xff]   ;;  %v3113_v42 = vld [vmem:[%s4531_s2 + $0xa0] ss:$8 sps:$4 sm:$0xff]  }
  0x15   : > { %2295 = vmatpush1.bf16.msra.mxu0 %v3072_v15  ;;  %2124 = vmatprep.subr.bf16.mxu1 %v3073_v16  ;;  %v3111_v41 = vld [vmem:[%s4531_s2 + $0x4a4] ss:$8 sps:$4 sm:$0xff]   ;;  %v3114_v43 = vld [vmem:[%s4531_s2 + $0x4a0] ss:$8 sps:$4 sm:$0xff]   ;;  %s3718_s29 = scalar_lea.vmem %s4529_s0, %s3024_s12  ;;  %v3115_v44 = vld [vmem:[%s4531_s2 + $0xb4] ss:$8 sps:$4 sm:$0xff]   ;;  %s3733_s14 = scalar_lea.vmem %s4530_s1, %s3024_s12 }
  0x16   : > { %2296 = vmatprep.subr.bf16.mxu0 %v3075_v17  ;;  %v3117_v45 = vld [vmem:[%s4531_s2 + $0x4b4] ss:$8 sps:$4 sm:$0xff]   ;;  %v3119_v46 = vld [vmem:[%s4531_s2 + $0xb0] ss:$8 sps:$4 sm:$0xff]   ;;  %v274_v47 = vld [vmem:[%s3718_s29] sm:$0xff]  ;;  %s2989_s12 = sshll.u32 %s4540_s18, 4 }
  0x17   : > { %v3736_v48 = vld [vmem:[%s3718_s29 + $0x18] sm:$0xff]  ;;  %v3121_v50 = vld [vmem:[%s4531_s2 + $0xc4] ss:$8 sps:$4 sm:$0xff]   ;;  %v3125_v54 = vld [vmem:[%s4531_s2 + $0xc0] ss:$8 sps:$4 sm:$0xff]   ;;  %s268_s24 = scalar_lea.vmem %s4534_s5, %s2989_s12 }
  0x18   : > { %2125 = vmatpush1.bf16.msra.mxu1 %v3077_v18  ;;  %v3120_v49 = vld [vmem:[%s4531_s2 + $0x4b0] ss:$8 sps:$4 sm:$0xff]   ;;  %v2680_v51 = vcombine.high %v274_v47, %v3736_v48  ;;  %v3123_v52 = vld [vmem:[%s4531_s2 + $0x4c4] ss:$8 sps:$4 sm:$0xff]   ;;  %v3126_v55 = vld [vmem:[%s4531_s2 + $0x4c0] ss:$8 sps:$4 sm:$0xff]   ;;  %v2679_v6 = vcombine.low %v274_v47, %v3736_v48 }
  0x19   : > { %2297 = vmatpush1.bf16.msra.mxu0 %v3078_v19  ;;  %2126 = vmatprep.subr.bf16.mxu1 %v3079_v20  ;;  %v3152_v53 = vld [vmem:[%s3733_s14 + $0xc] ss:$24 sps:$4 sm:$0xff]   ;;  %v3127_v56 = vld [vmem:[%s4531_s2 + $0xd4] ss:$8 sps:$4 sm:$0xff]   ;;  %v3131_v58 = vld [vmem:[%s4531_s2 + $0xd0] ss:$8 sps:$4 sm:$0xff]  }
  0x1a   : > { %2298 = vmatprep.subr.bf16.mxu0 %v3081_v21  ;;  %2148 = vmatprep.mubr.bf16.mxu1 %v2680_v51  ;;  %v3129_v57 = vld [vmem:[%s4531_s2 + $0x4d4] ss:$8 sps:$4 sm:$0xff]   ;;  %v3132_v59 = vld [vmem:[%s4531_s2 + $0x4d0] ss:$8 sps:$4 sm:$0xff]   ;;  %v3133_v60 = vld [vmem:[%s4531_s2 + $0xe4] ss:$8 sps:$4 sm:$0xff]  }
  0x1b   : > { %2320 = vmatprep.mubr.bf16.mxu0 %v3152_v53  ;;  %v3135_v61 = vld [vmem:[%s4531_s2 + $0x4e4] ss:$8 sps:$4 sm:$0xff]   ;;  %v3137_v62 = vld [vmem:[%s4531_s2 + $0xe0] ss:$8 sps:$4 sm:$0xff]   ;;  %v3139_v0 = vld [vmem:[%s4531_s2 + $0xf4] ss:$8 sps:$4 sm:$0xff]  }
  0x1c   : > { %2127 = vmatpush1.bf16.msra.mxu1 %v3083_v22  ;;  %v3138_v63 = vld [vmem:[%s4531_s2 + $0x4e0] ss:$8 sps:$4 sm:$0xff]   ;;  %v3141_v1 = vld [vmem:[%s4531_s2 + $0x4f4] ss:$8 sps:$4 sm:$0xff]   ;;  %v3143_v2 = vld [vmem:[%s4531_s2 + $0xf0] ss:$8 sps:$4 sm:$0xff]  }
  0x1d   : > { %2299 = vmatpush1.bf16.msra.mxu0 %v3084_v23  ;;  %2128 = vmatprep.subr.bf16.mxu1 %v3085_v24  ;;  %v3144_v3 = vld [vmem:[%s4531_s2 + $0x4f0] ss:$8 sps:$4 sm:$0xff]   ;;  %v3149_v4 = vld [vmem:[%s4531_s2 + $0x104] ss:$8 sps:$4 sm:$0xff]   ;;  %v3150_v7 = vld [vmem:[%s3733_s14 + $0x8] ss:$24 sps:$4 sm:$0xff]  }
  0x1e   : > { %2300 = vmatprep.subr.bf16.mxu0 %v3087_v25  ;;  %v3155_v5 = vld [vmem:[%s4531_s2 + $0x504] ss:$8 sps:$4 sm:$0xff]   ;;  %v3147_v8 = vld [vmem:[%s4531_s2 + $0x100] ss:$8 sps:$4 sm:$0xff]   ;;  %v3158_v10 = vld [vmem:[%s4531_s2 + $0x114] ss:$8 sps:$4 sm:$0xff]  }
  0x1f   : > { %v3153_v9 = vld [vmem:[%s4531_s2 + $0x500] ss:$8 sps:$4 sm:$0xff]   ;;  %v3161_v11 = vld [vmem:[%s4531_s2 + $0x514] ss:$8 sps:$4 sm:$0xff]   ;;  %v3156_v12 = vld [vmem:[%s4531_s2 + $0x110] ss:$8 sps:$4 sm:$0xff]  }
  0x20   : > { %2129 = vmatpush1.bf16.msra.mxu1 %v3089_v26  ;;  %v3159_v13 = vld [vmem:[%s4531_s2 + $0x510] ss:$8 sps:$4 sm:$0xff]   ;;  %v3164_v14 = vld [vmem:[%s4531_s2 + $0x124] ss:$8 sps:$4 sm:$0xff]   ;;  %v3162_v16 = vld [vmem:[%s4531_s2 + $0x120] ss:$8 sps:$4 sm:$0xff]  }
  0x21   : > { %2301 = vmatpush1.bf16.msra.mxu0 %v3090_v27  ;;  %2130 = vmatprep.subr.bf16.mxu1 %v3091_v28  ;;  %v3167_v15 = vld [vmem:[%s4531_s2 + $0x524] ss:$8 sps:$4 sm:$0xff]   ;;  %v3165_v17 = vld [vmem:[%s4531_s2 + $0x520] ss:$8 sps:$4 sm:$0xff]   ;;  %v3170_v18 = vld [vmem:[%s4531_s2 + $0x134] ss:$8 sps:$4 sm:$0xff]  }
  0x22   : > { %2302 = vmatprep.subr.bf16.mxu0 %v3093_v29  ;;  %v3173_v19 = vld [vmem:[%s4531_s2 + $0x534] ss:$8 sps:$4 sm:$0xff]   ;;  %v3168_v20 = vld [vmem:[%s4531_s2 + $0x130] ss:$8 sps:$4 sm:$0xff]   ;;  %v3176_v22 = vld [vmem:[%s4531_s2 + $0x144] ss:$8 sps:$4 sm:$0xff]  }
  0x23   : > { %v3171_v21 = vld [vmem:[%s4531_s2 + $0x530] ss:$8 sps:$4 sm:$0xff]   ;;  %v3179_v23 = vld [vmem:[%s4531_s2 + $0x544] ss:$8 sps:$4 sm:$0xff]   ;;  %v3174_v24 = vld [vmem:[%s4531_s2 + $0x140] ss:$8 sps:$4 sm:$0xff]  }
  0x24   : > { %2131 = vmatpush1.bf16.msra.mxu1 %v3095_v30  ;;  %v3177_v25 = vld [vmem:[%s4531_s2 + $0x540] ss:$8 sps:$4 sm:$0xff]   ;;  %v3182_v26 = vld [vmem:[%s4531_s2 + $0x154] ss:$8 sps:$4 sm:$0xff]   ;;  %v3180_v28 = vld [vmem:[%s4531_s2 + $0x150] ss:$8 sps:$4 sm:$0xff]  }
  0x25   : > { %2303 = vmatpush1.bf16.msra.mxu0 %v3096_v31  ;;  %2132 = vmatprep.subr.bf16.mxu1 %v3097_v32  ;;  %v3185_v27 = vld [vmem:[%s4531_s2 + $0x554] ss:$8 sps:$4 sm:$0xff]   ;;  %v3183_v29 = vld [vmem:[%s4531_s2 + $0x550] ss:$8 sps:$4 sm:$0xff]   ;;  %v3188_v30 = vld [vmem:[%s4531_s2 + $0x164] ss:$8 sps:$4 sm:$0xff]  }
  0x26   : > { %2304 = vmatprep.subr.bf16.mxu0 %v3099_v33  ;;  %v3191_v31 = vld [vmem:[%s4531_s2 + $0x564] ss:$8 sps:$4 sm:$0xff]   ;;  %v3186_v32 = vld [vmem:[%s4531_s2 + $0x160] ss:$8 sps:$4 sm:$0xff]   ;;  %v3209_v47 = vld [vmem:[%s4531_s2 + $0x594] ss:$8 sps:$4 sm:$0xff]  }
  0x27   : > { %v3189_v33 = vld [vmem:[%s4531_s2 + $0x560] ss:$8 sps:$4 sm:$0xff]   ;;  %v3212_v51 = vld [vmem:[%s4531_s2 + $0x1a4] ss:$8 sps:$4 sm:$0xff]  }
  0x28   : > { %2133 = vmatpush1.bf16.msra.mxu1 %v3101_v34  ;;  %v3878_v34 = vld [vmem:[%s3718_s29 + $0x8] sm:$0xff] }
  0x29   : > { %2305 = vmatpush1.bf16.msra.mxu0 %v3102_v35  ;;  %2134 = vmatprep.subr.bf16.mxu1 %v3103_v36  ;;  %v3881_v35 = vld [vmem:[%s3718_s29 + $0x20] sm:$0xff]  ;;  %v3194_v36 = vld [vmem:[%s4531_s2 + $0x174] ss:$8 sps:$4 sm:$0xff]  }
  0x2a   : > { %2306 = vmatprep.subr.bf16.mxu0 %v3105_v37  ;;  %v2682_v37 = vcombine.high %v3878_v34, %v3881_v35  ;;  %v3210_v53 = vld [vmem:[%s4531_s2 + $0x1a0] ss:$8 sps:$4 sm:$0xff]  }
  0x2c   : > { %2135 = vmatpush1.bf16.msra.mxu1 %v3107_v38  ;;  %v3197_v38 = vld [vmem:[%s4531_s2 + $0x574] ss:$8 sps:$4 sm:$0xff]  }
  0x2d   : > { %2307 = vmatpush1.bf16.msra.mxu0 %v3108_v39  ;;  %2136 = vmatprep.subr.bf16.mxu1 %v3109_v40  ;;  %v3253_v39 = vld [vmem:[%s3733_s14 + $0x14] ss:$24 sps:$4 sm:$0xff]   ;;  %v3192_v40 = vld [vmem:[%s4531_s2 + $0x170] ss:$8 sps:$4 sm:$0xff]  }
  0x2e   : > { %2308 = vmatprep.subr.bf16.mxu0 %v3111_v41  ;;  %v3195_v41 = vld [vmem:[%s4531_s2 + $0x570] ss:$8 sps:$4 sm:$0xff]  }
  0x30   : > { %2137 = vmatpush1.bf16.msra.mxu1 %v3113_v42  ;;  %v3200_v42 = vld [vmem:[%s4531_s2 + $0x184] ss:$8 sps:$4 sm:$0xff]  }
  0x31   : > { %2309 = vmatpush1.bf16.msra.mxu0 %v3114_v43  ;;  %2138 = vmatprep.subr.bf16.mxu1 %v3115_v44  ;;  %v3203_v43 = vld [vmem:[%s4531_s2 + $0x584] ss:$8 sps:$4 sm:$0xff]   ;;  %v3198_v44 = vld [vmem:[%s4531_s2 + $0x180] ss:$8 sps:$4 sm:$0xff]  }
  0x32   : > { %2310 = vmatprep.subr.bf16.mxu0 %v3117_v45  ;;  %v3201_v45 = vld [vmem:[%s4531_s2 + $0x580] ss:$8 sps:$4 sm:$0xff]  }
  0x34   : > { %2139 = vmatpush1.bf16.msra.mxu1 %v3119_v46  ;;  %v3206_v46 = vld [vmem:[%s4531_s2 + $0x194] ss:$8 sps:$4 sm:$0xff]  }
  0x35   : > { %2311 = vmatpush1.bf16.msra.mxu0 %v3120_v49  ;;  %2140 = vmatprep.subr.bf16.mxu1 %v3121_v50  ;;  %v3204_v49 = vld [vmem:[%s4531_s2 + $0x190] ss:$8 sps:$4 sm:$0xff]  }
  0x36   : > { %2312 = vmatprep.subr.bf16.mxu0 %v3123_v52  ;;  %v3207_v50 = vld [vmem:[%s4531_s2 + $0x590] ss:$8 sps:$4 sm:$0xff]   ;;  %v3215_v52 = vld [vmem:[%s4531_s2 + $0x5a4] ss:$8 sps:$4 sm:$0xff]  }
  0x38   : > { %2141 = vmatpush1.bf16.msra.mxu1 %v3125_v54  ;;  %v3213_v54 = vld [vmem:[%s4531_s2 + $0x5a0] ss:$8 sps:$4 sm:$0xff]  }
  0x39   : > { %2313 = vmatpush1.bf16.msra.mxu0 %v3126_v55  ;;  %2142 = vmatprep.subr.bf16.mxu1 %v3127_v56  ;;  %v3218_v55 = vld [vmem:[%s4531_s2 + $0x1b4] ss:$8 sps:$4 sm:$0xff]  }
  0x3a   : > { %2314 = vmatprep.subr.bf16.mxu0 %v3129_v57  ;;  %v3221_v56 = vld [vmem:[%s4531_s2 + $0x5b4] ss:$8 sps:$4 sm:$0xff]   ;;  %v3216_v57 = vld [vmem:[%s4531_s2 + $0x1b0] ss:$8 sps:$4 sm:$0xff]  }
  0x3c   : > { %2143 = vmatpush1.bf16.msra.mxu1 %v3131_v58  ;;  %v3219_v58 = vld [vmem:[%s4531_s2 + $0x5b0] ss:$8 sps:$4 sm:$0xff]  }
  0x3d   : > { %2315 = vmatpush1.bf16.msra.mxu0 %v3132_v59  ;;  %2144 = vmatprep.subr.bf16.mxu1 %v3133_v60  ;;  %v3224_v59 = vld [vmem:[%s4531_s2 + $0x1c4] ss:$8 sps:$4 sm:$0xff]  }
  0x3e   : > { %2316 = vmatprep.subr.bf16.mxu0 %v3135_v61  ;;  %v3227_v60 = vld [vmem:[%s4531_s2 + $0x5c4] ss:$8 sps:$4 sm:$0xff]   ;;  %v3222_v61 = vld [vmem:[%s4531_s2 + $0x1c0] ss:$8 sps:$4 sm:$0xff]  }
  0x40   : > { %2145 = vmatpush1.bf16.msra.mxu1 %v3137_v62  ;;  %v3225_v62 = vld [vmem:[%s4531_s2 + $0x5c0] ss:$8 sps:$4 sm:$0xff]  }
  0x41   : > { %2317 = vmatpush1.bf16.msra.mxu0 %v3138_v63  ;;  %2146 = vmatprep.subr.bf16.mxu1 %v3139_v0  ;;  %v3230_v63 = vld [vmem:[%s4531_s2 + $0x1d4] ss:$8 sps:$4 sm:$0xff]  }
  0x42   : > { %2318 = vmatprep.subr.bf16.mxu0 %v3141_v1  ;;  %v3233_v0 = vld [vmem:[%s4531_s2 + $0x5d4] ss:$8 sps:$4 sm:$0xff]   ;;  %v3228_v1 = vld [vmem:[%s4531_s2 + $0x1d0] ss:$8 sps:$4 sm:$0xff]  }
  0x44   : > { %2147 = vmatpush1.bf16.msra.mxu1 %v3143_v2  ;;  %v3231_v2 = vld [vmem:[%s4531_s2 + $0x5d0] ss:$8 sps:$4 sm:$0xff]  }
  0x45   : > { %2319 = vmatpush1.bf16.msra.mxu0 %v3144_v3  ;;  %2159 = vmatprep.subr.bf16.mxu1 %v3149_v4  ;;  %v3236_v3 = vld [vmem:[%s4531_s2 + $0x1e4] ss:$8 sps:$4 sm:$0xff]  }
  0x46   : > { %2331 = vmatprep.subr.bf16.mxu0 %v3155_v5  ;;  %v3239_v4 = vld [vmem:[%s4531_s2 + $0x5e4] ss:$8 sps:$4 sm:$0xff]   ;;  %v3234_v5 = vld [vmem:[%s4531_s2 + $0x1e0] ss:$8 sps:$4 sm:$0xff]  }
  0x47   : > { %2149 = vmatmul.mubr.bf16.vlgmr.msra.gmra.mrb[0].mxu1 %v2679_v6  ;;  %v3237_v6 = vld [vmem:[%s4531_s2 + $0x5e0] ss:$8 sps:$4 sm:$0xff]  }
  0x48   : > { %2321 = vmatmul.mubr.bf16.vlgmr.msra.gmra.mrb[0].mxu0 %v3150_v7  ;;  %2160 = vmatpush1.bf16.msra.mxu1 %v3147_v8  ;;  %v3242_v7 = vld [vmem:[%s4531_s2 + $0x1f4] ss:$8 sps:$4 sm:$0xff]  }
  0x49   : > { %2332 = vmatpush1.bf16.msra.mxu0 %v3153_v9  ;;  %2161 = vmatprep.subr.bf16.mxu1 %v3158_v10  ;;  %v3245_v8 = vld [vmem:[%s4531_s2 + $0x5f4] ss:$8 sps:$4 sm:$0xff]   ;;  %v3240_v9 = vld [vmem:[%s4531_s2 + $0x1f0] ss:$8 sps:$4 sm:$0xff]  }
  0x4a   : > { %2333 = vmatprep.subr.bf16.mxu0 %v3161_v11  ;;  %2191 = vmatprep.mubr.bf16.mxu1 %v2682_v37  ;;  %v3243_v10 = vld [vmem:[%s4531_s2 + $0x5f0] ss:$8 sps:$4 sm:$0xff]   ;;  %v3250_v11 = vld [vmem:[%s4531_s2 + $0x204] ss:$8 sps:$4 sm:$0xff]   ;;  %v3278_v37 = vld [vmem:[%s4531_s2 + $0x640] ss:$8 sps:$4 sm:$0xff]  }
  0x4b   : > { %2363 = vmatprep.mubr.bf16.mxu0 %v3253_v39  ;;  %v3286_v39 = vld [vmem:[%s4531_s2 + $0x654] ss:$8 sps:$4 sm:$0xff]  }
  0x4c   : > { %2162 = vmatpush1.bf16.msra.mxu1 %v3156_v12  ;;  %v3256_v12 = vld [vmem:[%s4531_s2 + $0x604] ss:$8 sps:$4 sm:$0xff]  }
  0x4d   : > { %2334 = vmatpush1.bf16.msra.mxu0 %v3159_v13  ;;  %2163 = vmatprep.subr.bf16.mxu1 %v3164_v14  ;;  %v3248_v13 = vld [vmem:[%s4531_s2 + $0x200] ss:$8 sps:$4 sm:$0xff]   ;;  %v2681_v14 = vcombine.low %v3878_v34, %v3881_v35  ;;  %v3280_v34 = vld [vmem:[%s4531_s2 + $0x644] ss:$8 sps:$4 sm:$0xff]  }
  0x4e   : > { %2335 = vmatprep.subr.bf16.mxu0 %v3167_v15  ;;  %v3251_v15 = vld [vmem:[%s3733_s14 + $0x10] ss:$24 sps:$4 sm:$0xff]  }
  0x50   : > { %2164 = vmatpush1.bf16.msra.mxu1 %v3162_v16  ;;  %v3254_v16 = vld [vmem:[%s4531_s2 + $0x600] ss:$8 sps:$4 sm:$0xff]  }
  0x51   : > { %2336 = vmatpush1.bf16.msra.mxu0 %v3165_v17  ;;  %2165 = vmatprep.subr.bf16.mxu1 %v3170_v18  ;;  %v3259_v17 = vld [vmem:[%s4531_s2 + $0x214] ss:$8 sps:$4 sm:$0xff]  }
  0x52   : > { %2337 = vmatprep.subr.bf16.mxu0 %v3173_v19  ;;  %v3262_v18 = vld [vmem:[%s4531_s2 + $0x614] ss:$8 sps:$4 sm:$0xff]   ;;  %v3257_v19 = vld [vmem:[%s4531_s2 + $0x210] ss:$8 sps:$4 sm:$0xff]  }
  0x54   : > { %2166 = vmatpush1.bf16.msra.mxu1 %v3168_v20  ;;  %v3260_v20 = vld [vmem:[%s4531_s2 + $0x610] ss:$8 sps:$4 sm:$0xff]  }
  0x55   : > { %2338 = vmatpush1.bf16.msra.mxu0 %v3171_v21  ;;  %2167 = vmatprep.subr.bf16.mxu1 %v3176_v22  ;;  %v4022_v21 = vld [vmem:[%s3718_s29 + $0x10] sm:$0xff]  ;;  %v4025_v22 = vld [vmem:[%s3718_s29 + $0x28] sm:$0xff] }
  0x56   : > { %2339 = vmatprep.subr.bf16.mxu0 %v3179_v23  ;;  %v3265_v23 = vld [vmem:[%s4531_s2 + $0x224] ss:$8 sps:$4 sm:$0xff]  }
  0x58   : > { %2168 = vmatpush1.bf16.msra.mxu1 %v3174_v24  ;;  %v3268_v24 = vld [vmem:[%s4531_s2 + $0x624] ss:$8 sps:$4 sm:$0xff]  }
  0x59   : > { %2340 = vmatpush1.bf16.msra.mxu0 %v3177_v25  ;;  %2169 = vmatprep.subr.bf16.mxu1 %v3182_v26  ;;  %v2684_v25 = vcombine.high %v4022_v21, %v4025_v22  ;;  %v4036_v26 = vld [vmem:[%s3718_s29 + $0x30] sm:$0xff] }
  0x5a   : > { %2341 = vmatprep.subr.bf16.mxu0 %v3185_v27  ;;  %v3263_v27 = vld [vmem:[%s4531_s2 + $0x220] ss:$8 sps:$4 sm:$0xff]  }
  0x5c   : > { %2170 = vmatpush1.bf16.msra.mxu1 %v3180_v28  ;;  %v2692_v28 = vcombine.high %v3736_v48, %v4036_v26  ;;  %v3269_v48 = vld [vmem:[%s4531_s2 + $0x230] ss:$8 sps:$4 sm:$0xff]  }
  0x5d   : > { %2342 = vmatpush1.bf16.msra.mxu0 %v3183_v29  ;;  %2171 = vmatprep.subr.bf16.mxu1 %v3188_v30  ;;  %v3266_v29 = vld [vmem:[%s4531_s2 + $0x620] ss:$8 sps:$4 sm:$0xff]   ;;  %v3271_v30 = vld [vmem:[%s4531_s2 + $0x234] ss:$8 sps:$4 sm:$0xff]  }
  0x5e   : > { %2343 = vmatprep.subr.bf16.mxu0 %v3191_v31  ;;  %v3274_v31 = vld [vmem:[%s4531_s2 + $0x634] ss:$8 sps:$4 sm:$0xff]  }
  0x60   : > { %2172 = vmatpush1.bf16.msra.mxu1 %v3186_v32  ;;  %v3272_v32 = vld [vmem:[%s4531_s2 + $0x630] ss:$8 sps:$4 sm:$0xff]  }
  0x61   : > { %2344 = vmatpush1.bf16.msra.mxu0 %v3189_v33  ;;  %2173 = vmatprep.subr.bf16.mxu1 %v3194_v36  ;;  %v3277_v33 = vld [vmem:[%s4531_s2 + $0x244] ss:$8 sps:$4 sm:$0xff]   ;;  %v3275_v36 = vld [vmem:[%s4531_s2 + $0x240] ss:$8 sps:$4 sm:$0xff]  }
  0x62   : > { %2345 = vmatprep.subr.bf16.mxu0 %v3197_v38  ;;  %v3283_v38 = vld [vmem:[%s4531_s2 + $0x254] ss:$8 sps:$4 sm:$0xff]  }
  0x64   : > { %2174 = vmatpush1.bf16.msra.mxu1 %v3192_v40  ;;  %v3281_v40 = vld [vmem:[%s4531_s2 + $0x250] ss:$8 sps:$4 sm:$0xff]  }
  0x65   : > { %2346 = vmatpush1.bf16.msra.mxu0 %v3195_v41  ;;  %2175 = vmatprep.subr.bf16.mxu1 %v3200_v42  ;;  %v3284_v41 = vld [vmem:[%s4531_s2 + $0x650] ss:$8 sps:$4 sm:$0xff]   ;;  %v3289_v42 = vld [vmem:[%s4531_s2 + $0x264] ss:$8 sps:$4 sm:$0xff]  }
  0x66   : > { %2347 = vmatprep.subr.bf16.mxu0 %v3203_v43  ;;  %v3292_v43 = vld [vmem:[%s4531_s2 + $0x664] ss:$8 sps:$4 sm:$0xff]  }
  0x68   : > { %2176 = vmatpush1.bf16.msra.mxu1 %v3198_v44  ;;  %v3287_v44 = vld [vmem:[%s4531_s2 + $0x260] ss:$8 sps:$4 sm:$0xff]  }
  0x69   : > { %2348 = vmatpush1.bf16.msra.mxu0 %v3201_v45  ;;  %2177 = vmatprep.subr.bf16.mxu1 %v3206_v46  ;;  %v3290_v45 = vld [vmem:[%s4531_s2 + $0x660] ss:$8 sps:$4 sm:$0xff]   ;;  %v3295_v46 = vld [vmem:[%s4531_s2 + $0x274] ss:$8 sps:$4 sm:$0xff]  }
  0x6a   : > { %2349 = vmatprep.subr.bf16.mxu0 %v3209_v47  ;;  %v3298_v47 = vld [vmem:[%s4531_s2 + $0x674] ss:$8 sps:$4 sm:$0xff]  }
  0x6c   : > { %2178 = vmatpush1.bf16.msra.mxu1 %v3204_v49  ;;  %v3293_v49 = vld [vmem:[%s4531_s2 + $0x270] ss:$8 sps:$4 sm:$0xff]  }
  0x6d   : > { %2350 = vmatpush1.bf16.msra.mxu0 %v3207_v50  ;;  %2179 = vmatprep.subr.bf16.mxu1 %v3212_v51  ;;  %v3296_v50 = vld [vmem:[%s4531_s2 + $0x670] ss:$8 sps:$4 sm:$0xff]   ;;  %v3301_v51 = vld [vmem:[%s4531_s2 + $0x284] ss:$8 sps:$4 sm:$0xff]  }
  0x6e   : > { %2351 = vmatprep.subr.bf16.mxu0 %v3215_v52  ;;  %v3304_v52 = vld [vmem:[%s4531_s2 + $0x684] ss:$8 sps:$4 sm:$0xff]  }
  0x70   : > { %2180 = vmatpush1.bf16.msra.mxu1 %v3210_v53  ;;  %v3299_v53 = vld [vmem:[%s4531_s2 + $0x280] ss:$8 sps:$4 sm:$0xff]  }
  0x71   : > { %2352 = vmatpush1.bf16.msra.mxu0 %v3213_v54  ;;  %2181 = vmatprep.subr.bf16.mxu1 %v3218_v55  ;;  %v3302_v54 = vld [vmem:[%s4531_s2 + $0x680] ss:$8 sps:$4 sm:$0xff]   ;;  %v3307_v55 = vld [vmem:[%s4531_s2 + $0x294] ss:$8 sps:$4 sm:$0xff]  }
  0x72   : > { %2353 = vmatprep.subr.bf16.mxu0 %v3221_v56  ;;  %v3310_v56 = vld [vmem:[%s4531_s2 + $0x694] ss:$8 sps:$4 sm:$0xff]  }
  0x74   : > { %2182 = vmatpush1.bf16.msra.mxu1 %v3216_v57  ;;  %v3305_v57 = vld [vmem:[%s4531_s2 + $0x290] ss:$8 sps:$4 sm:$0xff]  }
  0x75   : > { %2354 = vmatpush1.bf16.msra.mxu0 %v3219_v58  ;;  %2183 = vmatprep.subr.bf16.mxu1 %v3224_v59  ;;  %v3308_v58 = vld [vmem:[%s4531_s2 + $0x690] ss:$8 sps:$4 sm:$0xff]   ;;  %v3313_v59 = vld [vmem:[%s4531_s2 + $0x2a4] ss:$8 sps:$4 sm:$0xff]  }
  0x76   : > { %2355 = vmatprep.subr.bf16.mxu0 %v3227_v60  ;;  %v3316_v60 = vld [vmem:[%s4531_s2 + $0x6a4] ss:$8 sps:$4 sm:$0xff]  }
  0x78   : > { %2184 = vmatpush1.bf16.msra.mxu1 %v3222_v61  ;;  %v3311_v61 = vld [vmem:[%s4531_s2 + $0x2a0] ss:$8 sps:$4 sm:$0xff]  }
  0x79   : > { %2356 = vmatpush1.bf16.msra.mxu0 %v3225_v62  ;;  %2185 = vmatprep.subr.bf16.mxu1 %v3230_v63  ;;  %v3314_v62 = vld [vmem:[%s4531_s2 + $0x6a0] ss:$8 sps:$4 sm:$0xff]   ;;  %v3319_v63 = vld [vmem:[%s4531_s2 + $0x2b4] ss:$8 sps:$4 sm:$0xff]  }
  0x7a   : > { %2357 = vmatprep.subr.bf16.mxu0 %v3233_v0  ;;  %v3322_v0 = vld [vmem:[%s4531_s2 + $0x6b4] ss:$8 sps:$4 sm:$0xff]  }
  0x7c   : > { %2186 = vmatpush1.bf16.msra.mxu1 %v3228_v1  ;;  %v3317_v1 = vld [vmem:[%s4531_s2 + $0x2b0] ss:$8 sps:$4 sm:$0xff]  }
  0x7d   : > { %2358 = vmatpush1.bf16.msra.mxu0 %v3231_v2  ;;  %2187 = vmatprep.subr.bf16.mxu1 %v3236_v3  ;;  %v3320_v2 = vld [vmem:[%s4531_s2 + $0x6b0] ss:$8 sps:$4 sm:$0xff]   ;;  %v3325_v3 = vld [vmem:[%s4531_s2 + $0x2c4] ss:$8 sps:$4 sm:$0xff]  }
  0x7e   : > { %2359 = vmatprep.subr.bf16.mxu0 %v3239_v4  ;;  %v3328_v4 = vld [vmem:[%s4531_s2 + $0x6c4] ss:$8 sps:$4 sm:$0xff]  }
  0x80   : > { %2188 = vmatpush1.bf16.msra.mxu1 %v3234_v5  ;;  %v3323_v5 = vld [vmem:[%s4531_s2 + $0x2c0] ss:$8 sps:$4 sm:$0xff]  }
  0x81   : > { %2360 = vmatpush1.bf16.msra.mxu0 %v3237_v6  ;;  %2189 = vmatprep.subr.bf16.mxu1 %v3242_v7  ;;  %v3326_v6 = vld [vmem:[%s4531_s2 + $0x6c0] ss:$8 sps:$4 sm:$0xff]   ;;  %v3331_v7 = vld [vmem:[%s4531_s2 + $0x2d4] ss:$8 sps:$4 sm:$0xff]  }
  0x82   : > { %2361 = vmatprep.subr.bf16.mxu0 %v3245_v8  ;;  %v3334_v8 = vld [vmem:[%s4531_s2 + $0x6d4] ss:$8 sps:$4 sm:$0xff]  }
  0x84   : > { %2190 = vmatpush1.bf16.msra.mxu1 %v3240_v9  ;;  %v3329_v9 = vld [vmem:[%s4531_s2 + $0x2d0] ss:$8 sps:$4 sm:$0xff]  }
  0x85   : > { %2362 = vmatpush1.bf16.msra.mxu0 %v3243_v10  ;;  %2202 = vmatprep.subr.bf16.mxu1 %v3250_v11  ;;  %v3332_v10 = vld [vmem:[%s4531_s2 + $0x6d0] ss:$8 sps:$4 sm:$0xff]   ;;  %v3337_v11 = vld [vmem:[%s4531_s2 + $0x2e4] ss:$8 sps:$4 sm:$0xff]  }
  0x86   : > { %2374 = vmatprep.subr.bf16.mxu0 %v3256_v12  ;;  %v3340_v12 = vld [vmem:[%s4531_s2 + $0x6e4] ss:$8 sps:$4 sm:$0xff]  }
  0x87   : > { %2192 = vmatmul.mubr.bf16.vlgmr.msra.gmra.mrb[0].mxu1 %v2681_v14  ;;  %v3338_v14 = vld [vmem:[%s4531_s2 + $0x6e0] ss:$8 sps:$4 sm:$0xff]  }
  0x88   : > { %2364 = vmatmul.mubr.bf16.vlgmr.msra.gmra.mrb[0].mxu0 %v3251_v15  ;;  %2203 = vmatpush1.bf16.msra.mxu1 %v3248_v13  ;;  %v3335_v13 = vld [vmem:[%s4531_s2 + $0x2e0] ss:$8 sps:$4 sm:$0xff]   ;;  %v3343_v15 = vld [vmem:[%s4531_s2 + $0x2f4] ss:$8 sps:$4 sm:$0xff]  }
  0x89   : > { %2375 = vmatpush1.bf16.msra.mxu0 %v3254_v16  ;;  %2204 = vmatprep.subr.bf16.mxu1 %v3259_v17  ;;  %v3346_v16 = vld [vmem:[%s4531_s2 + $0x6f4] ss:$8 sps:$4 sm:$0xff]   ;;  %v3341_v17 = vld [vmem:[%s4531_s2 + $0x2f0] ss:$8 sps:$4 sm:$0xff]  }
  0x8a   : > { %2376 = vmatprep.subr.bf16.mxu0 %v3262_v18  ;;  %2234 = vmatprep.mubr.bf16.mxu1 %v2684_v25  ;;  %v3344_v18 = vld [vmem:[%s4531_s2 + $0x6f0] ss:$8 sps:$4 sm:$0xff]  }
  0x8b   : > { %2406 = vmatprep.mubr.bf16.mxu0 %v2692_v28  ;;  %v3502_v25 = vld [vmem:[%s3718_s29 + $0x18] sm:$0xff]  ;;  %v3354_v28 = vld [vmem:[%s4531_s2 + $0x700] ss:$8 sps:$4 sm:$0xff]  }
  0x8c   : > { %2205 = vmatpush1.bf16.msra.mxu1 %v3257_v19  ;;  %v3351_v19 = vld [vmem:[%s4531_s2 + $0x304] ss:$8 sps:$4 sm:$0xff]  }
  0x8d   : > { %2377 = vmatpush1.bf16.msra.mxu0 %v3260_v20  ;;  %2206 = vmatprep.subr.bf16.mxu1 %v3265_v23  ;;  %v3356_v20 = vld [vmem:[%s4531_s2 + $0x704] ss:$8 sps:$4 sm:$0xff]   ;;  %v3349_v23 = vld [vmem:[%s4531_s2 + $0x300] ss:$8 sps:$4 sm:$0xff]  }
  0x8e   : > { %2378 = vmatprep.subr.bf16.mxu0 %v3268_v24  ;;  %v2683_v24 = vcombine.low %v4022_v21, %v4025_v22  ;;  %v3362_v21 = vld [vmem:[%s4531_s2 + $0x714] ss:$8 sps:$4 sm:$0xff]  }
  0x90   : > { %2207 = vmatpush1.bf16.msra.mxu1 %v3263_v27  ;;  %v2691_v27 = vcombine.low %v3502_v25, %v4036_v26  ;;  %v3446_v25 = vld [vmem:[%s4531_s2 + $0x7f4] ss:$8 sps:$4 sm:$0xff]  }
  0x91   : > { %2379 = vmatpush1.bf16.msra.mxu0 %v3266_v29  ;;  %2208 = vmatprep.subr.bf16.mxu1 %v3271_v30  ;;  %v4219_v29 = vld [vmem:[%s3718_s29 + $0x38] sm:$0xff] }
  0x92   : > { %2380 = vmatprep.subr.bf16.mxu0 %v3274_v31  ;;  %v3359_v30 = vld [vmem:[%s4531_s2 + $0x314] ss:$8 sps:$4 sm:$0xff]   ;;  %v2694_v26 = vcombine.high %v3881_v35, %v4219_v29  ;;  %v3368_v35 = vld [vmem:[%s4531_s2 + $0x724] ss:$8 sps:$4 sm:$0xff]  }
  0x93   : > { %v3449_v31 = vld [vmem:[%s3733_s14 + $0x4] ss:$24 sps:$4 sm:$0xff]  }
  0x94   : > { %2209 = vmatpush1.bf16.msra.mxu1 %v3269_v48  ;;  %v3357_v48 = vld [vmem:[%s4531_s2 + $0x310] ss:$8 sps:$4 sm:$0xff]  }
  0x95   : > { %2381 = vmatpush1.bf16.msra.mxu0 %v3272_v32  ;;  %2210 = vmatprep.subr.bf16.mxu1 %v3277_v33  ;;  %v3360_v32 = vld [vmem:[%s4531_s2 + $0x710] ss:$8 sps:$4 sm:$0xff]   ;;  %v3365_v33 = vld [vmem:[%s4531_s2 + $0x324] ss:$8 sps:$4 sm:$0xff]  }
  0x96   : > { %2382 = vmatprep.subr.bf16.mxu0 %v3280_v34  ;;  %v3363_v34 = vld [vmem:[%s4531_s2 + $0x320] ss:$8 sps:$4 sm:$0xff]  }
  0x98   : > { %2211 = vmatpush1.bf16.msra.mxu1 %v3275_v36  ;;  %v3366_v36 = vld [vmem:[%s4531_s2 + $0x720] ss:$8 sps:$4 sm:$0xff]  }
  0x99   : > { %2383 = vmatpush1.bf16.msra.mxu0 %v3278_v37  ;;  %2212 = vmatprep.subr.bf16.mxu1 %v3283_v38  ;;  %v3371_v37 = vld [vmem:[%s4531_s2 + $0x334] ss:$8 sps:$4 sm:$0xff]  }
  0x9a   : > { %2384 = vmatprep.subr.bf16.mxu0 %v3286_v39  ;;  %v3374_v38 = vld [vmem:[%s4531_s2 + $0x734] ss:$8 sps:$4 sm:$0xff]   ;;  %v3369_v39 = vld [vmem:[%s4531_s2 + $0x330] ss:$8 sps:$4 sm:$0xff]  }
  0x9c   : > { %2213 = vmatpush1.bf16.msra.mxu1 %v3281_v40  ;;  %v3372_v40 = vld [vmem:[%s4531_s2 + $0x730] ss:$8 sps:$4 sm:$0xff]  }
  0x9d   : > { %2385 = vmatpush1.bf16.msra.mxu0 %v3284_v41  ;;  %2214 = vmatprep.subr.bf16.mxu1 %v3289_v42  ;;  %v3377_v41 = vld [vmem:[%s4531_s2 + $0x344] ss:$8 sps:$4 sm:$0xff]  }
  0x9e   : > { %2386 = vmatprep.subr.bf16.mxu0 %v3292_v43  ;;  %v3380_v42 = vld [vmem:[%s4531_s2 + $0x744] ss:$8 sps:$4 sm:$0xff]   ;;  %v3375_v43 = vld [vmem:[%s4531_s2 + $0x340] ss:$8 sps:$4 sm:$0xff]  }
  0xa0   : > { %2215 = vmatpush1.bf16.msra.mxu1 %v3287_v44  ;;  %v3378_v44 = vld [vmem:[%s4531_s2 + $0x740] ss:$8 sps:$4 sm:$0xff]  }
  0xa1   : > { %2387 = vmatpush1.bf16.msra.mxu0 %v3290_v45  ;;  %2216 = vmatprep.subr.bf16.mxu1 %v3295_v46  ;;  %v3383_v45 = vld [vmem:[%s4531_s2 + $0x354] ss:$8 sps:$4 sm:$0xff]  }
  0xa2   : > { %2388 = vmatprep.subr.bf16.mxu0 %v3298_v47  ;;  %v3386_v46 = vld [vmem:[%s4531_s2 + $0x754] ss:$8 sps:$4 sm:$0xff]   ;;  %v3381_v47 = vld [vmem:[%s4531_s2 + $0x350] ss:$8 sps:$4 sm:$0xff]  }
  0xa4   : > { %2217 = vmatpush1.bf16.msra.mxu1 %v3293_v49  ;;  %v3384_v49 = vld [vmem:[%s4531_s2 + $0x750] ss:$8 sps:$4 sm:$0xff]  }
  0xa5   : > { %2389 = vmatpush1.bf16.msra.mxu0 %v3296_v50  ;;  %2218 = vmatprep.subr.bf16.mxu1 %v3301_v51  ;;  %v3389_v50 = vld [vmem:[%s4531_s2 + $0x364] ss:$8 sps:$4 sm:$0xff]  }
  0xa6   : > { %2390 = vmatprep.subr.bf16.mxu0 %v3304_v52  ;;  %v3392_v51 = vld [vmem:[%s4531_s2 + $0x764] ss:$8 sps:$4 sm:$0xff]   ;;  %v3387_v52 = vld [vmem:[%s4531_s2 + $0x360] ss:$8 sps:$4 sm:$0xff]  }
  0xa8   : > { %2219 = vmatpush1.bf16.msra.mxu1 %v3299_v53  ;;  %v3390_v53 = vld [vmem:[%s4531_s2 + $0x760] ss:$8 sps:$4 sm:$0xff]  }
  0xa9   : > { %2391 = vmatpush1.bf16.msra.mxu0 %v3302_v54  ;;  %2220 = vmatprep.subr.bf16.mxu1 %v3307_v55  ;;  %v3395_v54 = vld [vmem:[%s4531_s2 + $0x374] ss:$8 sps:$4 sm:$0xff]  }
  0xaa   : > { %2392 = vmatprep.subr.bf16.mxu0 %v3310_v56  ;;  %v3398_v55 = vld [vmem:[%s4531_s2 + $0x774] ss:$8 sps:$4 sm:$0xff]   ;;  %v3393_v56 = vld [vmem:[%s4531_s2 + $0x370] ss:$8 sps:$4 sm:$0xff]  }
  0xac   : > { %2221 = vmatpush1.bf16.msra.mxu1 %v3305_v57  ;;  %v3396_v57 = vld [vmem:[%s4531_s2 + $0x770] ss:$8 sps:$4 sm:$0xff]  }
  0xad   : > { %2393 = vmatpush1.bf16.msra.mxu0 %v3308_v58  ;;  %2222 = vmatprep.subr.bf16.mxu1 %v3313_v59  ;;  %v3401_v58 = vld [vmem:[%s4531_s2 + $0x384] ss:$8 sps:$4 sm:$0xff]  }
  0xae   : > { %2394 = vmatprep.subr.bf16.mxu0 %v3316_v60  ;;  %v3404_v59 = vld [vmem:[%s4531_s2 + $0x784] ss:$8 sps:$4 sm:$0xff]   ;;  %v3399_v60 = vld [vmem:[%s4531_s2 + $0x380] ss:$8 sps:$4 sm:$0xff]  }
  0xb0   : > { %2223 = vmatpush1.bf16.msra.mxu1 %v3311_v61  ;;  %v3402_v61 = vld [vmem:[%s4531_s2 + $0x780] ss:$8 sps:$4 sm:$0xff]  }
  0xb1   : > { %2395 = vmatpush1.bf16.msra.mxu0 %v3314_v62  ;;  %2224 = vmatprep.subr.bf16.mxu1 %v3319_v63  ;;  %v3407_v62 = vld [vmem:[%s4531_s2 + $0x394] ss:$8 sps:$4 sm:$0xff]  }
  0xb2   : > { %2396 = vmatprep.subr.bf16.mxu0 %v3322_v0  ;;  %v3410_v63 = vld [vmem:[%s4531_s2 + $0x794] ss:$8 sps:$4 sm:$0xff]   ;;  %v3405_v0 = vld [vmem:[%s4531_s2 + $0x390] ss:$8 sps:$4 sm:$0xff]  }
  0xb4   : > { %2225 = vmatpush1.bf16.msra.mxu1 %v3317_v1  ;;  %v3408_v1 = vld [vmem:[%s4531_s2 + $0x790] ss:$8 sps:$4 sm:$0xff]  }
  0xb5   : > { %2397 = vmatpush1.bf16.msra.mxu0 %v3320_v2  ;;  %2226 = vmatprep.subr.bf16.mxu1 %v3325_v3  ;;  %v3413_v2 = vld [vmem:[%s4531_s2 + $0x3a4] ss:$8 sps:$4 sm:$0xff]  }
  0xb6   : > { %2398 = vmatprep.subr.bf16.mxu0 %v3328_v4  ;;  %v3416_v3 = vld [vmem:[%s4531_s2 + $0x7a4] ss:$8 sps:$4 sm:$0xff]   ;;  %v3411_v4 = vld [vmem:[%s4531_s2 + $0x3a0] ss:$8 sps:$4 sm:$0xff]  }
  0xb8   : > { %2227 = vmatpush1.bf16.msra.mxu1 %v3323_v5  ;;  %v3414_v5 = vld [vmem:[%s4531_s2 + $0x7a0] ss:$8 sps:$4 sm:$0xff]  }
  0xb9   : > { %2399 = vmatpush1.bf16.msra.mxu0 %v3326_v6  ;;  %2228 = vmatprep.subr.bf16.mxu1 %v3331_v7  ;;  %v3419_v6 = vld [vmem:[%s4531_s2 + $0x3b4] ss:$8 sps:$4 sm:$0xff]  }
  0xba   : > { %2400 = vmatprep.subr.bf16.mxu0 %v3334_v8  ;;  %v3422_v7 = vld [vmem:[%s4531_s2 + $0x7b4] ss:$8 sps:$4 sm:$0xff]   ;;  %v3417_v8 = vld [vmem:[%s4531_s2 + $0x3b0] ss:$8 sps:$4 sm:$0xff]  }
  0xbc   : > { %2229 = vmatpush1.bf16.msra.mxu1 %v3329_v9  ;;  %v3420_v9 = vld [vmem:[%s4531_s2 + $0x7b0] ss:$8 sps:$4 sm:$0xff]  }
  0xbd   : > { %2401 = vmatpush1.bf16.msra.mxu0 %v3332_v10  ;;  %2230 = vmatprep.subr.bf16.mxu1 %v3337_v11  ;;  %v3425_v10 = vld [vmem:[%s4531_s2 + $0x3c4] ss:$8 sps:$4 sm:$0xff]  }
  0xbe   : > { %2402 = vmatprep.subr.bf16.mxu0 %v3340_v12  ;;  %v3428_v11 = vld [vmem:[%s4531_s2 + $0x7c4] ss:$8 sps:$4 sm:$0xff]   ;;  %v3423_v12 = vld [vmem:[%s4531_s2 + $0x3c0] ss:$8 sps:$4 sm:$0xff]  }
  0xc0   : > { %2231 = vmatpush1.bf16.msra.mxu1 %v3335_v13  ;;  %v3426_v13 = vld [vmem:[%s4531_s2 + $0x7c0] ss:$8 sps:$4 sm:$0xff]  }
  0xc1   : > { %2403 = vmatpush1.bf16.msra.mxu0 %v3338_v14  ;;  %2232 = vmatprep.subr.bf16.mxu1 %v3343_v15  ;;  %v3431_v14 = vld [vmem:[%s4531_s2 + $0x3d4] ss:$8 sps:$4 sm:$0xff]  }
  0xc2   : > { %2404 = vmatprep.subr.bf16.mxu0 %v3346_v16  ;;  %v3434_v15 = vld [vmem:[%s4531_s2 + $0x7d4] ss:$8 sps:$4 sm:$0xff]   ;;  %v3429_v16 = vld [vmem:[%s4531_s2 + $0x3d0] ss:$8 sps:$4 sm:$0xff]  }
  0xc4   : > { %2233 = vmatpush1.bf16.msra.mxu1 %v3341_v17  ;;  %v3432_v17 = vld [vmem:[%s4531_s2 + $0x7d0] ss:$8 sps:$4 sm:$0xff]  }
  0xc5   : > { %2405 = vmatpush1.bf16.msra.mxu0 %v3344_v18  ;;  %2245 = vmatprep.subr.bf16.mxu1 %v3351_v19  ;;  %v3437_v18 = vld [vmem:[%s4531_s2 + $0x3e4] ss:$8 sps:$4 sm:$0xff]  }
  0xc6   : > { %2417 = vmatprep.subr.bf16.mxu0 %v3356_v20  ;;  %v3440_v19 = vld [vmem:[%s4531_s2 + $0x7e4] ss:$8 sps:$4 sm:$0xff]   ;;  %v3435_v20 = vld [vmem:[%s4531_s2 + $0x3e0] ss:$8 sps:$4 sm:$0xff]  }
  0xc7   : > { %2235 = vmatmul.mubr.bf16.vlgmr.msra.gmra.mrb[0].mxu1 %v2683_v24  ;;  %v3443_v24 = vld [vmem:[%s4531_s2 + $0x3f4] ss:$8 sps:$4 sm:$0xff]  }
  0xc8   : > { %2407 = vmatmul.mubr.bf16.vlgmr.msra.gmra.mrb[0].mxu0 %v2691_v27  ;;  %2246 = vmatpush1.bf16.msra.mxu1 %v3349_v23  ;;  %v3438_v23 = vld [vmem:[%s4531_s2 + $0x7e0] ss:$8 sps:$4 sm:$0xff]   ;;  %v3441_v27 = vld [vmem:[%s4531_s2 + $0x3f0] ss:$8 sps:$4 sm:$0xff]  }
  0xc9   : > { %2418 = vmatpush1.bf16.msra.mxu0 %v3354_v28  ;;  %2247 = vmatprep.subr.bf16.mxu1 %v3359_v30  ;;  %v3444_v28 = vld [vmem:[%s4531_s2 + $0x7f0] ss:$8 sps:$4 sm:$0xff]   ;;  %v3454_v30 = vld [vmem:[%s4531_s2 + $0x804] ss:$8 sps:$4 sm:$0xff]  }
  0xca   : > { %2419 = vmatprep.subr.bf16.mxu0 %v3362_v21  ;;  %2277 = vmatprep.mubr.bf16.mxu1 %v3449_v31  ;;  %v4408_v21 = vld [vmem:[%s3718_s29 + $0x40] sm:$0xff] }
  0xcb   : > { %2449 = vmatprep.mubr.bf16.mxu0 %v2694_v26  ;;  %v3447_v31 = vld [vmem:[%s3733_s14] ss:$24 sps:$4 sm:$0xff]  }
  0xcc   : > { %2248 = vmatpush1.bf16.msra.mxu1 %v3357_v48  ;;  %v3503_v26 = vld [vmem:[%s3718_s29 + $0x20] sm:$0xff] }
  0xcd   : > { %2420 = vmatpush1.bf16.msra.mxu0 %v3360_v32  ;;  %2249 = vmatprep.subr.bf16.mxu1 %v3365_v33  ;;  %v2693_v48 = vcombine.low %v3503_v26, %v4219_v29  ;;  %v3452_v32 = vld [vmem:[%s4531_s2 + $0x800] ss:$8 sps:$4 sm:$0xff]   ;;  %v2696_v33 = vcombine.high %v4025_v22, %v4408_v21  ;;  %v3455_v29 = vld [vmem:[%s4531_s2 + $0x810] ss:$8 sps:$4 sm:$0xff]  }
  0xce   : > { %2421 = vmatprep.subr.bf16.mxu0 %v3368_v35  ;;  %v3457_v35 = vld [vmem:[%s4531_s2 + $0x814] ss:$8 sps:$4 sm:$0xff]  }
  0xd0   : > { %2250 = vmatpush1.bf16.msra.mxu1 %v3363_v34  ;;  %v3460_v34 = vld [vmem:[%s4531_s2 + $0x824] ss:$8 sps:$4 sm:$0xff]  }
  0xd1   : > { %2422 = vmatpush1.bf16.msra.mxu0 %v3366_v36  ;;  %2251 = vmatprep.subr.bf16.mxu1 %v3371_v37  ;;  %v3458_v36 = vld [vmem:[%s4531_s2 + $0x820] ss:$8 sps:$4 sm:$0xff]   ;;  %v3463_v37 = vld [vmem:[%s4531_s2 + $0x834] ss:$8 sps:$4 sm:$0xff]  }
  0xd2   : > { %2423 = vmatprep.subr.bf16.mxu0 %v3374_v38  ;;  %v3461_v38 = vld [vmem:[%s4531_s2 + $0x830] ss:$8 sps:$4 sm:$0xff]  }
  0xd4   : > { %2252 = vmatpush1.bf16.msra.mxu1 %v3369_v39  ;;  %v3466_v39 = vld [vmem:[%s4531_s2 + $0x844] ss:$8 sps:$4 sm:$0xff]  }
  0xd5   : > { %2424 = vmatpush1.bf16.msra.mxu0 %v3372_v40  ;;  %2253 = vmatprep.subr.bf16.mxu1 %v3377_v41  ;;  %v3464_v40 = vld [vmem:[%s4531_s2 + $0x840] ss:$8 sps:$4 sm:$0xff]   ;;  %v3469_v41 = vld [vmem:[%s4531_s2 + $0x854] ss:$8 sps:$4 sm:$0xff]  }
  0xd6   : > { %2425 = vmatprep.subr.bf16.mxu0 %v3380_v42  ;;  %v3467_v42 = vld [vmem:[%s4531_s2 + $0x850] ss:$8 sps:$4 sm:$0xff]  }
  0xd8   : > { %2254 = vmatpush1.bf16.msra.mxu1 %v3375_v43  ;;  %v3472_v43 = vld [vmem:[%s4531_s2 + $0x864] ss:$8 sps:$4 sm:$0xff]  }
  0xd9   : > { %2426 = vmatpush1.bf16.msra.mxu0 %v3378_v44  ;;  %2255 = vmatprep.subr.bf16.mxu1 %v3383_v45  ;;  %v3470_v44 = vld [vmem:[%s4531_s2 + $0x860] ss:$8 sps:$4 sm:$0xff]   ;;  %v3475_v45 = vld [vmem:[%s4531_s2 + $0x874] ss:$8 sps:$4 sm:$0xff]  }
  0xda   : > { %2427 = vmatprep.subr.bf16.mxu0 %v3386_v46  ;;  %v3473_v46 = vld [vmem:[%s4531_s2 + $0x870] ss:$8 sps:$4 sm:$0xff]  }
  0xdc   : > { %2256 = vmatpush1.bf16.msra.mxu1 %v3381_v47  ;;  %v3478_v47 = vld [vmem:[%s4531_s2 + $0x884] ss:$8 sps:$4 sm:$0xff]  }
  0xdd   : > { %2428 = vmatpush1.bf16.msra.mxu0 %v3384_v49  ;;  %2257 = vmatprep.subr.bf16.mxu1 %v3389_v50  ;;  %v3476_v49 = vld [vmem:[%s4531_s2 + $0x880] ss:$8 sps:$4 sm:$0xff]   ;;  %v3481_v50 = vld [vmem:[%s4531_s2 + $0x894] ss:$8 sps:$4 sm:$0xff]  }
  0xde   : > { %2429 = vmatprep.subr.bf16.mxu0 %v3392_v51  ;;  %v3479_v51 = vld [vmem:[%s4531_s2 + $0x890] ss:$8 sps:$4 sm:$0xff]  }
  0xe0   : > { %2258 = vmatpush1.bf16.msra.mxu1 %v3387_v52  ;;  %v3484_v52 = vld [vmem:[%s4531_s2 + $0x8a4] ss:$8 sps:$4 sm:$0xff]  }
  0xe1   : > { %2430 = vmatpush1.bf16.msra.mxu0 %v3390_v53  ;;  %2259 = vmatprep.subr.bf16.mxu1 %v3395_v54  ;;  %v3482_v53 = vld [vmem:[%s4531_s2 + $0x8a0] ss:$8 sps:$4 sm:$0xff]   ;;  %v3487_v54 = vld [vmem:[%s4531_s2 + $0x8b4] ss:$8 sps:$4 sm:$0xff]  }
  0xe2   : > { %2431 = vmatprep.subr.bf16.mxu0 %v3398_v55  ;;  %v3485_v55 = vld [vmem:[%s4531_s2 + $0x8b0] ss:$8 sps:$4 sm:$0xff]  }
  0xe4   : > { %2260 = vmatpush1.bf16.msra.mxu1 %v3393_v56  ;;  %v3490_v56 = vld [vmem:[%s4531_s2 + $0x8c4] ss:$8 sps:$4 sm:$0xff]  }
  0xe5   : > { %2432 = vmatpush1.bf16.msra.mxu0 %v3396_v57  ;;  %2261 = vmatprep.subr.bf16.mxu1 %v3401_v58  ;;  %v3488_v57 = vld [vmem:[%s4531_s2 + $0x8c0] ss:$8 sps:$4 sm:$0xff]   ;;  %v3493_v58 = vld [vmem:[%s4531_s2 + $0x8d4] ss:$8 sps:$4 sm:$0xff]  }
  0xe6   : > { %2433 = vmatprep.subr.bf16.mxu0 %v3404_v59  ;;  %v3491_v59 = vld [vmem:[%s4531_s2 + $0x8d0] ss:$8 sps:$4 sm:$0xff]  }
  0xe8   : > { %2262 = vmatpush1.bf16.msra.mxu1 %v3399_v60  ;;  %v3496_v60 = vld [vmem:[%s4531_s2 + $0x8e4] ss:$8 sps:$4 sm:$0xff]  }
  0xe9   : > { %2434 = vmatpush1.bf16.msra.mxu0 %v3402_v61  ;;  %2263 = vmatprep.subr.bf16.mxu1 %v3407_v62  ;;  %v3494_v61 = vld [vmem:[%s4531_s2 + $0x8e0] ss:$8 sps:$4 sm:$0xff]   ;;  %v3499_v62 = vld [vmem:[%s4531_s2 + $0x8f4] ss:$8 sps:$4 sm:$0xff]  }
  0xea   : > { %2435 = vmatprep.subr.bf16.mxu0 %v3410_v63  ;;  %v3497_v63 = vld [vmem:[%s4531_s2 + $0x8f0] ss:$8 sps:$4 sm:$0xff]  }
  0xec   : > { %2264 = vmatpush1.bf16.msra.mxu1 %v3405_v0  ;;  %v2695_v0 = vcombine.low %v4025_v22, %v4408_v21 }
  0xed   : > { %2436 = vmatpush1.bf16.msra.mxu0 %v3408_v1  ;;  %2265 = vmatprep.subr.bf16.mxu1 %v3413_v2 }
  0xee   : > { %2437 = vmatprep.subr.bf16.mxu0 %v3416_v3 }
  0xf0   : > { %2266 = vmatpush1.bf16.msra.mxu1 %v3411_v4 }
  0xf1   : > { %2438 = vmatpush1.bf16.msra.mxu0 %v3414_v5  ;;  %2267 = vmatprep.subr.bf16.mxu1 %v3419_v6  ;;  %v2505_v5 = vlaneseq }
  0xf2   : > { %2439 = vmatprep.subr.bf16.mxu0 %v3422_v7 }
  0xf3   : > { %v2506_v6 = vshrl.u32 %v2505_v5, 7 }
  0xf4   : > { %2268 = vmatpush1.bf16.msra.mxu1 %v3417_v8  ;;  %v2503_v8 = vld [vmem:[%s4532_s3] sm:$0x3] }
  0xf5   : > { %2440 = vmatpush1.bf16.msra.mxu0 %v3420_v9  ;;  %2269 = vmatprep.subr.bf16.mxu1 %v3425_v10  ;;  %v2507_v7 = vsub.s32 0, %v2506_v6  ;;  %v2511_v9 = vsub.s32 1, %v2506_v6  ;;  %v2519_v10 = vld [vmem:[%s4533_s4] sm:$0x3] }
  0xf6   : > { %2441 = vmatprep.subr.bf16.mxu0 %v3428_v11 }
  0xf7   : > { %v2508_v11 = vrot.slane %v2503_v8, %v2507_v7 }
  0xf8   : > { %2270 = vmatpush1.bf16.msra.mxu1 %v3423_v12  ;;  %v2512_v12 = vrot.slane %v2503_v8, %v2511_v9 }
  0xf9   : > { %2442 = vmatpush1.bf16.msra.mxu0 %v3426_v13  ;;  %2271 = vmatprep.subr.bf16.mxu1 %v3431_v14  ;;  %v2524_v14 = vrot.slane %v2519_v10, %v2507_v7 }
  0xfa   : > { %2443 = vmatprep.subr.bf16.mxu0 %v3434_v15 }
  0xfc   : > { %2272 = vmatpush1.bf16.msra.mxu1 %v3429_v16 }
  0xfd   : > { %2444 = vmatpush1.bf16.msra.mxu0 %v3432_v17  ;;  %2273 = vmatprep.subr.bf16.mxu1 %v3437_v18  ;;  %v2528_v17 = vrot.slane %v2519_v10, %v2511_v9 }
  0xfe   : > { %2445 = vmatprep.subr.bf16.mxu0 %v3440_v19 }
 0x100   : > { %2274 = vmatpush1.bf16.msra.mxu1 %v3435_v20 }
 0x101   : > { %2446 = vmatpush1.bf16.msra.mxu0 %v3438_v23  ;;  %2275 = vmatprep.subr.bf16.mxu1 %v3443_v24 }
 0x102   : > { %2447 = vmatprep.subr.bf16.mxu0 %v3446_v25 }
 0x104   : > { %2276 = vmatpush1.bf16.msra.mxu1 %v3441_v27 }
 0x105   : > { %2448 = vmatpush1.bf16.msra.mxu0 %v3444_v28 }
 0x106   : > { %2460 = vmatprep.subr.bf16.mxu0 %v3454_v30 }
 0x107   : > { %2278 = vmatmul.mubr.bf16.vlgmr.msra.gmra.mrb[0].mxu1 %v3447_v31 }
 0x108   : > { %2450 = vmatmul.mubr.bf16.vlgmr.msra.gmra.mrb[0].mxu0 %v2693_v48 }
 0x109   : > { %2461 = vmatpush1.bf16.msra.mxu0 %v3452_v32  ;;  %2492 = vmatprep.mubr.bf16.mxu0 %v2696_v33 }
 0x10a   : > { %2462 = vmatprep.subr.bf16.mxu0 %v3457_v35 }
 0x10d   : > { %2463 = vmatpush1.bf16.msra.mxu0 %v3455_v29 }
 0x10e   : > { %2464 = vmatprep.subr.bf16.mxu0 %v3460_v34 }
 0x111   : > { %2465 = vmatpush1.bf16.msra.mxu0 %v3458_v36 }
 0x112   : > { %2466 = vmatprep.subr.bf16.mxu0 %v3463_v37 }
 0x115   : > { %2467 = vmatpush1.bf16.msra.mxu0 %v3461_v38 }
 0x116   : > { %2468 = vmatprep.subr.bf16.mxu0 %v3466_v39 }
 0x119   : > { %2469 = vmatpush1.bf16.msra.mxu0 %v3464_v40 }
 0x11a   : > { %2470 = vmatprep.subr.bf16.mxu0 %v3469_v41 }
 0x11d   : > { %2471 = vmatpush1.bf16.msra.mxu0 %v3467_v42 }
 0x11e   : > { %2472 = vmatprep.subr.bf16.mxu0 %v3472_v43 }
 0x121   : > { %2473 = vmatpush1.bf16.msra.mxu0 %v3470_v44 }
 0x122   : > { %2474 = vmatprep.subr.bf16.mxu0 %v3475_v45 }
 0x125   : > { %2475 = vmatpush1.bf16.msra.mxu0 %v3473_v46 }
 0x126   : > { %2476 = vmatprep.subr.bf16.mxu0 %v3478_v47 }
 0x129   : > { %2477 = vmatpush1.bf16.msra.mxu0 %v3476_v49 }
 0x12a   : > { %2478 = vmatprep.subr.bf16.mxu0 %v3481_v50 }
 0x12d   : > { %2479 = vmatpush1.bf16.msra.mxu0 %v3479_v51 }
 0x12e   : > { %2480 = vmatprep.subr.bf16.mxu0 %v3484_v52 }
 0x131   : > { %2481 = vmatpush1.bf16.msra.mxu0 %v3482_v53 }
 0x132   : > { %2482 = vmatprep.subr.bf16.mxu0 %v3487_v54 }
 0x135   : > { %2483 = vmatpush1.bf16.msra.mxu0 %v3485_v55 }
 0x136   : > { %2484 = vmatprep.subr.bf16.mxu0 %v3490_v56 }
 0x139   : > { %2485 = vmatpush1.bf16.msra.mxu0 %v3488_v57 }
 0x13a   : > { %2486 = vmatprep.subr.bf16.mxu0 %v3493_v58 }
 0x13d   : > { %2487 = vmatpush1.bf16.msra.mxu0 %v3491_v59 }
 0x13e   : > { %2488 = vmatprep.subr.bf16.mxu0 %v3496_v60 }
 0x141   : > { %2489 = vmatpush1.bf16.msra.mxu0 %v3494_v61 }
 0x142   : > { %2490 = vmatprep.subr.bf16.mxu0 %v3499_v62 }
 0x145   : > { %2491 = vmatpush1.bf16.msra.mxu0 %v3497_v63 }
 0x148   : > { %2493 = vmatmul.mubr.bf16.vlgmr.msra.gmra.mrb[0].mxu0 %v2695_v0 }
 0x1da   : > { %v2279_v1 = vpop.f32.mrb[0].mxu1 }
 0x1db   : > { %v2281_v2 = vpop.f32.mrb[1].mxu1 }
 0x1dc   : > { %v2283_v3 = vpop.f32.mrb[2].mxu1 }
 0x1dd   : > { %v2285_v4 = vpop.f32.mrb[3].mxu1 }
 0x21b   : > { %v2494_v22 = vpop.f32.mrb[0].mxu0 }
 0x21c   : > { %v2992_v13 = vadd.f32 %v2494_v22, %v2279_v1  ;;  %v2496_v15 = vpop.f32.mrb[1].mxu0 }
 0x21d   : > { %v2993_v16 = vadd.f32 %v2496_v15, %v2281_v2  ;;  %v2498_v18 = vpop.f32.mrb[2].mxu0 }
 0x21e   : > { %v2515_v19 = vmul.f32 %v2992_v13, %v2508_v11  ;;  %v2994_v20 = vadd.f32 %v2498_v18, %v2283_v3  ;;  %v2500_v23 = vpop.f32.mrb[3].mxu0 }
 0x21f   : > { %v2516_v24 = vmul.f32 %v2993_v16, %v2512_v12  ;;  %v2995_v25 = vadd.f32 %v2500_v23, %v2285_v4 }
 0x220   : > { %v2531_v27 = vadd.f32 %v2524_v14, %v2515_v19  ;;  %v2517_v28 = vmul.f32 %v2994_v20, %v2508_v11 }
 0x221   : > { %v2532_v30 = vadd.f32 %v2528_v17, %v2516_v24  ;;  %v2518_v21 = vmul.f32 %v2995_v25, %v2512_v12 }
 0x222   : > { %v2535_v31 = vmax.f32 %v2531_v27, 0.0  ;;  %v2533_v26 = vadd.f32 %v2524_v14, %v2517_v28 }
 0x223   : > { %v2536_v48 = vmax.f32 %v2532_v30, 0.0  ;;  %v2534_v32 = vadd.f32 %v2528_v17, %v2518_v21 }
 0x224   : > { %v2537_v33 = vmax.f32 %v2533_v26, 0.0 }
 0x225   : > { %v2990_v35 = vpack.c.bf16 %v2536_v48, %v2535_v31  ;;  %v2538_v29 = vmax.f32 %v2534_v32, 0.0 }
 0x227   : > { %2555 = vst [vmem:[%s268_s24] sm:$0xff] %v2990_v35  ;;  %v2991_v34 = vpack.c.bf16 %v2538_v29, %v2537_v33 }
 0x229   : > { %2556 = vst [vmem:[%s268_s24 + $0x8] sm:$0xff] %v2991_v34 }
 0x22a PF: > { %s15_s20 = sadd.s32 1, %s3526_s20   ;;  %s4535_s18 = smov %s3522_s19 }
 0x22b   : > { %p12_p5 = scmp.ge.s32.totalorder %s15_s20, 4   ;;  %s4536_s19 = smov %s4538_s21 }
 0x22d   :  { %14 = sbr.rel (!%p12_p5) target bundleno = 2 (0x2), region = 76 }

</bundles_post_ra>
